<compile_context>
chip_gen: v5e
topology: v5e:2x2
jax: 0.10.0
libtpu: 0.0.40
codegen_flags: <defaults>
</compile_context>

<pallas_src>
import math

import jax
import jax.numpy as jnp
from jax.experimental import pallas as pl
from jax.experimental.pallas import tpu as pltpu

# ----------------------------- configuration --------------------------------
B = 2                                   # batch
L = 16                                  # sequence length
D = 32                                  # hidden_size
MEL = 11                                # mel_filter_size
D_IN = D * (((MEL - 1) // 2 - 1) // 2)  # = 64, input feature dim of the Linear
NL = 2                                  # num_hidden_layers
H = 4                                   # attention heads
DH = D // H                             # head dim = 8
FF = 4 * D                              # FFN intermediate = 128
K = 7                                   # depthwise conv kernel size (odd)
PAD = (K - 1) // 2
EPS = 1e-5                              # LayerNorm / BatchNorm eps (torch default)

# Raw per-layer parameters (each stacked with a leading NL dimension).
LAYER_PARAM_SPECS = [
    ("ffn1_ln_g", (D,)), ("ffn1_ln_b", (D,)),
    ("ffn1_w1", (D, FF)), ("ffn1_b1", (FF,)),
    ("ffn1_w2", (FF, D)), ("ffn1_b2", (D,)),
    ("attn_ln_g", (D,)), ("attn_ln_b", (D,)),
    ("wq", (D, D)), ("bq", (D,)),
    ("wk", (D, D)), ("bk", (D,)),
    ("wv", (D, D)), ("bv", (D,)),
    ("wo", (D, D)), ("bo", (D,)),
    ("w_pos", (D, D)),
    ("pos_u", (H, DH)), ("pos_v", (H, DH)),
    ("conv_ln_g", (D,)), ("conv_ln_b", (D,)),
    ("pw1_w", (D, 2 * D)), ("pw1_b", (2 * D,)),
    ("dw_w", (K, D)), ("dw_b", (D,)),
    ("bn_g", (D,)), ("bn_b", (D,)), ("bn_m", (D,)), ("bn_v", (D,)),
    ("pw2_w", (D, D)), ("pw2_b", (D,)),
    ("ffn2_ln_g", (D,)), ("ffn2_ln_b", (D,)),
    ("ffn2_w1", (D, FF)), ("ffn2_b1", (FF,)),
    ("ffn2_w2", (FF, D)), ("ffn2_b2", (D,)),
    ("final_ln_g", (D,)), ("final_ln_b", (D,)),
]

# Packed "vector slab" layout: one 128-lane row per small vector; the slab has
# NL * NV rows.  (name, valid width)
VEC_FIELDS = (
    [("ffn1_ln_g", D), ("ffn1_ln_b", D), ("ffn1_b1", FF), ("ffn1_b2", D),
     ("attn_ln_g", D), ("attn_ln_b", D), ("b_qkv", 3 * D), ("bo", D),
     ("pos_u", D), ("pos_v", D),
     ("conv_ln_g", D), ("conv_ln_b", D), ("pw1_b", 2 * D), ("dw_b", D),
     ("bn_g", D), ("bn_b", D), ("bn_m", D), ("bn_v", D), ("pw2_b", D),
     ("ffn2_ln_g", D), ("ffn2_ln_b", D), ("ffn2_b1", FF), ("ffn2_b2", D),
     ("final_ln_g", D), ("final_ln_b", D)]
    + [("dw_w%d" % m, D) for m in range(K)]
)
VEC_IDX = {name: (i, w) for i, (name, w) in enumerate(VEC_FIELDS)}
NV = len(VEC_FIELDS)          # 32 rows per layer
VEC_LANES = 128


# ------------------------------ kernel helpers -------------------------------
def _layer_norm(x, g, b):
    mu = jnp.mean(x, axis=-1, keepdims=True)
    var = jnp.mean(jnp.square(x - mu), axis=-1, keepdims=True)
    return (x - mu) * jax.lax.rsqrt(var + EPS) * g + b


def _sigmoid(x):
    # approx reciprocal runs on the EUP slot (idle next to the VPU-heavy code).
    return pl.reciprocal(1.0 + jnp.exp(-x), approx=True)


def _silu(x):
    return x * _sigmoid(x)


# -------------------------------- the kernel ---------------------------------
def conformer_encoder_kernel(x_ref, w_in_ref, b_in_ref, pe_g_ref, vec_ref,
                             wqkv_ref, wpos_ref, pw1_ref, sq_ref,
                             ffw1_ref, ffw2_ref, out_ref):
    # --- input Linear (dropout is identity at inference) ---
    x = x_ref[0]                                                        # (L, D_IN)
    h = jnp.dot(x, w_in_ref[...], preferred_element_type=jnp.float32) + b_in_ref[...]

    inv_sqrt_dh = 1.0 / math.sqrt(DH)

    for l in range(NL):
        base = l * NV

        def vld(name):
            # load a packed parameter row at point of use -> (1, width)
            idx, w = VEC_IDX[name]
            return vec_ref[base + idx: base + idx + 1, 0:w]

        def ffn(x_in, tag, widx):
            y = _layer_norm(x_in, vld(tag + "_ln_g"), vld(tag + "_ln_b"))
            y = jnp.dot(y, ffw1_ref[widx], preferred_element_type=jnp.float32) + vld(tag + "_b1")
            y = _silu(y)
            return jnp.dot(y, ffw2_ref[widx], preferred_element_type=jnp.float32) + vld(tag + "_b2")

        # ---- Macaron FFN 1 (half-step residual) ----
        h = h + 0.5 * ffn(h, "ffn1", 2 * l)

        # ---- relative-position multi-head self-attention ----
        res = h
        y = _layer_norm(h, vld("attn_ln_g"), vld("attn_ln_b"))
        qkv = jnp.dot(y, wqkv_ref[l], preferred_element_type=jnp.float32) + vld("b_qkv")
        q = qkv[:, 0:D]
        k = qkv[:, D:2 * D]
        v = qkv[:, 2 * D:3 * D]
        q_u = q + vld("pos_u")                                          # content bias
        q_v = q + vld("pos_v")                                          # position bias
        # Block-diagonal repacked w_pos: one matmul produces, for every head h,
        # t_h = (q + v_h) @ w_pos[:, head_h]^T in columns [h*D, (h+1)*D).
        t_all = jnp.dot(q_v, wpos_ref[l], preferred_element_type=jnp.float32)  # (L, H*D)
        pe_g = pe_g_ref[...]                                            # (L, L, D), pe[L-1-i+j]

        ctxs = []
        for hd in range(H):
            sl = slice(hd * DH, (hd + 1) * DH)
            # content term: (q + u) @ k^T   (MXU)
            ac = jax.lax.dot_general(q_u[:, sl], k[:, sl], (((1,), (1,)), ((), ())),
                                     preferred_element_type=jnp.float32)        # (L, L)
            # position term: <t_h[i], pe[L-1-i+j]>  (VPU/XLU, no relative shift needed)
            t_h = t_all[:, hd * D:(hd + 1) * D]                                  # (L, D)
            bd = jnp.sum(t_h[:, None, :] * pe_g, axis=-1)                        # (L, L)
            s = (ac + bd) * inv_sqrt_dh
            s = s - jnp.max(s, axis=-1, keepdims=True)
            e = jnp.exp(s)
            probs = e * pl.reciprocal(jnp.sum(e, axis=-1, keepdims=True), approx=True)
            ctxs.append(jnp.dot(probs, v[:, sl], preferred_element_type=jnp.float32))
        ctx = jnp.concatenate(ctxs, axis=-1)                                     # (L, D)
        h = res + jnp.dot(ctx, sq_ref[2 * l], preferred_element_type=jnp.float32) + vld("bo")

        # ---- convolution module ----
        res = h
        y = _layer_norm(h, vld("conv_ln_g"), vld("conv_ln_b"))
        y = jnp.dot(y, pw1_ref[l], preferred_element_type=jnp.float32) + vld("pw1_b")  # (L, 2D)
        y = y[:, 0:D] * _sigmoid(y[:, D:2 * D])                                   # GLU
        # depthwise conv (kernel K, 'same' zero padding): padded buffer + static
        # time shifts + VPU multiply-accumulate (no MXU matmuls).
        zpad = jnp.zeros((PAD, D), jnp.float32)
        ypad = jnp.concatenate([zpad, y, zpad], axis=0)                            # (L+2*PAD, D)
        acc = jnp.zeros((L, D), jnp.float32)
        for m in range(K):
            acc = acc + ypad[m:m + L, :] * vld("dw_w%d" % m)
        y = acc + vld("dw_b")
        # BatchNorm1d (eval mode, running stats)
        y = (y - vld("bn_m")) * jax.lax.rsqrt(vld("bn_v") + EPS)
        y = y * vld("bn_g") + vld("bn_b")
        y = _silu(y)
        y = jnp.dot(y, sq_ref[2 * l + 1], preferred_element_type=jnp.float32) + vld("pw2_b")
        h = res + y

        # ---- Macaron FFN 2 (half-step residual) + final LayerNorm ----
        h = h + 0.5 * ffn(h, "ffn2", 2 * l + 1)
        h = _layer_norm(h, vld("final_ln_g"), vld("final_ln_b"))

    out_ref[0] = h.astype(out_ref.dtype)


# ------------------------------ host-side glue --------------------------------
def make_rel_pos_encoding(seq_len, d_model):
    # ESPnet/Transformer-XL convention: index r <-> relative position (L-1)-r
    pos = jnp.arange(seq_len - 1, -seq_len, -1, dtype=jnp.float32)          # (2L-1,)
    div = jnp.exp(jnp.arange(0, d_model, 2, dtype=jnp.float32)
                  * (-math.log(10000.0) / d_model))
    ang = pos[:, None] * div[None, :]
    pe = jnp.zeros((2 * seq_len - 1, d_model), jnp.float32)
    pe = pe.at[:, 0::2].set(jnp.sin(ang))
    pe = pe.at[:, 1::2].set(jnp.cos(ang))
    return pe


def init_params(key):
    params = {}
    keys = iter(jax.random.split(key, 4 + len(LAYER_PARAM_SPECS)))

    def nrm(shape, scale=0.02):
        return scale * jax.random.normal(next(keys), shape, dtype=jnp.float32)

    params["w_in"] = nrm((D_IN, D))
    params["b_in"] = nrm((1, D))
    for name, shape in LAYER_PARAM_SPECS:
        full = (NL,) + shape
        if name.endswith("ln_g") or name in ("bn_g", "bn_v"):
            params[name] = jnp.ones(full, jnp.float32)       # torch default init
        elif name.endswith("ln_b") or name in ("bn_b", "bn_m"):
            params[name] = jnp.zeros(full, jnp.float32)      # torch default init
        else:
            params[name] = nrm(full)
    return params


def pack_params(params):
    """Host-side repacking of the raw parameters into a handful of slabs."""
    packed = {}

    # (1) all small per-layer vectors -> one (NL*NV, 128) slab (one DMA).
    rows = []
    for l in range(NL):
        for name, _w in VEC_FIELDS:
            if name == "b_qkv":
                val = jnp.concatenate([params["bq"][l], params["bk"][l], params["bv"][l]])
            elif name in ("pos_u", "pos_v"):
                val = params[name][l].reshape(-1)            # (H, DH) -> head-major (D,)
            elif name.startswith("dw_w"):
                val = params["dw_w"][l, int(name[4:])]
            else:
                val = params[name][l]
            rows.append(jnp.pad(val, (0, VEC_LANES - val.shape[0])))
    packed["vec"] = jnp.stack(rows)                          # (NL*NV, 128)

    # (2) fused QKV projection weights.
    packed["wqkv"] = jnp.concatenate([params["wq"], params["wk"], params["wv"]], axis=-1)

    # (3) block-diagonal repack of w_pos: columns [h*D,(h+1)*D) hold
    #     w_pos[:, h*DH:(h+1)*DH]^T so all per-head position transforms become
    #     a single (L, D) @ (D, H*D) matmul inside the kernel.
    wp = params["w_pos"]                                     # (NL, D, D)
    blk = jnp.zeros((NL, D, H * D), jnp.float32)
    for hd in range(H):
        sub = jnp.transpose(wp[:, :, hd * DH:(hd + 1) * DH], (0, 2, 1))   # (NL, DH, D)
        blk = blk.at[:, hd * DH:(hd + 1) * DH, hd * D:(hd + 1) * D].set(sub)
    packed["wpos_blk"] = blk

    packed["pw1"] = params["pw1_w"]                                           # (NL, D, 2D)
    packed["sq"] = jnp.stack([params["wo"], params["pw2_w"]],
                             axis=1).reshape(NL * 2, D, D)                    # [wo, pw2] per layer
    packed["ffw1"] = jnp.stack([params["ffn1_w1"], params["ffn2_w1"]],
                               axis=1).reshape(NL * 2, D, FF)
    packed["ffw2"] = jnp.stack([params["ffn1_w2"], params["ffn2_w2"]],
                               axis=1).reshape(NL * 2, FF, D)

    # (4) relative positional encodings, pre-gathered so no in-kernel rel-shift:
    #     pe_g[i, j, :] = pe[(L-1) - i + j]  (relative position i - j).
    pe = make_rel_pos_encoding(L, D)
    ii = jnp.arange(L)[:, None]
    jj = jnp.arange(L)[None, :]
    packed["pe_g"] = pe[(L - 1) - ii + jj]                   # (L, L, D)
    return packed


def _full_spec(a):
    zeros = (0,) * a.ndim
    return pl.BlockSpec(a.shape, lambda b, _z=zeros: _z)


def conformer_encoder(hidden_states, params):
    """hidden_states: (B, L, D_IN) float32 -> (B, L, D) float32."""
    packed = pack_params(params)
    inputs = [hidden_states, params["w_in"], params["b_in"], packed["pe_g"],
              packed["vec"], packed["wqkv"], packed["wpos_blk"], packed["pw1"],
              packed["sq"], packed["ffw1"], packed["ffw2"]]

    in_specs = [pl.BlockSpec((1, L, D_IN), lambda b: (b, 0, 0))]
    in_specs += [_full_spec(a) for a in inputs[1:]]
    out_spec = pl.BlockSpec((1, L, D), lambda b: (b, 0, 0))

    return pl.pallas_call(
        conformer_encoder_kernel,
        out_shape=jax.ShapeDtypeStruct((B, L, D), jnp.float32),
        grid_spec=pltpu.PrefetchScalarGridSpec(
            num_scalar_prefetch=0,
            grid=(B,),
            in_specs=in_specs,
            out_specs=out_spec,
        ),
        # batch elements are independent -> shard across TensorCores on v7x.
        compiler_params=pltpu.CompilerParams(dimension_semantics=("parallel",)),
    )(*inputs)


# ---------------------------------- main --------------------------------------
if __name__ == "__main__":
    key = jax.random.PRNGKey(0)
    kx, kp = jax.random.split(key)
    x = jax.random.normal(kx, (B, L, D_IN), dtype=jnp.float32)
    params = init_params(kp)

    out = jax.block_until_ready(conformer_encoder(x, params))

    assert out.shape == (B, L, D), out.shape
    assert bool(jnp.all(jnp.isfinite(out)))
    print("KERNEL_OK")
</pallas_src>

<mosaic_0001>
module attributes {stable_mosaic.version = 11 : i64} {
  func.func @conformer_encoder_kernel(%arg0: i32, %arg1: memref<1x16x64xf32, #tpu.memory_space<vmem>>, %arg2: memref<64x32xf32, #tpu.memory_space<vmem>>, %arg3: memref<1x32xf32, #tpu.memory_space<vmem>>, %arg4: memref<16x16x32xf32, #tpu.memory_space<vmem>>, %arg5: memref<64x128xf32, #tpu.memory_space<vmem>>, %arg6: memref<2x32x96xf32, #tpu.memory_space<vmem>>, %arg7: memref<2x32x128xf32, #tpu.memory_space<vmem>>, %arg8: memref<2x32x64xf32, #tpu.memory_space<vmem>>, %arg9: memref<4x32x32xf32, #tpu.memory_space<vmem>>, %arg10: memref<4x32x128xf32, #tpu.memory_space<vmem>>, %arg11: memref<4x128x32xf32, #tpu.memory_space<vmem>>, %arg12: memref<1x16x32xf32, #tpu.memory_space<vmem>>) attributes {dimension_semantics = [#tpu.dimension_semantics<parallel>], iteration_bounds = array<i64: 2>, scalar_prefetch = 0 : i64, scratch_operands = 0 : i64, tpu.core_type = #tpu.core_type<tc>, window_params = [{transform_indices = @transform_0, window_bounds = array<i64: 1, 16, 64>}, {pipeline_mode = #tpu.pipeline_mode<synchronous>, transform_indices = @transform_1, window_bounds = array<i64: 64, 32>}, {pipeline_mode = #tpu.pipeline_mode<synchronous>, transform_indices = @transform_2, window_bounds = array<i64: 1, 32>}, {pipeline_mode = #tpu.pipeline_mode<synchronous>, transform_indices = @transform_3, window_bounds = array<i64: 16, 16, 32>}, {pipeline_mode = #tpu.pipeline_mode<synchronous>, transform_indices = @transform_4, window_bounds = array<i64: 64, 128>}, {pipeline_mode = #tpu.pipeline_mode<synchronous>, transform_indices = @transform_5, window_bounds = array<i64: 2, 32, 96>}, {pipeline_mode = #tpu.pipeline_mode<synchronous>, transform_indices = @transform_6, window_bounds = array<i64: 2, 32, 128>}, {pipeline_mode = #tpu.pipeline_mode<synchronous>, transform_indices = @transform_7, window_bounds = array<i64: 2, 32, 64>}, {pipeline_mode = #tpu.pipeline_mode<synchronous>, transform_indices = @transform_8, window_bounds = array<i64: 4, 32, 32>}, {pipeline_mode = #tpu.pipeline_mode<synchronous>, transform_indices = @transform_9, window_bounds = array<i64: 4, 32, 128>}, {pipeline_mode = #tpu.pipeline_mode<synchronous>, transform_indices = @transform_10, window_bounds = array<i64: 4, 128, 32>}, {transform_indices = @transform_11, window_bounds = array<i64: 1, 16, 32>}]} {
    %c0 = arith.constant 0 : index
    %c0_0 = arith.constant 0 : index
    %c0_1 = arith.constant 0 : index
    %0 = vector.load %arg1[%c0, %c0_0, %c0_1] : memref<1x16x64xf32, #tpu.memory_space<vmem>>, vector<1x16x64xf32>
    %1 = vector.shape_cast %0 : vector<1x16x64xf32> to vector<16x64xf32>
    %c0_2 = arith.constant 0 : index
    %c0_3 = arith.constant 0 : index
    %2 = vector.load %arg2[%c0_2, %c0_3] : memref<64x32xf32, #tpu.memory_space<vmem>>, vector<64x32xf32>
    %cst = arith.constant dense<0.000000e+00> : vector<16x32xf32>
    %3 = tpu.matmul %1, %2, %cst {dimension_numbers = #tpu.dot_dimension_numbers<[1], [0], [0], [1], [0, 0, 1, 1], [], []>} : vector<16x64xf32>, vector<64x32xf32>, vector<16x32xf32> -> vector<16x32xf32>
    %c0_4 = arith.constant 0 : index
    %c0_5 = arith.constant 0 : index
    %4 = vector.load %arg3[%c0_4, %c0_5] : memref<1x32xf32, #tpu.memory_space<vmem>>, vector<1x32xf32>
    %5 = vector.broadcast %4 : vector<1x32xf32> to vector<16x32xf32>
    %6 = arith.addf %3, %5 : vector<16x32xf32>
    %c0_6 = arith.constant 0 : index
    %c0_7 = arith.constant 0 : index
    %7 = vector.load %arg5[%c0_6, %c0_7] : memref<64x128xf32, #tpu.memory_space<vmem>>, vector<1x32xf32>
    %c1 = arith.constant 1 : index
    %c0_8 = arith.constant 0 : index
    %8 = vector.load %arg5[%c1, %c0_8] : memref<64x128xf32, #tpu.memory_space<vmem>>, vector<1x32xf32>
    %cst_9 = arith.constant dense<0.000000e+00> : vector<16xf32>
    %9 = vector.multi_reduction <add>, %6, %cst_9 [1] : vector<16x32xf32> to vector<16xf32>
    %10 = vector.shape_cast %9 : vector<16xf32> to vector<16x1xf32>
    %cst_10 = arith.constant 3.200000e+01 : f32
    %11 = vector.broadcast %cst_10 : f32 to vector<16x1xf32>
    %12 = arith.divf %10, %11 : vector<16x1xf32>
    %13 = vector.broadcast %12 : vector<16x1xf32> to vector<16x32xf32>
    %14 = arith.subf %6, %13 : vector<16x32xf32>
    %15 = arith.mulf %14, %14 : vector<16x32xf32>
    %cst_11 = arith.constant dense<0.000000e+00> : vector<16xf32>
    %16 = vector.multi_reduction <add>, %15, %cst_11 [1] : vector<16x32xf32> to vector<16xf32>
    %17 = vector.shape_cast %16 : vector<16xf32> to vector<16x1xf32>
    %cst_12 = arith.constant 3.200000e+01 : f32
    %18 = vector.broadcast %cst_12 : f32 to vector<16x1xf32>
    %19 = arith.divf %17, %18 : vector<16x1xf32>
    %20 = vector.broadcast %12 : vector<16x1xf32> to vector<16x32xf32>
    %21 = arith.subf %6, %20 : vector<16x32xf32>
    %cst_13 = arith.constant 9.99999974E-6 : f32
    %22 = vector.broadcast %cst_13 : f32 to vector<16x1xf32>
    %23 = arith.addf %19, %22 : vector<16x1xf32>
    %24 = math.rsqrt %23 : vector<16x1xf32>
    %25 = vector.broadcast %24 : vector<16x1xf32> to vector<16x32xf32>
    %26 = arith.mulf %21, %25 : vector<16x32xf32>
    %27 = vector.broadcast %7 : vector<1x32xf32> to vector<16x32xf32>
    %28 = arith.mulf %26, %27 : vector<16x32xf32>
    %29 = vector.broadcast %8 : vector<1x32xf32> to vector<16x32xf32>
    %30 = arith.addf %28, %29 : vector<16x32xf32>
    %c0_14 = arith.constant 0 : index
    %c0_15 = arith.constant 0 : index
    %c0_16 = arith.constant 0 : index
    %31 = vector.load %arg10[%c0_14, %c0_15, %c0_16] : memref<4x32x128xf32, #tpu.memory_space<vmem>>, vector<1x32x128xf32>
    %32 = vector.shape_cast %31 : vector<1x32x128xf32> to vector<32x128xf32>
    %cst_17 = arith.constant dense<0.000000e+00> : vector<16x128xf32>
    %33 = tpu.matmul %30, %32, %cst_17 {dimension_numbers = #tpu.dot_dimension_numbers<[1], [0], [0], [1], [0, 0, 1, 1], [], []>} : vector<16x32xf32>, vector<32x128xf32>, vector<16x128xf32> -> vector<16x128xf32>
    %c2 = arith.constant 2 : index
    %c0_18 = arith.constant 0 : index
    %34 = vector.load %arg5[%c2, %c0_18] : memref<64x128xf32, #tpu.memory_space<vmem>>, vector<1x128xf32>
    %35 = vector.broadcast %34 : vector<1x128xf32> to vector<16x128xf32>
    %36 = arith.addf %33, %35 : vector<16x128xf32>
    %cst_19 = arith.constant 0.000000e+00 : f32
    %37 = vector.broadcast %cst_19 : f32 to vector<16x128xf32>
    %38 = arith.subf %37, %36 : vector<16x128xf32>
    %39 = math.exp %38 : vector<16x128xf32>
    %cst_20 = arith.constant 1.000000e+00 : f32
    %40 = vector.broadcast %cst_20 : f32 to vector<16x128xf32>
    %41 = arith.addf %40, %39 : vector<16x128xf32>
    %42 = tpu.reciprocal %41 {approx = true} : vector<16x128xf32> -> vector<16x128xf32>
    %43 = arith.mulf %36, %42 : vector<16x128xf32>
    %c0_21 = arith.constant 0 : index
    %c0_22 = arith.constant 0 : index
    %c0_23 = arith.constant 0 : index
    %44 = vector.load %arg11[%c0_21, %c0_22, %c0_23] : memref<4x128x32xf32, #tpu.memory_space<vmem>>, vector<1x128x32xf32>
    %45 = vector.shape_cast %44 : vector<1x128x32xf32> to vector<128x32xf32>
    %cst_24 = arith.constant dense<0.000000e+00> : vector<16x32xf32>
    %46 = tpu.matmul %43, %45, %cst_24 {dimension_numbers = #tpu.dot_dimension_numbers<[1], [0], [0], [1], [0, 0, 1, 1], [], []>} : vector<16x128xf32>, vector<128x32xf32>, vector<16x32xf32> -> vector<16x32xf32>
    %c3 = arith.constant 3 : index
    %c0_25 = arith.constant 0 : index
    %47 = vector.load %arg5[%c3, %c0_25] : memref<64x128xf32, #tpu.memory_space<vmem>>, vector<1x32xf32>
    %48 = vector.broadcast %47 : vector<1x32xf32> to vector<16x32xf32>
    %49 = arith.addf %46, %48 : vector<16x32xf32>
    %cst_26 = arith.constant 5.000000e-01 : f32
    %50 = vector.broadcast %cst_26 : f32 to vector<16x32xf32>
    %51 = arith.mulf %50, %49 : vector<16x32xf32>
    %52 = arith.addf %6, %51 : vector<16x32xf32>
    %c4 = arith.constant 4 : index
    %c0_27 = arith.constant 0 : index
    %53 = vector.load %arg5[%c4, %c0_27] : memref<64x128xf32, #tpu.memory_space<vmem>>, vector<1x32xf32>
    %c5 = arith.constant 5 : index
    %c0_28 = arith.constant 0 : index
    %54 = vector.load %arg5[%c5, %c0_28] : memref<64x128xf32, #tpu.memory_space<vmem>>, vector<1x32xf32>
    %cst_29 = arith.constant dense<0.000000e+00> : vector<16xf32>
    %55 = vector.multi_reduction <add>, %52, %cst_29 [1] : vector<16x32xf32> to vector<16xf32>
    %56 = vector.shape_cast %55 : vector<16xf32> to vector<16x1xf32>
    %cst_30 = arith.constant 3.200000e+01 : f32
    %57 = vector.broadcast %cst_30 : f32 to vector<16x1xf32>
    %58 = arith.divf %56, %57 : vector<16x1xf32>
    %59 = vector.broadcast %58 : vector<16x1xf32> to vector<16x32xf32>
    %60 = arith.subf %52, %59 : vector<16x32xf32>
    %61 = arith.mulf %60, %60 : vector<16x32xf32>
    %cst_31 = arith.constant dense<0.000000e+00> : vector<16xf32>
    %62 = vector.multi_reduction <add>, %61, %cst_31 [1] : vector<16x32xf32> to vector<16xf32>
    %63 = vector.shape_cast %62 : vector<16xf32> to vector<16x1xf32>
    %cst_32 = arith.constant 3.200000e+01 : f32
    %64 = vector.broadcast %cst_32 : f32 to vector<16x1xf32>
    %65 = arith.divf %63, %64 : vector<16x1xf32>
    %66 = vector.broadcast %58 : vector<16x1xf32> to vector<16x32xf32>
    %67 = arith.subf %52, %66 : vector<16x32xf32>
    %cst_33 = arith.constant 9.99999974E-6 : f32
    %68 = vector.broadcast %cst_33 : f32 to vector<16x1xf32>
    %69 = arith.addf %65, %68 : vector<16x1xf32>
    %70 = math.rsqrt %69 : vector<16x1xf32>
    %71 = vector.broadcast %70 : vector<16x1xf32> to vector<16x32xf32>
    %72 = arith.mulf %67, %71 : vector<16x32xf32>
    %73 = vector.broadcast %53 : vector<1x32xf32> to vector<16x32xf32>
    %74 = arith.mulf %72, %73 : vector<16x32xf32>
    %75 = vector.broadcast %54 : vector<1x32xf32> to vector<16x32xf32>
    %76 = arith.addf %74, %75 : vector<16x32xf32>
    %c0_34 = arith.constant 0 : index
    %c0_35 = arith.constant 0 : index
    %c0_36 = arith.constant 0 : index
    %77 = vector.load %arg6[%c0_34, %c0_35, %c0_36] : memref<2x32x96xf32, #tpu.memory_space<vmem>>, vector<1x32x96xf32>
    %78 = vector.shape_cast %77 : vector<1x32x96xf32> to vector<32x96xf32>
    %cst_37 = arith.constant dense<0.000000e+00> : vector<16x96xf32>
    %79 = tpu.matmul %76, %78, %cst_37 {dimension_numbers = #tpu.dot_dimension_numbers<[1], [0], [0], [1], [0, 0, 1, 1], [], []>} : vector<16x32xf32>, vector<32x96xf32>, vector<16x96xf32> -> vector<16x96xf32>
    %c6 = arith.constant 6 : index
    %c0_38 = arith.constant 0 : index
    %80 = vector.load %arg5[%c6, %c0_38] : memref<64x128xf32, #tpu.memory_space<vmem>>, vector<1x96xf32>
    %81 = vector.broadcast %80 : vector<1x96xf32> to vector<16x96xf32>
    %82 = arith.addf %79, %81 : vector<16x96xf32>
    %83 = vector.extract_strided_slice %82 {offsets = [0, 0], sizes = [16, 32], strides = [1, 1]} : vector<16x96xf32> to vector<16x32xf32>
    %84 = vector.extract_strided_slice %82 {offsets = [0, 32], sizes = [16, 32], strides = [1, 1]} : vector<16x96xf32> to vector<16x32xf32>
    %85 = vector.extract_strided_slice %82 {offsets = [0, 64], sizes = [16, 32], strides = [1, 1]} : vector<16x96xf32> to vector<16x32xf32>
    %c8 = arith.constant 8 : index
    %c0_39 = arith.constant 0 : index
    %86 = vector.load %arg5[%c8, %c0_39] : memref<64x128xf32, #tpu.memory_space<vmem>>, vector<1x32xf32>
    %87 = vector.broadcast %86 : vector<1x32xf32> to vector<16x32xf32>
    %88 = arith.addf %83, %87 : vector<16x32xf32>
    %c9 = arith.constant 9 : index
    %c0_40 = arith.constant 0 : index
    %89 = vector.load %arg5[%c9, %c0_40] : memref<64x128xf32, #tpu.memory_space<vmem>>, vector<1x32xf32>
    %90 = vector.broadcast %89 : vector<1x32xf32> to vector<16x32xf32>
    %91 = arith.addf %83, %90 : vector<16x32xf32>
    %c0_41 = arith.constant 0 : index
    %c0_42 = arith.constant 0 : index
    %c0_43 = arith.constant 0 : index
    %92 = vector.load %arg7[%c0_41, %c0_42, %c0_43] : memref<2x32x128xf32, #tpu.memory_space<vmem>>, vector<1x32x128xf32>
    %93 = vector.shape_cast %92 : vector<1x32x128xf32> to vector<32x128xf32>
    %cst_44 = arith.constant dense<0.000000e+00> : vector<16x128xf32>
    %94 = tpu.matmul %91, %93, %cst_44 {dimension_numbers = #tpu.dot_dimension_numbers<[1], [0], [0], [1], [0, 0, 1, 1], [], []>} : vector<16x32xf32>, vector<32x128xf32>, vector<16x128xf32> -> vector<16x128xf32>
    %c0_45 = arith.constant 0 : index
    %c0_46 = arith.constant 0 : index
    %c0_47 = arith.constant 0 : index
    %95 = vector.load %arg4[%c0_45, %c0_46, %c0_47] : memref<16x16x32xf32, #tpu.memory_space<vmem>>, vector<16x16x32xf32>
    %96 = vector.extract_strided_slice %88 {offsets = [0, 0], sizes = [16, 8], strides = [1, 1]} : vector<16x32xf32> to vector<16x8xf32>
    %97 = vector.extract_strided_slice %84 {offsets = [0, 0], sizes = [16, 8], strides = [1, 1]} : vector<16x32xf32> to vector<16x8xf32>
    %cst_48 = arith.constant dense<0.000000e+00> : vector<16x16xf32>
    %98 = tpu.matmul %96, %97, %cst_48 {dimension_numbers = #tpu.dot_dimension_numbers<[1], [1], [0], [0], [0, 0, 1, 0], [], []>} : vector<16x8xf32>, vector<16x8xf32>, vector<16x16xf32> -> vector<16x16xf32>
    %99 = vector.extract_strided_slice %94 {offsets = [0, 0], sizes = [16, 32], strides = [1, 1]} : vector<16x128xf32> to vector<16x32xf32>
    %100 = vector.shape_cast %99 : vector<16x32xf32> to vector<16x1x32xf32>
    %101 = vector.broadcast %100 : vector<16x1x32xf32> to vector<16x16x32xf32>
    %102 = arith.mulf %101, %95 : vector<16x16x32xf32>
    %cst_49 = arith.constant dense<0.000000e+00> : vector<16x16xf32>
    %103 = vector.multi_reduction <add>, %102, %cst_49 [2] : vector<16x16x32xf32> to vector<16x16xf32>
    %104 = arith.addf %98, %103 : vector<16x16xf32>
    %cst_50 = arith.constant 0.353553385 : f32
    %105 = vector.broadcast %cst_50 : f32 to vector<16x16xf32>
    %106 = arith.mulf %104, %105 : vector<16x16xf32>
    %cst_51 = arith.constant dense<0xFF800000> : vector<16xf32>
    %107 = vector.multi_reduction <maximumf>, %106, %cst_51 [1] : vector<16x16xf32> to vector<16xf32>
    %108 = vector.shape_cast %107 : vector<16xf32> to vector<16x1xf32>
    %109 = vector.broadcast %108 : vector<16x1xf32> to vector<16x16xf32>
    %110 = arith.subf %106, %109 : vector<16x16xf32>
    %111 = math.exp %110 : vector<16x16xf32>
    %cst_52 = arith.constant dense<0.000000e+00> : vector<16xf32>
    %112 = vector.multi_reduction <add>, %111, %cst_52 [1] : vector<16x16xf32> to vector<16xf32>
    %113 = vector.shape_cast %112 : vector<16xf32> to vector<16x1xf32>
    %114 = tpu.reciprocal %113 {approx = true} : vector<16x1xf32> -> vector<16x1xf32>
    %115 = vector.broadcast %114 : vector<16x1xf32> to vector<16x16xf32>
    %116 = arith.mulf %111, %115 : vector<16x16xf32>
    %117 = vector.extract_strided_slice %85 {offsets = [0, 0], sizes = [16, 8], strides = [1, 1]} : vector<16x32xf32> to vector<16x8xf32>
    %cst_53 = arith.constant dense<0.000000e+00> : vector<16x8xf32>
    %118 = tpu.matmul %116, %117, %cst_53 {dimension_numbers = #tpu.dot_dimension_numbers<[1], [0], [0], [1], [0, 0, 1, 1], [], []>} : vector<16x16xf32>, vector<16x8xf32>, vector<16x8xf32> -> vector<16x8xf32>
    %119 = vector.extract_strided_slice %88 {offsets = [0, 8], sizes = [16, 8], strides = [1, 1]} : vector<16x32xf32> to vector<16x8xf32>
    %120 = vector.extract_strided_slice %84 {offsets = [0, 8], sizes = [16, 8], strides = [1, 1]} : vector<16x32xf32> to vector<16x8xf32>
    %cst_54 = arith.constant dense<0.000000e+00> : vector<16x16xf32>
    %121 = tpu.matmul %119, %120, %cst_54 {dimension_numbers = #tpu.dot_dimension_numbers<[1], [1], [0], [0], [0, 0, 1, 0], [], []>} : vector<16x8xf32>, vector<16x8xf32>, vector<16x16xf32> -> vector<16x16xf32>
    %122 = vector.extract_strided_slice %94 {offsets = [0, 32], sizes = [16, 32], strides = [1, 1]} : vector<16x128xf32> to vector<16x32xf32>
    %123 = vector.shape_cast %122 : vector<16x32xf32> to vector<16x1x32xf32>
    %124 = vector.broadcast %123 : vector<16x1x32xf32> to vector<16x16x32xf32>
    %125 = arith.mulf %124, %95 : vector<16x16x32xf32>
    %cst_55 = arith.constant dense<0.000000e+00> : vector<16x16xf32>
    %126 = vector.multi_reduction <add>, %125, %cst_55 [2] : vector<16x16x32xf32> to vector<16x16xf32>
    %127 = arith.addf %121, %126 : vector<16x16xf32>
    %cst_56 = arith.constant 0.353553385 : f32
    %128 = vector.broadcast %cst_56 : f32 to vector<16x16xf32>
    %129 = arith.mulf %127, %128 : vector<16x16xf32>
    %cst_57 = arith.constant dense<0xFF800000> : vector<16xf32>
    %130 = vector.multi_reduction <maximumf>, %129, %cst_57 [1] : vector<16x16xf32> to vector<16xf32>
    %131 = vector.shape_cast %130 : vector<16xf32> to vector<16x1xf32>
    %132 = vector.broadcast %131 : vector<16x1xf32> to vector<16x16xf32>
    %133 = arith.subf %129, %132 : vector<16x16xf32>
    %134 = math.exp %133 : vector<16x16xf32>
    %cst_58 = arith.constant dense<0.000000e+00> : vector<16xf32>
    %135 = vector.multi_reduction <add>, %134, %cst_58 [1] : vector<16x16xf32> to vector<16xf32>
    %136 = vector.shape_cast %135 : vector<16xf32> to vector<16x1xf32>
    %137 = tpu.reciprocal %136 {approx = true} : vector<16x1xf32> -> vector<16x1xf32>
    %138 = vector.broadcast %137 : vector<16x1xf32> to vector<16x16xf32>
    %139 = arith.mulf %134, %138 : vector<16x16xf32>
    %140 = vector.extract_strided_slice %85 {offsets = [0, 8], sizes = [16, 8], strides = [1, 1]} : vector<16x32xf32> to vector<16x8xf32>
    %cst_59 = arith.constant dense<0.000000e+00> : vector<16x8xf32>
    %141 = tpu.matmul %139, %140, %cst_59 {dimension_numbers = #tpu.dot_dimension_numbers<[1], [0], [0], [1], [0, 0, 1, 1], [], []>} : vector<16x16xf32>, vector<16x8xf32>, vector<16x8xf32> -> vector<16x8xf32>
    %142 = vector.extract_strided_slice %88 {offsets = [0, 16], sizes = [16, 8], strides = [1, 1]} : vector<16x32xf32> to vector<16x8xf32>
    %143 = vector.extract_strided_slice %84 {offsets = [0, 16], sizes = [16, 8], strides = [1, 1]} : vector<16x32xf32> to vector<16x8xf32>
    %cst_60 = arith.constant dense<0.000000e+00> : vector<16x16xf32>
    %144 = tpu.matmul %142, %143, %cst_60 {dimension_numbers = #tpu.dot_dimension_numbers<[1], [1], [0], [0], [0, 0, 1, 0], [], []>} : vector<16x8xf32>, vector<16x8xf32>, vector<16x16xf32> -> vector<16x16xf32>
    %145 = vector.extract_strided_slice %94 {offsets = [0, 64], sizes = [16, 32], strides = [1, 1]} : vector<16x128xf32> to vector<16x32xf32>
    %146 = vector.shape_cast %145 : vector<16x32xf32> to vector<16x1x32xf32>
    %147 = vector.broadcast %146 : vector<16x1x32xf32> to vector<16x16x32xf32>
    %148 = arith.mulf %147, %95 : vector<16x16x32xf32>
    %cst_61 = arith.constant dense<0.000000e+00> : vector<16x16xf32>
    %149 = vector.multi_reduction <add>, %148, %cst_61 [2] : vector<16x16x32xf32> to vector<16x16xf32>
    %150 = arith.addf %144, %149 : vector<16x16xf32>
    %cst_62 = arith.constant 0.353553385 : f32
    %151 = vector.broadcast %cst_62 : f32 to vector<16x16xf32>
    %152 = arith.mulf %150, %151 : vector<16x16xf32>
    %cst_63 = arith.constant dense<0xFF800000> : vector<16xf32>
    %153 = vector.multi_reduction <maximumf>, %152, %cst_63 [1] : vector<16x16xf32> to vector<16xf32>
    %154 = vector.shape_cast %153 : vector<16xf32> to vector<16x1xf32>
    %155 = vector.broadcast %154 : vector<16x1xf32> to vector<16x16xf32>
    %156 = arith.subf %152, %155 : vector<16x16xf32>
    %157 = math.exp %156 : vector<16x16xf32>
    %cst_64 = arith.constant dense<0.000000e+00> : vector<16xf32>
    %158 = vector.multi_reduction <add>, %157, %cst_64 [1] : vector<16x16xf32> to vector<16xf32>
    %159 = vector.shape_cast %158 : vector<16xf32> to vector<16x1xf32>
    %160 = tpu.reciprocal %159 {approx = true} : vector<16x1xf32> -> vector<16x1xf32>
    %161 = vector.broadcast %160 : vector<16x1xf32> to vector<16x16xf32>
    %162 = arith.mulf %157, %161 : vector<16x16xf32>
    %163 = vector.extract_strided_slice %85 {offsets = [0, 16], sizes = [16, 8], strides = [1, 1]} : vector<16x32xf32> to vector<16x8xf32>
    %cst_65 = arith.constant dense<0.000000e+00> : vector<16x8xf32>
    %164 = tpu.matmul %162, %163, %cst_65 {dimension_numbers = #tpu.dot_dimension_numbers<[1], [0], [0], [1], [0, 0, 1, 1], [], []>} : vector<16x16xf32>, vector<16x8xf32>, vector<16x8xf32> -> vector<16x8xf32>
    %165 = vector.extract_strided_slice %88 {offsets = [0, 24], sizes = [16, 8], strides = [1, 1]} : vector<16x32xf32> to vector<16x8xf32>
    %166 = vector.extract_strided_slice %84 {offsets = [0, 24], sizes = [16, 8], strides = [1, 1]} : vector<16x32xf32> to vector<16x8xf32>
    %cst_66 = arith.constant dense<0.000000e+00> : vector<16x16xf32>
    %167 = tpu.matmul %165, %166, %cst_66 {dimension_numbers = #tpu.dot_dimension_numbers<[1], [1], [0], [0], [0, 0, 1, 0], [], []>} : vector<16x8xf32>, vector<16x8xf32>, vector<16x16xf32> -> vector<16x16xf32>
    %168 = vector.extract_strided_slice %94 {offsets = [0, 96], sizes = [16, 32], strides = [1, 1]} : vector<16x128xf32> to vector<16x32xf32>
    %169 = vector.shape_cast %168 : vector<16x32xf32> to vector<16x1x32xf32>
    %170 = vector.broadcast %169 : vector<16x1x32xf32> to vector<16x16x32xf32>
    %171 = arith.mulf %170, %95 : vector<16x16x32xf32>
    %cst_67 = arith.constant dense<0.000000e+00> : vector<16x16xf32>
    %172 = vector.multi_reduction <add>, %171, %cst_67 [2] : vector<16x16x32xf32> to vector<16x16xf32>
    %173 = arith.addf %167, %172 : vector<16x16xf32>
    %cst_68 = arith.constant 0.353553385 : f32
    %174 = vector.broadcast %cst_68 : f32 to vector<16x16xf32>
    %175 = arith.mulf %173, %174 : vector<16x16xf32>
    %cst_69 = arith.constant dense<0xFF800000> : vector<16xf32>
    %176 = vector.multi_reduction <maximumf>, %175, %cst_69 [1] : vector<16x16xf32> to vector<16xf32>
    %177 = vector.shape_cast %176 : vector<16xf32> to vector<16x1xf32>
    %178 = vector.broadcast %177 : vector<16x1xf32> to vector<16x16xf32>
    %179 = arith.subf %175, %178 : vector<16x16xf32>
    %180 = math.exp %179 : vector<16x16xf32>
    %cst_70 = arith.constant dense<0.000000e+00> : vector<16xf32>
    %181 = vector.multi_reduction <add>, %180, %cst_70 [1] : vector<16x16xf32> to vector<16xf32>
    %182 = vector.shape_cast %181 : vector<16xf32> to vector<16x1xf32>
    %183 = tpu.reciprocal %182 {approx = true} : vector<16x1xf32> -> vector<16x1xf32>
    %184 = vector.broadcast %183 : vector<16x1xf32> to vector<16x16xf32>
    %185 = arith.mulf %180, %184 : vector<16x16xf32>
    %186 = vector.extract_strided_slice %85 {offsets = [0, 24], sizes = [16, 8], strides = [1, 1]} : vector<16x32xf32> to vector<16x8xf32>
    %cst_71 = arith.constant dense<0.000000e+00> : vector<16x8xf32>
    %187 = tpu.matmul %185, %186, %cst_71 {dimension_numbers = #tpu.dot_dimension_numbers<[1], [0], [0], [1], [0, 0, 1, 1], [], []>} : vector<16x16xf32>, vector<16x8xf32>, vector<16x8xf32> -> vector<16x8xf32>
    %188 = tpu.concatenate %118, %141, %164, %187 in 1 : vector<16x8xf32>, vector<16x8xf32>, vector<16x8xf32>, vector<16x8xf32> -> vector<16x32xf32>
    %c0_72 = arith.constant 0 : index
    %c0_73 = arith.constant 0 : index
    %c0_74 = arith.constant 0 : index
    %189 = vector.load %arg9[%c0_72, %c0_73, %c0_74] : memref<4x32x32xf32, #tpu.memory_space<vmem>>, vector<1x32x32xf32>
    %190 = vector.shape_cast %189 : vector<1x32x32xf32> to vector<32x32xf32>
    %cst_75 = arith.constant dense<0.000000e+00> : vector<16x32xf32>
    %191 = tpu.matmul %188, %190, %cst_75 {dimension_numbers = #tpu.dot_dimension_numbers<[1], [0], [0], [1], [0, 0, 1, 1], [], []>} : vector<16x32xf32>, vector<32x32xf32>, vector<16x32xf32> -> vector<16x32xf32>
    %192 = arith.addf %52, %191 : vector<16x32xf32>
    %c7 = arith.constant 7 : index
    %c0_76 = arith.constant 0 : index
    %193 = vector.load %arg5[%c7, %c0_76] : memref<64x128xf32, #tpu.memory_space<vmem>>, vector<1x32xf32>
    %194 = vector.broadcast %193 : vector<1x32xf32> to vector<16x32xf32>
    %195 = arith.addf %192, %194 : vector<16x32xf32>
    %c10 = arith.constant 10 : index
    %c0_77 = arith.constant 0 : index
    %196 = vector.load %arg5[%c10, %c0_77] : memref<64x128xf32, #tpu.memory_space<vmem>>, vector<1x32xf32>
    %c11 = arith.constant 11 : index
    %c0_78 = arith.constant 0 : index
    %197 = vector.load %arg5[%c11, %c0_78] : memref<64x128xf32, #tpu.memory_space<vmem>>, vector<1x32xf32>
    %cst_79 = arith.constant dense<0.000000e+00> : vector<16xf32>
    %198 = vector.multi_reduction <add>, %195, %cst_79 [1] : vector<16x32xf32> to vector<16xf32>
    %199 = vector.shape_cast %198 : vector<16xf32> to vector<16x1xf32>
    %cst_80 = arith.constant 3.200000e+01 : f32
    %200 = vector.broadcast %cst_80 : f32 to vector<16x1xf32>
    %201 = arith.divf %199, %200 : vector<16x1xf32>
    %202 = vector.broadcast %201 : vector<16x1xf32> to vector<16x32xf32>
    %203 = arith.subf %195, %202 : vector<16x32xf32>
    %204 = arith.mulf %203, %203 : vector<16x32xf32>
    %cst_81 = arith.constant dense<0.000000e+00> : vector<16xf32>
    %205 = vector.multi_reduction <add>, %204, %cst_81 [1] : vector<16x32xf32> to vector<16xf32>
    %206 = vector.shape_cast %205 : vector<16xf32> to vector<16x1xf32>
    %cst_82 = arith.constant 3.200000e+01 : f32
    %207 = vector.broadcast %cst_82 : f32 to vector<16x1xf32>
    %208 = arith.divf %206, %207 : vector<16x1xf32>
    %209 = vector.broadcast %201 : vector<16x1xf32> to vector<16x32xf32>
    %210 = arith.subf %195, %209 : vector<16x32xf32>
    %cst_83 = arith.constant 9.99999974E-6 : f32
    %211 = vector.broadcast %cst_83 : f32 to vector<16x1xf32>
    %212 = arith.addf %208, %211 : vector<16x1xf32>
    %213 = math.rsqrt %212 : vector<16x1xf32>
    %214 = vector.broadcast %213 : vector<16x1xf32> to vector<16x32xf32>
    %215 = arith.mulf %210, %214 : vector<16x32xf32>
    %216 = vector.broadcast %196 : vector<1x32xf32> to vector<16x32xf32>
    %217 = arith.mulf %215, %216 : vector<16x32xf32>
    %218 = vector.broadcast %197 : vector<1x32xf32> to vector<16x32xf32>
    %219 = arith.addf %217, %218 : vector<16x32xf32>
    %c0_84 = arith.constant 0 : index
    %c0_85 = arith.constant 0 : index
    %c0_86 = arith.constant 0 : index
    %220 = vector.load %arg8[%c0_84, %c0_85, %c0_86] : memref<2x32x64xf32, #tpu.memory_space<vmem>>, vector<1x32x64xf32>
    %221 = vector.shape_cast %220 : vector<1x32x64xf32> to vector<32x64xf32>
    %cst_87 = arith.constant dense<0.000000e+00> : vector<16x64xf32>
    %222 = tpu.matmul %219, %221, %cst_87 {dimension_numbers = #tpu.dot_dimension_numbers<[1], [0], [0], [1], [0, 0, 1, 1], [], []>} : vector<16x32xf32>, vector<32x64xf32>, vector<16x64xf32> -> vector<16x64xf32>
    %c12 = arith.constant 12 : index
    %c0_88 = arith.constant 0 : index
    %223 = vector.load %arg5[%c12, %c0_88] : memref<64x128xf32, #tpu.memory_space<vmem>>, vector<1x64xf32>
    %224 = vector.broadcast %223 : vector<1x64xf32> to vector<16x64xf32>
    %225 = arith.addf %222, %224 : vector<16x64xf32>
    %226 = vector.extract_strided_slice %225 {offsets = [0, 0], sizes = [16, 32], strides = [1, 1]} : vector<16x64xf32> to vector<16x32xf32>
    %227 = vector.extract_strided_slice %225 {offsets = [0, 32], sizes = [16, 32], strides = [1, 1]} : vector<16x64xf32> to vector<16x32xf32>
    %cst_89 = arith.constant 0.000000e+00 : f32
    %228 = vector.broadcast %cst_89 : f32 to vector<16x32xf32>
    %229 = arith.subf %228, %227 : vector<16x32xf32>
    %230 = math.exp %229 : vector<16x32xf32>
    %cst_90 = arith.constant 1.000000e+00 : f32
    %231 = vector.broadcast %cst_90 : f32 to vector<16x32xf32>
    %232 = arith.addf %231, %230 : vector<16x32xf32>
    %233 = tpu.reciprocal %232 {approx = true} : vector<16x32xf32> -> vector<16x32xf32>
    %234 = arith.mulf %226, %233 : vector<16x32xf32>
    %cst_91 = arith.constant 0.000000e+00 : f32
    %235 = vector.broadcast %cst_91 : f32 to vector<3x32xf32>
    %236 = tpu.concatenate %235, %234, %235 in 0 : vector<3x32xf32>, vector<16x32xf32>, vector<3x32xf32> -> vector<22x32xf32>
    %cst_92 = arith.constant 0.000000e+00 : f32
    %237 = vector.broadcast %cst_92 : f32 to vector<16x32xf32>
    %238 = vector.extract_strided_slice %236 {offsets = [0, 0], sizes = [16, 32], strides = [1, 1]} : vector<22x32xf32> to vector<16x32xf32>
    %c25 = arith.constant 25 : index
    %c0_93 = arith.constant 0 : index
    %239 = vector.load %arg5[%c25, %c0_93] : memref<64x128xf32, #tpu.memory_space<vmem>>, vector<1x32xf32>
    %240 = vector.broadcast %239 : vector<1x32xf32> to vector<16x32xf32>
    %241 = arith.mulf %238, %240 : vector<16x32xf32>
    %242 = arith.addf %237, %241 : vector<16x32xf32>
    %243 = vector.extract_strided_slice %236 {offsets = [1, 0], sizes = [16, 32], strides = [1, 1]} : vector<22x32xf32> to vector<16x32xf32>
    %c26 = arith.constant 26 : index
    %c0_94 = arith.constant 0 : index
    %244 = vector.load %arg5[%c26, %c0_94] : memref<64x128xf32, #tpu.memory_space<vmem>>, vector<1x32xf32>
    %245 = vector.broadcast %244 : vector<1x32xf32> to vector<16x32xf32>
    %246 = arith.mulf %243, %245 : vector<16x32xf32>
    %247 = arith.addf %242, %246 : vector<16x32xf32>
    %248 = vector.extract_strided_slice %236 {offsets = [2, 0], sizes = [16, 32], strides = [1, 1]} : vector<22x32xf32> to vector<16x32xf32>
    %c27 = arith.constant 27 : index
    %c0_95 = arith.constant 0 : index
    %249 = vector.load %arg5[%c27, %c0_95] : memref<64x128xf32, #tpu.memory_space<vmem>>, vector<1x32xf32>
    %250 = vector.broadcast %249 : vector<1x32xf32> to vector<16x32xf32>
    %251 = arith.mulf %248, %250 : vector<16x32xf32>
    %252 = arith.addf %247, %251 : vector<16x32xf32>
    %253 = vector.extract_strided_slice %236 {offsets = [3, 0], sizes = [16, 32], strides = [1, 1]} : vector<22x32xf32> to vector<16x32xf32>
    %c28 = arith.constant 28 : index
    %c0_96 = arith.constant 0 : index
    %254 = vector.load %arg5[%c28, %c0_96] : memref<64x128xf32, #tpu.memory_space<vmem>>, vector<1x32xf32>
    %255 = vector.broadcast %254 : vector<1x32xf32> to vector<16x32xf32>
    %256 = arith.mulf %253, %255 : vector<16x32xf32>
    %257 = arith.addf %252, %256 : vector<16x32xf32>
    %258 = vector.extract_strided_slice %236 {offsets = [4, 0], sizes = [16, 32], strides = [1, 1]} : vector<22x32xf32> to vector<16x32xf32>
    %c29 = arith.constant 29 : index
    %c0_97 = arith.constant 0 : index
    %259 = vector.load %arg5[%c29, %c0_97] : memref<64x128xf32, #tpu.memory_space<vmem>>, vector<1x32xf32>
    %260 = vector.broadcast %259 : vector<1x32xf32> to vector<16x32xf32>
    %261 = arith.mulf %258, %260 : vector<16x32xf32>
    %262 = arith.addf %257, %261 : vector<16x32xf32>
    %263 = vector.extract_strided_slice %236 {offsets = [5, 0], sizes = [16, 32], strides = [1, 1]} : vector<22x32xf32> to vector<16x32xf32>
    %c30 = arith.constant 30 : index
    %c0_98 = arith.constant 0 : index
    %264 = vector.load %arg5[%c30, %c0_98] : memref<64x128xf32, #tpu.memory_space<vmem>>, vector<1x32xf32>
    %265 = vector.broadcast %264 : vector<1x32xf32> to vector<16x32xf32>
    %266 = arith.mulf %263, %265 : vector<16x32xf32>
    %267 = arith.addf %262, %266 : vector<16x32xf32>
    %268 = vector.extract_strided_slice %236 {offsets = [6, 0], sizes = [16, 32], strides = [1, 1]} : vector<22x32xf32> to vector<16x32xf32>
    %c31 = arith.constant 31 : index
    %c0_99 = arith.constant 0 : index
    %269 = vector.load %arg5[%c31, %c0_99] : memref<64x128xf32, #tpu.memory_space<vmem>>, vector<1x32xf32>
    %270 = vector.broadcast %269 : vector<1x32xf32> to vector<16x32xf32>
    %271 = arith.mulf %268, %270 : vector<16x32xf32>
    %272 = arith.addf %267, %271 : vector<16x32xf32>
    %c13 = arith.constant 13 : index
    %c0_100 = arith.constant 0 : index
    %273 = vector.load %arg5[%c13, %c0_100] : memref<64x128xf32, #tpu.memory_space<vmem>>, vector<1x32xf32>
    %274 = vector.broadcast %273 : vector<1x32xf32> to vector<16x32xf32>
    %275 = arith.addf %272, %274 : vector<16x32xf32>
    %c16 = arith.constant 16 : index
    %c0_101 = arith.constant 0 : index
    %276 = vector.load %arg5[%c16, %c0_101] : memref<64x128xf32, #tpu.memory_space<vmem>>, vector<1x32xf32>
    %277 = vector.broadcast %276 : vector<1x32xf32> to vector<16x32xf32>
    %278 = arith.subf %275, %277 : vector<16x32xf32>
    %c17 = arith.constant 17 : index
    %c0_102 = arith.constant 0 : index
    %279 = vector.load %arg5[%c17, %c0_102] : memref<64x128xf32, #tpu.memory_space<vmem>>, vector<1x32xf32>
    %cst_103 = arith.constant 9.99999974E-6 : f32
    %280 = vector.broadcast %cst_103 : f32 to vector<1x32xf32>
    %281 = arith.addf %279, %280 : vector<1x32xf32>
    %282 = math.rsqrt %281 : vector<1x32xf32>
    %283 = vector.broadcast %282 : vector<1x32xf32> to vector<16x32xf32>
    %284 = arith.mulf %278, %283 : vector<16x32xf32>
    %c14 = arith.constant 14 : index
    %c0_104 = arith.constant 0 : index
    %285 = vector.load %arg5[%c14, %c0_104] : memref<64x128xf32, #tpu.memory_space<vmem>>, vector<1x32xf32>
    %286 = vector.broadcast %285 : vector<1x32xf32> to vector<16x32xf32>
    %287 = arith.mulf %284, %286 : vector<16x32xf32>
    %c15 = arith.constant 15 : index
    %c0_105 = arith.constant 0 : index
    %288 = vector.load %arg5[%c15, %c0_105] : memref<64x128xf32, #tpu.memory_space<vmem>>, vector<1x32xf32>
    %289 = vector.broadcast %288 : vector<1x32xf32> to vector<16x32xf32>
    %290 = arith.addf %287, %289 : vector<16x32xf32>
    %cst_106 = arith.constant 0.000000e+00 : f32
    %291 = vector.broadcast %cst_106 : f32 to vector<16x32xf32>
    %292 = arith.subf %291, %290 : vector<16x32xf32>
    %293 = math.exp %292 : vector<16x32xf32>
    %cst_107 = arith.constant 1.000000e+00 : f32
    %294 = vector.broadcast %cst_107 : f32 to vector<16x32xf32>
    %295 = arith.addf %294, %293 : vector<16x32xf32>
    %296 = tpu.reciprocal %295 {approx = true} : vector<16x32xf32> -> vector<16x32xf32>
    %297 = arith.mulf %290, %296 : vector<16x32xf32>
    %c1_108 = arith.constant 1 : index
    %c0_109 = arith.constant 0 : index
    %c0_110 = arith.constant 0 : index
    %298 = vector.load %arg9[%c1_108, %c0_109, %c0_110] : memref<4x32x32xf32, #tpu.memory_space<vmem>>, vector<1x32x32xf32>
    %299 = vector.shape_cast %298 : vector<1x32x32xf32> to vector<32x32xf32>
    %cst_111 = arith.constant dense<0.000000e+00> : vector<16x32xf32>
    %300 = tpu.matmul %297, %299, %cst_111 {dimension_numbers = #tpu.dot_dimension_numbers<[1], [0], [0], [1], [0, 0, 1, 1], [], []>} : vector<16x32xf32>, vector<32x32xf32>, vector<16x32xf32> -> vector<16x32xf32>
    %c18 = arith.constant 18 : index
    %c0_112 = arith.constant 0 : index
    %301 = vector.load %arg5[%c18, %c0_112] : memref<64x128xf32, #tpu.memory_space<vmem>>, vector<1x32xf32>
    %302 = vector.broadcast %301 : vector<1x32xf32> to vector<16x32xf32>
    %303 = arith.addf %300, %302 : vector<16x32xf32>
    %304 = arith.addf %195, %303 : vector<16x32xf32>
    %c19 = arith.constant 19 : index
    %c0_113 = arith.constant 0 : index
    %305 = vector.load %arg5[%c19, %c0_113] : memref<64x128xf32, #tpu.memory_space<vmem>>, vector<1x32xf32>
    %c20 = arith.constant 20 : index
    %c0_114 = arith.constant 0 : index
    %306 = vector.load %arg5[%c20, %c0_114] : memref<64x128xf32, #tpu.memory_space<vmem>>, vector<1x32xf32>
    %cst_115 = arith.constant dense<0.000000e+00> : vector<16xf32>
    %307 = vector.multi_reduction <add>, %304, %cst_115 [1] : vector<16x32xf32> to vector<16xf32>
    %308 = vector.shape_cast %307 : vector<16xf32> to vector<16x1xf32>
    %cst_116 = arith.constant 3.200000e+01 : f32
    %309 = vector.broadcast %cst_116 : f32 to vector<16x1xf32>
    %310 = arith.divf %308, %309 : vector<16x1xf32>
    %311 = vector.broadcast %310 : vector<16x1xf32> to vector<16x32xf32>
    %312 = arith.subf %304, %311 : vector<16x32xf32>
    %313 = arith.mulf %312, %312 : vector<16x32xf32>
    %cst_117 = arith.constant dense<0.000000e+00> : vector<16xf32>
    %314 = vector.multi_reduction <add>, %313, %cst_117 [1] : vector<16x32xf32> to vector<16xf32>
    %315 = vector.shape_cast %314 : vector<16xf32> to vector<16x1xf32>
    %cst_118 = arith.constant 3.200000e+01 : f32
    %316 = vector.broadcast %cst_118 : f32 to vector<16x1xf32>
    %317 = arith.divf %315, %316 : vector<16x1xf32>
    %318 = vector.broadcast %310 : vector<16x1xf32> to vector<16x32xf32>
    %319 = arith.subf %304, %318 : vector<16x32xf32>
    %cst_119 = arith.constant 9.99999974E-6 : f32
    %320 = vector.broadcast %cst_119 : f32 to vector<16x1xf32>
    %321 = arith.addf %317, %320 : vector<16x1xf32>
    %322 = math.rsqrt %321 : vector<16x1xf32>
    %323 = vector.broadcast %322 : vector<16x1xf32> to vector<16x32xf32>
    %324 = arith.mulf %319, %323 : vector<16x32xf32>
    %325 = vector.broadcast %305 : vector<1x32xf32> to vector<16x32xf32>
    %326 = arith.mulf %324, %325 : vector<16x32xf32>
    %327 = vector.broadcast %306 : vector<1x32xf32> to vector<16x32xf32>
    %328 = arith.addf %326, %327 : vector<16x32xf32>
    %c1_120 = arith.constant 1 : index
    %c0_121 = arith.constant 0 : index
    %c0_122 = arith.constant 0 : index
    %329 = vector.load %arg10[%c1_120, %c0_121, %c0_122] : memref<4x32x128xf32, #tpu.memory_space<vmem>>, vector<1x32x128xf32>
    %330 = vector.shape_cast %329 : vector<1x32x128xf32> to vector<32x128xf32>
    %cst_123 = arith.constant dense<0.000000e+00> : vector<16x128xf32>
    %331 = tpu.matmul %328, %330, %cst_123 {dimension_numbers = #tpu.dot_dimension_numbers<[1], [0], [0], [1], [0, 0, 1, 1], [], []>} : vector<16x32xf32>, vector<32x128xf32>, vector<16x128xf32> -> vector<16x128xf32>
    %c21 = arith.constant 21 : index
    %c0_124 = arith.constant 0 : index
    %332 = vector.load %arg5[%c21, %c0_124] : memref<64x128xf32, #tpu.memory_space<vmem>>, vector<1x128xf32>
    %333 = vector.broadcast %332 : vector<1x128xf32> to vector<16x128xf32>
    %334 = arith.addf %331, %333 : vector<16x128xf32>
    %cst_125 = arith.constant 0.000000e+00 : f32
    %335 = vector.broadcast %cst_125 : f32 to vector<16x128xf32>
    %336 = arith.subf %335, %334 : vector<16x128xf32>
    %337 = math.exp %336 : vector<16x128xf32>
    %cst_126 = arith.constant 1.000000e+00 : f32
    %338 = vector.broadcast %cst_126 : f32 to vector<16x128xf32>
    %339 = arith.addf %338, %337 : vector<16x128xf32>
    %340 = tpu.reciprocal %339 {approx = true} : vector<16x128xf32> -> vector<16x128xf32>
    %341 = arith.mulf %334, %340 : vector<16x128xf32>
    %c1_127 = arith.constant 1 : index
    %c0_128 = arith.constant 0 : index
    %c0_129 = arith.constant 0 : index
    %342 = vector.load %arg11[%c1_127, %c0_128, %c0_129] : memref<4x128x32xf32, #tpu.memory_space<vmem>>, vector<1x128x32xf32>
    %343 = vector.shape_cast %342 : vector<1x128x32xf32> to vector<128x32xf32>
    %cst_130 = arith.constant dense<0.000000e+00> : vector<16x32xf32>
    %344 = tpu.matmul %341, %343, %cst_130 {dimension_numbers = #tpu.dot_dimension_numbers<[1], [0], [0], [1], [0, 0, 1, 1], [], []>} : vector<16x128xf32>, vector<128x32xf32>, vector<16x32xf32> -> vector<16x32xf32>
    %c22 = arith.constant 22 : index
    %c0_131 = arith.constant 0 : index
    %345 = vector.load %arg5[%c22, %c0_131] : memref<64x128xf32, #tpu.memory_space<vmem>>, vector<1x32xf32>
    %346 = vector.broadcast %345 : vector<1x32xf32> to vector<16x32xf32>
    %347 = arith.addf %344, %346 : vector<16x32xf32>
    %cst_132 = arith.constant 5.000000e-01 : f32
    %348 = vector.broadcast %cst_132 : f32 to vector<16x32xf32>
    %349 = arith.mulf %348, %347 : vector<16x32xf32>
    %350 = arith.addf %304, %349 : vector<16x32xf32>
    %c23 = arith.constant 23 : index
    %c0_133 = arith.constant 0 : index
    %351 = vector.load %arg5[%c23, %c0_133] : memref<64x128xf32, #tpu.memory_space<vmem>>, vector<1x32xf32>
    %c24 = arith.constant 24 : index
    %c0_134 = arith.constant 0 : index
    %352 = vector.load %arg5[%c24, %c0_134] : memref<64x128xf32, #tpu.memory_space<vmem>>, vector<1x32xf32>
    %cst_135 = arith.constant dense<0.000000e+00> : vector<16xf32>
    %353 = vector.multi_reduction <add>, %350, %cst_135 [1] : vector<16x32xf32> to vector<16xf32>
    %354 = vector.shape_cast %353 : vector<16xf32> to vector<16x1xf32>
    %cst_136 = arith.constant 3.200000e+01 : f32
    %355 = vector.broadcast %cst_136 : f32 to vector<16x1xf32>
    %356 = arith.divf %354, %355 : vector<16x1xf32>
    %357 = vector.broadcast %356 : vector<16x1xf32> to vector<16x32xf32>
    %358 = arith.subf %350, %357 : vector<16x32xf32>
    %359 = arith.mulf %358, %358 : vector<16x32xf32>
    %cst_137 = arith.constant dense<0.000000e+00> : vector<16xf32>
    %360 = vector.multi_reduction <add>, %359, %cst_137 [1] : vector<16x32xf32> to vector<16xf32>
    %361 = vector.shape_cast %360 : vector<16xf32> to vector<16x1xf32>
    %cst_138 = arith.constant 3.200000e+01 : f32
    %362 = vector.broadcast %cst_138 : f32 to vector<16x1xf32>
    %363 = arith.divf %361, %362 : vector<16x1xf32>
    %364 = vector.broadcast %356 : vector<16x1xf32> to vector<16x32xf32>
    %365 = arith.subf %350, %364 : vector<16x32xf32>
    %cst_139 = arith.constant 9.99999974E-6 : f32
    %366 = vector.broadcast %cst_139 : f32 to vector<16x1xf32>
    %367 = arith.addf %363, %366 : vector<16x1xf32>
    %368 = math.rsqrt %367 : vector<16x1xf32>
    %369 = vector.broadcast %368 : vector<16x1xf32> to vector<16x32xf32>
    %370 = arith.mulf %365, %369 : vector<16x32xf32>
    %371 = vector.broadcast %351 : vector<1x32xf32> to vector<16x32xf32>
    %372 = arith.mulf %370, %371 : vector<16x32xf32>
    %373 = vector.broadcast %352 : vector<1x32xf32> to vector<16x32xf32>
    %374 = arith.addf %372, %373 : vector<16x32xf32>
    %c32 = arith.constant 32 : index
    %c0_140 = arith.constant 0 : index
    %375 = vector.load %arg5[%c32, %c0_140] : memref<64x128xf32, #tpu.memory_space<vmem>>, vector<1x32xf32>
    %c33 = arith.constant 33 : index
    %c0_141 = arith.constant 0 : index
    %376 = vector.load %arg5[%c33, %c0_141] : memref<64x128xf32, #tpu.memory_space<vmem>>, vector<1x32xf32>
    %cst_142 = arith.constant dense<0.000000e+00> : vector<16xf32>
    %377 = vector.multi_reduction <add>, %374, %cst_142 [1] : vector<16x32xf32> to vector<16xf32>
    %378 = vector.shape_cast %377 : vector<16xf32> to vector<16x1xf32>
    %cst_143 = arith.constant 3.200000e+01 : f32
    %379 = vector.broadcast %cst_143 : f32 to vector<16x1xf32>
    %380 = arith.divf %378, %379 : vector<16x1xf32>
    %381 = vector.broadcast %380 : vector<16x1xf32> to vector<16x32xf32>
    %382 = arith.subf %374, %381 : vector<16x32xf32>
    %383 = arith.mulf %382, %382 : vector<16x32xf32>
    %cst_144 = arith.constant dense<0.000000e+00> : vector<16xf32>
    %384 = vector.multi_reduction <add>, %383, %cst_144 [1] : vector<16x32xf32> to vector<16xf32>
    %385 = vector.shape_cast %384 : vector<16xf32> to vector<16x1xf32>
    %cst_145 = arith.constant 3.200000e+01 : f32
    %386 = vector.broadcast %cst_145 : f32 to vector<16x1xf32>
    %387 = arith.divf %385, %386 : vector<16x1xf32>
    %388 = vector.broadcast %380 : vector<16x1xf32> to vector<16x32xf32>
    %389 = arith.subf %374, %388 : vector<16x32xf32>
    %cst_146 = arith.constant 9.99999974E-6 : f32
    %390 = vector.broadcast %cst_146 : f32 to vector<16x1xf32>
    %391 = arith.addf %387, %390 : vector<16x1xf32>
    %392 = math.rsqrt %391 : vector<16x1xf32>
    %393 = vector.broadcast %392 : vector<16x1xf32> to vector<16x32xf32>
    %394 = arith.mulf %389, %393 : vector<16x32xf32>
    %395 = vector.broadcast %375 : vector<1x32xf32> to vector<16x32xf32>
    %396 = arith.mulf %394, %395 : vector<16x32xf32>
    %397 = vector.broadcast %376 : vector<1x32xf32> to vector<16x32xf32>
    %398 = arith.addf %396, %397 : vector<16x32xf32>
    %c2_147 = arith.constant 2 : index
    %c0_148 = arith.constant 0 : index
    %c0_149 = arith.constant 0 : index
    %399 = vector.load %arg10[%c2_147, %c0_148, %c0_149] : memref<4x32x128xf32, #tpu.memory_space<vmem>>, vector<1x32x128xf32>
    %400 = vector.shape_cast %399 : vector<1x32x128xf32> to vector<32x128xf32>
    %cst_150 = arith.constant dense<0.000000e+00> : vector<16x128xf32>
    %401 = tpu.matmul %398, %400, %cst_150 {dimension_numbers = #tpu.dot_dimension_numbers<[1], [0], [0], [1], [0, 0, 1, 1], [], []>} : vector<16x32xf32>, vector<32x128xf32>, vector<16x128xf32> -> vector<16x128xf32>
    %c34 = arith.constant 34 : index
    %c0_151 = arith.constant 0 : index
    %402 = vector.load %arg5[%c34, %c0_151] : memref<64x128xf32, #tpu.memory_space<vmem>>, vector<1x128xf32>
    %403 = vector.broadcast %402 : vector<1x128xf32> to vector<16x128xf32>
    %404 = arith.addf %401, %403 : vector<16x128xf32>
    %cst_152 = arith.constant 0.000000e+00 : f32
    %405 = vector.broadcast %cst_152 : f32 to vector<16x128xf32>
    %406 = arith.subf %405, %404 : vector<16x128xf32>
    %407 = math.exp %406 : vector<16x128xf32>
    %cst_153 = arith.constant 1.000000e+00 : f32
    %408 = vector.broadcast %cst_153 : f32 to vector<16x128xf32>
    %409 = arith.addf %408, %407 : vector<16x128xf32>
    %410 = tpu.reciprocal %409 {approx = true} : vector<16x128xf32> -> vector<16x128xf32>
    %411 = arith.mulf %404, %410 : vector<16x128xf32>
    %c2_154 = arith.constant 2 : index
    %c0_155 = arith.constant 0 : index
    %c0_156 = arith.constant 0 : index
    %412 = vector.load %arg11[%c2_154, %c0_155, %c0_156] : memref<4x128x32xf32, #tpu.memory_space<vmem>>, vector<1x128x32xf32>
    %413 = vector.shape_cast %412 : vector<1x128x32xf32> to vector<128x32xf32>
    %cst_157 = arith.constant dense<0.000000e+00> : vector<16x32xf32>
    %414 = tpu.matmul %411, %413, %cst_157 {dimension_numbers = #tpu.dot_dimension_numbers<[1], [0], [0], [1], [0, 0, 1, 1], [], []>} : vector<16x128xf32>, vector<128x32xf32>, vector<16x32xf32> -> vector<16x32xf32>
    %c35 = arith.constant 35 : index
    %c0_158 = arith.constant 0 : index
    %415 = vector.load %arg5[%c35, %c0_158] : memref<64x128xf32, #tpu.memory_space<vmem>>, vector<1x32xf32>
    %416 = vector.broadcast %415 : vector<1x32xf32> to vector<16x32xf32>
    %417 = arith.addf %414, %416 : vector<16x32xf32>
    %cst_159 = arith.constant 5.000000e-01 : f32
    %418 = vector.broadcast %cst_159 : f32 to vector<16x32xf32>
    %419 = arith.mulf %418, %417 : vector<16x32xf32>
    %420 = arith.addf %374, %419 : vector<16x32xf32>
    %c36 = arith.constant 36 : index
    %c0_160 = arith.constant 0 : index
    %421 = vector.load %arg5[%c36, %c0_160] : memref<64x128xf32, #tpu.memory_space<vmem>>, vector<1x32xf32>
    %c37 = arith.constant 37 : index
    %c0_161 = arith.constant 0 : index
    %422 = vector.load %arg5[%c37, %c0_161] : memref<64x128xf32, #tpu.memory_space<vmem>>, vector<1x32xf32>
    %cst_162 = arith.constant dense<0.000000e+00> : vector<16xf32>
    %423 = vector.multi_reduction <add>, %420, %cst_162 [1] : vector<16x32xf32> to vector<16xf32>
    %424 = vector.shape_cast %423 : vector<16xf32> to vector<16x1xf32>
    %cst_163 = arith.constant 3.200000e+01 : f32
    %425 = vector.broadcast %cst_163 : f32 to vector<16x1xf32>
    %426 = arith.divf %424, %425 : vector<16x1xf32>
    %427 = vector.broadcast %426 : vector<16x1xf32> to vector<16x32xf32>
    %428 = arith.subf %420, %427 : vector<16x32xf32>
    %429 = arith.mulf %428, %428 : vector<16x32xf32>
    %cst_164 = arith.constant dense<0.000000e+00> : vector<16xf32>
    %430 = vector.multi_reduction <add>, %429, %cst_164 [1] : vector<16x32xf32> to vector<16xf32>
    %431 = vector.shape_cast %430 : vector<16xf32> to vector<16x1xf32>
    %cst_165 = arith.constant 3.200000e+01 : f32
    %432 = vector.broadcast %cst_165 : f32 to vector<16x1xf32>
    %433 = arith.divf %431, %432 : vector<16x1xf32>
    %434 = vector.broadcast %426 : vector<16x1xf32> to vector<16x32xf32>
    %435 = arith.subf %420, %434 : vector<16x32xf32>
    %cst_166 = arith.constant 9.99999974E-6 : f32
    %436 = vector.broadcast %cst_166 : f32 to vector<16x1xf32>
    %437 = arith.addf %433, %436 : vector<16x1xf32>
    %438 = math.rsqrt %437 : vector<16x1xf32>
    %439 = vector.broadcast %438 : vector<16x1xf32> to vector<16x32xf32>
    %440 = arith.mulf %435, %439 : vector<16x32xf32>
    %441 = vector.broadcast %421 : vector<1x32xf32> to vector<16x32xf32>
    %442 = arith.mulf %440, %441 : vector<16x32xf32>
    %443 = vector.broadcast %422 : vector<1x32xf32> to vector<16x32xf32>
    %444 = arith.addf %442, %443 : vector<16x32xf32>
    %c1_167 = arith.constant 1 : index
    %c0_168 = arith.constant 0 : index
    %c0_169 = arith.constant 0 : index
    %445 = vector.load %arg6[%c1_167, %c0_168, %c0_169] : memref<2x32x96xf32, #tpu.memory_space<vmem>>, vector<1x32x96xf32>
    %446 = vector.shape_cast %445 : vector<1x32x96xf32> to vector<32x96xf32>
    %cst_170 = arith.constant dense<0.000000e+00> : vector<16x96xf32>
    %447 = tpu.matmul %444, %446, %cst_170 {dimension_numbers = #tpu.dot_dimension_numbers<[1], [0], [0], [1], [0, 0, 1, 1], [], []>} : vector<16x32xf32>, vector<32x96xf32>, vector<16x96xf32> -> vector<16x96xf32>
    %c38 = arith.constant 38 : index
    %c0_171 = arith.constant 0 : index
    %448 = vector.load %arg5[%c38, %c0_171] : memref<64x128xf32, #tpu.memory_space<vmem>>, vector<1x96xf32>
    %449 = vector.broadcast %448 : vector<1x96xf32> to vector<16x96xf32>
    %450 = arith.addf %447, %449 : vector<16x96xf32>
    %451 = vector.extract_strided_slice %450 {offsets = [0, 0], sizes = [16, 32], strides = [1, 1]} : vector<16x96xf32> to vector<16x32xf32>
    %452 = vector.extract_strided_slice %450 {offsets = [0, 32], sizes = [16, 32], strides = [1, 1]} : vector<16x96xf32> to vector<16x32xf32>
    %453 = vector.extract_strided_slice %450 {offsets = [0, 64], sizes = [16, 32], strides = [1, 1]} : vector<16x96xf32> to vector<16x32xf32>
    %c40 = arith.constant 40 : index
    %c0_172 = arith.constant 0 : index
    %454 = vector.load %arg5[%c40, %c0_172] : memref<64x128xf32, #tpu.memory_space<vmem>>, vector<1x32xf32>
    %455 = vector.broadcast %454 : vector<1x32xf32> to vector<16x32xf32>
    %456 = arith.addf %451, %455 : vector<16x32xf32>
    %c41 = arith.constant 41 : index
    %c0_173 = arith.constant 0 : index
    %457 = vector.load %arg5[%c41, %c0_173] : memref<64x128xf32, #tpu.memory_space<vmem>>, vector<1x32xf32>
    %458 = vector.broadcast %457 : vector<1x32xf32> to vector<16x32xf32>
    %459 = arith.addf %451, %458 : vector<16x32xf32>
    %c1_174 = arith.constant 1 : index
    %c0_175 = arith.constant 0 : index
    %c0_176 = arith.constant 0 : index
    %460 = vector.load %arg7[%c1_174, %c0_175, %c0_176] : memref<2x32x128xf32, #tpu.memory_space<vmem>>, vector<1x32x128xf32>
    %461 = vector.shape_cast %460 : vector<1x32x128xf32> to vector<32x128xf32>
    %cst_177 = arith.constant dense<0.000000e+00> : vector<16x128xf32>
    %462 = tpu.matmul %459, %461, %cst_177 {dimension_numbers = #tpu.dot_dimension_numbers<[1], [0], [0], [1], [0, 0, 1, 1], [], []>} : vector<16x32xf32>, vector<32x128xf32>, vector<16x128xf32> -> vector<16x128xf32>
    %c0_178 = arith.constant 0 : index
    %c0_179 = arith.constant 0 : index
    %c0_180 = arith.constant 0 : index
    %463 = vector.load %arg4[%c0_178, %c0_179, %c0_180] : memref<16x16x32xf32, #tpu.memory_space<vmem>>, vector<16x16x32xf32>
    %464 = vector.extract_strided_slice %456 {offsets = [0, 0], sizes = [16, 8], strides = [1, 1]} : vector<16x32xf32> to vector<16x8xf32>
    %465 = vector.extract_strided_slice %452 {offsets = [0, 0], sizes = [16, 8], strides = [1, 1]} : vector<16x32xf32> to vector<16x8xf32>
    %cst_181 = arith.constant dense<0.000000e+00> : vector<16x16xf32>
    %466 = tpu.matmul %464, %465, %cst_181 {dimension_numbers = #tpu.dot_dimension_numbers<[1], [1], [0], [0], [0, 0, 1, 0], [], []>} : vector<16x8xf32>, vector<16x8xf32>, vector<16x16xf32> -> vector<16x16xf32>
    %467 = vector.extract_strided_slice %462 {offsets = [0, 0], sizes = [16, 32], strides = [1, 1]} : vector<16x128xf32> to vector<16x32xf32>
    %468 = vector.shape_cast %467 : vector<16x32xf32> to vector<16x1x32xf32>
    %469 = vector.broadcast %468 : vector<16x1x32xf32> to vector<16x16x32xf32>
    %470 = arith.mulf %469, %463 : vector<16x16x32xf32>
    %cst_182 = arith.constant dense<0.000000e+00> : vector<16x16xf32>
    %471 = vector.multi_reduction <add>, %470, %cst_182 [2] : vector<16x16x32xf32> to vector<16x16xf32>
    %472 = arith.addf %466, %471 : vector<16x16xf32>
    %cst_183 = arith.constant 0.353553385 : f32
    %473 = vector.broadcast %cst_183 : f32 to vector<16x16xf32>
    %474 = arith.mulf %472, %473 : vector<16x16xf32>
    %cst_184 = arith.constant dense<0xFF800000> : vector<16xf32>
    %475 = vector.multi_reduction <maximumf>, %474, %cst_184 [1] : vector<16x16xf32> to vector<16xf32>
    %476 = vector.shape_cast %475 : vector<16xf32> to vector<16x1xf32>
    %477 = vector.broadcast %476 : vector<16x1xf32> to vector<16x16xf32>
    %478 = arith.subf %474, %477 : vector<16x16xf32>
    %479 = math.exp %478 : vector<16x16xf32>
    %cst_185 = arith.constant dense<0.000000e+00> : vector<16xf32>
    %480 = vector.multi_reduction <add>, %479, %cst_185 [1] : vector<16x16xf32> to vector<16xf32>
    %481 = vector.shape_cast %480 : vector<16xf32> to vector<16x1xf32>
    %482 = tpu.reciprocal %481 {approx = true} : vector<16x1xf32> -> vector<16x1xf32>
    %483 = vector.broadcast %482 : vector<16x1xf32> to vector<16x16xf32>
    %484 = arith.mulf %479, %483 : vector<16x16xf32>
    %485 = vector.extract_strided_slice %453 {offsets = [0, 0], sizes = [16, 8], strides = [1, 1]} : vector<16x32xf32> to vector<16x8xf32>
    %cst_186 = arith.constant dense<0.000000e+00> : vector<16x8xf32>
    %486 = tpu.matmul %484, %485, %cst_186 {dimension_numbers = #tpu.dot_dimension_numbers<[1], [0], [0], [1], [0, 0, 1, 1], [], []>} : vector<16x16xf32>, vector<16x8xf32>, vector<16x8xf32> -> vector<16x8xf32>
    %487 = vector.extract_strided_slice %456 {offsets = [0, 8], sizes = [16, 8], strides = [1, 1]} : vector<16x32xf32> to vector<16x8xf32>
    %488 = vector.extract_strided_slice %452 {offsets = [0, 8], sizes = [16, 8], strides = [1, 1]} : vector<16x32xf32> to vector<16x8xf32>
    %cst_187 = arith.constant dense<0.000000e+00> : vector<16x16xf32>
    %489 = tpu.matmul %487, %488, %cst_187 {dimension_numbers = #tpu.dot_dimension_numbers<[1], [1], [0], [0], [0, 0, 1, 0], [], []>} : vector<16x8xf32>, vector<16x8xf32>, vector<16x16xf32> -> vector<16x16xf32>
    %490 = vector.extract_strided_slice %462 {offsets = [0, 32], sizes = [16, 32], strides = [1, 1]} : vector<16x128xf32> to vector<16x32xf32>
    %491 = vector.shape_cast %490 : vector<16x32xf32> to vector<16x1x32xf32>
    %492 = vector.broadcast %491 : vector<16x1x32xf32> to vector<16x16x32xf32>
    %493 = arith.mulf %492, %463 : vector<16x16x32xf32>
    %cst_188 = arith.constant dense<0.000000e+00> : vector<16x16xf32>
    %494 = vector.multi_reduction <add>, %493, %cst_188 [2] : vector<16x16x32xf32> to vector<16x16xf32>
    %495 = arith.addf %489, %494 : vector<16x16xf32>
    %cst_189 = arith.constant 0.353553385 : f32
    %496 = vector.broadcast %cst_189 : f32 to vector<16x16xf32>
    %497 = arith.mulf %495, %496 : vector<16x16xf32>
    %cst_190 = arith.constant dense<0xFF800000> : vector<16xf32>
    %498 = vector.multi_reduction <maximumf>, %497, %cst_190 [1] : vector<16x16xf32> to vector<16xf32>
    %499 = vector.shape_cast %498 : vector<16xf32> to vector<16x1xf32>
    %500 = vector.broadcast %499 : vector<16x1xf32> to vector<16x16xf32>
    %501 = arith.subf %497, %500 : vector<16x16xf32>
    %502 = math.exp %501 : vector<16x16xf32>
    %cst_191 = arith.constant dense<0.000000e+00> : vector<16xf32>
    %503 = vector.multi_reduction <add>, %502, %cst_191 [1] : vector<16x16xf32> to vector<16xf32>
    %504 = vector.shape_cast %503 : vector<16xf32> to vector<16x1xf32>
    %505 = tpu.reciprocal %504 {approx = true} : vector<16x1xf32> -> vector<16x1xf32>
    %506 = vector.broadcast %505 : vector<16x1xf32> to vector<16x16xf32>
    %507 = arith.mulf %502, %506 : vector<16x16xf32>
    %508 = vector.extract_strided_slice %453 {offsets = [0, 8], sizes = [16, 8], strides = [1, 1]} : vector<16x32xf32> to vector<16x8xf32>
    %cst_192 = arith.constant dense<0.000000e+00> : vector<16x8xf32>
    %509 = tpu.matmul %507, %508, %cst_192 {dimension_numbers = #tpu.dot_dimension_numbers<[1], [0], [0], [1], [0, 0, 1, 1], [], []>} : vector<16x16xf32>, vector<16x8xf32>, vector<16x8xf32> -> vector<16x8xf32>
    %510 = vector.extract_strided_slice %456 {offsets = [0, 16], sizes = [16, 8], strides = [1, 1]} : vector<16x32xf32> to vector<16x8xf32>
    %511 = vector.extract_strided_slice %452 {offsets = [0, 16], sizes = [16, 8], strides = [1, 1]} : vector<16x32xf32> to vector<16x8xf32>
    %cst_193 = arith.constant dense<0.000000e+00> : vector<16x16xf32>
    %512 = tpu.matmul %510, %511, %cst_193 {dimension_numbers = #tpu.dot_dimension_numbers<[1], [1], [0], [0], [0, 0, 1, 0], [], []>} : vector<16x8xf32>, vector<16x8xf32>, vector<16x16xf32> -> vector<16x16xf32>
    %513 = vector.extract_strided_slice %462 {offsets = [0, 64], sizes = [16, 32], strides = [1, 1]} : vector<16x128xf32> to vector<16x32xf32>
    %514 = vector.shape_cast %513 : vector<16x32xf32> to vector<16x1x32xf32>
    %515 = vector.broadcast %514 : vector<16x1x32xf32> to vector<16x16x32xf32>
    %516 = arith.mulf %515, %463 : vector<16x16x32xf32>
    %cst_194 = arith.constant dense<0.000000e+00> : vector<16x16xf32>
    %517 = vector.multi_reduction <add>, %516, %cst_194 [2] : vector<16x16x32xf32> to vector<16x16xf32>
    %518 = arith.addf %512, %517 : vector<16x16xf32>
    %cst_195 = arith.constant 0.353553385 : f32
    %519 = vector.broadcast %cst_195 : f32 to vector<16x16xf32>
    %520 = arith.mulf %518, %519 : vector<16x16xf32>
    %cst_196 = arith.constant dense<0xFF800000> : vector<16xf32>
    %521 = vector.multi_reduction <maximumf>, %520, %cst_196 [1] : vector<16x16xf32> to vector<16xf32>
    %522 = vector.shape_cast %521 : vector<16xf32> to vector<16x1xf32>
    %523 = vector.broadcast %522 : vector<16x1xf32> to vector<16x16xf32>
    %524 = arith.subf %520, %523 : vector<16x16xf32>
    %525 = math.exp %524 : vector<16x16xf32>
    %cst_197 = arith.constant dense<0.000000e+00> : vector<16xf32>
    %526 = vector.multi_reduction <add>, %525, %cst_197 [1] : vector<16x16xf32> to vector<16xf32>
    %527 = vector.shape_cast %526 : vector<16xf32> to vector<16x1xf32>
    %528 = tpu.reciprocal %527 {approx = true} : vector<16x1xf32> -> vector<16x1xf32>
    %529 = vector.broadcast %528 : vector<16x1xf32> to vector<16x16xf32>
    %530 = arith.mulf %525, %529 : vector<16x16xf32>
    %531 = vector.extract_strided_slice %453 {offsets = [0, 16], sizes = [16, 8], strides = [1, 1]} : vector<16x32xf32> to vector<16x8xf32>
    %cst_198 = arith.constant dense<0.000000e+00> : vector<16x8xf32>
    %532 = tpu.matmul %530, %531, %cst_198 {dimension_numbers = #tpu.dot_dimension_numbers<[1], [0], [0], [1], [0, 0, 1, 1], [], []>} : vector<16x16xf32>, vector<16x8xf32>, vector<16x8xf32> -> vector<16x8xf32>
    %533 = vector.extract_strided_slice %456 {offsets = [0, 24], sizes = [16, 8], strides = [1, 1]} : vector<16x32xf32> to vector<16x8xf32>
    %534 = vector.extract_strided_slice %452 {offsets = [0, 24], sizes = [16, 8], strides = [1, 1]} : vector<16x32xf32> to vector<16x8xf32>
    %cst_199 = arith.constant dense<0.000000e+00> : vector<16x16xf32>
    %535 = tpu.matmul %533, %534, %cst_199 {dimension_numbers = #tpu.dot_dimension_numbers<[1], [1], [0], [0], [0, 0, 1, 0], [], []>} : vector<16x8xf32>, vector<16x8xf32>, vector<16x16xf32> -> vector<16x16xf32>
    %536 = vector.extract_strided_slice %462 {offsets = [0, 96], sizes = [16, 32], strides = [1, 1]} : vector<16x128xf32> to vector<16x32xf32>
    %537 = vector.shape_cast %536 : vector<16x32xf32> to vector<16x1x32xf32>
    %538 = vector.broadcast %537 : vector<16x1x32xf32> to vector<16x16x32xf32>
    %539 = arith.mulf %538, %463 : vector<16x16x32xf32>
    %cst_200 = arith.constant dense<0.000000e+00> : vector<16x16xf32>
    %540 = vector.multi_reduction <add>, %539, %cst_200 [2] : vector<16x16x32xf32> to vector<16x16xf32>
    %541 = arith.addf %535, %540 : vector<16x16xf32>
    %cst_201 = arith.constant 0.353553385 : f32
    %542 = vector.broadcast %cst_201 : f32 to vector<16x16xf32>
    %543 = arith.mulf %541, %542 : vector<16x16xf32>
    %cst_202 = arith.constant dense<0xFF800000> : vector<16xf32>
    %544 = vector.multi_reduction <maximumf>, %543, %cst_202 [1] : vector<16x16xf32> to vector<16xf32>
    %545 = vector.shape_cast %544 : vector<16xf32> to vector<16x1xf32>
    %546 = vector.broadcast %545 : vector<16x1xf32> to vector<16x16xf32>
    %547 = arith.subf %543, %546 : vector<16x16xf32>
    %548 = math.exp %547 : vector<16x16xf32>
    %cst_203 = arith.constant dense<0.000000e+00> : vector<16xf32>
    %549 = vector.multi_reduction <add>, %548, %cst_203 [1] : vector<16x16xf32> to vector<16xf32>
    %550 = vector.shape_cast %549 : vector<16xf32> to vector<16x1xf32>
    %551 = tpu.reciprocal %550 {approx = true} : vector<16x1xf32> -> vector<16x1xf32>
    %552 = vector.broadcast %551 : vector<16x1xf32> to vector<16x16xf32>
    %553 = arith.mulf %548, %552 : vector<16x16xf32>
    %554 = vector.extract_strided_slice %453 {offsets = [0, 24], sizes = [16, 8], strides = [1, 1]} : vector<16x32xf32> to vector<16x8xf32>
    %cst_204 = arith.constant dense<0.000000e+00> : vector<16x8xf32>
    %555 = tpu.matmul %553, %554, %cst_204 {dimension_numbers = #tpu.dot_dimension_numbers<[1], [0], [0], [1], [0, 0, 1, 1], [], []>} : vector<16x16xf32>, vector<16x8xf32>, vector<16x8xf32> -> vector<16x8xf32>
    %556 = tpu.concatenate %486, %509, %532, %555 in 1 : vector<16x8xf32>, vector<16x8xf32>, vector<16x8xf32>, vector<16x8xf32> -> vector<16x32xf32>
    %c2_205 = arith.constant 2 : index
    %c0_206 = arith.constant 0 : index
    %c0_207 = arith.constant 0 : index
    %557 = vector.load %arg9[%c2_205, %c0_206, %c0_207] : memref<4x32x32xf32, #tpu.memory_space<vmem>>, vector<1x32x32xf32>
    %558 = vector.shape_cast %557 : vector<1x32x32xf32> to vector<32x32xf32>
    %cst_208 = arith.constant dense<0.000000e+00> : vector<16x32xf32>
    %559 = tpu.matmul %556, %558, %cst_208 {dimension_numbers = #tpu.dot_dimension_numbers<[1], [0], [0], [1], [0, 0, 1, 1], [], []>} : vector<16x32xf32>, vector<32x32xf32>, vector<16x32xf32> -> vector<16x32xf32>
    %560 = arith.addf %420, %559 : vector<16x32xf32>
    %c39 = arith.constant 39 : index
    %c0_209 = arith.constant 0 : index
    %561 = vector.load %arg5[%c39, %c0_209] : memref<64x128xf32, #tpu.memory_space<vmem>>, vector<1x32xf32>
    %562 = vector.broadcast %561 : vector<1x32xf32> to vector<16x32xf32>
    %563 = arith.addf %560, %562 : vector<16x32xf32>
    %c42 = arith.constant 42 : index
    %c0_210 = arith.constant 0 : index
    %564 = vector.load %arg5[%c42, %c0_210] : memref<64x128xf32, #tpu.memory_space<vmem>>, vector<1x32xf32>
    %c43 = arith.constant 43 : index
    %c0_211 = arith.constant 0 : index
    %565 = vector.load %arg5[%c43, %c0_211] : memref<64x128xf32, #tpu.memory_space<vmem>>, vector<1x32xf32>
    %cst_212 = arith.constant dense<0.000000e+00> : vector<16xf32>
    %566 = vector.multi_reduction <add>, %563, %cst_212 [1] : vector<16x32xf32> to vector<16xf32>
    %567 = vector.shape_cast %566 : vector<16xf32> to vector<16x1xf32>
    %cst_213 = arith.constant 3.200000e+01 : f32
    %568 = vector.broadcast %cst_213 : f32 to vector<16x1xf32>
    %569 = arith.divf %567, %568 : vector<16x1xf32>
    %570 = vector.broadcast %569 : vector<16x1xf32> to vector<16x32xf32>
    %571 = arith.subf %563, %570 : vector<16x32xf32>
    %572 = arith.mulf %571, %571 : vector<16x32xf32>
    %cst_214 = arith.constant dense<0.000000e+00> : vector<16xf32>
    %573 = vector.multi_reduction <add>, %572, %cst_214 [1] : vector<16x32xf32> to vector<16xf32>
    %574 = vector.shape_cast %573 : vector<16xf32> to vector<16x1xf32>
    %cst_215 = arith.constant 3.200000e+01 : f32
    %575 = vector.broadcast %cst_215 : f32 to vector<16x1xf32>
    %576 = arith.divf %574, %575 : vector<16x1xf32>
    %577 = vector.broadcast %569 : vector<16x1xf32> to vector<16x32xf32>
    %578 = arith.subf %563, %577 : vector<16x32xf32>
    %cst_216 = arith.constant 9.99999974E-6 : f32
    %579 = vector.broadcast %cst_216 : f32 to vector<16x1xf32>
    %580 = arith.addf %576, %579 : vector<16x1xf32>
    %581 = math.rsqrt %580 : vector<16x1xf32>
    %582 = vector.broadcast %581 : vector<16x1xf32> to vector<16x32xf32>
    %583 = arith.mulf %578, %582 : vector<16x32xf32>
    %584 = vector.broadcast %564 : vector<1x32xf32> to vector<16x32xf32>
    %585 = arith.mulf %583, %584 : vector<16x32xf32>
    %586 = vector.broadcast %565 : vector<1x32xf32> to vector<16x32xf32>
    %587 = arith.addf %585, %586 : vector<16x32xf32>
    %c1_217 = arith.constant 1 : index
    %c0_218 = arith.constant 0 : index
    %c0_219 = arith.constant 0 : index
    %588 = vector.load %arg8[%c1_217, %c0_218, %c0_219] : memref<2x32x64xf32, #tpu.memory_space<vmem>>, vector<1x32x64xf32>
    %589 = vector.shape_cast %588 : vector<1x32x64xf32> to vector<32x64xf32>
    %cst_220 = arith.constant dense<0.000000e+00> : vector<16x64xf32>
    %590 = tpu.matmul %587, %589, %cst_220 {dimension_numbers = #tpu.dot_dimension_numbers<[1], [0], [0], [1], [0, 0, 1, 1], [], []>} : vector<16x32xf32>, vector<32x64xf32>, vector<16x64xf32> -> vector<16x64xf32>
    %c44 = arith.constant 44 : index
    %c0_221 = arith.constant 0 : index
    %591 = vector.load %arg5[%c44, %c0_221] : memref<64x128xf32, #tpu.memory_space<vmem>>, vector<1x64xf32>
    %592 = vector.broadcast %591 : vector<1x64xf32> to vector<16x64xf32>
    %593 = arith.addf %590, %592 : vector<16x64xf32>
    %594 = vector.extract_strided_slice %593 {offsets = [0, 0], sizes = [16, 32], strides = [1, 1]} : vector<16x64xf32> to vector<16x32xf32>
    %595 = vector.extract_strided_slice %593 {offsets = [0, 32], sizes = [16, 32], strides = [1, 1]} : vector<16x64xf32> to vector<16x32xf32>
    %cst_222 = arith.constant 0.000000e+00 : f32
    %596 = vector.broadcast %cst_222 : f32 to vector<16x32xf32>
    %597 = arith.subf %596, %595 : vector<16x32xf32>
    %598 = math.exp %597 : vector<16x32xf32>
    %cst_223 = arith.constant 1.000000e+00 : f32
    %599 = vector.broadcast %cst_223 : f32 to vector<16x32xf32>
    %600 = arith.addf %599, %598 : vector<16x32xf32>
    %601 = tpu.reciprocal %600 {approx = true} : vector<16x32xf32> -> vector<16x32xf32>
    %602 = arith.mulf %594, %601 : vector<16x32xf32>
    %cst_224 = arith.constant 0.000000e+00 : f32
    %603 = vector.broadcast %cst_224 : f32 to vector<3x32xf32>
    %604 = tpu.concatenate %603, %602, %603 in 0 : vector<3x32xf32>, vector<16x32xf32>, vector<3x32xf32> -> vector<22x32xf32>
    %cst_225 = arith.constant 0.000000e+00 : f32
    %605 = vector.broadcast %cst_225 : f32 to vector<16x32xf32>
    %606 = vector.extract_strided_slice %604 {offsets = [0, 0], sizes = [16, 32], strides = [1, 1]} : vector<22x32xf32> to vector<16x32xf32>
    %c57 = arith.constant 57 : index
    %c0_226 = arith.constant 0 : index
    %607 = vector.load %arg5[%c57, %c0_226] : memref<64x128xf32, #tpu.memory_space<vmem>>, vector<1x32xf32>
    %608 = vector.broadcast %607 : vector<1x32xf32> to vector<16x32xf32>
    %609 = arith.mulf %606, %608 : vector<16x32xf32>
    %610 = arith.addf %605, %609 : vector<16x32xf32>
    %611 = vector.extract_strided_slice %604 {offsets = [1, 0], sizes = [16, 32], strides = [1, 1]} : vector<22x32xf32> to vector<16x32xf32>
    %c58 = arith.constant 58 : index
    %c0_227 = arith.constant 0 : index
    %612 = vector.load %arg5[%c58, %c0_227] : memref<64x128xf32, #tpu.memory_space<vmem>>, vector<1x32xf32>
    %613 = vector.broadcast %612 : vector<1x32xf32> to vector<16x32xf32>
    %614 = arith.mulf %611, %613 : vector<16x32xf32>
    %615 = arith.addf %610, %614 : vector<16x32xf32>
    %616 = vector.extract_strided_slice %604 {offsets = [2, 0], sizes = [16, 32], strides = [1, 1]} : vector<22x32xf32> to vector<16x32xf32>
    %c59 = arith.constant 59 : index
    %c0_228 = arith.constant 0 : index
    %617 = vector.load %arg5[%c59, %c0_228] : memref<64x128xf32, #tpu.memory_space<vmem>>, vector<1x32xf32>
    %618 = vector.broadcast %617 : vector<1x32xf32> to vector<16x32xf32>
    %619 = arith.mulf %616, %618 : vector<16x32xf32>
    %620 = arith.addf %615, %619 : vector<16x32xf32>
    %621 = vector.extract_strided_slice %604 {offsets = [3, 0], sizes = [16, 32], strides = [1, 1]} : vector<22x32xf32> to vector<16x32xf32>
    %c60 = arith.constant 60 : index
    %c0_229 = arith.constant 0 : index
    %622 = vector.load %arg5[%c60, %c0_229] : memref<64x128xf32, #tpu.memory_space<vmem>>, vector<1x32xf32>
    %623 = vector.broadcast %622 : vector<1x32xf32> to vector<16x32xf32>
    %624 = arith.mulf %621, %623 : vector<16x32xf32>
    %625 = arith.addf %620, %624 : vector<16x32xf32>
    %626 = vector.extract_strided_slice %604 {offsets = [4, 0], sizes = [16, 32], strides = [1, 1]} : vector<22x32xf32> to vector<16x32xf32>
    %c61 = arith.constant 61 : index
    %c0_230 = arith.constant 0 : index
    %627 = vector.load %arg5[%c61, %c0_230] : memref<64x128xf32, #tpu.memory_space<vmem>>, vector<1x32xf32>
    %628 = vector.broadcast %627 : vector<1x32xf32> to vector<16x32xf32>
    %629 = arith.mulf %626, %628 : vector<16x32xf32>
    %630 = arith.addf %625, %629 : vector<16x32xf32>
    %631 = vector.extract_strided_slice %604 {offsets = [5, 0], sizes = [16, 32], strides = [1, 1]} : vector<22x32xf32> to vector<16x32xf32>
    %c62 = arith.constant 62 : index
    %c0_231 = arith.constant 0 : index
    %632 = vector.load %arg5[%c62, %c0_231] : memref<64x128xf32, #tpu.memory_space<vmem>>, vector<1x32xf32>
    %633 = vector.broadcast %632 : vector<1x32xf32> to vector<16x32xf32>
    %634 = arith.mulf %631, %633 : vector<16x32xf32>
    %635 = arith.addf %630, %634 : vector<16x32xf32>
    %636 = vector.extract_strided_slice %604 {offsets = [6, 0], sizes = [16, 32], strides = [1, 1]} : vector<22x32xf32> to vector<16x32xf32>
    %c63 = arith.constant 63 : index
    %c0_232 = arith.constant 0 : index
    %637 = vector.load %arg5[%c63, %c0_232] : memref<64x128xf32, #tpu.memory_space<vmem>>, vector<1x32xf32>
    %638 = vector.broadcast %637 : vector<1x32xf32> to vector<16x32xf32>
    %639 = arith.mulf %636, %638 : vector<16x32xf32>
    %640 = arith.addf %635, %639 : vector<16x32xf32>
    %c45 = arith.constant 45 : index
    %c0_233 = arith.constant 0 : index
    %641 = vector.load %arg5[%c45, %c0_233] : memref<64x128xf32, #tpu.memory_space<vmem>>, vector<1x32xf32>
    %642 = vector.broadcast %641 : vector<1x32xf32> to vector<16x32xf32>
    %643 = arith.addf %640, %642 : vector<16x32xf32>
    %c48 = arith.constant 48 : index
    %c0_234 = arith.constant 0 : index
    %644 = vector.load %arg5[%c48, %c0_234] : memref<64x128xf32, #tpu.memory_space<vmem>>, vector<1x32xf32>
    %645 = vector.broadcast %644 : vector<1x32xf32> to vector<16x32xf32>
    %646 = arith.subf %643, %645 : vector<16x32xf32>
    %c49 = arith.constant 49 : index
    %c0_235 = arith.constant 0 : index
    %647 = vector.load %arg5[%c49, %c0_235] : memref<64x128xf32, #tpu.memory_space<vmem>>, vector<1x32xf32>
    %cst_236 = arith.constant 9.99999974E-6 : f32
    %648 = vector.broadcast %cst_236 : f32 to vector<1x32xf32>
    %649 = arith.addf %647, %648 : vector<1x32xf32>
    %650 = math.rsqrt %649 : vector<1x32xf32>
    %651 = vector.broadcast %650 : vector<1x32xf32> to vector<16x32xf32>
    %652 = arith.mulf %646, %651 : vector<16x32xf32>
    %c46 = arith.constant 46 : index
    %c0_237 = arith.constant 0 : index
    %653 = vector.load %arg5[%c46, %c0_237] : memref<64x128xf32, #tpu.memory_space<vmem>>, vector<1x32xf32>
    %654 = vector.broadcast %653 : vector<1x32xf32> to vector<16x32xf32>
    %655 = arith.mulf %652, %654 : vector<16x32xf32>
    %c47 = arith.constant 47 : index
    %c0_238 = arith.constant 0 : index
    %656 = vector.load %arg5[%c47, %c0_238] : memref<64x128xf32, #tpu.memory_space<vmem>>, vector<1x32xf32>
    %657 = vector.broadcast %656 : vector<1x32xf32> to vector<16x32xf32>
    %658 = arith.addf %655, %657 : vector<16x32xf32>
    %cst_239 = arith.constant 0.000000e+00 : f32
    %659 = vector.broadcast %cst_239 : f32 to vector<16x32xf32>
    %660 = arith.subf %659, %658 : vector<16x32xf32>
    %661 = math.exp %660 : vector<16x32xf32>
    %cst_240 = arith.constant 1.000000e+00 : f32
    %662 = vector.broadcast %cst_240 : f32 to vector<16x32xf32>
    %663 = arith.addf %662, %661 : vector<16x32xf32>
    %664 = tpu.reciprocal %663 {approx = true} : vector<16x32xf32> -> vector<16x32xf32>
    %665 = arith.mulf %658, %664 : vector<16x32xf32>
    %c3_241 = arith.constant 3 : index
    %c0_242 = arith.constant 0 : index
    %c0_243 = arith.constant 0 : index
    %666 = vector.load %arg9[%c3_241, %c0_242, %c0_243] : memref<4x32x32xf32, #tpu.memory_space<vmem>>, vector<1x32x32xf32>
    %667 = vector.shape_cast %666 : vector<1x32x32xf32> to vector<32x32xf32>
    %cst_244 = arith.constant dense<0.000000e+00> : vector<16x32xf32>
    %668 = tpu.matmul %665, %667, %cst_244 {dimension_numbers = #tpu.dot_dimension_numbers<[1], [0], [0], [1], [0, 0, 1, 1], [], []>} : vector<16x32xf32>, vector<32x32xf32>, vector<16x32xf32> -> vector<16x32xf32>
    %c50 = arith.constant 50 : index
    %c0_245 = arith.constant 0 : index
    %669 = vector.load %arg5[%c50, %c0_245] : memref<64x128xf32, #tpu.memory_space<vmem>>, vector<1x32xf32>
    %670 = vector.broadcast %669 : vector<1x32xf32> to vector<16x32xf32>
    %671 = arith.addf %668, %670 : vector<16x32xf32>
    %672 = arith.addf %563, %671 : vector<16x32xf32>
    %c51 = arith.constant 51 : index
    %c0_246 = arith.constant 0 : index
    %673 = vector.load %arg5[%c51, %c0_246] : memref<64x128xf32, #tpu.memory_space<vmem>>, vector<1x32xf32>
    %c52 = arith.constant 52 : index
    %c0_247 = arith.constant 0 : index
    %674 = vector.load %arg5[%c52, %c0_247] : memref<64x128xf32, #tpu.memory_space<vmem>>, vector<1x32xf32>
    %cst_248 = arith.constant dense<0.000000e+00> : vector<16xf32>
    %675 = vector.multi_reduction <add>, %672, %cst_248 [1] : vector<16x32xf32> to vector<16xf32>
    %676 = vector.shape_cast %675 : vector<16xf32> to vector<16x1xf32>
    %cst_249 = arith.constant 3.200000e+01 : f32
    %677 = vector.broadcast %cst_249 : f32 to vector<16x1xf32>
    %678 = arith.divf %676, %677 : vector<16x1xf32>
    %679 = vector.broadcast %678 : vector<16x1xf32> to vector<16x32xf32>
    %680 = arith.subf %672, %679 : vector<16x32xf32>
    %681 = arith.mulf %680, %680 : vector<16x32xf32>
    %cst_250 = arith.constant dense<0.000000e+00> : vector<16xf32>
    %682 = vector.multi_reduction <add>, %681, %cst_250 [1] : vector<16x32xf32> to vector<16xf32>
    %683 = vector.shape_cast %682 : vector<16xf32> to vector<16x1xf32>
    %cst_251 = arith.constant 3.200000e+01 : f32
    %684 = vector.broadcast %cst_251 : f32 to vector<16x1xf32>
    %685 = arith.divf %683, %684 : vector<16x1xf32>
    %686 = vector.broadcast %678 : vector<16x1xf32> to vector<16x32xf32>
    %687 = arith.subf %672, %686 : vector<16x32xf32>
    %cst_252 = arith.constant 9.99999974E-6 : f32
    %688 = vector.broadcast %cst_252 : f32 to vector<16x1xf32>
    %689 = arith.addf %685, %688 : vector<16x1xf32>
    %690 = math.rsqrt %689 : vector<16x1xf32>
    %691 = vector.broadcast %690 : vector<16x1xf32> to vector<16x32xf32>
    %692 = arith.mulf %687, %691 : vector<16x32xf32>
    %693 = vector.broadcast %673 : vector<1x32xf32> to vector<16x32xf32>
    %694 = arith.mulf %692, %693 : vector<16x32xf32>
    %695 = vector.broadcast %674 : vector<1x32xf32> to vector<16x32xf32>
    %696 = arith.addf %694, %695 : vector<16x32xf32>
    %c3_253 = arith.constant 3 : index
    %c0_254 = arith.constant 0 : index
    %c0_255 = arith.constant 0 : index
    %697 = vector.load %arg10[%c3_253, %c0_254, %c0_255] : memref<4x32x128xf32, #tpu.memory_space<vmem>>, vector<1x32x128xf32>
    %698 = vector.shape_cast %697 : vector<1x32x128xf32> to vector<32x128xf32>
    %cst_256 = arith.constant dense<0.000000e+00> : vector<16x128xf32>
    %699 = tpu.matmul %696, %698, %cst_256 {dimension_numbers = #tpu.dot_dimension_numbers<[1], [0], [0], [1], [0, 0, 1, 1], [], []>} : vector<16x32xf32>, vector<32x128xf32>, vector<16x128xf32> -> vector<16x128xf32>
    %c53 = arith.constant 53 : index
    %c0_257 = arith.constant 0 : index
    %700 = vector.load %arg5[%c53, %c0_257] : memref<64x128xf32, #tpu.memory_space<vmem>>, vector<1x128xf32>
    %701 = vector.broadcast %700 : vector<1x128xf32> to vector<16x128xf32>
    %702 = arith.addf %699, %701 : vector<16x128xf32>
    %cst_258 = arith.constant 0.000000e+00 : f32
    %703 = vector.broadcast %cst_258 : f32 to vector<16x128xf32>
    %704 = arith.subf %703, %702 : vector<16x128xf32>
    %705 = math.exp %704 : vector<16x128xf32>
    %cst_259 = arith.constant 1.000000e+00 : f32
    %706 = vector.broadcast %cst_259 : f32 to vector<16x128xf32>
    %707 = arith.addf %706, %705 : vector<16x128xf32>
    %708 = tpu.reciprocal %707 {approx = true} : vector<16x128xf32> -> vector<16x128xf32>
    %709 = arith.mulf %702, %708 : vector<16x128xf32>
    %c3_260 = arith.constant 3 : index
    %c0_261 = arith.constant 0 : index
    %c0_262 = arith.constant 0 : index
    %710 = vector.load %arg11[%c3_260, %c0_261, %c0_262] : memref<4x128x32xf32, #tpu.memory_space<vmem>>, vector<1x128x32xf32>
    %711 = vector.shape_cast %710 : vector<1x128x32xf32> to vector<128x32xf32>
    %cst_263 = arith.constant dense<0.000000e+00> : vector<16x32xf32>
    %712 = tpu.matmul %709, %711, %cst_263 {dimension_numbers = #tpu.dot_dimension_numbers<[1], [0], [0], [1], [0, 0, 1, 1], [], []>} : vector<16x128xf32>, vector<128x32xf32>, vector<16x32xf32> -> vector<16x32xf32>
    %c54 = arith.constant 54 : index
    %c0_264 = arith.constant 0 : index
    %713 = vector.load %arg5[%c54, %c0_264] : memref<64x128xf32, #tpu.memory_space<vmem>>, vector<1x32xf32>
    %714 = vector.broadcast %713 : vector<1x32xf32> to vector<16x32xf32>
    %715 = arith.addf %712, %714 : vector<16x32xf32>
    %cst_265 = arith.constant 5.000000e-01 : f32
    %716 = vector.broadcast %cst_265 : f32 to vector<16x32xf32>
    %717 = arith.mulf %716, %715 : vector<16x32xf32>
    %718 = arith.addf %672, %717 : vector<16x32xf32>
    %c55 = arith.constant 55 : index
    %c0_266 = arith.constant 0 : index
    %719 = vector.load %arg5[%c55, %c0_266] : memref<64x128xf32, #tpu.memory_space<vmem>>, vector<1x32xf32>
    %c56 = arith.constant 56 : index
    %c0_267 = arith.constant 0 : index
    %720 = vector.load %arg5[%c56, %c0_267] : memref<64x128xf32, #tpu.memory_space<vmem>>, vector<1x32xf32>
    %cst_268 = arith.constant dense<0.000000e+00> : vector<16xf32>
    %721 = vector.multi_reduction <add>, %718, %cst_268 [1] : vector<16x32xf32> to vector<16xf32>
    %722 = vector.shape_cast %721 : vector<16xf32> to vector<16x1xf32>
    %cst_269 = arith.constant 3.200000e+01 : f32
    %723 = vector.broadcast %cst_269 : f32 to vector<16x1xf32>
    %724 = arith.divf %722, %723 : vector<16x1xf32>
    %725 = vector.broadcast %724 : vector<16x1xf32> to vector<16x32xf32>
    %726 = arith.subf %718, %725 : vector<16x32xf32>
    %727 = arith.mulf %726, %726 : vector<16x32xf32>
    %cst_270 = arith.constant dense<0.000000e+00> : vector<16xf32>
    %728 = vector.multi_reduction <add>, %727, %cst_270 [1] : vector<16x32xf32> to vector<16xf32>
    %729 = vector.shape_cast %728 : vector<16xf32> to vector<16x1xf32>
    %cst_271 = arith.constant 3.200000e+01 : f32
    %730 = vector.broadcast %cst_271 : f32 to vector<16x1xf32>
    %731 = arith.divf %729, %730 : vector<16x1xf32>
    %732 = vector.broadcast %724 : vector<16x1xf32> to vector<16x32xf32>
    %733 = arith.subf %718, %732 : vector<16x32xf32>
    %cst_272 = arith.constant 9.99999974E-6 : f32
    %734 = vector.broadcast %cst_272 : f32 to vector<16x1xf32>
    %735 = arith.addf %731, %734 : vector<16x1xf32>
    %736 = math.rsqrt %735 : vector<16x1xf32>
    %737 = vector.broadcast %736 : vector<16x1xf32> to vector<16x32xf32>
    %738 = arith.mulf %733, %737 : vector<16x32xf32>
    %739 = vector.broadcast %719 : vector<1x32xf32> to vector<16x32xf32>
    %740 = arith.mulf %738, %739 : vector<16x32xf32>
    %741 = vector.broadcast %720 : vector<1x32xf32> to vector<16x32xf32>
    %742 = arith.addf %740, %741 : vector<16x32xf32>
    %c0_273 = arith.constant 0 : index
    %c0_274 = arith.constant 0 : index
    %c0_275 = arith.constant 0 : index
    %743 = vector.load %arg12[%c0_273, %c0_274, %c0_275] : memref<1x16x32xf32, #tpu.memory_space<vmem>>, vector<1x16x32xf32>
    %744 = vector.shape_cast %743 : vector<1x16x32xf32> to vector<16x32xf32>
    %745 = vector.shape_cast %742 : vector<16x32xf32> to vector<1x16x32xf32>
    tpu.vector_store %arg12[%c0_273, %c0_274, %c0_275], %745 {strides = array<i32>} : memref<1x16x32xf32, #tpu.memory_space<vmem>>, vector<1x16x32xf32>,
    return
  }
  func.func @transform_0(%arg0: i32) -> (i32, i32, i32) {
    %c0_i32 = arith.constant 0 : i32
    %c0_i32_0 = arith.constant 0 : i32
    %c0_i32_1 = arith.constant 0 : i32
    return %arg0, %c0_i32, %c0_i32_0 : i32, i32, i32
  }
  func.func @transform_1(%arg0: i32) -> (i32, i32) {
    %c0_i32 = arith.constant 0 : i32
    %c0_i32_0 = arith.constant 0 : i32
    %c0_i32_1 = arith.constant 0 : i32
    return %c0_i32, %c0_i32_0 : i32, i32
  }
  func.func @transform_2(%arg0: i32) -> (i32, i32) {
    %c0_i32 = arith.constant 0 : i32
    %c0_i32_0 = arith.constant 0 : i32
    %c0_i32_1 = arith.constant 0 : i32
    return %c0_i32, %c0_i32_0 : i32, i32
  }
  func.func @transform_3(%arg0: i32) -> (i32, i32, i32) {
    %c0_i32 = arith.constant 0 : i32
    %c0_i32_0 = arith.constant 0 : i32
    %c0_i32_1 = arith.constant 0 : i32
    %c0_i32_2 = arith.constant 0 : i32
    return %c0_i32, %c0_i32_0, %c0_i32_1 : i32, i32, i32
  }
  func.func @transform_4(%arg0: i32) -> (i32, i32) {
    %c0_i32 = arith.constant 0 : i32
    %c0_i32_0 = arith.constant 0 : i32
    %c0_i32_1 = arith.constant 0 : i32
    return %c0_i32, %c0_i32_0 : i32, i32
  }
  func.func @transform_5(%arg0: i32) -> (i32, i32, i32) {
    %c0_i32 = arith.constant 0 : i32
    %c0_i32_0 = arith.constant 0 : i32
    %c0_i32_1 = arith.constant 0 : i32
    %c0_i32_2 = arith.constant 0 : i32
    return %c0_i32, %c0_i32_0, %c0_i32_1 : i32, i32, i32
  }
  func.func @transform_6(%arg0: i32) -> (i32, i32, i32) {
    %c0_i32 = arith.constant 0 : i32
    %c0_i32_0 = arith.constant 0 : i32
    %c0_i32_1 = arith.constant 0 : i32
    %c0_i32_2 = arith.constant 0 : i32
    return %c0_i32, %c0_i32_0, %c0_i32_1 : i32, i32, i32
  }
  func.func @transform_7(%arg0: i32) -> (i32, i32, i32) {
    %c0_i32 = arith.constant 0 : i32
    %c0_i32_0 = arith.constant 0 : i32
    %c0_i32_1 = arith.constant 0 : i32
    %c0_i32_2 = arith.constant 0 : i32
    return %c0_i32, %c0_i32_0, %c0_i32_1 : i32, i32, i32
  }
  func.func @transform_8(%arg0: i32) -> (i32, i32, i32) {
    %c0_i32 = arith.constant 0 : i32
    %c0_i32_0 = arith.constant 0 : i32
    %c0_i32_1 = arith.constant 0 : i32
    %c0_i32_2 = arith.constant 0 : i32
    return %c0_i32, %c0_i32_0, %c0_i32_1 : i32, i32, i32
  }
  func.func @transform_9(%arg0: i32) -> (i32, i32, i32) {
    %c0_i32 = arith.constant 0 : i32
    %c0_i32_0 = arith.constant 0 : i32
    %c0_i32_1 = arith.constant 0 : i32
    %c0_i32_2 = arith.constant 0 : i32
    return %c0_i32, %c0_i32_0, %c0_i32_1 : i32, i32, i32
  }
  func.func @transform_10(%arg0: i32) -> (i32, i32, i32) {
    %c0_i32 = arith.constant 0 : i32
    %c0_i32_0 = arith.constant 0 : i32
    %c0_i32_1 = arith.constant 0 : i32
    %c0_i32_2 = arith.constant 0 : i32
    return %c0_i32, %c0_i32_0, %c0_i32_1 : i32, i32, i32
  }
  func.func @transform_11(%arg0: i32) -> (i32, i32, i32) {
    %c0_i32 = arith.constant 0 : i32
    %c0_i32_0 = arith.constant 0 : i32
    %c0_i32_1 = arith.constant 0 : i32
    return %arg0, %c0_i32, %c0_i32_0 : i32, i32, i32
  }
}

</mosaic_0001>

<bundles_post_ra>
// kernel: tpu_custom_call.1
= control target key start
LH: loop header
LB: loop body
LE: loop exit
PB: predicated region body
PF: predicated region fallthrough
CT: control target
= control target key end

     0   :  { %s11262_s0 = inlined_call_operand.vmem [shape: f32[2,16,64], index: 0, kind: input, shape index: {}]   ;;  %s11263_s1 = inlined_call_operand.vmem [shape: f32[64,32], index: 1, kind: input, shape index: {}]   ;;  %s11264_s2 = inlined_call_operand.hbm [shape: f32[1,32], index: 2, kind: input, shape index: {}]   ;;  %s11265_s3 = inlined_call_operand.vmem [shape: f32[16,16,32], index: 3, kind: input, shape index: {}]   ;;  %s11266_s4 = inlined_call_operand.vmem [shape: f32[64,128], index: 4, kind: input, shape index: {}]   ;;  %s11267_s5 = inlined_call_operand.vmem [shape: f32[2,32,96], index: 5, kind: input, shape index: {}]   ;;  %s11268_s6 = inlined_call_operand.vmem [shape: f32[2,32,128], index: 6, kind: input, shape index: {}]   ;;  %s11269_s7 = inlined_call_operand.hbm [shape: f32[2,32,64], index: 7, kind: input, shape index: {}]   ;;  %s11270_s8 = inlined_call_operand.vmem [shape: f32[4,32,32], index: 8, kind: input, shape index: {}]   ;;  %s11271_s9 = inlined_call_operand.vmem [shape: f32[4,32,128], index: 9, kind: input, shape index: {}]   ;;  %s11272_s10 = inlined_call_operand.vmem [shape: f32[4,128,32], index: 10, kind: input, shape index: {}]   ;;  %s11273_s11 = inlined_call_operand.hbm [shape: f32[2,16,32], index: 11, kind: output, shape index: {}]  }
   0x1   :  { %11415 = sst [smem:[#allocation145_spill]] %s11264_s2 }
   0x2   :  { %16 = vsyncpa [#allocation3], 0 }
   0x3   :  { %17 = vsyncpa [#allocation6], 0 }
   0x4   :  { %18 = vsyncpa [#allocation4], 0 }
   0x5   :  { %20 = vsyncpa [#allocation4 + $0x1], 0  ;;  %s6890_s17 = smov 0   ;;  %s6892_s18 = smov 0  }
   0x6   :  { %s6894_s19 = smov 0   ;;  %s6896_s20 = smov 0  }
   0x7 LB: > { %s6911_s21 = sadd.s32 4294967295, %s6807_s20   ;;  %s6079_s22 = sadd.s32 4294967294, %s6807_s20   ;;  %s6807_s20 = sphi %s6896_s20, %s11885_s20   ;;  %s6803_s19 = sphi %s6894_s19, %s11884_s19   ;;  %s6799_s18 = sphi %s6892_s18, %s11883_s18   ;;  %s6795_s17 = sphi %s6890_s17, %s11882_s17  }
   0x8   : > { %s6915_s23 = sadd.s32 1, %s6807_s20   ;;  %s269_s24 = sadd.s32 1, %s6803_s19 }
   0x9   : > { %s266_s25 = ssub.s32 %s6807_s20, %s6915_s23  ;;  %p279_p0 = scmp.ne.s32.totalorder %s6803_s19, %s6799_s18 }
   0xa   : > { %p267_p1 = scmp.eq.s32.totalorder %s266_s25, 0  ;;  %p280_p2 = scmp.eq.s32.totalorder %s6911_s21, 1 }
   0xb   : > { %p285_p3 = scmp.ne.s32.totalorder %s6799_s18, %s6795_s17  ;;  %p286_p4 = scmp.eq.s32.totalorder %s6079_s22, 1 }
   0xc   : > { %s6926_s26 = scalar_select %p267_p1, %s6803_s19, %s269_s24  }
   0xd   : > { %p6928_p5 = por %p280_p2, %p279_p0  ;;  %p6932_p6 = por %p286_p4, %p285_p3 }
   0xe   : > { %11416 = sst [smem:[#allocation11_spill]] %s6926_s26  ;;  %p6080_p7 = scmp.ge.s32.totalorder %s6807_s20, 1 }
   0xf   : > { %p293_p8 = scmp.lt.s32.totalorder %s6807_s20, 3  ;;  %p6280_p9 = scmp.eq.s32.totalorder %s6911_s21, 0 }
  0x10   : > { %s11420_s2 = sld [smem:[#allocation145_spill]]  ;;  %s6809_s14 = smov [#allocation2]  }
  0x11   : > { %p6939_p10 = pnand %p6080_p7, %p293_p8  ;;  %s310_s15 = sshll.u32 %s6809_s14, 4  ;;  %s311_s15 = int_to_ptr.vmem [resolvable:$true] %s310_s15 }
  0x12   : > { %s331_s24 = sshll.u32 %s11269_s7, 4  ;;  %s6810_s25 = smov [#allocation5]   ;;  %s332_s24 = int_to_ptr.hbm [resolvable:$true] %s331_s24 }
  0x13   : > { %p6269_p11 = pneg %p6939_p10  ;;  %s333_s26 = sshll.u32 %s6810_s25, 4  ;;  %s334_s26 = int_to_ptr.vmem [resolvable:$true] %s333_s26 }
  0x14   : > { %s6811_s30 = smov 128   ;;  %s6812_s12 = smov 8  }
  0x15   : > { %p6270_p12 = pnand %p6280_p9, %p6269_p11  ;;  %366 = sbr.rel (%p6939_p10) target bundleno = 8626 (0x21b2), region = 64 }
  0x16   : > { %s308_s13 = sshll.u32 %s11420_s2, 4  ;;  %s309_s13 = int_to_ptr.hbm [resolvable:$true] %s308_s13 }
  0x17   : > { %6272 = dma.hbm_to_vmem [thread:$0]  (!%p6270_p12), %s309_s13, 16, %s311_s15, [#allocation3]  }
  0x18   : > { %6275 = dma.hbm_to_vmem [thread:$0]  (!%p6270_p12), %s332_s24, 1024, %s334_s26, [#allocation6], %s6811_s30, %s6811_s30, %s6812_s12  }
  0x1a   : > { %6782 = dma.done.wait (%p6280_p9), [#allocation3], 16  }
  0x1b   : > { %6784 = vsyncadd (%p6280_p9), [#allocation3], 4294967280 }
  0x1c   : > { %6786 = dma.done.wait (%p6280_p9), [#allocation6], 1024  }
  0x1d   : > { %6788 = vsyncadd (%p6280_p9), [#allocation6], 4294966272  ;;  %p412_p13 = scmp.lt.s32.totalorder %s6911_s21, 1  ;;  %v426_v0 = vld [vmem:[%s11263_s1 + $0x38] sm:$0xff]  ;;  %v425_v1 = vld [vmem:[%s11263_s1 + $0x30] sm:$0xff]  ;;  %s11274_s13 = smov 32  }
  0x1e   : > { %446 = vmatpush.msra.mxu0 %v426_v0  ;;  %v424_v2 = vld [vmem:[%s11263_s1 + $0x28] sm:$0xff]  ;;  %v423_v4 = vld [vmem:[%s11263_s1 + $0x20] sm:$0xff]  ;;  %v6987_v5 = vld [vmem:[%s11265_s3 + $0x10] sm:$0xff]  ;;  %s11421_s30 = smov 32   ;;  %vm431_vm0 = vcmask 523264   ;;  %s11391_s12 = smov 64  }
  0x1f   : > { %s413_s22 = scalar_select %p412_p13, %s6911_s21, 1  ;;  %v6977_v3 = vld [vmem:[%s11265_s3 + $0x8] sm:$0xff]  ;;  %1192 = vrot.lane.b32.xlu1 %v6987_v5, %s11274_s13  ;;  %v422_v6 = vld [vmem:[%s11263_s1 + $0x18] sm:$0xff]  ;;  %v421_v7 = vld [vmem:[%s11263_s1 + $0x10] sm:$0xff]  ;;  %vm463_vm1 = vcmask 261120   ;;  %v6816_v39 = vmov 32.0  }
  0x20   : > { %447 = vmatpush.msra.mxu0 %v425_v1  ;;  %1190 = vrot.lane.b32.xlu0 %v6977_v3, %s11274_s13  ;;  %v7000_v8 = vld [vmem:[%s11265_s3 + $0x20] sm:$0xff]  ;;  %v420_v9 = vld [vmem:[%s11263_s1 + $0x8] sm:$0xff]  ;;  %v7023_v13 = vld [vmem:[%s11265_s3 + $0x38] sm:$0xff]  ;;  %s11401_s26 = smov 96   ;;  %6441 = vrcp.f32 %v6816_v39  ;;  %s6817_s2 = smov 88   ;;  %vm1062_vm15 = vcmask 64512  }
  0x21   : > { %s6253_s25 = sshll.u32 %s413_s22, 4  ;;  %v7008_v10 = vld [vmem:[%s11265_s3 + $0x28] sm:$0xff]  ;;  %v419_v11 = vld [vmem:[%s11263_s1] sm:$0xff]  ;;  %v7037_v16 = vld [vmem:[%s11265_s3 + $0x50] sm:$0xff]  ;;  %s11336_s13 = smov 112  }
  0x22   : > { %448 = vmatpush.msra.mxu0 %v424_v2  ;;  %s416_s24 = scalar_lea.vmem %s11262_s0, %s6253_s25  ;;  %v7028_v14 = vld [vmem:[%s11265_s3 + $0x40] sm:$0xff]  ;;  %v7042_v17 = vld [vmem:[%s11265_s3 + $0x58] sm:$0xff]  ;;  %v7051_v18 = vld [vmem:[%s11265_s3 + $0x70] sm:$0xff]  ;;  %s11338_s25 = smov 80  }
  0x23   : > { %v417_v12 = vld [vmem:[%s416_s24] sm:$0xff]  ;;  %v418_v15 = vld [vmem:[%s416_s24 + $0x8] sm:$0xff]  ;;  %v7072_v21 = vld [vmem:[%s11265_s3 + $0xb8] sm:$0xff]  ;;  %s11393_s29 = smov 72   ;;  %s11334_s14 = smov 104  }
  0x24   : > { %449 = vmatpush.msra.mxu0 %v423_v4  ;;  %v7058_v19 = vld [vmem:[%s11265_s3 + $0x88] sm:$0xff]  ;;  %v7065_v20 = vld [vmem:[%s11265_s3 + $0xa0] sm:$0xff]  ;;  %v7079_v22 = vld [vmem:[%s11265_s3 + $0xd0] sm:$0xff]  ;;  %s11395_s15 = smov 120   ;;  %s11386_s22 = smov 40  }
  0x25   : > { %v741_v23 = vld [vmem:[%s11265_s3] sm:$0xff]  ;;  %v7090_v24 = vld [vmem:[%s11265_s3 + $0xe8] sm:$0xff]  ;;  %v744_v25 = vld [vmem:[%s11265_s3 + $0x18] sm:$0xff]  ;;  %s11399_s16 = smov 24   ;;  %s11397_s24 = smov 16  }
  0x26   : > { %450 = vmatpush.msra.mxu0 %v422_v6  ;;  %1188 = vrot.lane.b32.xlu2 %v741_v23, %s11421_s30  ;;  %v6378_v26 = vld [vmem:[#allocation2] ss:$0 sm:$0xff]  ;;  %v7115_v33 = vld [vmem:[%s11265_s3 + $0x48] sm:$0xff]  ;;  %v6442_v41 = vpop.eup %6441 }
  0x27   : > { %1198 = vrot.lane.b32.xlu1 %v7008_v10, %s11421_s30  ;;  %v471_v43 = vmul.f32 32.0, %v6442_v41  ;;  %vm475_vm2 = vweird.f32 %v6442_v41 }
  0x28   : > { %451 = vmatpush.msra.mxu0 %v421_v7  ;;  %1196 = vrot.lane.b32.xlu0 %v7000_v8, %s11421_s30 }
  0x29   : > { %v472_v45 = vsub.f32 1.0, %v471_v43 }
  0x2a   : > { %452 = vmatpush.msra.mxu0 %v420_v9 }
  0x2b   : > { %v473_v46 = vmul.f32 %v6442_v41, %v472_v45 }
  0x2c   : > { %453 = vmatpush.msra.mxu0 %v419_v11 }
  0x2d   : > { %6090 = vmatmul.msk.f32.vlgmr.msra.gmra.mxu0 %vm431_vm0, %v417_v12  ;;  %v474_v48 = vadd.f32 %v6442_v41, %v473_v46  ;;  %v524_v12 = vld [vmem:[%s11271_s9 + $0x18] sm:$0xff] }
  0x2e   : > { %1194 = vrot.lane.b32.xlu2 %v744_v25, %s11421_s30  ;;  %545 = vmatpush.msra.mxu1 %v524_v12 }
  0x2f   : > { %1204 = vrot.lane.b32.xlu1 %v7028_v14, %s11421_s30  ;;  %v7143_v50 = vsel %vm475_vm2, %v6442_v41, %v474_v48  ;;  %vm1039_vm2 = vcmask 1041409  }
  0x30   : > { %1202 = vrot.lane.b32.xlu0 %v7023_v13, %s11421_s30  ;;  %11432 = vst [vmem:[#allocation22_spill] sm:$0xff] %v7143_v50 }
  0x35   : > { %6091 = vmatmul.msk.f32.gmra.mxu0 %vm431_vm0, %v418_v15  ;;  %v523_v15 = vld [vmem:[%s11271_s9 + $0x10] sm:$0xff]  ;;  %vm992_vm0 = vcmask 130112  }
  0x36   : > { %546 = vmatpush.msra.mxu1 %v523_v15  ;;  %v6380_v15 = vld [vmem:[%s11266_s4 + $0x1] ss:$0 sm:$0xff] }
  0x37   : > { %1210 = vrot.lane.b32.xlu1 %v7042_v17, %s11421_s30 }
  0x38   : > { %1208 = vrot.lane.b32.xlu0 %v7037_v16, %s11421_s30 }
  0x3f   : > { %1216 = vrot.lane.b32.xlu1 %v7051_v18, %s11421_s30 }
  0x47   : > { %1222 = vrot.lane.b32.xlu1 %v7058_v19, %s11421_s30 }
  0x4f   : > { %1228 = vrot.lane.b32.xlu1 %v7065_v20, %s11421_s30 }
  0x57   : > { %1234 = vrot.lane.b32.xlu1 %v7072_v21, %s11421_s30 }
  0x5f   : > { %1240 = vrot.lane.b32.xlu1 %v7079_v22, %s11421_s30 }
  0x67   : > { %1246 = vrot.lane.b32.xlu1 %v7090_v24, %s11421_s30 }
  0x6f   : > { %1734 = vrot.lane.b32.xlu1 %v741_v23, %s11391_s12 }
  0x77   : > { %1740 = vrot.lane.b32.xlu1 %v744_v25, %s11391_s12 }
  0x7f   : > { %2280 = vrot.lane.b32.xlu1 %v741_v23, %s11401_s26  ;;  %v522_v23 = vld [vmem:[%s11271_s9 + $0x8] sm:$0xff] }
  0x80   : > { %547 = vmatpush.msra.mxu1 %v522_v23 }
  0x87   : > { %2286 = vrot.lane.b32.xlu1 %v744_v25, %s11401_s26  ;;  %v521_v25 = vld [vmem:[%s11271_s9] sm:$0xff] }
  0x88   : > { %548 = vmatpush.msra.mxu1 %v521_v25 }
  0x8f   : > { %2288 = vrot.lane.b32.xlu1 %v7000_v8, %s11401_s26 }
  0x91   : > { %v7123_v34 = vpop.permute.xlu1 %1192 }
  0x92   : > { %11422 = vst [vmem:[#allocation12_spill] sm:$0xff] %v7123_v34  ;;  %v7127_v36 = vpop.permute.xlu0 %1190 }
  0x93   : > { %11424 = vst [vmem:[#allocation14_spill] sm:$0xff] %v7127_v36 }
  0x97   : > { %1752 = vrot.lane.b32.xlu1 %v7115_v33, %s11391_s12 }
  0x99   : > { %v7125_v35 = vpop.permute.xlu1 %1198 }
  0x9a   : > { %11423 = vst [vmem:[#allocation13_spill] sm:$0xff] %v7125_v35  ;;  %v7131_v38 = vpop.permute.xlu0 %1196 }
  0x9b   : > { %11426 = vst [vmem:[#allocation16_spill] sm:$0xff] %v7131_v38 }
  0x9f   : > { %1754 = vrot.lane.b32.xlu1 %v7037_v16, %s11391_s12 }
  0xa1   : > { %v7129_v37 = vpop.permute.xlu1 %1204 }
  0xa2   : > { %11425 = vst [vmem:[#allocation15_spill] sm:$0xff] %v7129_v37  ;;  %v7135_v42 = vpop.permute.xlu0 %1202 }
  0xa3   : > { %11428 = vst [vmem:[#allocation18_spill] sm:$0xff] %v7135_v42 }
  0xa7   : > { %2298 = vrot.lane.b32.xlu1 %v7115_v33, %s11401_s26 }
  0xa9   : > { %v7133_v40 = vpop.permute.xlu1 %1210 }
  0xaa   : > { %v455_v27 = vpop.f32.mrf.mxu0  ;;  %11427 = vst [vmem:[#allocation17_spill] sm:$0xff] %v7133_v40  ;;  %v7139_v47 = vpop.permute.xlu0 %1208 }
  0xab   : > { %v7099_v28 = vadd.f32 %v6378_v26, %v455_v27  ;;  %11430 = vst [vmem:[#allocation20_spill] sm:$0xff] %v7139_v47 }
  0xad   : > { %v464_v29 = vsel %vm463_vm1, %v7099_v28, 0.0 }
  0xae   : > { %465 = vadd.xlane.f32.xlu0 %v464_v29 }
  0xb1   : > { %v7137_v44 = vpop.permute.xlu1 %1216 }
  0xb2   : > { %v458_v30 = vpop.f32.mrf.mxu0  ;;  %11429 = vst [vmem:[#allocation19_spill] sm:$0xff] %v7137_v44 }
  0xb3   : > { %v7104_v31 = vadd.f32 %v6378_v26, %v458_v30  ;;  %v7197_v30 = vld [vmem:[%s11265_s3 + $0x30] sm:$0xff] }
  0xb4   : > { %1200 = vrot.lane.b32.xlu2 %v7197_v30, %s11421_s30 }
  0xb5   : > { %v467_v32 = vsel %vm463_vm1, %v7104_v31, 0.0 }
  0xb6   : > { %468 = vadd.xlane.f32.xlu0 %v467_v32  ;;  %v7202_v32 = vld [vmem:[%s11265_s3 + $0x78] sm:$0xff] }
  0xb9   : > { %v7141_v49 = vpop.permute.xlu1 %1222 }
  0xba   : > { %11431 = vst [vmem:[#allocation21_spill] sm:$0xff] %v7141_v49 }
  0xbc   : > { %1206 = vrot.lane.b32.xlu2 %v7115_v33, %s11421_s30  ;;  %v6379_v33 = vld [vmem:[%s11266_s4] ss:$0 sm:$0xff] }
  0xc1   : > { %v7147_v54 = vpop.permute.xlu1 %1228 }
  0xc2   : > { %11433 = vst [vmem:[#allocation23_spill] sm:$0xff] %v7147_v54 }
  0xc9   : > { %v7156_v61 = vpop.permute.xlu1 %1234 }
  0xca   : > { %11434 = vst [vmem:[#allocation24_spill] sm:$0xff] %v7156_v61 }
  0xd1   : > { %v7159_v63 = vpop.permute.xlu1 %1240 }
  0xd2   : > { %11435 = vst [vmem:[#allocation25_spill] sm:$0xff] %v7159_v63 }
  0xd9   : > { %v7161_v0 = vpop.permute.xlu1 %1246 }
  0xda   : > { %11436 = vst [vmem:[#allocation26_spill] sm:$0xff] %v7161_v0 }
  0xe1   : > { %v7165_v1 = vpop.permute.xlu1 %1734 }
  0xe2   : > { %11437 = vst [vmem:[#allocation27_spill] sm:$0xff] %v7165_v1 }
  0xe9   : > { %v7167_v2 = vpop.permute.xlu1 %1740 }
  0xea   : > { %11438 = vst [vmem:[#allocation28_spill] sm:$0xff] %v7167_v2 }
  0xf1   : > { %v7169_v4 = vpop.permute.xlu1 %2280 }
  0xf2   : > { %11439 = vst [vmem:[#allocation29_spill] sm:$0xff] %v7169_v4 }
  0xf9   : > { %v7171_v6 = vpop.permute.xlu1 %2286 }
  0xfa   : > { %11440 = vst [vmem:[#allocation30_spill] sm:$0xff] %v7171_v6 }
 0x101   : > { %v7173_v7 = vpop.permute.xlu1 %2288 }
 0x102   : > { %11441 = vst [vmem:[#allocation31_spill] sm:$0xff] %v7173_v7 }
 0x109   : > { %v7175_v9 = vpop.permute.xlu1 %1752 }
 0x10a   : > { %11442 = vst [vmem:[#allocation32_spill] sm:$0xff] %v7175_v9 }
 0x111   : > { %v7177_v11 = vpop.permute.xlu1 %1754 }
 0x112   : > { %11443 = vst [vmem:[#allocation33_spill] sm:$0xff] %v7177_v11 }
 0x121   : > { %v466_v51 = vpop.xlane.xlu0 %465 }
 0x122   : > { %v477_v52 = vmul.f32 %v7143_v50, %v466_v51 }
 0x124   : > { %v479_v53 = vsub.f32 %v7099_v28, %v477_v52 }
 0x126   : > { %v481_v55 = vmul.f32 %v479_v53, %v479_v53 }
 0x128   : > { %v483_v56 = vsel %vm463_vm1, %v481_v55, 0.0 }
 0x129   : > { %484 = vadd.xlane.f32.xlu1 %v483_v56  ;;  %v469_v57 = vpop.xlane.xlu0 %468  ;;  %v7216_v56 = vld [vmem:[%s11265_s3 + $0x60] sm:$0xff] }
 0x12a   : > { %v478_v58 = vmul.f32 %v7143_v50, %v469_v57  ;;  %1212 = vrot.lane.b32.xlu2 %v7216_v56, %s11421_s30 }
 0x12c   : > { %v7152_v59 = vsub.f32 %v7104_v31, %v478_v58 }
 0x12e   : > { %v482_v60 = vmul.f32 %v7152_v59, %v7152_v59 }
 0x130   : > { %v486_v62 = vsel %vm463_vm1, %v482_v60, 0.0 }
 0x131   : > { %487 = vadd.xlane.f32.xlu1 %v486_v62 }
 0x132   : > { %1218 = vrot.lane.b32.xlu2 %v7202_v32, %s11421_s30 }
 0x14a   : > { %2300 = vrot.lane.b32.xlu1 %v7037_v16, %s11401_s26  ;;  %v7185_v16 = vpop.permute.xlu1 %2298 }
 0x14b   : > { %11444 = vst [vmem:[#allocation34_spill] sm:$0xff] %v7185_v16 }
 0x152   : > { %1764 = vrot.lane.b32.xlu1 %v7202_v32, %s11391_s12 }
 0x15a   : > { %2308 = vrot.lane.b32.xlu1 %v7051_v18, %s11401_s26 }
 0x162   : > { %1768 = vrot.lane.b32.xlu1 %v7058_v19, %s11391_s12 }
 0x16a   : > { %1774 = vrot.lane.b32.xlu1 %v7065_v20, %s11391_s12 }
 0x172   : > { %2314 = vrot.lane.b32.xlu1 %v7058_v19, %s11401_s26  ;;  %v7261_v19 = vld [vmem:[%s11265_s3 + $0xd8] sm:$0xff] }
 0x19c   : > { %v485_v26 = vpop.xlane.xlu1 %484 }
 0x19d   : > { %v489_v27 = vmul.f32 %v485_v26, %v7143_v50 }
 0x19f   : > { %v491_v29 = vadd.f32 1e-05, %v489_v27 }
 0x1a1   : > { %6443 = vrsqrt.f32 %v491_v29  ;;  %vm499_vm4 = vweird.f32 %v491_v29 }
 0x1a4   : > { %v488_v39 = vpop.xlane.xlu1 %487 }
 0x1a5   : > { %v490_v41 = vmul.f32 %v488_v39, %v7143_v50 }
 0x1a7   : > { %v6444_v43 = vpop.eup %6443  ;;  %v492_v45 = vadd.f32 1e-05, %v490_v41 }
 0x1a8   : > { %v494_v46 = vmul.f32 %v6444_v43, %v491_v29  ;;  %vm500_vm3 = vweird.f32 %v6444_v43 }
 0x1a9   : > { %6445 = vrsqrt.f32 %v492_v45  ;;  %vm501_vm5 = vmor %vm499_vm4, %vm500_vm3  ;;  %vm509_vm7 = vweird.f32 %v492_v45  ;;  %vm1041_vm3 = vcmask 1042434   ;;  %vm1043_vm4 = vcmask 1043459  }
 0x1aa   : > { %v495_v48 = vmul.f32 %v6444_v43, %v494_v46  ;;  %v7237_v46 = vld [vmem:[%s11265_s3 + $0x90] sm:$0xff] }
 0x1ab   : > { %1224 = vrot.lane.b32.xlu2 %v7237_v46, %s11421_s30 }
 0x1ac   : > { %v496_v51 = vmul.f32 0.5, %v495_v48  ;;  %v7268_v48 = vld [vmem:[%s11265_s3 + $0xf0] sm:$0xff] }
 0x1ae   : > { %v497_v52 = vsub.f32 1.5, %v496_v51  ;;  %v583_v51 = vld [vmem:[%s11272_s10 + $0x78] sm:$0xff] }
 0x1af   : > { %v6446_v55 = vpop.eup %6445  ;;  %586 = vmatpush.msra.mxu2 %v583_v51 }
 0x1b0   : > { %v498_v57 = vmul.f32 %v6444_v43, %v497_v52  ;;  %v504_v58 = vmul.f32 %v6446_v55, %v492_v45  ;;  %vm510_vm6 = vweird.f32 %v6446_v55  ;;  %v7247_v45 = vld [vmem:[%s11265_s3 + $0xa8] sm:$0xff]  ;;  %v582_v52 = vld [vmem:[%s11272_s10 + $0x70] sm:$0xff] }
 0x1b1   : > { %vm511_vm8 = vmor %vm509_vm7, %vm510_vm6  ;;  %587 = vmatpush.msra.mxu2 %v582_v52  ;;  %vm1047_vm6 = vcmask 1045509   ;;  %vm1049_vm7 = vcmask 1046534  }
 0x1b2   : > { %v505_v60 = vmul.f32 %v6446_v55, %v504_v58  ;;  %v502_v62 = vsel %vm501_vm5, %v6444_v43, %v498_v57  ;;  %v7291_v57 = vpop.permute.xlu2 %1188  ;;  %v580_v58 = vld [vmem:[%s11272_s10 + $0x60] sm:$0xff]  ;;  %vm1045_vm5 = vcmask 1044484  }
 0x1b3   : > { %v513_v12 = vmul.f32 %v502_v62, %v479_v53  ;;  %1230 = vrot.lane.b32.xlu2 %v7247_v45, %s11421_s30  ;;  %11445 = vst [vmem:[#allocation35_spill] sm:$0xff] %v7291_v57  ;;  %v575_v62 = vld [vmem:[%s11272_s10 + $0x38] sm:$0xff] }
 0x1b4   : > { %v506_v23 = vmul.f32 0.5, %v505_v60  ;;  %v576_v60 = vld [vmem:[%s11272_s10 + $0x40] sm:$0xff] }
 0x1b5   : > { %v516_v25 = vmul.f32 %v6379_v33, %v513_v12  ;;  %v574_v12 = vld [vmem:[%s11272_s10 + $0x30] sm:$0xff] }
 0x1b6   : > { %v507_v26 = vsub.f32 1.5, %v506_v23  ;;  %v573_v23 = vld [vmem:[%s11272_s10 + $0x28] sm:$0xff] }
 0x1b7   : > { %v519_v27 = vadd.f32 %v6380_v15, %v516_v25  ;;  %v572_v25 = vld [vmem:[%s11272_s10 + $0x20] sm:$0xff] }
 0x1b8   : > { %v508_v29 = vmul.f32 %v6446_v55, %v507_v26  ;;  %v571_v26 = vld [vmem:[%s11272_s10 + $0x18] sm:$0xff] }
 0x1b9   : > { %6092 = vmatmul.msk.f32.vlgmr.msra.gmra.mxu1 %vm463_vm1, %v519_v27  ;;  %v570_v27 = vld [vmem:[%s11272_s10 + $0x10] sm:$0xff] }
 0x1ba   : > { %v512_v39 = vsel %vm511_vm8, %v6446_v55, %v508_v29  ;;  %v581_v55 = vld [vmem:[%s11272_s10 + $0x68] sm:$0xff]  ;;  %vm11405_vm8 = vcmask 1047559  }
 0x1bb   : > { %v514_v53 = vmul.f32 %v512_v39, %v7152_v59  ;;  %v7254_v59 = vld [vmem:[%s11265_s3 + $0xc0] sm:$0xff]  ;;  %588 = vmatpush.msra.mxu2 %v581_v55  ;;  %v569_v29 = vld [vmem:[%s11272_s10 + $0x8] sm:$0xff] }
 0x1bc   : > { %1236 = vrot.lane.b32.xlu2 %v7254_v59, %s11421_s30  ;;  %v7363_v55 = vld [vmem:[%s11265_s3 + $0x80] sm:$0xff] }
 0x1bd   : > { %v517_v41 = vmul.f32 %v6379_v33, %v514_v53  ;;  %589 = vmatpush.msra.mxu2 %v580_v58  ;;  %v578_v33 = vld [vmem:[%s11272_s10 + $0x50] sm:$0xff]  ;;  %v568_v53 = vld [vmem:[%s11272_s10] sm:$0xff]  ;;  %11451 = vst [vmem:[#allocation41_spill] sm:$0xff] %v7363_v55 }
 0x1be   : > { %v763_v58 = vld [vmem:[%s11265_s3 + $0xb0] sm:$0xff] }
 0x1bf   : > { %v520_v43 = vadd.f32 %v6380_v15, %v517_v41  ;;  %v7349_v41 = vld [vmem:[%s11265_s3 + $0x68] sm:$0xff]  ;;  %1778 = vrot.lane.b32.xlu1 %v763_v58, %s11391_s12 }
 0x1c0   : > { %11449 = vst [vmem:[#allocation39_spill] sm:$0xff] %v7349_v41  ;;  %1214 = vrot.lane.b32.xlu0 %v7349_v41, %s11421_s30 }
 0x1c1   : > { %6093 = vmatmul.msk.f32.gmra.mxu1 %vm463_vm1, %v520_v43 }
 0x1c4   : > { %1242 = vrot.lane.b32.xlu2 %v7261_v19, %s11421_s30 }
 0x1c7   : > { %2322 = vrot.lane.b32.xlu1 %v7247_v45, %s11401_s26 }
 0x1c8   : > { %1220 = vrot.lane.b32.xlu0 %v7363_v55, %s11421_s30 }
 0x1cc   : > { %1248 = vrot.lane.b32.xlu2 %v7268_v48, %s11421_s30 }
 0x1cf   : > { %2324 = vrot.lane.b32.xlu1 %v763_v58, %s11401_s26 }
 0x1d4   : > { %1736 = vrot.lane.b32.xlu2 %v6977_v3, %s11391_s12 }
 0x1d7   : > { %1788 = vrot.lane.b32.xlu1 %v7261_v19, %s11391_s12 }
 0x1dc   : > { %1742 = vrot.lane.b32.xlu2 %v7000_v8, %s11391_s12  ;;  %v7301_v8 = vpop.permute.xlu2 %1194 }
 0x1dd   : > { %11446 = vst [vmem:[#allocation36_spill] sm:$0xff] %v7301_v8 }
 0x1e4   : > { %2282 = vrot.lane.b32.xlu2 %v6977_v3, %s11401_s26  ;;  %v579_v3 = vld [vmem:[%s11272_s10 + $0x58] sm:$0xff]  ;;  %v7322_v15 = vpop.permute.xlu2 %1200 }
 0x1e5   : > { %590 = vmatpush.msra.mxu2 %v579_v3  ;;  %11447 = vst [vmem:[#allocation37_spill] sm:$0xff] %v7322_v15 }
 0x1e7   : > { %591 = vmatpush.msra.mxu2 %v578_v33  ;;  %v7376_v33 = vld [vmem:[%s11265_s3 + $0x98] sm:$0xff] }
 0x1e8   : > { %1226 = vrot.lane.b32.xlu0 %v7376_v33, %s11421_s30 }
 0x1ec   : > { %1746 = vrot.lane.b32.xlu2 %v7197_v30, %s11391_s12  ;;  %v7341_v39 = vpop.permute.xlu2 %1206 }
 0x1ed   : > { %11448 = vst [vmem:[#allocation38_spill] sm:$0xff] %v7341_v39 }
 0x1f0   : > { %1232 = vrot.lane.b32.xlu0 %v763_v58, %s11421_s30 }
 0x1f4   : > { %2290 = vrot.lane.b32.xlu2 %v7008_v10, %s11401_s26  ;;  %v7358_v51 = vpop.permute.xlu2 %1212 }
 0x1f5   : > { %11450 = vst [vmem:[#allocation40_spill] sm:$0xff] %v7358_v51 }
 0x1fc   : > { %2292 = vrot.lane.b32.xlu2 %v7197_v30, %s11401_s26  ;;  %v577_v30 = vld [vmem:[%s11272_s10 + $0x48] sm:$0xff] }
 0x1fd   : > { %592 = vmatpush.msra.mxu2 %v577_v30 }
 0x1ff   : > { %593 = vmatpush.msra.mxu2 %v576_v60 }
 0x201   : > { %594 = vmatpush.msra.mxu2 %v575_v62  ;;  %v7382_v62 = vpop.permute.xlu2 %1218 }
 0x202   : > { %11452 = vst [vmem:[#allocation42_spill] sm:$0xff] %v7382_v62 }
 0x203   : > { %595 = vmatpush.msra.mxu2 %v574_v12 }
 0x204   : > { %1756 = vrot.lane.b32.xlu2 %v7042_v17, %s11391_s12 }
 0x205   : > { %596 = vmatpush.msra.mxu2 %v573_v23 }
 0x207   : > { %597 = vmatpush.msra.mxu2 %v572_v25 }
 0x209   : > { %598 = vmatpush.msra.mxu2 %v571_v26 }
 0x20b   : > { %599 = vmatpush.msra.mxu2 %v570_v27  ;;  %v7390_v27 = vpop.permute.xlu2 %1224 }
 0x20c   : > { %1758 = vrot.lane.b32.xlu2 %v7216_v56, %s11391_s12  ;;  %11453 = vst [vmem:[#allocation43_spill] sm:$0xff] %v7390_v27 }
 0x20d   : > { %600 = vmatpush.msra.mxu2 %v569_v29 }
 0x20f   : > { %601 = vmatpush.msra.mxu2 %v568_v53 }
 0x213   : > { %v7403_v58 = vpop.permute.xlu2 %1230 }
 0x214   : > { %2302 = vrot.lane.b32.xlu2 %v7042_v17, %s11401_s26  ;;  %v6381_v17 = vld [vmem:[%s11266_s4 + $0x2] ss:$0 sm:$0xff]  ;;  %11454 = vst [vmem:[#allocation44_spill] sm:$0xff] %v7403_v58 }
 0x21c   : > { %2304 = vrot.lane.b32.xlu2 %v7216_v56, %s11401_s26 }
 0x224   : > { %2310 = vrot.lane.b32.xlu2 %v7202_v32, %s11401_s26 }
 0x22c   : > { %1770 = vrot.lane.b32.xlu2 %v7237_v46, %s11391_s12 }
 0x234   : > { %1776 = vrot.lane.b32.xlu2 %v7247_v45, %s11391_s12 }
 0x236   : > { %v550_v43 = vpop.f32.mrf.mxu1 }
 0x237   : > { %v551_v52 = vadd.f32 %v6381_v17, %v550_v43  ;;  %v7395_v43 = vld [vmem:[%s11265_s3 + $0xc8] sm:$0xff] }
 0x238   : > { %1238 = vrot.lane.b32.xlu0 %v7395_v43, %s11421_s30 }
 0x239   : > { %v556_v56 = vsub.f32 0.0, %v551_v52 }
 0x23b   : > { %v558_v3 = vmul.f32 1.442695, %v556_v56  ;;  %v769_v56 = vld [vmem:[%s11265_s3 + $0xe0] sm:$0xff] }
 0x23c   : > { %2316 = vrot.lane.b32.xlu2 %v7237_v46, %s11401_s26  ;;  %1790 = vrot.lane.b32.xlu1 %v769_v56, %s11391_s12  ;;  %v7415_v46 = vld [vmem:[%s11265_s3 + $0xf8] sm:$0xff] }
 0x23d   : > { %6447 = vpow2.f32 %v558_v3  ;;  %v7417_v3 = vpop.permute.xlu2 %1236 }
 0x23e   : > { %v553_v30 = vpop.f32.mrf.mxu1  ;;  %11455 = vst [vmem:[#allocation45_spill] sm:$0xff] %v7417_v3 }
 0x23f   : > { %v554_v60 = vadd.f32 %v6381_v17, %v553_v30 }
 0x240   : > { %1244 = vrot.lane.b32.xlu0 %v769_v56, %s11421_s30 }
 0x241   : > { %v557_v12 = vsub.f32 0.0, %v554_v60 }
 0x243   : > { %v6448_v32 = vpop.eup %6447  ;;  %v560_v23 = vmul.f32 1.442695, %v557_v12 }
 0x244   : > { %v562_v25 = vadd.f32 1.0, %v6448_v32  ;;  %1780 = vrot.lane.b32.xlu2 %v7072_v21, %s11391_s12  ;;  %2334 = vrot.lane.b32.xlu1 %v7261_v19, %s11401_s26 }
 0x245   : > { %6449 = vpow2.f32 %v560_v23  ;;  %v7428_v30 = vpop.permute.xlu2 %1242 }
 0x246   : > { %6451 = vrcp.f32 %v562_v25  ;;  %11456 = vst [vmem:[#allocation46_spill] sm:$0xff] %v7428_v30  ;;  %v6382_v25 = vld [vmem:[%s11266_s4 + $0x3] ss:$0 sm:$0xff] }
 0x248   : > { %1250 = vrot.lane.b32.xlu0 %v7415_v46, %s11421_s30 }
 0x24b   : > { %v6450_v26 = vpop.eup %6449 }
 0x24c   : > { %v6452_v29 = vpop.eup %6451  ;;  %v563_v53 = vadd.f32 1.0, %v6450_v26  ;;  %1782 = vrot.lane.b32.xlu2 %v7254_v59, %s11391_s12  ;;  %2336 = vrot.lane.b32.xlu1 %v769_v56, %s11401_s26 }
 0x24d   : > { %v566_v17 = vmul.f32 %v6452_v29, %v551_v52  ;;  %v7438_v19 = vpop.permute.xlu2 %1248 }
 0x24e   : > { %6453 = vrcp.f32 %v563_v53  ;;  %11457 = vst [vmem:[#allocation47_spill] sm:$0xff] %v7438_v19 }
 0x24f   : > { %602 = vmatmul.f32.vlgmr.msra.gmra.mxu2 %v566_v17 }
 0x250   : > { %1738 = vrot.lane.b32.xlu0 %v6987_v5, %s11391_s12 }
 0x254   : > { %v6454_v45 = vpop.eup %6453  ;;  %2326 = vrot.lane.b32.xlu2 %v7072_v21, %s11401_s26  ;;  %2342 = vrot.lane.b32.xlu1 %v7415_v46, %s11401_s26 }
 0x255   : > { %v567_v52 = vmul.f32 %v6454_v45, %v554_v60  ;;  %v7444_v60 = vpop.permute.xlu2 %1736 }
 0x256   : > { %11458 = vst [vmem:[#allocation48_spill] sm:$0xff] %v7444_v60 }
 0x257   : > { %605 = vmatmul.f32.gmra.mxu2 %v567_v52 }
 0x258   : > { %1744 = vrot.lane.b32.xlu0 %v7008_v10, %s11391_s12 }
 0x25c   : > { %2328 = vrot.lane.b32.xlu2 %v7254_v59, %s11401_s26 }
 0x25d   : > { %v7450_v10 = vpop.permute.xlu2 %1742 }
 0x25e   : > { %11459 = vst [vmem:[#allocation49_spill] sm:$0xff] %v7450_v10 }
 0x260   : > { %2284 = vrot.lane.b32.xlu0 %v6987_v5, %s11401_s26 }
 0x264   : > { %1792 = vrot.lane.b32.xlu2 %v7090_v24, %s11391_s12 }
 0x265   : > { %v7458_v5 = vpop.permute.xlu2 %2282 }
 0x266   : > { %11460 = vst [vmem:[#allocation50_spill] sm:$0xff] %v7458_v5 }
 0x268   : > { %1748 = vrot.lane.b32.xlu0 %v7023_v13, %s11391_s12 }
 0x26c   : > { %1794 = vrot.lane.b32.xlu2 %v7268_v48, %s11391_s12 }
 0x26d   : > { %v7462_v21 = vpop.permute.xlu2 %1746 }
 0x26e   : > { %11461 = vst [vmem:[#allocation51_spill] sm:$0xff] %v7462_v21 }
 0x270   : > { %1750 = vrot.lane.b32.xlu0 %v7028_v14, %s11391_s12 }
 0x274   : > { %2338 = vrot.lane.b32.xlu2 %v7090_v24, %s11401_s26 }
 0x275   : > { %v7466_v59 = vpop.permute.xlu2 %2290 }
 0x276   : > { %11462 = vst [vmem:[#allocation52_spill] sm:$0xff] %v7466_v59 }
 0x278   : > { %2294 = vrot.lane.b32.xlu0 %v7023_v13, %s11401_s26  ;;  %v7474_v13 = vpop.permute.xlu0 %1214 }
 0x279   : > { %11464 = vst [vmem:[#allocation54_spill] sm:$0xff] %v7474_v13 }
 0x27d   : > { %v7470_v12 = vpop.permute.xlu2 %2292 }
 0x27e   : > { %11463 = vst [vmem:[#allocation53_spill] sm:$0xff] %v7470_v12 }
 0x280   : > { %2296 = vrot.lane.b32.xlu0 %v7028_v14, %s11401_s26  ;;  %v7480_v24 = vpop.permute.xlu0 %1220 }
 0x281   : > { %11466 = vst [vmem:[#allocation56_spill] sm:$0xff] %v7480_v24 }
 0x285   : > { %v7478_v14 = vpop.permute.xlu2 %1756 }
 0x286   : > { %11465 = vst [vmem:[#allocation55_spill] sm:$0xff] %v7478_v14 }
 0x288   : > { %1760 = vrot.lane.b32.xlu0 %v7349_v41, %s11391_s12 }
 0x28d   : > { %v7484_v32 = vpop.permute.xlu2 %1758 }
 0x28e   : > { %11467 = vst [vmem:[#allocation57_spill] sm:$0xff] %v7484_v32 }
 0x290   : > { %1762 = vrot.lane.b32.xlu0 %v7051_v18, %s11391_s12  ;;  %v7486_v18 = vpop.permute.xlu0 %1226 }
 0x291   : > { %11468 = vst [vmem:[#allocation58_spill] sm:$0xff] %v7486_v18 }
 0x295   : > { %v7490_v23 = vpop.permute.xlu2 %2302 }
 0x296   : > { %11469 = vst [vmem:[#allocation59_spill] sm:$0xff] %v7490_v23 }
 0x298   : > { %2306 = vrot.lane.b32.xlu0 %v7349_v41, %s11401_s26  ;;  %v7495_v26 = vpop.permute.xlu0 %1232 }
 0x299   : > { %11470 = vst [vmem:[#allocation60_spill] sm:$0xff] %v7495_v26  ;;  %v7567_v26 = vpop.permute.xlu1 %2300 }
 0x29a   : > { %11495 = vst [vmem:[#allocation85_spill] sm:$0xff] %v7567_v26 }
 0x29d   : > { %v7499_v45 = vpop.permute.xlu2 %2304 }
 0x29e   : > { %11471 = vst [vmem:[#allocation61_spill] sm:$0xff] %v7499_v45 }
 0x2a0   : > { %1766 = vrot.lane.b32.xlu0 %v7363_v55, %s11391_s12 }
 0x2a8   : > { %1772 = vrot.lane.b32.xlu0 %v7376_v33, %s11391_s12 }
 0x2aa   : > { %v7508_v63 = vpop.permute.xlu0 %1238 }
 0x2ab   : > { %11473 = vst [vmem:[#allocation63_spill] sm:$0xff] %v7508_v63 }
 0x2b0   : > { %2312 = vrot.lane.b32.xlu0 %v7363_v55, %s11401_s26 }
 0x2b8   : > { %2318 = vrot.lane.b32.xlu0 %v7376_v33, %s11401_s26 }
 0x2c0   : > { %2320 = vrot.lane.b32.xlu0 %v7065_v20, %s11401_s26 }
 0x2c8   : > { %1784 = vrot.lane.b32.xlu0 %v7395_v43, %s11391_s12 }
 0x2d0   : > { %1786 = vrot.lane.b32.xlu0 %v7079_v22, %s11391_s12 }
 0x2d2   : > { %v603_v29 = vpop.f32.mrf.mxu2 }
 0x2d3   : > { %v604_v53 = vadd.f32 %v6382_v25, %v603_v29 }
 0x2d5   : > { %v609_v17 = vmul.f32 0.5, %v604_v53  ;;  %v7519_v53 = vpop.permute.xlu0 %1244 }
 0x2d6   : > { %11476 = vst [vmem:[#allocation66_spill] sm:$0xff] %v7519_v53 }
 0x2d7   : > { %v7502_v52 = vadd.f32 %v609_v17, %v7099_v28  ;;  %v7515_v28 = vpop.permute.xlu2 %2310 }
 0x2d8   : > { %11475 = vst [vmem:[#allocation65_spill] sm:$0xff] %v7515_v28  ;;  %2330 = vrot.lane.b32.xlu0 %v7395_v43, %s11401_s26 }
 0x2d9   : > { %11472 = vst [vmem:[#allocation62_spill] sm:$0xff] %v7502_v52  ;;  %v615_v56 = vsel %vm463_vm1, %v7502_v52, 0.0 }
 0x2da   : > { %616 = vadd.xlane.f32.xlu2 %v615_v56  ;;  %v606_v0 = vpop.f32.mrf.mxu2 }
 0x2db   : > { %v607_v61 = vadd.f32 %v6382_v25, %v606_v0 }
 0x2dd   : > { %v610_v33 = vmul.f32 0.5, %v607_v61  ;;  %v7525_v61 = vpop.permute.xlu0 %1250 }
 0x2de   : > { %11478 = vst [vmem:[#allocation68_spill] sm:$0xff] %v7525_v61 }
 0x2df   : > { %v7511_v29 = vadd.f32 %v610_v33, %v7104_v31  ;;  %v7523_v17 = vpop.permute.xlu2 %1770 }
 0x2e0   : > { %11477 = vst [vmem:[#allocation67_spill] sm:$0xff] %v7523_v17  ;;  %2332 = vrot.lane.b32.xlu0 %v7079_v22, %s11401_s26 }
 0x2e1   : > { %11474 = vst [vmem:[#allocation64_spill] sm:$0xff] %v7511_v29  ;;  %v618_v20 = vsel %vm463_vm1, %v7511_v29, 0.0 }
 0x2e2   : > { %619 = vadd.xlane.f32.xlu2 %v618_v20 }
 0x2e5   : > { %v7531_v0 = vpop.permute.xlu0 %1738 }
 0x2e6   : > { %11480 = vst [vmem:[#allocation70_spill] sm:$0xff] %v7531_v0 }
 0x2e7   : > { %v7529_v31 = vpop.permute.xlu2 %1776 }
 0x2e8   : > { %11479 = vst [vmem:[#allocation69_spill] sm:$0xff] %v7529_v31  ;;  %1796 = vrot.lane.b32.xlu0 %v7415_v46, %s11391_s12 }
 0x2ed   : > { %v7539_v56 = vpop.permute.xlu0 %1744 }
 0x2ee   : > { %11482 = vst [vmem:[#allocation72_spill] sm:$0xff] %v7539_v56 }
 0x2ef   : > { %v7535_v25 = vpop.permute.xlu2 %2316 }
 0x2f0   : > { %11481 = vst [vmem:[#allocation71_spill] sm:$0xff] %v7535_v25  ;;  %2340 = vrot.lane.b32.xlu0 %v7268_v48, %s11401_s26 }
 0x2f5   : > { %v7545_v43 = vpop.permute.xlu0 %2284 }
 0x2f6   : > { %11484 = vst [vmem:[#allocation74_spill] sm:$0xff] %v7545_v43 }
 0x2f7   : > { %v7543_v33 = vpop.permute.xlu2 %1780 }
 0x2f8   : > { %11483 = vst [vmem:[#allocation73_spill] sm:$0xff] %v7543_v33 }
 0x2fd   : > { %v7549_v54 = vpop.permute.xlu0 %1748 }
 0x2fe   : > { %11486 = vst [vmem:[#allocation76_spill] sm:$0xff] %v7549_v54 }
 0x2ff   : > { %v7547_v20 = vpop.permute.xlu2 %1782 }
 0x300   : > { %11485 = vst [vmem:[#allocation75_spill] sm:$0xff] %v7547_v20 }
 0x305   : > { %v7553_v22 = vpop.permute.xlu0 %1750 }
 0x306   : > { %11488 = vst [vmem:[#allocation78_spill] sm:$0xff] %v7553_v22 }
 0x307   : > { %v7551_v49 = vpop.permute.xlu2 %2326 }
 0x308   : > { %11487 = vst [vmem:[#allocation77_spill] sm:$0xff] %v7551_v49 }
 0x30d   : > { %v7557_v46 = vpop.permute.xlu0 %2294 }
 0x30e   : > { %11490 = vst [vmem:[#allocation80_spill] sm:$0xff] %v7557_v46 }
 0x30f   : > { %v7555_v61 = vpop.permute.xlu2 %2328 }
 0x310   : > { %11489 = vst [vmem:[#allocation79_spill] sm:$0xff] %v7555_v61  ;;  %v7574_v61 = vpop.permute.xlu1 %1764 }
 0x311   : > { %11498 = vst [vmem:[#allocation88_spill] sm:$0xff] %v7574_v61 }
 0x315   : > { %v7561_v63 = vpop.permute.xlu0 %2296 }
 0x316   : > { %11492 = vst [vmem:[#allocation82_spill] sm:$0xff] %v7561_v63 }
 0x317   : > { %v7559_v53 = vpop.permute.xlu2 %1792 }
 0x318   : > { %11491 = vst [vmem:[#allocation81_spill] sm:$0xff] %v7559_v53 }
 0x31d   : > { %v7565_v33 = vpop.permute.xlu0 %1760 }
 0x31e   : > { %11494 = vst [vmem:[#allocation84_spill] sm:$0xff] %v7565_v33 }
 0x31f   : > { %v7563_v48 = vpop.permute.xlu2 %1794 }
 0x320   : > { %11493 = vst [vmem:[#allocation83_spill] sm:$0xff] %v7563_v48 }
 0x325   : > { %v7571_v25 = vpop.permute.xlu0 %1762 }
 0x326   : > { %11497 = vst [vmem:[#allocation87_spill] sm:$0xff] %v7571_v25 }
 0x327   : > { %v7569_v20 = vpop.permute.xlu2 %2338 }
 0x328   : > { %11496 = vst [vmem:[#allocation86_spill] sm:$0xff] %v7569_v20 }
 0x32d   : > { %v7579_v53 = vpop.permute.xlu0 %2306 }
 0x32e   : > { %11499 = vst [vmem:[#allocation89_spill] sm:$0xff] %v7579_v53 }
 0x34d   : > { %v617_v49 = vpop.xlane.xlu2 %616 }
 0x34e   : > { %v621_v18 = vmul.f32 %v617_v49, %v7143_v50  ;;  %v7588_v49 = vpop.permute.xlu1 %2308 }
 0x34f   : > { %11500 = vst [vmem:[#allocation90_spill] sm:$0xff] %v7588_v49 }
 0x350   : > { %v7577_v31 = vsub.f32 %v7502_v52, %v621_v18  ;;  %v7592_v52 = vpop.permute.xlu0 %1766 }
 0x351   : > { %11501 = vst [vmem:[#allocation91_spill] sm:$0xff] %v7592_v52 }
 0x352   : > { %v625_v48 = vmul.f32 %v7577_v31, %v7577_v31 }
 0x354   : > { %v627_v17 = vsel %vm463_vm1, %v625_v48, 0.0 }
 0x355   : > { %628 = vadd.xlane.f32.xlu0 %v627_v17  ;;  %v620_v19 = vpop.xlane.xlu2 %619 }
 0x356   : > { %v622_v20 = vmul.f32 %v620_v19, %v7143_v50  ;;  %v7595_v58 = vpop.permute.xlu1 %1768 }
 0x357   : > { %11502 = vst [vmem:[#allocation92_spill] sm:$0xff] %v7595_v58 }
 0x358   : > { %v7586_v30 = vsub.f32 %v7511_v29, %v622_v20  ;;  %v7597_v48 = vpop.permute.xlu0 %1772 }
 0x359   : > { %11503 = vst [vmem:[#allocation93_spill] sm:$0xff] %v7597_v48 }
 0x35a   : > { %v626_v18 = vmul.f32 %v7586_v30, %v7586_v30 }
 0x35c   : > { %v630_v3 = vsel %vm463_vm1, %v626_v18, 0.0 }
 0x35d   : > { %631 = vadd.xlane.f32.xlu1 %v630_v3 }
 0x35e   : > { %v7599_v17 = vpop.permute.xlu1 %1774 }
 0x35f   : > { %11504 = vst [vmem:[#allocation94_spill] sm:$0xff] %v7599_v17 }
 0x360   : > { %v7601_v19 = vpop.permute.xlu0 %2312 }
 0x361   : > { %11505 = vst [vmem:[#allocation95_spill] sm:$0xff] %v7601_v19 }
 0x366   : > { %v7603_v20 = vpop.permute.xlu1 %2314 }
 0x367   : > { %11506 = vst [vmem:[#allocation96_spill] sm:$0xff] %v7603_v20 }
 0x368   : > { %v7605_v29 = vpop.permute.xlu0 %2318 }
 0x369   : > { %11507 = vst [vmem:[#allocation97_spill] sm:$0xff] %v7605_v29 }
 0x36e   : > { %v7607_v27 = vpop.permute.xlu1 %1778 }
 0x36f   : > { %11508 = vst [vmem:[#allocation98_spill] sm:$0xff] %v7607_v27 }
 0x370   : > { %v7609_v24 = vpop.permute.xlu0 %2320 }
 0x371   : > { %11509 = vst [vmem:[#allocation99_spill] sm:$0xff] %v7609_v24 }
 0x376   : > { %v7611_v52 = vpop.permute.xlu1 %2322 }
 0x377   : > { %11510 = vst [vmem:[#allocation100_spill] sm:$0xff] %v7611_v52 }
 0x378   : > { %v7613_v18 = vpop.permute.xlu0 %1784 }
 0x379   : > { %11511 = vst [vmem:[#allocation101_spill] sm:$0xff] %v7613_v18 }
 0x37e   : > { %v7615_v3 = vpop.permute.xlu1 %2324 }
 0x37f   : > { %11512 = vst [vmem:[#allocation102_spill] sm:$0xff] %v7615_v3  ;;  %v668_v3 = vld [vmem:[%s11267_s5 + $0x18] sm:$0xff] }
 0x380   : > { %v7617_v58 = vpop.permute.xlu0 %1786  ;;  %689 = vmatpush.msrb.mxu0 %v668_v3  ;;  %6255 = vmatpush.msrb.mxu2 %v668_v3 }
 0x381   : > { %11513 = vst [vmem:[#allocation103_spill] sm:$0xff] %v7617_v58 }
 0x386   : > { %v7619_v48 = vpop.permute.xlu1 %1788 }
 0x387   : > { %11514 = vst [vmem:[#allocation104_spill] sm:$0xff] %v7619_v48  ;;  %v667_v48 = vld [vmem:[%s11267_s5 + $0x10] sm:$0xff] }
 0x388   : > { %v7621_v17 = vpop.permute.xlu0 %2330  ;;  %690 = vmatpush.msrb.mxu0 %v667_v48  ;;  %6256 = vmatpush.msrb.mxu2 %v667_v48  ;;  %v711_v48 = vld [vmem:[%s11268_s6 + $0x18] sm:$0xff] }
 0x389   : > { %11515 = vst [vmem:[#allocation105_spill] sm:$0xff] %v7621_v17  ;;  %730 = vmatpush.msrb.mxu1 %v711_v48 }
 0x38e   : > { %v7623_v19 = vpop.permute.xlu1 %1790 }
 0x38f   : > { %11516 = vst [vmem:[#allocation106_spill] sm:$0xff] %v7623_v19 }
 0x390   : > { %v7625_v20 = vpop.permute.xlu0 %2332 }
 0x391   : > { %11517 = vst [vmem:[#allocation107_spill] sm:$0xff] %v7625_v20 }
 0x396   : > { %v7627_v29 = vpop.permute.xlu1 %2334 }
 0x397   : > { %11518 = vst [vmem:[#allocation108_spill] sm:$0xff] %v7627_v29  ;;  %v666_v29 = vld [vmem:[%s11267_s5 + $0x8] sm:$0xff] }
 0x398   : > { %v7629_v27 = vpop.permute.xlu0 %1796  ;;  %691 = vmatpush.msrb.mxu0 %v666_v29  ;;  %6257 = vmatpush.msrb.mxu2 %v666_v29  ;;  %v710_v29 = vld [vmem:[%s11268_s6 + $0x10] sm:$0xff] }
 0x399   : > { %11519 = vst [vmem:[#allocation109_spill] sm:$0xff] %v7629_v27  ;;  %731 = vmatpush.msrb.mxu1 %v710_v29  ;;  %v6383_v29 = vld [vmem:[%s11266_s4 + $0x4] ss:$0 sm:$0xff] }
 0x39e   : > { %v7631_v24 = vpop.permute.xlu1 %2336 }
 0x39f   : > { %11520 = vst [vmem:[#allocation110_spill] sm:$0xff] %v7631_v24  ;;  %v665_v24 = vld [vmem:[%s11267_s5] sm:$0xff] }
 0x3a0   : > { %v7639_v52 = vpop.permute.xlu0 %2340  ;;  %692 = vmatpush.msrb.mxu0 %v665_v24  ;;  %6258 = vmatpush.msrb.mxu2 %v665_v24  ;;  %v709_v24 = vld [vmem:[%s11268_s6 + $0x8] sm:$0xff] }
 0x3a1   : > { %11521 = vst [vmem:[#allocation111_spill] sm:$0xff] %v7639_v52  ;;  %732 = vmatpush.msrb.mxu1 %v709_v24 }
 0x3a6   : > { %v7647_v3 = vpop.permute.xlu1 %2342 }
 0x3a7   : > { %11522 = vst [vmem:[#allocation112_spill] sm:$0xff] %v7647_v3 }
 0x3c8   : > { %v629_v19 = vpop.xlane.xlu0 %628 }
 0x3c9   : > { %v633_v27 = vmul.f32 %v629_v19, %v7143_v50 }
 0x3cb   : > { %v635_v52 = vadd.f32 1e-05, %v633_v27 }
 0x3cd   : > { %6455 = vrsqrt.f32 %v635_v52  ;;  %vm643_vm10 = vweird.f32 %v635_v52 }
 0x3d0   : > { %v632_v20 = vpop.xlane.xlu1 %631 }
 0x3d1   : > { %v634_v3 = vmul.f32 %v632_v20, %v7143_v50 }
 0x3d3   : > { %v6456_v27 = vpop.eup %6455  ;;  %v636_v19 = vadd.f32 1e-05, %v634_v3 }
 0x3d4   : > { %v638_v17 = vmul.f32 %v6456_v27, %v635_v52  ;;  %vm644_vm9 = vweird.f32 %v6456_v27 }
 0x3d5   : > { %6457 = vrsqrt.f32 %v636_v19  ;;  %vm645_vm11 = vmor %vm643_vm10, %vm644_vm9  ;;  %vm653_vm13 = vweird.f32 %v636_v19  ;;  %vm11404_vm9 = vcmask 130048   ;;  %vm11403_vm10 = vcmask 195584  }
 0x3d6   : > { %v639_v58 = vmul.f32 %v6456_v27, %v638_v17  ;;  %v6384_v17 = vld [vmem:[%s11266_s4 + $0x5] ss:$0 sm:$0xff] }
 0x3d8   : > { %v640_v18 = vmul.f32 0.5, %v639_v58 }
 0x3da   : > { %v641_v55 = vsub.f32 1.5, %v640_v18 }
 0x3db   : > { %v6458_v49 = vpop.eup %6457 }
 0x3dc   : > { %v642_v41 = vmul.f32 %v6456_v27, %v641_v55  ;;  %v648_v48 = vmul.f32 %v6458_v49, %v636_v19  ;;  %vm654_vm12 = vweird.f32 %v6458_v49  ;;  %v6386_v19 = vld [vmem:[%s11266_s4 + $0x9] ss:$0 sm:$0xff] }
 0x3dd   : > { %vm655_vm14 = vmor %vm653_vm13, %vm654_vm12 }
 0x3de   : > { %v646_v61 = vsel %vm645_vm11, %v6456_v27, %v642_v41  ;;  %v649_v20 = vmul.f32 %v6458_v49, %v648_v48 }
 0x3df   : > { %v657_v24 = vmul.f32 %v646_v61, %v7577_v31  ;;  %v708_v61 = vld [vmem:[%s11268_s6] sm:$0xff] }
 0x3e0   : > { %v650_v58 = vmul.f32 0.5, %v649_v20  ;;  %733 = vmatpush.msrb.mxu1 %v708_v61  ;;  %v6385_v31 = vld [vmem:[%s11266_s4 + $0x6] ss:$0 sm:$0xff] }
 0x3e1   : > { %v660_v18 = vmul.f32 %v6383_v29, %v657_v24 }
 0x3e2   : > { %v651_v3 = vsub.f32 1.5, %v650_v58 }
 0x3e3   : > { %v663_v55 = vadd.f32 %v6384_v17, %v660_v18 }
 0x3e4   : > { %v652_v52 = vmul.f32 %v6458_v49, %v651_v3 }
 0x3e5   : > { %6094 = vmatmul.msk.f32.vlgmr.msrb.gmra.mxu0 %vm463_vm1, %v663_v55 }
 0x3e6   : > { %v656_v50 = vsel %vm655_vm14, %v6458_v49, %v652_v52 }
 0x3e7   : > { %v658_v41 = vmul.f32 %v656_v50, %v7586_v30  ;;  %v6387_v50 = vld [vmem:[%s11266_s4 + $0x8] ss:$0 sm:$0xff] }
 0x3e9   : > { %v661_v27 = vmul.f32 %v6383_v29, %v658_v41 }
 0x3eb   : > { %v664_v48 = vadd.f32 %v6384_v17, %v661_v27 }
 0x3ed   : > { %6095 = vmatmul.msk.f32.vlgmr.msrb.gmra.mxu2 %vm463_vm1, %v664_v48 }
 0x462   : > { %v694_v30 = vpop.f32.mrf.mxu0 }
 0x463   : > { %v695_v49 = vadd.f32 %v6385_v31, %v694_v30 }
 0x465   : > { %1544 = vrot.lane.b32.xlu2 %v695_v49, %s6817_s2  ;;  %951 = vrot.lane.b32.xlu0 %v695_v49, %s11401_s26  ;;  %v706_v29 = vadd.f32 %v6386_v19, %v695_v49  ;;  %v702_v20 = vadd.f32 %v6387_v50, %v695_v49 }
 0x467   : > { %6096 = vmatmul.msk.f32.vlgmr.msrb.gmra.mxu1 %vm463_vm1, %v706_v29  ;;  %2086 = vrot.lane.b32.xlu1 %v702_v20, %s11336_s13 }
 0x46d   : > { %2090 = vrot.lane.b32.xlu2 %v695_v49, %s11338_s25  ;;  %2636 = vrot.lane.b32.xlu0 %v695_v49, %s11393_s29 }
 0x470   : > { %v697_v24 = vpop.f32.mrf.mxu2 }
 0x471   : > { %v698_v17 = vadd.f32 %v6385_v31, %v697_v24 }
 0x473   : > { %v707_v58 = vadd.f32 %v6386_v19, %v698_v17  ;;  %v7688_v18 = vpack.i.bf16 %v695_v49, %v698_v17  ;;  %v703_v3 = vadd.f32 %v6387_v50, %v698_v17 }
 0x475   : > { %11523 = vst [vmem:[#allocation113_spill] sm:$0xff] %v7688_v18  ;;  %6097 = vmatmul.msk.f32.gmra.mxu1 %vm463_vm1, %v707_v58  ;;  %2632 = vrot.lane.b32.xlu2 %v702_v20, %s11334_s14 }
 0x476   : > { %6339 = vrot.lane.b32.xlu1 %v7688_v18, %s11391_s12  ;;  %1540 = vrot.lane.b32.xlu0 %v702_v20, %s11395_s15  ;;  %v11575_v18 = vld [vmem:[#allocation101_spill] sm:$0xff] }
 0x47d   : > { %953 = vrot.lane.b32.xlu2 %v698_v17, %s11401_s26 }
 0x47e   : > { %2638 = vrot.lane.b32.xlu1 %v698_v17, %s11393_s29  ;;  %1546 = vrot.lane.b32.xlu0 %v698_v17, %s6817_s2  ;;  %s11648_s29 = smov 96  }
 0x486   : > { %1542 = vrot.lane.b32.xlu1 %v703_v3, %s11395_s15  ;;  %2092 = vrot.lane.b32.xlu0 %v698_v17, %s11338_s25  ;;  %s11388_s25 = smov 8   ;;  %s11649_s15 = smov 120  }
 0x48e   : > { %2634 = vrot.lane.b32.xlu1 %v703_v3, %s11334_s14  ;;  %2088 = vrot.lane.b32.xlu0 %v703_v3, %s11336_s13  ;;  %s11390_s14 = smov 56   ;;  %s11387_s13 = smov 48  }
 0x4bf   : > { %v1545_v55 = vpop.permute.xlu2 %1544 }
 0x4c7   : > { %v2091_v52 = vpop.permute.xlu2 %2090 }
 0x4cf   : > { %v2633_v41 = vpop.permute.xlu2 %2632 }
 0x4d7   : > { %v952_v27 = vpop.permute.xlu0 %951  ;;  %v954_v48 = vpop.permute.xlu2 %953 }
 0x4d8   : > { %6098 = vmatpush.xpose.msk.msra.mxu3 %vm1062_vm15, %v954_v48 }
 0x4d9   : > { %v7705_v31 = vpop.permute.xlu1 %2086 }
 0x4da   : > { %11524 = vst [vmem:[#allocation114_spill] sm:$0xff] %v7705_v31 }
 0x4dc   : > { %6099 = vmatpush.xpose.msk.msra.mxu3 %vm1062_vm15, %v952_v27 }
 0x4df   : > { %v2637_v61 = vpop.permute.xlu0 %2636  ;;  %6100 = vmatmul.msk.f32.vlgmr.msra.gmra.mxu3 %vm1062_vm15, %v702_v20 }
 0x4e4   : > { %v7707_v19 = vpop.f32.mrf.mxu1 }
 0x4e5   : > { %v7710_v50 = vperm.slane %v7707_v19, 0  ;;  %v776_v24 = vrot.slane %v7707_v19, 2 }
 0x4e7   : > { %6101 = vmatmul.msk.f32.gmra.mxu3 %vm1062_vm15, %v703_v3  ;;  %v1284_v29 = vmul.f32 %v7291_v57, %v7710_v50  ;;  %v1830_v20 = vmul.f32 %v7165_v1, %v7710_v50  ;;  %v1285_v58 = vmul.f32 %v7127_v36, %v7710_v50  ;;  %v7723_v27 = vperm.slane %v776_v24, 0 }
 0x4e8   : > { %v6340_v30 = vpop.permute.xlu1 %6339  ;;  %v1541_v49 = vpop.permute.xlu0 %1540  ;;  %v1831_v57 = vmul.f32 %v7444_v60, %v7710_v50  ;;  %v777_v1 = vrot.slane %v7707_v19, 3 }
 0x4e9   : > { %v6341_v17 = vunpack.i.l.bf16 %v6340_v30  ;;  %1348 = vrot.lane.b32.xlu2 %v1284_v29, %s11401_s26  ;;  %1894 = vrot.lane.b32.xlu1 %v1830_v20, %s11391_s12  ;;  %v6342_v3 = vunpack.i.h.bf16 %v6340_v30  ;;  %v2376_v29 = vmul.f32 %v7169_v4, %v7710_v50  ;;  %v1288_v20 = vmul.f32 %v7131_v38, %v7723_v27 }
 0x4ea   : > { %1350 = vrot.lane.b32.xlu0 %v1285_v58, %s11401_s26  ;;  %v7736_v30 = vperm.slane %v777_v1, 0 }
 0x4eb   : > { %1147 = vmatpush.msra.mxu0 %v6341_v17  ;;  %v775_v17 = vrot.slane %v7707_v19, 1 }
 0x4ec   : > { %v1291_v1 = vmul.f32 %v7135_v42, %v7736_v30 }
 0x4ed   : > { %1148 = vmatpush.msra.mxu0 %v6342_v3  ;;  %v2377_v3 = vmul.f32 %v7458_v5, %v7710_v50 }
 0x4f0   : > { %v1547_v48 = vpop.permute.xlu0 %1546  ;;  %v2639_v24 = vpop.permute.xlu1 %2638 }
 0x4f1   : > { %6104 = vmatpush.xpose.msk.msra.mxu1 %vm1062_vm15, %v1547_v48  ;;  %1896 = vrot.lane.b32.xlu2 %v1831_v57, %s11391_s12  ;;  %v779_v57 = vrot.slane %v7707_v19, 5 }
 0x4f2   : > { %2440 = vrot.lane.b32.xlu1 %v2376_v29, %s11421_s30  ;;  %1356 = vrot.lane.b32.xlu0 %v1288_v20, %s11401_s26  ;;  %v780_v20 = vrot.slane %v7707_v19, 6 }
 0x4f5   : > { %6105 = vmatpush.xpose.msk.msra.mxu1 %vm1062_vm15, %v1545_v55  ;;  %v7751_v55 = vperm.slane %v775_v17, 0  ;;  %v778_v17 = vrot.slane %v7707_v19, 4 }
 0x4f7   : > { %v1287_v29 = vmul.f32 %v7301_v8, %v7751_v55  ;;  %v11542_v8 = vld [vmem:[#allocation58_spill] sm:$0xff] }
 0x4f8   : > { %6106 = vmatmul.msk.f32.vlgmr.msra.gmra.mxu1 %vm1062_vm15, %v1541_v49  ;;  %v2093_v58 = vpop.permute.xlu0 %2092  ;;  %v7753_v49 = vperm.slane %v779_v57, 0  ;;  %v1543_v48 = vpop.permute.xlu1 %1542 }
 0x4f9   : > { %6116 = vmatpush.xpose.msk.msrb.mxu1 %vm1062_vm15, %v2639_v24  ;;  %6110 = vmatpush.xpose.msk.msrb.mxu0 %vm1062_vm15, %v2093_v58 }
 0x4fa   : > { %2442 = vrot.lane.b32.xlu2 %v2377_v3, %s11421_s30  ;;  %1362 = vrot.lane.b32.xlu0 %v1291_v1, %s11401_s26  ;;  %v1294_v24 = vmul.f32 %v7139_v47, %v7753_v49  ;;  %v7774_v3 = vperm.slane %v778_v17, 0  ;;  %v1835_v17 = vmul.f32 %v7539_v56, %v7723_v27  ;;  %v11544_v47 = vld [vmem:[#allocation71_spill] sm:$0xff] }
 0x4fc   : > { %v1293_v1 = vmul.f32 %v7341_v39, %v7774_v3 }
 0x4fd   : > { %6117 = vmatpush.xpose.msk.msrb.mxu1 %vm1062_vm15, %v2637_v61  ;;  %6111 = vmatpush.xpose.msk.msrb.mxu0 %vm1062_vm15, %v2091_v52  ;;  %v7764_v61 = vperm.slane %v780_v20, 0  ;;  %v1290_v52 = vmul.f32 %v7322_v15, %v7736_v30  ;;  %v6615_v20 = vld [vmem:[%s11265_s3] sm:$0xff] }
 0x4ff   : > { %v1297_v58 = vmul.f32 %v7474_v13, %v7764_v61 }
 0x500   : > { %6107 = vmatmul.msk.f32.gmra.mxu1 %vm1062_vm15, %v1543_v48  ;;  %v2635_v57 = vpop.permute.xlu1 %2634  ;;  %v781_v48 = vrot.slane %v7707_v19, 7 }
 0x502   : > { %1354 = vrot.lane.b32.xlu2 %v1287_v29, %s11401_s26  ;;  %1368 = vrot.lane.b32.xlu0 %v1294_v24, %s11401_s26  ;;  %v1296_v29 = vmul.f32 %v7358_v51, %v7764_v61  ;;  %v821_v24 = vmul.f32 %v6615_v20, %v7710_v50  ;;  %v1837_v20 = vmul.f32 %v7549_v54, %v7736_v30 }
 0x504   : > { %v853_v19 = vsel %vm463_vm1, %v821_v24, 0.0  ;;  %v1838_v24 = vmul.f32 %v7553_v22, %v7774_v3 }
 0x508   : > { %6118 = vmatmul.msk.f32.vlgmr.msrb.gmra.mxu1 %vm1062_vm15, %v2633_v41  ;;  %v1832_v41 = vmul.f32 %v7531_v0, %v7751_v55 }
 0x50a   : > { %1360 = vrot.lane.b32.xlu2 %v1290_v52, %s11401_s26  ;;  %1374 = vrot.lane.b32.xlu0 %v1297_v58, %s11401_s26  ;;  %v7794_v52 = vperm.slane %v781_v48, 0 }
 0x50c   : > { %v1299_v58 = vmul.f32 %v7382_v62, %v7794_v52 }
 0x510   : > { %6119 = vmatmul.msk.f32.gmra.mxu1 %vm1062_vm15, %v2635_v57  ;;  %v6616_v57 = vld [vmem:[%s11265_s3 + $0x8] sm:$0xff] }
 0x512   : > { %1366 = vrot.lane.b32.xlu2 %v1293_v1, %s11401_s26  ;;  %1898 = vrot.lane.b32.xlu0 %v1832_v41, %s11391_s12  ;;  %v822_v1 = vmul.f32 %v6616_v57, %v7710_v50  ;;  %v2378_v41 = vmul.f32 %v7545_v43, %v7751_v55  ;;  %v1836_v50 = vmul.f32 %v7462_v21, %v7736_v30 }
 0x513   : > { %v2382_v57 = vmul.f32 %v7470_v12, %v7736_v30 }
 0x514   : > { %v856_v48 = vsel %vm463_vm1, %v822_v1, 0.0  ;;  %v2384_v1 = vmul.f32 %v7561_v63, %v7774_v3 }
 0x51a   : > { %1372 = vrot.lane.b32.xlu2 %v1296_v29, %s11401_s26  ;;  %1904 = vrot.lane.b32.xlu0 %v1835_v17, %s11391_s12  ;;  %v1834_v29 = vmul.f32 %v7450_v10, %v7723_v27  ;;  %v2381_v17 = vmul.f32 %v7466_v59, %v7723_v27  ;;  %v11535_v59 = vld [vmem:[#allocation43_spill] sm:$0xff] }
 0x51c   : > { %854 = vadd.xlane.f32.xlu1 %v853_v19  ;;  %v2383_v19 = vmul.f32 %v7557_v46, %v7736_v30 }
 0x522   : > { %1378 = vrot.lane.b32.xlu2 %v1299_v58, %s11401_s26  ;;  %2444 = vrot.lane.b32.xlu0 %v2378_v41, %s11421_s30  ;;  %v1286_v58 = vmul.f32 %v7123_v34, %v7751_v55  ;;  %v1289_v41 = vmul.f32 %v7125_v35, %v7723_v27  ;;  %v11567_v34 = vld [vmem:[#allocation83_spill] sm:$0xff] }
 0x524   : > { %857 = vadd.xlane.f32.xlu1 %v856_v48  ;;  %v1841_v48 = vmul.f32 %v7478_v14, %v7753_v49 }
 0x52a   : > { %1902 = vrot.lane.b32.xlu2 %v1834_v29, %s11391_s12  ;;  %1908 = vrot.lane.b32.xlu0 %v1837_v20, %s11391_s12  ;;  %v1843_v29 = vmul.f32 %v7565_v33, %v7764_v61  ;;  %v1292_v20 = vmul.f32 %v7129_v37, %v7774_v3 }
 0x532   : > { %1906 = vrot.lane.b32.xlu2 %v1836_v50, %s11391_s12  ;;  %1910 = vrot.lane.b32.xlu0 %v1838_v24, %s11391_s12  ;;  %v1842_v50 = vmul.f32 %v7484_v32, %v7764_v61  ;;  %v1844_v24 = vmul.f32 %v7571_v25, %v7794_v52  ;;  %v11531_v25 = vld [vmem:[#allocation91_spill] sm:$0xff] }
 0x53a   : > { %2450 = vrot.lane.b32.xlu2 %v2381_v17, %s11421_s30  ;;  %2454 = vrot.lane.b32.xlu0 %v2383_v19, %s11421_s30  ;;  %v1295_v17 = vmul.f32 %v7133_v40, %v7753_v49  ;;  %v2387_v19 = vmul.f32 %v7490_v23, %v7753_v49 }
 0x53d   : > { %1352 = vrot.lane.b32.xlu1 %v1286_v58, %s11401_s26  ;;  %v2389_v58 = vmul.f32 %v7579_v53, %v7764_v61 }
 0x542   : > { %2452 = vrot.lane.b32.xlu2 %v2382_v57, %s11421_s30  ;;  %2456 = vrot.lane.b32.xlu0 %v2384_v1, %s11421_s30  ;;  %v1298_v57 = vmul.f32 %v7137_v44, %v7794_v52  ;;  %v2388_v1 = vmul.f32 %v7499_v45, %v7764_v61  ;;  %v11529_v45 = vld [vmem:[#allocation41_spill] sm:$0xff] }
 0x545   : > { %1358 = vrot.lane.b32.xlu1 %v1289_v41, %s11401_s26  ;;  %v1833_v41 = vmul.f32 %v7167_v2, %v7751_v55 }
 0x54a   : > { %1916 = vrot.lane.b32.xlu2 %v1841_v48, %s11391_s12  ;;  %1920 = vrot.lane.b32.xlu0 %v1843_v29, %s11391_s12  ;;  %v2391_v48 = vmul.f32 %v7515_v28, %v7794_v52  ;;  %v2379_v29 = vmul.f32 %v7171_v6, %v7751_v55 }
 0x54d   : > { %1364 = vrot.lane.b32.xlu1 %v1292_v20, %s11401_s26  ;;  %v2380_v20 = vmul.f32 %v7173_v7, %v7723_v27 }
 0x552   : > { %1918 = vrot.lane.b32.xlu2 %v1842_v50, %s11391_s12  ;;  %1922 = vrot.lane.b32.xlu0 %v1844_v24, %s11391_s12  ;;  %v1839_v50 = vmul.f32 %v7175_v9, %v7774_v3  ;;  %v6617_v24 = vld [vmem:[%s11265_s3 + $0x20] sm:$0xff] }
 0x555   : > { %1370 = vrot.lane.b32.xlu1 %v1295_v17, %s11401_s26  ;;  %v825_v17 = vmul.f32 %v6617_v24, %v7723_v27 }
 0x55a   : > { %2462 = vrot.lane.b32.xlu2 %v2387_v19, %s11421_s30  ;;  %2466 = vrot.lane.b32.xlu0 %v2389_v58, %s11421_s30  ;;  %v865_v19 = vsel %vm463_vm1, %v825_v17, 0.0  ;;  %v1840_v58 = vmul.f32 %v7177_v11, %v7753_v49 }
 0x55d   : > { %1376 = vrot.lane.b32.xlu1 %v1298_v57, %s11401_s26  ;;  %v6618_v57 = vld [vmem:[%s11265_s3 + $0x58] sm:$0xff] }
 0x562   : > { %2464 = vrot.lane.b32.xlu2 %v2388_v1, %s11421_s30  ;;  %v832_v1 = vmul.f32 %v6618_v57, %v7753_v49  ;;  %v7911_v57 = vpop.permute.xlu0 %2088 }
 0x563   : > { %11525 = vst [vmem:[#allocation115_spill] sm:$0xff] %v7911_v57 }
 0x565   : > { %1900 = vrot.lane.b32.xlu1 %v1833_v41, %s11391_s12  ;;  %v886_v41 = vsel %vm463_vm1, %v832_v1, 0.0  ;;  %v6621_v1 = vld [vmem:[%s11265_s3 + $0x50] sm:$0xff] }
 0x56a   : > { %2470 = vrot.lane.b32.xlu2 %v2391_v48, %s11421_s30  ;;  %v2385_v48 = vmul.f32 %v7185_v16, %v7774_v3 }
 0x56d   : > { %2446 = vrot.lane.b32.xlu1 %v2379_v29, %s11421_s30  ;;  %v6619_v29 = vld [vmem:[%s11265_s3 + $0x18] sm:$0xff] }
 0x575   : > { %2448 = vrot.lane.b32.xlu1 %v2380_v20, %s11421_s30  ;;  %v824_v20 = vmul.f32 %v6619_v29, %v7751_v55 }
 0x577   : > { %v862_v17 = vsel %vm463_vm1, %v824_v20, 0.0  ;;  %v11526_v20 = vld [vmem:[#allocation88_spill] sm:$0xff] }
 0x57d   : > { %1912 = vrot.lane.b32.xlu1 %v1839_v50, %s11391_s12  ;;  %v6620_v50 = vld [vmem:[%s11265_s3 + $0x70] sm:$0xff] }
 0x57e   : > { %v835_v24 = vmul.f32 %v6620_v50, %v7794_v52  ;;  %v1845_v50 = vmul.f32 %v11526_v20, %v7794_v52 }
 0x584   : > { %866 = vadd.xlane.f32.xlu0 %v865_v19  ;;  %v895_v19 = vsel %vm463_vm1, %v835_v24, 0.0  ;;  %v7923_v24 = vpop.permute.xlu0 %1350 }
 0x585   : > { %1914 = vrot.lane.b32.xlu1 %v1840_v58, %s11391_s12  ;;  %v2386_v58 = vmul.f32 %v7567_v26, %v7753_v49  ;;  %v11538_v26 = vld [vmem:[#allocation46_spill] sm:$0xff] }
 0x58c   : > { %887 = vadd.xlane.f32.xlu0 %v886_v41  ;;  %v831_v41 = vmul.f32 %v6621_v1, %v7753_v49  ;;  %v7943_v53 = vpop.permute.xlu0 %1356 }
 0x58d   : > { %2458 = vrot.lane.b32.xlu1 %v2385_v48, %s11421_s30  ;;  %v7918_v48 = vpop.permute.xlu1 %1894 }
 0x58e   : > { %v883_v29 = vsel %vm463_vm1, %v831_v41, 0.0  ;;  %v11528_v41 = vld [vmem:[#allocation90_spill] sm:$0xff] }
 0x593   : > { %863 = vadd.xlane.f32.xlu2 %v862_v17  ;;  %v11527_v17 = vld [vmem:[#allocation39_spill] sm:$0xff] }
 0x594   : > { %896 = vadd.xlane.f32.xlu0 %v895_v19  ;;  %v834_v19 = vmul.f32 %v7764_v61, %v11527_v17  ;;  %v11530_v17 = vld [vmem:[#allocation56_spill] sm:$0xff] }
 0x595   : > { %2460 = vrot.lane.b32.xlu1 %v2386_v58, %s11421_s30  ;;  %v7928_v58 = vpop.f32.mrf.mxu1  ;;  %v7933_v49 = vpop.permute.xlu1 %2440 }
 0x596   : > { %v7931_v28 = vperm.slane %v7928_v58, 0  ;;  %v892_v1 = vsel %vm463_vm1, %v834_v19, 0.0  ;;  %v782_v12 = vrot.slane %v7928_v58, 1  ;;  %v783_v63 = vrot.slane %v7928_v58, 2 }
 0x597   : > { %v785_v22 = vrot.slane %v7928_v58, 4  ;;  %v786_v43 = vrot.slane %v7928_v58, 5  ;;  %v784_v13 = vrot.slane %v7928_v58, 3 }
 0x598   : > { %v1300_v23 = vmul.f32 %v11530_v17, %v7931_v28 }
 0x59b   : > { %884 = vadd.xlane.f32.xlu2 %v883_v29  ;;  %v2390_v29 = vmul.f32 %v11528_v41, %v7794_v52 }
 0x59d   : > { %1924 = vrot.lane.b32.xlu1 %v1845_v50, %s11391_s12  ;;  %v837_v50 = vmul.f32 %v7931_v28, %v11529_v45  ;;  %v7946_v32 = vpop.xlane.xlu1 %854  ;;  %v7954_v45 = vpop.permute.xlu0 %1362 }
 0x59f   : > { %v901_v19 = vsel %vm463_vm1, %v837_v50, 0.0 }
 0x5a3   : > { %893 = vadd.xlane.f32.xlu2 %v892_v1  ;;  %v7949_v1 = vpop.permute.xlu2 %1348 }
 0x5a5   : > { %2468 = vrot.lane.b32.xlu1 %v2390_v29, %s11421_s30  ;;  %v1846_v29 = vmul.f32 %v11531_v25, %v7931_v28  ;;  %v7956_v14 = vpop.xlane.xlu1 %857  ;;  %v7964_v50 = vpop.permute.xlu0 %1368  ;;  %v7968_v25 = vperm.slane %v782_v12, 0  ;;  %v11536_v12 = vld [vmem:[#allocation44_spill] sm:$0xff] }
 0x5a7   : > { %v1302_v46 = vmul.f32 %v11535_v59, %v7968_v25  ;;  %v6622_v59 = vld [vmem:[%s11265_s3 + $0x10] sm:$0xff]  ;;  %v1303_v9 = vmul.f32 %v11542_v8, %v7968_v25  ;;  %v2394_v7 = vmul.f32 %v11544_v47, %v7968_v25 }
 0x5a8   : > { %1380 = vrot.lane.b32.xlu0 %v1300_v23, %s11401_s26  ;;  %v11533_v23 = vld [vmem:[#allocation95_spill] sm:$0xff] }
 0x5a9   : > { %v2392_v33 = vmul.f32 %v11533_v23, %v7931_v28  ;;  %v7976_v23 = vperm.slane %v783_v63, 0  ;;  %v823_v63 = vmul.f32 %v6622_v59, %v7751_v55  ;;  %v6623_v59 = vld [vmem:[%s11265_s3 + $0x28] sm:$0xff]  ;;  %v8009_v55 = vperm.slane %v786_v43, 0 }
 0x5ab   : > { %902 = vadd.xlane.f32.xlu2 %v901_v19  ;;  %v7958_v17 = vpop.permute.xlu2 %1896  ;;  %v1305_v41 = vmul.f32 %v11536_v12, %v7976_v23  ;;  %v859_v54 = vsel %vm463_vm1, %v823_v63, 0.0  ;;  %v11537_v12 = vld [vmem:[#allocation45_spill] sm:$0xff] }
 0x5ac   : > { %11532 = vst [vmem:[#allocation39_spill] sm:$0xff] %v7958_v17 }
 0x5ad   : > { %v7978_v21 = vpop.permute.xlu0 %1374 }
 0x5af   : > { %v7966_v19 = vpop.permute.xlu1 %1352 }
 0x5b0   : > { %1926 = vrot.lane.b32.xlu0 %v1846_v29, %s11391_s12 }
 0x5b3   : > { %v7970_v29 = vpop.permute.xlu2 %2442 }
 0x5b4   : > { %11534 = vst [vmem:[#allocation41_spill] sm:$0xff] %v7970_v29 }
 0x5b5   : > { %v7995_v62 = vpop.permute.xlu0 %1898 }
 0x5b8   : > { %2472 = vrot.lane.b32.xlu0 %v2392_v33, %s11421_s30  ;;  %v7980_v33 = vpop.permute.xlu1 %1358 }
 0x5bb   : > { %v7983_v10 = vpop.permute.xlu2 %1354 }
 0x5bd   : > { %v8015_v56 = vpop.permute.xlu0 %1904 }
 0x5c0   : > { %v7997_v20 = vpop.permute.xlu1 %1364 }
 0x5c3   : > { %1384 = vrot.lane.b32.xlu2 %v1302_v46, %s11401_s26  ;;  %v7992_v46 = vperm.slane %v785_v22, 0  ;;  %v8002_v51 = vpop.permute.xlu2 %1360  ;;  %v826_v22 = vmul.f32 %v6623_v59, %v7723_v27  ;;  %v6624_v27 = vld [vmem:[%s11265_s3 + $0x30] sm:$0xff] }
 0x5c4   : > { %v827_v43 = vmul.f32 %v6624_v27, %v7736_v30 }
 0x5c5   : > { %v868_v63 = vsel %vm463_vm1, %v826_v22, 0.0  ;;  %v6625_v22 = vld [vmem:[%s11265_s3 + $0x88] sm:$0xff]  ;;  %v8041_v15 = vpop.permute.xlu0 %2444  ;;  %v1855_v57 = vmul.f32 %v11575_v18, %v7992_v46 }
 0x5c6   : > { %v11580_v18 = vld [vmem:[#allocation24_spill] sm:$0xff] }
 0x5c8   : > { %v8017_v39 = vpop.permute.xlu1 %1370 }
 0x5cb   : > { %1390 = vrot.lane.b32.xlu2 %v1305_v41, %s11401_s26  ;;  %v1308_v41 = vmul.f32 %v11537_v12, %v7992_v46  ;;  %v1311_v12 = vmul.f32 %v11538_v26, %v8009_v55  ;;  %v8026_v59 = vpop.permute.xlu2 %1366  ;;  %v871_v26 = vsel %vm463_vm1, %v827_v43, 0.0 }
 0x5cf   : > { %860 = vadd.xlane.f32.xlu1 %v859_v54  ;;  %v788_v54 = vrot.slane %v7928_v58, 7 }
 0x5d3   : > { %1396 = vrot.lane.b32.xlu2 %v1308_v41, %s11401_s26  ;;  %v8024_v41 = vperm.slane %v788_v54, 0  ;;  %v6626_v54 = vld [vmem:[%s11265_s3 + $0x38] sm:$0xff]  ;;  %v8045_v43 = vpop.permute.xlu2 %1372 }
 0x5d4   : > { %v828_v27 = vmul.f32 %v6626_v54, %v7736_v30  ;;  %v8055_v54 = vpop.permute.xlu0 %1908 }
 0x5d7   : > { %869 = vadd.xlane.f32.xlu1 %v868_v63  ;;  %v838_v63 = vmul.f32 %v6625_v22, %v7931_v28  ;;  %v8043_v22 = vpop.permute.xlu1 %1376 }
 0x5d9   : > { %v904_v0 = vsel %vm463_vm1, %v838_v63, 0.0  ;;  %v11540_v63 = vld [vmem:[#allocation67_spill] sm:$0xff] }
 0x5db   : > { %1402 = vrot.lane.b32.xlu2 %v1311_v12, %s11401_s26  ;;  %v11539_v12 = vld [vmem:[#allocation47_spill] sm:$0xff] }
 0x5dc   : > { %v1314_v16 = vmul.f32 %v11539_v12, %v8024_v41 }
 0x5df   : > { %872 = vadd.xlane.f32.xlu1 %v871_v26  ;;  %v874_v26 = vsel %vm463_vm1, %v828_v27, 0.0  ;;  %v8057_v12 = vpop.permute.xlu1 %1900  ;;  %v8060_v27 = vpop.permute.xlu2 %1378 }
 0x5e2   : > { %905 = vadd.xlane.f32.xlu0 %v904_v0  ;;  %v1848_v0 = vmul.f32 %v11540_v63, %v7968_v25 }
 0x5e3   : > { %1408 = vrot.lane.b32.xlu2 %v1314_v16, %s11401_s26  ;;  %v6627_v16 = vld [vmem:[%s11265_s3 + $0x40] sm:$0xff] }
 0x5e4   : > { %v829_v30 = vmul.f32 %v6627_v16, %v7774_v3 }
 0x5e6   : > { %v877_v11 = vsel %vm463_vm1, %v829_v30, 0.0  ;;  %v8074_v30 = vpop.permute.xlu0 %1910 }
 0x5e7   : > { %875 = vadd.xlane.f32.xlu1 %v874_v26  ;;  %v11541_v26 = vld [vmem:[#allocation69_spill] sm:$0xff] }
 0x5e8   : > { %v1851_v63 = vmul.f32 %v11541_v26, %v7976_v23  ;;  %v8076_v26 = vpop.permute.xlu1 %2446 }
 0x5e9   : > { %11543 = vst [vmem:[#allocation116_spill] sm:$0xff] %v8076_v26 }
 0x5eb   : > { %1930 = vrot.lane.b32.xlu2 %v1848_v0, %s11391_s12  ;;  %v6628_v0 = vld [vmem:[%s11265_s3 + $0x48] sm:$0xff] }
 0x5ec   : > { %v830_v16 = vmul.f32 %v6628_v0, %v7774_v3  ;;  %v8082_v3 = vpop.permute.xlu2 %1902 }
 0x5ed   : > { %11545 = vst [vmem:[#allocation117_spill] sm:$0xff] %v8082_v3 }
 0x5ee   : > { %v8095_v42 = vpop.permute.xlu0 %2454 }
 0x5ef   : > { %878 = vadd.xlane.f32.xlu1 %v877_v11  ;;  %v880_v11 = vsel %vm463_vm1, %v830_v16, 0.0  ;;  %v11546_v16 = vld [vmem:[#allocation60_spill] sm:$0xff] }
 0x5f3   : > { %1936 = vrot.lane.b32.xlu2 %v1851_v63, %s11391_s12  ;;  %v8078_v63 = vperm.slane %v784_v13, 0 }
 0x5f5   : > { %v1306_v8 = vmul.f32 %v11546_v16, %v8078_v63  ;;  %v8105_v16 = vpop.permute.xlu2 %1906  ;;  %v1307_v31 = vmul.f32 %v11580_v18, %v8078_v63  ;;  %v11585_v18 = vld [vmem:[#allocation107_spill] sm:$0xff] }
 0x5f6   : > { %1386 = vrot.lane.b32.xlu0 %v1303_v9, %s11401_s26  ;;  %v6629_v9 = vld [vmem:[%s11265_s3 + $0x60] sm:$0xff]  ;;  %11549 = vst [vmem:[#allocation119_spill] sm:$0xff] %v8105_v16 }
 0x5f7   : > { %881 = vadd.xlane.f32.xlu1 %v880_v11  ;;  %v833_v0 = vmul.f32 %v6629_v9, %v7764_v61  ;;  %v11547_v11 = vld [vmem:[#allocation73_spill] sm:$0xff]  ;;  %v6630_v61 = vld [vmem:[%s11265_s3 + $0x78] sm:$0xff] }
 0x5f8   : > { %v1853_v47 = vmul.f32 %v11547_v11, %v8078_v63  ;;  %v836_v9 = vmul.f32 %v6630_v61, %v7794_v52  ;;  %v8116_v52 = vpop.permute.xlu0 %2456  ;;  %v11553_v61 = vld [vmem:[#allocation66_spill] sm:$0xff] }
 0x5f9   : > { %v889_v13 = vsel %vm463_vm1, %v833_v0, 0.0  ;;  %v11550_v0 = vld [vmem:[#allocation63_spill] sm:$0xff] }
 0x5fa   : > { %v898_v11 = vsel %vm463_vm1, %v836_v9, 0.0 }
 0x5fb   : > { %2476 = vrot.lane.b32.xlu2 %v2394_v7, %s11421_s30  ;;  %v8097_v7 = vpop.permute.xlu1 %2448 }
 0x5fc   : > { %11548 = vst [vmem:[#allocation118_spill] sm:$0xff] %v8097_v7 }
 0x5fe   : > { %1392 = vrot.lane.b32.xlu0 %v1306_v8, %s11401_s26  ;;  %v787_v8 = vrot.slane %v7928_v58, 6 }
 0x5ff   : > { %890 = vadd.xlane.f32.xlu1 %v889_v13  ;;  %v1309_v13 = vmul.f32 %v11550_v0, %v7992_v46  ;;  %v8122_v0 = vpop.permute.xlu2 %2450 }
 0x600   : > { %v8111_v6 = vperm.slane %v787_v8, 0  ;;  %11554 = vst [vmem:[#allocation121_spill] sm:$0xff] %v8122_v0  ;;  %v11556_v8 = vld [vmem:[#allocation68_spill] sm:$0xff] }
 0x602   : > { %v1312_v2 = vmul.f32 %v11553_v61, %v8111_v6  ;;  %v11559_v61 = vld [vmem:[#allocation79_spill] sm:$0xff] }
 0x603   : > { %1940 = vrot.lane.b32.xlu2 %v1853_v47, %s11391_s12  ;;  %v11551_v47 = vld [vmem:[#allocation75_spill] sm:$0xff]  ;;  %v8118_v58 = vpop.permute.xlu1 %1912  ;;  %v2400_v40 = vmul.f32 %v11559_v61, %v7992_v46 }
 0x604   : > { %v1854_v38 = vmul.f32 %v11551_v47, %v7992_v46  ;;  %11552 = vst [vmem:[#allocation120_spill] sm:$0xff] %v8118_v58 }
 0x606   : > { %1398 = vrot.lane.b32.xlu0 %v1309_v13, %s11401_s26  ;;  %v1315_v13 = vmul.f32 %v11556_v8, %v8024_v41 }
 0x607   : > { %899 = vadd.xlane.f32.xlu1 %v898_v11  ;;  %v11555_v11 = vld [vmem:[#allocation77_spill] sm:$0xff]  ;;  %v8135_v44 = vpop.permute.xlu2 %2452 }
 0x608   : > { %v2399_v9 = vmul.f32 %v11555_v11, %v8078_v63  ;;  %11558 = vst [vmem:[#allocation123_spill] sm:$0xff] %v8135_v44 }
 0x60b   : > { %1942 = vrot.lane.b32.xlu2 %v1854_v38, %s11391_s12  ;;  %v8130_v38 = vpop.permute.xlu0 %1920  ;;  %v8132_v47 = vpop.permute.xlu1 %1914 }
 0x60c   : > { %11557 = vst [vmem:[#allocation122_spill] sm:$0xff] %v8132_v47 }
 0x60e   : > { %1404 = vrot.lane.b32.xlu0 %v1312_v2, %s11401_s26  ;;  %v11560_v2 = vld [vmem:[#allocation93_spill] sm:$0xff] }
 0x60f   : > { %v1849_v11 = vmul.f32 %v11560_v2, %v7968_v25  ;;  %v8152_v61 = vpop.permute.xlu2 %1916 }
 0x610   : > { %11564 = vst [vmem:[#allocation125_spill] sm:$0xff] %v8152_v61  ;;  %v6633_v61 = vld [vmem:[%s11265_s3 + $0xc8] sm:$0xff] }
 0x613   : > { %2486 = vrot.lane.b32.xlu2 %v2399_v9, %s11421_s30  ;;  %v11561_v9 = vld [vmem:[#allocation21_spill] sm:$0xff]  ;;  %v8145_v37 = vpop.permute.xlu0 %1922  ;;  %v8147_v35 = vpop.permute.xlu1 %2458 }
 0x614   : > { %v1301_v8 = vmul.f32 %v11561_v9, %v7931_v28  ;;  %11562 = vst [vmem:[#allocation124_spill] sm:$0xff] %v8147_v35  ;;  %v2402_v35 = vmul.f32 %v11585_v18, %v8009_v55  ;;  %v11588_v18 = vld [vmem:[#allocation94_spill] sm:$0xff] }
 0x615   : > { %v1850_v7 = vmul.f32 %v11588_v18, %v7976_v23 }
 0x616   : > { %1410 = vrot.lane.b32.xlu0 %v1315_v13, %s11401_s26  ;;  %v11563_v13 = vld [vmem:[#allocation81_spill] sm:$0xff] }
 0x617   : > { %v1859_v5 = vmul.f32 %v11563_v13, %v8111_v6 }
 0x61b   : > { %2488 = vrot.lane.b32.xlu2 %v2400_v40, %s11421_s30  ;;  %v11565_v40 = vld [vmem:[#allocation97_spill] sm:$0xff]  ;;  %v8163_v60 = vpop.permute.xlu0 %2466  ;;  %v8165_v13 = vpop.permute.xlu1 %2460 }
 0x61c   : > { %v2395_v2 = vmul.f32 %v11565_v40, %v7968_v25  ;;  %11568 = vst [vmem:[#allocation126_spill] sm:$0xff] %v8163_v60  ;;  %v11571_v40 = vld [vmem:[#allocation99_spill] sm:$0xff] }
 0x61d   : > { %11569 = vst [vmem:[#allocation127_spill] sm:$0xff] %v8165_v13  ;;  %v2396_v4 = vmul.f32 %v11571_v40, %v7976_v23 }
 0x61e   : > { %1932 = vrot.lane.b32.xlu0 %v1849_v11, %s11391_s12  ;;  %v11566_v11 = vld [vmem:[#allocation92_spill] sm:$0xff] }
 0x61f   : > { %v1847_v9 = vmul.f32 %v11566_v11, %v7931_v28 }
 0x620   : > { %1382 = vrot.lane.b32.xlu1 %v1301_v8, %s11401_s26  ;;  %v1860_v8 = vmul.f32 %v11567_v34, %v8024_v41 }
 0x623   : > { %1952 = vrot.lane.b32.xlu2 %v1859_v5, %s11391_s12  ;;  %v8168_v5 = vpop.permute.xlu2 %1918  ;;  %v8178_v36 = vpop.xlane.xlu0 %866 }
 0x624   : > { %11570 = vst [vmem:[#allocation128_spill] sm:$0xff] %v8168_v5 }
 0x626   : > { %2478 = vrot.lane.b32.xlu0 %v2395_v2, %s11421_s30  ;;  %v11572_v2 = vld [vmem:[#allocation96_spill] sm:$0xff] }
 0x627   : > { %v2393_v11 = vmul.f32 %v11572_v2, %v7931_v28 }
 0x628   : > { %1928 = vrot.lane.b32.xlu1 %v1847_v9, %s11391_s12  ;;  %v11573_v9 = vld [vmem:[#allocation86_spill] sm:$0xff] }
 0x629   : > { %v2405_v34 = vmul.f32 %v11573_v9, %v8111_v6  ;;  %v11578_v9 = vld [vmem:[#allocation103_spill] sm:$0xff] }
 0x62a   : > { %v1856_v2 = vmul.f32 %v11578_v9, %v8009_v55  ;;  %v11583_v9 = vld [vmem:[#allocation25_spill] sm:$0xff] }
 0x62b   : > { %1954 = vrot.lane.b32.xlu2 %v1860_v8, %s11391_s12  ;;  %v8181_v8 = vpop.permute.xlu1 %1924  ;;  %v8185_v40 = vpop.permute.xlu2 %2462 }
 0x62c   : > { %11574 = vst [vmem:[#allocation129_spill] sm:$0xff] %v8181_v8 }
 0x62d   : > { %11576 = vst [vmem:[#allocation130_spill] sm:$0xff] %v8185_v40 }
 0x62e   : > { %2480 = vrot.lane.b32.xlu0 %v2396_v4, %s11421_s30  ;;  %v11577_v4 = vld [vmem:[#allocation23_spill] sm:$0xff] }
 0x62f   : > { %v1304_v28 = vmul.f32 %v11577_v4, %v7976_v23 }
 0x630   : > { %2474 = vrot.lane.b32.xlu1 %v2393_v11, %s11421_s30  ;;  %v8191_v11 = vpop.xlane.xlu0 %887 }
 0x633   : > { %2498 = vrot.lane.b32.xlu2 %v2405_v34, %s11421_s30  ;;  %v8195_v34 = vpop.permute.xlu1 %2468  ;;  %v8200_v8 = vpop.permute.xlu2 %2464 }
 0x634   : > { %11579 = vst [vmem:[#allocation131_spill] sm:$0xff] %v8195_v34  ;;  %v1310_v34 = vmul.f32 %v11583_v9, %v8009_v55 }
 0x635   : > { %11581 = vst [vmem:[#allocation132_spill] sm:$0xff] %v8200_v8  ;;  %v11591_v8 = vld [vmem:[#allocation98_spill] sm:$0xff] }
 0x636   : > { %1944 = vrot.lane.b32.xlu0 %v1855_v57, %s11391_s12  ;;  %v11582_v57 = vld [vmem:[#allocation105_spill] sm:$0xff]  ;;  %v1852_v40 = vmul.f32 %v11591_v8, %v8078_v63 }
 0x637   : > { %v2401_v4 = vmul.f32 %v11582_v57, %v7992_v46  ;;  %v11586_v57 = vld [vmem:[#allocation26_spill] sm:$0xff] }
 0x638   : > { %1388 = vrot.lane.b32.xlu1 %v1304_v28, %s11401_s26  ;;  %v8205_v28 = vpop.xlane.xlu0 %896  ;;  %v1313_v47 = vmul.f32 %v11586_v57, %v8111_v6 }
 0x63e   : > { %1946 = vrot.lane.b32.xlu0 %v1856_v2, %s11391_s12  ;;  %v8213_v2 = vpop.permute.xlu2 %2470 }
 0x63f   : > { %11584 = vst [vmem:[#allocation133_spill] sm:$0xff] %v8213_v2 }
 0x640   : > { %1394 = vrot.lane.b32.xlu1 %v1307_v31, %s11401_s26  ;;  %v8217_v31 = vpop.permute.xlu0 %1380 }
 0x642   : > { %v8207_v13 = vpop.xlane.xlu1 %860 }
 0x646   : > { %2490 = vrot.lane.b32.xlu0 %v2401_v4, %s11421_s30  ;;  %v8225_v4 = vpop.xlane.xlu2 %863 }
 0x648   : > { %1400 = vrot.lane.b32.xlu1 %v1310_v34, %s11401_s26  ;;  %v11587_v34 = vld [vmem:[#allocation109_spill] sm:$0xff]  ;;  %v8236_v26 = vpop.permute.xlu0 %1926 }
 0x649   : > { %v1861_v9 = vmul.f32 %v11587_v34, %v8024_v41  ;;  %11589 = vst [vmem:[#allocation134_spill] sm:$0xff] %v8236_v26 }
 0x64a   : > { %v8222_v58 = vpop.xlane.xlu1 %869 }
 0x64e   : > { %2492 = vrot.lane.b32.xlu0 %v2402_v35, %s11421_s30  ;;  %v6631_v35 = vld [vmem:[%s11265_s3 + $0x98] sm:$0xff]  ;;  %v8242_v34 = vpop.xlane.xlu2 %884 }
 0x64f   : > { %v840_v57 = vmul.f32 %v6631_v35, %v7968_v25  ;;  %v6632_v35 = vld [vmem:[%s11265_s3 + $0xb0] sm:$0xff] }
 0x650   : > { %1406 = vrot.lane.b32.xlu1 %v1313_v47, %s11401_s26 }
 0x651   : > { %v910_v2 = vsel %vm463_vm1, %v840_v57, 0.0  ;;  %v8254_v57 = vpop.permute.xlu0 %2472 }
 0x652   : > { %v8239_v47 = vpop.xlane.xlu1 %872  ;;  %11592 = vst [vmem:[#allocation135_spill] sm:$0xff] %v8254_v57 }
 0x656   : > { %1956 = vrot.lane.b32.xlu0 %v1861_v9, %s11391_s12  ;;  %v11590_v9 = vld [vmem:[#allocation111_spill] sm:$0xff] }
 0x657   : > { %v2406_v18 = vmul.f32 %v11590_v9, %v8024_v41  ;;  %v8259_v9 = vpop.xlane.xlu2 %893 }
 0x658   : > { %1934 = vrot.lane.b32.xlu1 %v1850_v7, %s11391_s12  ;;  %v843_v7 = vmul.f32 %v6632_v35, %v8078_v63  ;;  %v846_v35 = vmul.f32 %v6633_v61, %v7992_v46 }
 0x65a   : > { %v8257_v5 = vpop.xlane.xlu1 %875 }
 0x65c   : > { %911 = vadd.xlane.f32.xlu2 %v910_v2  ;;  %v919_v2 = vsel %vm463_vm1, %v843_v7, 0.0  ;;  %v928_v7 = vsel %vm463_vm1, %v846_v35, 0.0  ;;  %v11597_v35 = vld [vmem:[#allocation104_spill] sm:$0xff] }
 0x65e   : > { %2500 = vrot.lane.b32.xlu0 %v2406_v18, %s11421_s30  ;;  %v11593_v18 = vld [vmem:[#allocation100_spill] sm:$0xff] }
 0x65f   : > { %v2397_v8 = vmul.f32 %v11593_v18, %v7976_v23  ;;  %v6634_v18 = vld [vmem:[%s11265_s3 + $0xe0] sm:$0xff]  ;;  %v8279_v29 = vpop.xlane.xlu2 %902 }
 0x660   : > { %1938 = vrot.lane.b32.xlu1 %v1852_v40, %s11391_s12  ;;  %v8268_v40 = vpop.xlane.xlu0 %905  ;;  %v849_v16 = vmul.f32 %v6634_v18, %v8111_v6  ;;  %11596 = vst [vmem:[#allocation137_spill] sm:$0xff] %v8279_v29 }
 0x661   : > { %11594 = vst [vmem:[#allocation136_spill] sm:$0xff] %v8268_v40 }
 0x662   : > { %v8271_v44 = vpop.xlane.xlu1 %878 }
 0x664   : > { %920 = vadd.xlane.f32.xlu2 %v919_v2  ;;  %v11595_v2 = vld [vmem:[#allocation102_spill] sm:$0xff] }
 0x665   : > { %v2398_v0 = vmul.f32 %v11595_v2, %v8078_v63  ;;  %v6635_v2 = vld [vmem:[%s11265_s3 + $0xf8] sm:$0xff] }
 0x666   : > { %v852_v3 = vmul.f32 %v6635_v2, %v8024_v41  ;;  %v1444_v2 = vsel %vm463_vm1, %v7949_v1, 0.0  ;;  %v1453_v1 = vsel %vm463_vm1, %v7983_v10, 0.0  ;;  %v1459_v10 = vsel %vm463_vm1, %v7980_v33, 0.0 }
 0x667   : > { %v8294_v18 = vpop.permute.xlu2 %1384  ;;  %v1468_v33 = vsel %vm463_vm1, %v7997_v20, 0.0 }
 0x668   : > { %2482 = vrot.lane.b32.xlu1 %v2397_v8, %s11421_s30  ;;  %v8282_v61 = vpop.permute.xlu0 %1386  ;;  %v937_v8 = vsel %vm463_vm1, %v849_v16, 0.0  ;;  %v11598_v16 = vld [vmem:[#allocation106_spill] sm:$0xff] }
 0x66a   : > { %v8291_v17 = vpop.xlane.xlu1 %881 }
 0x66c   : > { %929 = vadd.xlane.f32.xlu2 %v928_v7  ;;  %v1857_v7 = vmul.f32 %v11597_v35, %v8009_v55 }
 0x66f   : > { %v8310_v26 = vpop.permute.xlu2 %1390 }
 0x670   : > { %2484 = vrot.lane.b32.xlu1 %v2398_v0, %s11421_s30  ;;  %v946_v0 = vsel %vm463_vm1, %v852_v3, 0.0  ;;  %v8297_v57 = vpop.permute.xlu0 %1392  ;;  %11599 = vst [vmem:[#allocation138_spill] sm:$0xff] %v8310_v26 }
 0x672   : > { %v8302_v35 = vpop.xlane.xlu1 %890 }
 0x674   : > { %938 = vadd.xlane.f32.xlu2 %v937_v8  ;;  %v1858_v8 = vmul.f32 %v11598_v16, %v8111_v6  ;;  %v11600_v16 = vld [vmem:[#allocation108_spill] sm:$0xff] }
 0x675   : > { %v2403_v60 = vmul.f32 %v11600_v16, %v8009_v55  ;;  %v11602_v16 = vld [vmem:[#allocation110_spill] sm:$0xff] }
 0x677   : > { %v8326_v29 = vpop.permute.xlu2 %1396 }
 0x678   : > { %1948 = vrot.lane.b32.xlu1 %v1857_v7, %s11391_s12  ;;  %v6636_v7 = vld [vmem:[%s11265_s3 + $0xa0] sm:$0xff]  ;;  %11601 = vst [vmem:[#allocation139_spill] sm:$0xff] %v8326_v29 }
 0x679   : > { %v841_v3 = vmul.f32 %v6636_v7, %v7976_v23  ;;  %v6637_v7 = vld [vmem:[%s11265_s3 + $0xb8] sm:$0xff] }
 0x67a   : > { %v844_v26 = vmul.f32 %v6637_v7, %v8078_v63  ;;  %v6638_v63 = vld [vmem:[%s11265_s3 + $0xd0] sm:$0xff]  ;;  %v11603_v7 = vld [vmem:[#allocation112_spill] sm:$0xff] }
 0x67c   : > { %947 = vadd.xlane.f32.xlu2 %v946_v0  ;;  %v8312_v0 = vpop.permute.xlu0 %1398 }
 0x680   : > { %1950 = vrot.lane.b32.xlu1 %v1858_v8, %s11391_s12  ;;  %v913_v8 = vsel %vm463_vm1, %v841_v3, 0.0  ;;  %v2404_v3 = vmul.f32 %v11602_v16, %v8111_v6  ;;  %v2407_v16 = vmul.f32 %v11603_v7, %v8024_v41  ;;  %s409_s12 = sand.u32 1, %s6799_s18  }
 0x684   : > { %1445 = vadd.xlane.f32.xlu2 %v1444_v2  ;;  %v8320_v2 = vpop.xlane.xlu1 %899  ;;  %v8330_v40 = vpop.permute.xlu0 %1404 }
 0x688   : > { %2494 = vrot.lane.b32.xlu1 %v2403_v60, %s11421_s30  ;;  %914 = vadd.xlane.f32.xlu0 %v913_v8  ;;  %v922_v60 = vsel %vm463_vm1, %v844_v26, 0.0  ;;  %v8343_v26 = vpop.permute.xlu2 %1402 }
 0x68c   : > { %1454 = vadd.xlane.f32.xlu2 %v1453_v1  ;;  %v847_v1 = vmul.f32 %v6638_v63, %v8009_v55 }
 0x68e   : > { %v931_v29 = vsel %vm463_vm1, %v847_v1, 0.0 }
 0x690   : > { %2496 = vrot.lane.b32.xlu1 %v2404_v3, %s11421_s30  ;;  %923 = vadd.xlane.f32.xlu0 %v922_v60  ;;  %v8346_v3 = vpop.permute.xlu0 %1410  ;;  %v6639_v60 = vld [vmem:[%s11265_s3 + $0xe8] sm:$0xff]  ;;  %v8357_v7 = vpop.permute.xlu2 %1408 }
 0x692   : > { %v1383_v8 = vpop.permute.xlu1 %1382 }
 0x694   : > { %1460 = vadd.xlane.f32.xlu2 %v1459_v10  ;;  %v850_v10 = vmul.f32 %v6639_v60, %v8111_v6  ;;  %v1486_v6 = vsel %vm463_vm1, %v8043_v22, 0.0  ;;  %v1465_v22 = vsel %vm463_vm1, %v7954_v45, 0.0 }
 0x696   : > { %v940_v1 = vsel %vm463_vm1, %v850_v10, 0.0 }
 0x698   : > { %2502 = vrot.lane.b32.xlu1 %v2407_v16, %s11421_s30  ;;  %932 = vadd.xlane.f32.xlu0 %v931_v29  ;;  %v1477_v29 = vsel %vm463_vm1, %v8017_v39, 0.0  ;;  %v8361_v16 = vpop.permute.xlu0 %1932  ;;  %v8369_v60 = vpop.permute.xlu2 %1930  ;;  %v1456_v39 = vsel %vm463_vm1, %v7943_v53, 0.0 }
 0x69a   : > { %v8354_v63 = vpop.permute.xlu1 %1928 }
 0x69b   : > { %11604 = vst [vmem:[#allocation140_spill] sm:$0xff] %v8354_v63 }
 0x69c   : > { %1469 = vadd.xlane.f32.xlu2 %v1468_v33  ;;  %v1447_v33 = vsel %vm463_vm1, %v7923_v24, 0.0 }
 0x6a0   : > { %941 = vadd.xlane.f32.xlu0 %v940_v1  ;;  %v8371_v10 = vpop.permute.xlu0 %2478  ;;  %v8376_v63 = vpop.permute.xlu2 %1936 }
 0x6a1   : > { %11606 = vst [vmem:[#allocation142_spill] sm:$0xff] %v8376_v63 }
 0x6a2   : > { %v8363_v20 = vpop.permute.xlu1 %2474 }
 0x6a3   : > { %11605 = vst [vmem:[#allocation141_spill] sm:$0xff] %v8363_v20  ;;  %v987_v20 = vlaneseq }
 0x6a4   : > { %1478 = vadd.xlane.f32.xlu2 %v1477_v29  ;;  %v1495_v29 = vsel %vm463_vm1, %v1383_v8, 0.0  ;;  %v6640_v8 = vld [vmem:[%s11265_s3 + $0x90] sm:$0xff] }
 0x6a8   : > { %1448 = vadd.xlane.f32.xlu0 %v1447_v33  ;;  %v8378_v24 = vpop.permute.xlu0 %2480  ;;  %v8382_v33 = vand.u32 127, %v987_v20 }
 0x6aa   : > { %v1389_v1 = vpop.permute.xlu1 %1388  ;;  %v8386_v53 = vadd.s32 4294967288, %v8382_v33  ;;  %v994_v63 = vperm.slane %v8207_v13, %v8382_v33  ;;  %v8406_v13 = vpop.permute.xlu2 %2476 }
 0x6ac   : > { %1487 = vadd.xlane.f32.xlu2 %v1486_v6  ;;  %v1504_v6 = vsel %vm463_vm1, %v1389_v1, 0.0  ;;  %v998_v45 = vperm.slane %v8222_v58, %v8386_v53  ;;  %v991_v20 = vperm.slane %v7956_v14, %v8386_v53  ;;  %v995_v1 = vperm.slane %v8225_v4, %v8386_v53 }
 0x6ad   : > { %v1004_v58 = vperm.slane %v8291_v17, %v8386_v53  ;;  %v989_v4 = vperm.slane %v7946_v32, %v8382_v33  ;;  %v1003_v17 = vperm.slane %v8271_v44, %v8382_v33  ;;  %v1006_v44 = vperm.slane %v8242_v34, %v8382_v33 }
 0x6ae   : > { %v1483_v34 = vsel %vm463_vm1, %v7978_v21, 0.0 }
 0x6b0   : > { %1457 = vadd.xlane.f32.xlu0 %v1456_v39 }
 0x6b2   : > { %v1395_v39 = vpop.permute.xlu1 %1394  ;;  %v8451_v21 = vpop.permute.xlu2 %1940 }
 0x6b4   : > { %1496 = vadd.xlane.f32.xlu2 %v1495_v29  ;;  %v839_v29 = vmul.f32 %v6640_v8, %v7968_v25  ;;  %v997_v25 = vperm.slane %v8178_v36, %v8382_v33  ;;  %v8416_v8 = vpop.permute.xlu0 %1944 }
 0x6b6   : > { %v907_v14 = vsel %vm463_vm1, %v839_v29, 0.0  ;;  %v999_v36 = vsel %vm992_vm0, %v998_v45, %v997_v25  ;;  %v1513_v29 = vsel %vm463_vm1, %v1395_v39, 0.0  ;;  %v1009_v45 = vperm.slane %v8302_v35, %v8382_v33 }
 0x6b7   : > { %v1013_v39 = vperm.slane %v8320_v2, %v8386_v53  ;;  %v1012_v2 = vperm.slane %v8205_v28, %v8382_v33 }
 0x6b8   : > { %1466 = vadd.xlane.f32.xlu0 %v1465_v22  ;;  %v1001_v22 = vperm.slane %v8257_v5, %v8386_v53  ;;  %v996_v5 = vsel %vm992_vm0, %v995_v1, %v994_v63 }
 0x6bc   : > { %1505 = vadd.xlane.f32.xlu2 %v1504_v6  ;;  %v1474_v6 = vsel %vm463_vm1, %v7964_v50, 0.0  ;;  %v1000_v50 = vperm.slane %v8239_v47, %v8382_v33  ;;  %v1005_v47 = vsel %vm992_vm0, %v1004_v58, %v1003_v17  ;;  %v1010_v58 = vperm.slane %v8259_v9, %v8386_v53 }
 0x6bd   : > { %v1014_v9 = vsel %vm992_vm0, %v1013_v39, %v1012_v2  ;;  %v6644_v2 = vld [vmem:[%s11265_s3 + $0xf0] sm:$0xff] }
 0x6be   : > { %v1002_v32 = vsel %vm992_vm0, %v1001_v22, %v1000_v50  ;;  %v6641_v22 = vld [vmem:[%s11265_s3 + $0xa8] sm:$0xff] }
 0x6bf   : > { %v842_v25 = vmul.f32 %v6641_v22, %v7976_v23  ;;  %v8469_v22 = vpop.permute.xlu2 %1942 }
 0x6c0   : > { %1475 = vadd.xlane.f32.xlu0 %v1474_v6  ;;  %v993_v6 = vsel %vm992_vm0, %v991_v20, %v989_v4  ;;  %v1401_v20 = vpop.permute.xlu1 %1400 }
 0x6c1   : > { %v1040_v63 = vsel %vm1039_vm2, %v996_v5, %v993_v6  ;;  %v1011_v5 = vsel %vm992_vm0, %v1010_v58, %v1009_v45  ;;  %v916_v50 = vsel %vm463_vm1, %v842_v25, 0.0  ;;  %v6642_v6 = vld [vmem:[%s11265_s3 + $0xc0] sm:$0xff]  ;;  %v1492_v45 = vsel %vm463_vm1, %v8217_v31, 0.0 }
 0x6c2   : > { %908 = vadd.xlane.f32.xlu1 %v907_v14  ;;  %v1042_v1 = vsel %vm1041_vm3, %v999_v36, %v1040_v63  ;;  %v1007_v14 = vperm.slane %v8191_v11, %v8386_v53  ;;  %v1522_v11 = vsel %vm463_vm1, %v1401_v20, 0.0  ;;  %v8455_v36 = vpop.permute.xlu0 %1946  ;;  %v1090_v63 = vpop.f32.mrf.mxu3 }
 0x6c3   : > { %v1044_v35 = vsel %vm1043_vm4, %v1002_v32, %v1042_v1  ;;  %v845_v32 = vmul.f32 %v6642_v6, %v7992_v46  ;;  %v6643_v46 = vld [vmem:[%s11265_s3 + $0xd8] sm:$0xff] }
 0x6c4   : > { %1514 = vadd.xlane.f32.xlu2 %v1513_v29  ;;  %v1046_v4 = vsel %vm1045_vm5, %v1005_v47, %v1044_v35  ;;  %v1008_v23 = vsel %vm992_vm0, %v1007_v14, %v1006_v44  ;;  %v848_v31 = vmul.f32 %v6643_v46, %v8009_v55 }
 0x6c5   : > { %v1048_v28 = vsel %vm1047_vm6, %v1008_v23, %v1046_v4  ;;  %v925_v1 = vsel %vm463_vm1, %v845_v32, 0.0  ;;  %v851_v4 = vmul.f32 %v6644_v2, %v8024_v41  ;;  %v1501_v23 = vsel %vm463_vm1, %v8282_v61, 0.0 }
 0x6c6   : > { %v1050_v17 = vsel %vm1049_vm7, %v1011_v5, %v1048_v28  ;;  %v934_v35 = vsel %vm463_vm1, %v848_v31, 0.0  ;;  %v1510_v41 = vsel %vm463_vm1, %v8297_v57, 0.0  ;;  %v1450_v61 = vsel %vm463_vm1, %v7966_v19, 0.0 }
 0x6c7   : > { %v1052_v29 = vsel %vm11405_vm8, %v1014_v9, %v1050_v17  ;;  %v8488_v55 = vpop.permute.xlu2 %2486  ;;  %v943_v9 = vsel %vm463_vm1, %v851_v4, 0.0  ;;  %v2536_v17 = vsel %vm463_vm1, %v7933_v49, 0.0  ;;  %v1462_v57 = vsel %vm463_vm1, %v8002_v51, 0.0 }
 0x6c8   : > { %1484 = vadd.xlane.f32.xlu0 %v1483_v34  ;;  %v1407_v47 = vpop.permute.xlu1 %1406  ;;  %v1091_v44 = vadd.f32 %v1090_v63, %v1052_v29  ;;  %v1990_v34 = vsel %vm463_vm1, %v7918_v48, 0.0  ;;  %v1999_v48 = vsel %vm463_vm1, %v8057_v12, 0.0  ;;  %v1519_v12 = vsel %vm463_vm1, %v8312_v0, 0.0 }
 0x6c9   : > { %v1531_v39 = vsel %vm463_vm1, %v1407_v47, 0.0  ;;  %v1528_v19 = vsel %vm463_vm1, %v8330_v40, 0.0  ;;  %v1471_v49 = vsel %vm463_vm1, %v8026_v59, 0.0  ;;  %v1537_v51 = vsel %vm463_vm1, %v8346_v3, 0.0 }
 0x6ca   : > { %917 = vadd.xlane.f32.xlu1 %v916_v50  ;;  %v8467_v20 = vmul.f32 0.35355338, %v1091_v44  ;;  %v8471_v25 = vpop.permute.xlu0 %2490  ;;  %v2011_v4 = vsel %vm463_vm1, %v8055_v54, 0.0 }
 0x6cc   : > { %1523 = vadd.xlane.f32.xlu2 %v1522_v11  ;;  %v1099_v58 = vsel %vm11404_vm9, %v8467_v20, -inf }
 0x6cf   : > { %v8501_v11 = vpop.permute.xlu2 %2488 }
 0x6d0   : > { %1493 = vadd.xlane.f32.xlu0 %v1492_v45  ;;  %v8482_v14 = vpop.permute.xlu1 %1934  ;;  %v1480_v45 = vsel %vm463_vm1, %v8045_v43, 0.0  ;;  %v2005_v43 = vsel %vm463_vm1, %v8015_v56, 0.0 }
 0x6d2   : > { %926 = vadd.xlane.f32.xlu1 %v925_v1  ;;  %v8490_v5 = vpop.permute.xlu0 %2492  ;;  %v1996_v1 = vsel %vm463_vm1, %v7995_v62, 0.0  ;;  %v2542_v62 = vsel %vm463_vm1, %v8041_v15, 0.0 }
 0x6d4   : > { %1532 = vadd.xlane.f32.xlu2 %v1531_v39  ;;  %v1489_v39 = vsel %vm463_vm1, %v8060_v27, 0.0 }
 0x6d7   : > { %v8515_v6 = vpop.permute.xlu2 %1952 }
 0x6d8   : > { %1100 = vmax.xlane.f32.xlu0 %v1099_v58  ;;  %v8497_v50 = vpop.permute.xlu1 %1938  ;;  %v1498_v58 = vsel %vm463_vm1, %v8294_v18, 0.0 }
 0x6da   : > { %935 = vadd.xlane.f32.xlu1 %v934_v35  ;;  %v8503_v28 = vpop.permute.xlu0 %1956 }
 0x6dc   : > { %1991 = vadd.xlane.f32.xlu2 %v1990_v34 }
 0x6df   : > { %v8527_v47 = vpop.permute.xlu2 %1954 }
 0x6e0   : > { %1502 = vadd.xlane.f32.xlu0 %v1501_v23  ;;  %v8511_v29 = vpop.permute.xlu1 %2482 }
 0x6e2   : > { %944 = vadd.xlane.f32.xlu1 %v943_v9  ;;  %v8517_v32 = vpop.permute.xlu0 %2500  ;;  %v2014_v9 = vsel %vm463_vm1, %v8074_v30, 0.0 }
 0x6e4   : > { %2000 = vadd.xlane.f32.xlu2 %v1999_v48 }
 0x6e7   : > { %v8537_v59 = vpop.permute.xlu2 %2498 }
 0x6e8   : > { %1511 = vadd.xlane.f32.xlu0 %v1510_v41  ;;  %v8523_v0 = vpop.permute.xlu1 %2484 }
 0x6ea   : > { %1451 = vadd.xlane.f32.xlu1 %v1450_v61  ;;  %v2557_v61 = vsel %vm463_vm1, %v8095_v42, 0.0 }
 0x6ec   : > { %2537 = vadd.xlane.f32.xlu2 %v2536_v17 }
 0x6ef   : > { %v912_v46 = vpop.xlane.xlu2 %911 }
 0x6f0   : > { %1520 = vadd.xlane.f32.xlu0 %v1519_v12  ;;  %v8535_v44 = vpop.permute.xlu1 %1948 }
 0x6f2   : > { %1463 = vadd.xlane.f32.xlu1 %v1462_v57  ;;  %v2560_v57 = vsel %vm463_vm1, %v8116_v52, 0.0 }
 0x6f7   : > { %v921_v27 = vpop.xlane.xlu2 %920 }
 0x6f8   : > { %1529 = vadd.xlane.f32.xlu0 %v1528_v19  ;;  %v8545_v31 = vpop.permute.xlu1 %1950 }
 0x6fa   : > { %1472 = vadd.xlane.f32.xlu1 %v1471_v49  ;;  %v2029_v49 = vsel %vm463_vm1, %v8130_v38, 0.0 }
 0x6fb   : > { %v8525_v63 = vpop.xlane.xlu0 %914 }
 0x6fc   : > { %v1021_v38 = vperm.slane %v8525_v63, %v8382_v33 }
 0x6ff   : > { %v930_v56 = vpop.xlane.xlu2 %929 }
 0x700   : > { %1538 = vadd.xlane.f32.xlu0 %v1537_v51  ;;  %v8555_v34 = vpop.permute.xlu1 %2494 }
 0x702   : > { %1481 = vadd.xlane.f32.xlu1 %v1480_v45 }
 0x703   : > { %v8533_v40 = vpop.xlane.xlu0 %923 }
 0x704   : > { %v1025_v63 = vperm.slane %v8533_v40, %v8386_v53 }
 0x707   : > { %v939_v48 = vpop.xlane.xlu2 %938 }
 0x708   : > { %1997 = vadd.xlane.f32.xlu0 %v1996_v1  ;;  %v8561_v23 = vpop.permute.xlu1 %2496  ;;  %v2032_v1 = vsel %vm463_vm1, %v8145_v37, 0.0 }
 0x709   : > { %11607 = vst [vmem:[#allocation143_spill] sm:$0xff] %v8561_v23  ;;  %v1028_v23 = vperm.slane %v930_v56, %v8386_v53 }
 0x70a   : > { %1490 = vadd.xlane.f32.xlu1 %v1489_v39 }
 0x70b   : > { %v8543_v3 = vpop.xlane.xlu0 %932 }
 0x70f   : > { %v948_v12 = vpop.xlane.xlu2 %947 }
 0x710   : > { %2006 = vadd.xlane.f32.xlu0 %v2005_v43  ;;  %v8569_v41 = vpop.permute.xlu1 %2502  ;;  %v11609_v43 = vld [vmem:[#allocation136_spill] sm:$0xff] }
 0x711   : > { %11608 = vst [vmem:[#allocation144_spill] sm:$0xff] %v8569_v41 }
 0x712   : > { %1499 = vadd.xlane.f32.xlu1 %v1498_v58  ;;  %v1016_v58 = vperm.slane %v11609_v43, %v8386_v53 }
 0x713   : > { %v8551_v35 = vpop.xlane.xlu0 %941 }
 0x717   : > { %v8581_v51 = vpop.xlane.xlu2 %1445 }
 0x718   : > { %2543 = vadd.xlane.f32.xlu0 %v2542_v62  ;;  %v1019_v62 = vperm.slane %v912_v46, %v8386_v53 }
 0x71b   : > { %v8557_v2 = vpop.xlane.xlu0 %1448 }
 0x720   : > { %2012 = vadd.xlane.f32.xlu0 %v2011_v4  ;;  %v8594_v4 = vpop.xlane.xlu2 %1454 }
 0x723   : > { %v8563_v18 = vpop.xlane.xlu0 %1457 }
 0x728   : > { %2015 = vadd.xlane.f32.xlu0 %v2014_v9 }
 0x72b   : > { %v8567_v15 = vpop.xlane.xlu0 %1466 }
 0x730   : > { %2558 = vadd.xlane.f32.xlu0 %v2557_v61  ;;  %v11610_v61 = vld [vmem:[#allocation137_spill] sm:$0xff] }
 0x733   : > { %v8573_v54 = vpop.xlane.xlu0 %1475 }
 0x735   : > { %v909_v17 = vpop.xlane.xlu1 %908 }
 0x736   : > { %v1018_v39 = vperm.slane %v909_v17, %v8382_v33 }
 0x738   : > { %2561 = vadd.xlane.f32.xlu0 %v2560_v57  ;;  %v1015_v57 = vperm.slane %v11610_v61, %v8382_v33  ;;  %v1020_v37 = vsel %vm992_vm0, %v1019_v62, %v1018_v39  ;;  %v11611_v39 = vld [vmem:[#allocation126_spill] sm:$0xff] }
 0x73a   : > { %v1017_v46 = vsel %vm992_vm0, %v1016_v58, %v1015_v57  ;;  %v1033_v57 = vperm.slane %v939_v48, %v8382_v33 }
 0x73b   : > { %v8577_v19 = vpop.xlane.xlu0 %1484  ;;  %v1053_v61 = vsel %vm1039_vm2, %v1020_v37, %v1017_v46 }
 0x73d   : > { %v918_v30 = vpop.xlane.xlu1 %917 }
 0x73e   : > { %v1022_v52 = vperm.slane %v918_v30, %v8386_v53 }
 0x740   : > { %2030 = vadd.xlane.f32.xlu0 %v2029_v49  ;;  %v1023_v30 = vsel %vm992_vm0, %v1022_v52, %v1021_v38  ;;  %v1024_v52 = vperm.slane %v921_v27, %v8382_v33  ;;  %v1034_v38 = vperm.slane %v8551_v35, %v8386_v53  ;;  %v11612_v35 = vld [vmem:[#allocation134_spill] sm:$0xff] }
 0x741   : > { %v1054_v58 = vsel %vm1041_vm3, %v1023_v30, %v1053_v61 }
 0x742   : > { %v1026_v62 = vsel %vm992_vm0, %v1025_v63, %v1024_v52 }
 0x743   : > { %v8583_v45 = vpop.xlane.xlu0 %1493 }
 0x745   : > { %v927_v42 = vpop.xlane.xlu1 %926 }
 0x746   : > { %v1027_v49 = vperm.slane %v927_v42, %v8382_v33  ;;  %v1030_v42 = vperm.slane %v8543_v3, %v8382_v33  ;;  %v8622_v3 = vpop.xlane.xlu2 %1460 }
 0x748   : > { %2033 = vadd.xlane.f32.xlu0 %v2032_v1  ;;  %v1029_v40 = vsel %vm992_vm0, %v1028_v23, %v1027_v49  ;;  %v1037_v23 = vperm.slane %v948_v12, %v8386_v53  ;;  %v1035_v49 = vsel %vm992_vm0, %v1034_v38, %v1033_v57  ;;  %v2593_v57 = vsel %vm463_vm1, %v8371_v10, 0.0 }
 0x749   : > { %v2065_v10 = vsel %vm463_vm1, %v8416_v8, 0.0 }
 0x74b   : > { %v1101_v9 = vpop.xlane.xlu0 %1100 }
 0x74c   : > { %v1105_v17 = vsub.f32 %v8467_v20, %v1101_v9  ;;  %v2575_v20 = vsel %vm463_vm1, %v11611_v39, 0.0  ;;  %v1055_v9 = vsel %vm1043_vm4, %v1026_v62, %v1054_v58  ;;  %v11613_v58 = vld [vmem:[#allocation138_spill] sm:$0xff]  ;;  %v11614_v62 = vld [vmem:[#allocation135_spill] sm:$0xff] }
 0x74d   : > { %v936_v1 = vpop.xlane.xlu1 %935  ;;  %v1056_v27 = vsel %vm1045_vm5, %v1029_v40, %v1055_v9  ;;  %v1507_v40 = vsel %vm463_vm1, %v11613_v58, 0.0  ;;  %v11615_v9 = vld [vmem:[#allocation139_spill] sm:$0xff] }
 0x74e   : > { %v1107_v43 = vmul.f32 1.442695, %v1105_v17  ;;  %v1031_v41 = vperm.slane %v936_v1, %v8386_v53  ;;  %v2038_v1 = vsel %vm463_vm1, %v11612_v35, 0.0  ;;  %v8641_v52 = vpop.xlane.xlu2 %1469 }
 0x750   : > { %6459 = vpow2.f32 %v1107_v43  ;;  %2576 = vadd.xlane.f32.xlu0 %v2575_v20  ;;  %v1032_v56 = vsel %vm992_vm0, %v1031_v41, %v1030_v42  ;;  %v1093_v43 = vpop.f32.mrf.mxu3  ;;  %v2047_v42 = vsel %vm463_vm1, %v8361_v16, 0.0 }
 0x751   : > { %v1057_v37 = vsel %vm1047_vm6, %v1032_v56, %v1056_v27  ;;  %v2584_v56 = vsel %vm463_vm1, %v11614_v62, 0.0  ;;  %v1516_v27 = vsel %vm463_vm1, %v11615_v9, 0.0  ;;  %v2626_v62 = vsel %vm463_vm1, %v8517_v32, 0.0  ;;  %v11621_v9 = vld [vmem:[#allocation123_spill] sm:$0xff] }
 0x752   : > { %v1058_v63 = vsel %vm1049_vm7, %v1035_v49, %v1057_v37  ;;  %v1525_v37 = vsel %vm463_vm1, %v8343_v26, 0.0  ;;  %v11616_v49 = vld [vmem:[#allocation39_spill] sm:$0xff]  ;;  %v2068_v26 = vsel %vm463_vm1, %v8455_v36, 0.0 }
 0x753   : > { %v1993_v35 = vsel %vm463_vm1, %v11616_v49, 0.0 }
 0x755   : > { %v945_v17 = vpop.xlane.xlu1 %944 }
 0x756   : > { %v8625_v30 = vpop.eup %6459  ;;  %v1036_v41 = vperm.slane %v945_v17, %v8382_v33  ;;  %v8649_v38 = vpop.xlane.xlu2 %1478  ;;  %v2596_v17 = vsel %vm463_vm1, %v8378_v24, 0.0  ;;  %v11617_v24 = vld [vmem:[#allocation117_spill] sm:$0xff] }
 0x757   : > { %v1111_v46 = vsel %vm11404_vm9, %v8625_v30, 0.0 }
 0x758   : > { %v1038_v48 = vsel %vm992_vm0, %v1037_v23, %v1036_v41  ;;  %2039 = vadd.xlane.f32.xlu0 %v2038_v1  ;;  %1112 = vadd.xlane.f32.xlu2 %v1111_v46  ;;  %v1534_v41 = vsel %vm463_vm1, %v8357_v7, 0.0  ;;  %v2002_v46 = vsel %vm463_vm1, %v11617_v24, 0.0  ;;  %v2611_v7 = vsel %vm463_vm1, %v8471_v25, 0.0 }
 0x759   : > { %v1059_v61 = vsel %vm11405_vm8, %v1038_v48, %v1058_v63  ;;  %v11618_v48 = vld [vmem:[#allocation41_spill] sm:$0xff]  ;;  %v2083_v25 = vsel %vm463_vm1, %v8503_v28, 0.0 }
 0x75a   : > { %v1094_v12 = vadd.f32 %v1093_v43, %v1059_v61  ;;  %v2539_v63 = vsel %vm463_vm1, %v11618_v48, 0.0  ;;  %v2614_v43 = vsel %vm463_vm1, %v8490_v5, 0.0 }
 0x75c   : > { %v8637_v39 = vmul.f32 0.35355338, %v1094_v12  ;;  %v11619_v12 = vld [vmem:[#allocation119_spill] sm:$0xff] }
 0x75d   : > { %v8683_v61 = vpop.xlane.xlu1 %1451 }
 0x75e   : > { %v1102_v20 = vsel %vm11404_vm9, %v8637_v39, -inf  ;;  %v8655_v16 = vpop.xlane.xlu2 %1487 }
 0x75f   : > { %1103 = vmax.xlane.f32.xlu1 %v1102_v20  ;;  %v2008_v20 = vsel %vm463_vm1, %v11619_v12, 0.0 }
 0x760   : > { %2048 = vadd.xlane.f32.xlu0 %v2047_v42 }
 0x765   : > { %v8691_v42 = vpop.xlane.xlu1 %1463 }
 0x766   : > { %v8661_v23 = vpop.xlane.xlu2 %1496 }
 0x767   : > { %1508 = vadd.xlane.f32.xlu1 %v1507_v40  ;;  %v11620_v40 = vld [vmem:[#allocation121_spill] sm:$0xff] }
 0x768   : > { %2585 = vadd.xlane.f32.xlu0 %v2584_v56  ;;  %v2551_v5 = vsel %vm463_vm1, %v11620_v40, 0.0 }
 0x76d   : > { %v8699_v56 = vpop.xlane.xlu1 %1472 }
 0x76e   : > { %v8669_v1 = vpop.xlane.xlu2 %1505 }
 0x76f   : > { %1517 = vadd.xlane.f32.xlu1 %v1516_v27  ;;  %v2554_v27 = vsel %vm463_vm1, %v11621_v9, 0.0  ;;  %v11626_v9 = vld [vmem:[#allocation133_spill] sm:$0xff] }
 0x770   : > { %2594 = vadd.xlane.f32.xlu0 %v2593_v57 }
 0x775   : > { %v8705_v28 = vpop.xlane.xlu1 %1481 }
 0x776   : > { %v8677_v8 = vpop.xlane.xlu2 %1514 }
 0x777   : > { %1526 = vadd.xlane.f32.xlu1 %v1525_v37  ;;  %v11622_v37 = vld [vmem:[#allocation125_spill] sm:$0xff] }
 0x778   : > { %2597 = vadd.xlane.f32.xlu0 %v2596_v17  ;;  %v2023_v17 = vsel %vm463_vm1, %v11622_v37, 0.0 }
 0x77d   : > { %v8713_v49 = vpop.xlane.xlu1 %1490 }
 0x77e   : > { %v8685_v36 = vpop.xlane.xlu2 %1523 }
 0x77f   : > { %1535 = vadd.xlane.f32.xlu1 %v1534_v41 }
 0x780   : > { %2066 = vadd.xlane.f32.xlu0 %v2065_v10  ;;  %v11623_v10 = vld [vmem:[#allocation128_spill] sm:$0xff] }
 0x781   : > { %v2026_v32 = vsel %vm463_vm1, %v11623_v10, 0.0 }
 0x786   : > { %v8693_v58 = vpop.xlane.xlu2 %1532 }
 0x787   : > { %1994 = vadd.xlane.f32.xlu1 %v1993_v35 }
 0x788   : > { %2069 = vadd.xlane.f32.xlu0 %v2068_v26  ;;  %v11624_v26 = vld [vmem:[#allocation130_spill] sm:$0xff] }
 0x789   : > { %v2569_v24 = vsel %vm463_vm1, %v11624_v26, 0.0 }
 0x78e   : > { %v8703_v57 = vpop.xlane.xlu2 %1991 }
 0x78f   : > { %2003 = vadd.xlane.f32.xlu1 %v2002_v46  ;;  %v1503_v46 = vpop.xlane.xlu0 %1502 }
 0x790   : > { %2612 = vadd.xlane.f32.xlu0 %v2611_v7  ;;  %v1500_v7 = vpop.xlane.xlu1 %1499 }
 0x791   : > { %v1607_v26 = vperm.slane %v1500_v7, %v8382_v33  ;;  %v1605_v7 = vperm.slane %v8661_v23, %v8386_v53  ;;  %v1614_v23 = vperm.slane %v8677_v8, %v8386_v53 }
 0x796   : > { %v8709_v41 = vpop.xlane.xlu2 %2000 }
 0x797   : > { %2540 = vadd.xlane.f32.xlu1 %v2539_v63  ;;  %v11625_v63 = vld [vmem:[#allocation132_spill] sm:$0xff] }
 0x798   : > { %2615 = vadd.xlane.f32.xlu0 %v2614_v43  ;;  %v2572_v43 = vsel %vm463_vm1, %v11625_v63, 0.0  ;;  %v11627_v63 = vld [vmem:[#allocation142_spill] sm:$0xff] }
 0x79e   : > { %v8715_v35 = vpop.xlane.xlu2 %2537 }
 0x79f   : > { %2009 = vadd.xlane.f32.xlu1 %v2008_v20  ;;  %v1512_v20 = vpop.xlane.xlu0 %1511 }
 0x7a0   : > { %2084 = vadd.xlane.f32.xlu0 %v2083_v25 }
 0x7a7   : > { %2552 = vadd.xlane.f32.xlu1 %v2551_v5 }
 0x7a8   : > { %2627 = vadd.xlane.f32.xlu0 %v2626_v62 }
 0x7af   : > { %2555 = vadd.xlane.f32.xlu1 %v2554_v27  ;;  %v2581_v27 = vsel %vm463_vm1, %v11626_v9, 0.0 }
 0x7b7   : > { %2024 = vadd.xlane.f32.xlu1 %v2023_v17  ;;  %v1521_v17 = vpop.xlane.xlu0 %1520 }
 0x7bf   : > { %2027 = vadd.xlane.f32.xlu1 %v2026_v32  ;;  %v2044_v32 = vsel %vm463_vm1, %v8369_v60, 0.0  ;;  %v1604_v60 = vperm.slane %v8583_v45, %v8382_v33  ;;  %v1613_v45 = vperm.slane %v1512_v20, %v8382_v33  ;;  %v2590_v20 = vsel %vm463_vm1, %v8406_v13, 0.0 }
 0x7c7   : > { %2570 = vadd.xlane.f32.xlu1 %v2569_v24  ;;  %v1530_v24 = vpop.xlane.xlu0 %1529 }
 0x7c8   : > { %v1622_v8 = vperm.slane %v1530_v24, %v8382_v33 }
 0x7cb   : > { %v1113_v48 = vpop.xlane.xlu2 %1112 }
 0x7cc   : > { %6461 = vrcp.f32 %v1113_v48 }
 0x7cf   : > { %2573 = vadd.xlane.f32.xlu1 %v2572_v43  ;;  %v2053_v43 = vsel %vm463_vm1, %v11627_v63, 0.0 }
 0x7d2   : > { %v6462_v12 = vpop.eup %6461  ;;  %v1104_v25 = vpop.xlane.xlu1 %1103 }
 0x7d3   : > { %v1119_v40 = vmul.f32 %v6462_v12, %v8625_v30  ;;  %v1106_v5 = vsub.f32 %v8637_v39, %v1104_v25  ;;  %v11628_v12 = vld [vmem:[#allocation116_spill] sm:$0xff] }
 0x7d4   : > { %v2545_v25 = vsel %vm463_vm1, %v11628_v12, 0.0 }
 0x7d5   : > { %v1109_v62 = vmul.f32 1.442695, %v1106_v5  ;;  %6102 = vmatmul.msk.f32.vlgmr.msra.gmra.mxu0 %vm11404_vm9, %v1119_v40  ;;  %v1608_v40 = vperm.slane %v1503_v46, %v8386_v53  ;;  %v1610_v5 = vperm.slane %v8669_v1, %v8382_v33  ;;  %v1617_v1 = vperm.slane %v1521_v17, %v8386_v53 }
 0x7d6   : > { %v1615_v17 = vsel %vm992_vm0, %v1614_v23, %v1613_v45  ;;  %v2059_v45 = vsel %vm463_vm1, %v8451_v21, 0.0  ;;  %v11631_v21 = vld [vmem:[#allocation122_spill] sm:$0xff] }
 0x7d7   : > { %6463 = vpow2.f32 %v1109_v62  ;;  %2582 = vadd.xlane.f32.xlu1 %v2581_v27  ;;  %v1609_v62 = vsel %vm992_vm0, %v1608_v40, %v1607_v26  ;;  %v1619_v26 = vperm.slane %v8685_v36, %v8382_v33 }
 0x7da   : > { %v1509_v37 = vpop.xlane.xlu1 %1508 }
 0x7db   : > { %v1611_v48 = vperm.slane %v1509_v37, %v8386_v53 }
 0x7dd   : > { %v8726_v10 = vpop.eup %6463  ;;  %v1612_v9 = vsel %vm992_vm0, %v1611_v48, %v1610_v5  ;;  %v1623_v5 = vperm.slane %v8693_v58, %v8386_v53 }
 0x7de   : > { %v1114_v30 = vsel %vm11404_vm9, %v8726_v10, 0.0 }
 0x7df   : > { %2045 = vadd.xlane.f32.xlu1 %v2044_v32  ;;  %1115 = vadd.xlane.f32.xlu2 %v1114_v30  ;;  %v1606_v32 = vsel %vm992_vm0, %v1605_v7, %v1604_v60  ;;  %v8751_v30 = vpop.f32.mrf.mxu1  ;;  %v1539_v60 = vpop.xlane.xlu0 %1538 }
 0x7e0   : > { %v1635_v63 = vsel %vm1039_vm2, %v1609_v62, %v1606_v32  ;;  %v1626_v62 = vperm.slane %v1539_v60, %v8386_v53  ;;  %v11633_v60 = vld [vmem:[#allocation127_spill] sm:$0xff] }
 0x7e2   : > { %v1518_v39 = vpop.xlane.xlu1 %1517 }
 0x7e3   : > { %v1616_v27 = vperm.slane %v1518_v39, %v8382_v33  ;;  %v1636_v39 = vsel %vm1041_vm3, %v1612_v9, %v1635_v63 }
 0x7e4   : > { %v1637_v36 = vsel %vm1043_vm4, %v1615_v17, %v1636_v39  ;;  %v11632_v17 = vld [vmem:[#allocation124_spill] sm:$0xff] }
 0x7e5   : > { %v1618_v48 = vsel %vm992_vm0, %v1617_v1, %v1616_v27  ;;  %v1624_v27 = vsel %vm992_vm0, %v1623_v5, %v1622_v8 }
 0x7e6   : > { %v1638_v40 = vsel %vm1045_vm5, %v1618_v48, %v1637_v36  ;;  %v2062_v48 = vsel %vm463_vm1, %v8469_v22, 0.0  ;;  %v2608_v22 = vsel %vm463_vm1, %v8501_v11, 0.0  ;;  %v2566_v36 = vsel %vm463_vm1, %v11633_v60, 0.0  ;;  %v11636_v60 = vld [vmem:[#allocation140_spill] sm:$0xff] }
 0x7e7   : > { %2054 = vadd.xlane.f32.xlu1 %v2053_v43  ;;  %2546 = vadd.xlane.f32.xlu2 %v2545_v25  ;;  %v11629_v43 = vld [vmem:[#allocation118_spill] sm:$0xff]  ;;  %v1672_v32 = vpop.f32.mrf.mxu1  ;;  %v1580_v11 = vperm.slane %v8581_v51, %v8382_v33  ;;  %v1590_v51 = vperm.slane %v8567_v15, %v8386_v53  ;;  %v1598_v15 = vperm.slane %v8705_v28, %v8382_v33 }
 0x7e8   : > { %v2548_v12 = vsel %vm463_vm1, %v11629_v43, 0.0  ;;  %v1601_v28 = vperm.slane %v8655_v16, %v8382_v33 }
 0x7ea   : > { %v1527_v37 = vpop.xlane.xlu1 %1526 }
 0x7eb   : > { %v1620_v46 = vperm.slane %v1527_v37, %v8386_v53 }
 0x7ed   : > { %v1621_v25 = vsel %vm992_vm0, %v1620_v46, %v1619_v26  ;;  %v11630_v46 = vld [vmem:[#allocation120_spill] sm:$0xff] }
 0x7ee   : > { %v1639_v13 = vsel %vm1047_vm6, %v1621_v25, %v1638_v40  ;;  %v2017_v58 = vsel %vm463_vm1, %v11630_v46, 0.0  ;;  %v2563_v25 = vsel %vm463_vm1, %v11632_v17, 0.0  ;;  %v1583_v40 = vperm.slane %v8683_v61, %v8382_v33 }
 0x7ef   : > { %2591 = vadd.xlane.f32.xlu1 %v2590_v20  ;;  %2549 = vadd.xlane.f32.xlu2 %v2548_v12  ;;  %v1640_v24 = vsel %vm1049_vm7, %v1624_v27, %v1639_v13  ;;  %v2020_v20 = vsel %vm463_vm1, %v11631_v21, 0.0  ;;  %v2605_v12 = vsel %vm463_vm1, %v8488_v55, 0.0  ;;  %v1584_v55 = vperm.slane %v8594_v4, %v8386_v53 }
 0x7f0   : > { %v1581_v13 = vperm.slane %v8557_v2, %v8386_v53  ;;  %v1589_v27 = vperm.slane %v8691_v42, %v8382_v33  ;;  %v2077_v61 = vsel %vm463_vm1, %v8515_v6, 0.0  ;;  %v1586_v4 = vperm.slane %v8563_v18, %v8382_v33 }
 0x7f1   : > { %v1593_v2 = vperm.slane %v8699_v56, %v8386_v53  ;;  %v1587_v42 = vperm.slane %v8622_v3, %v8386_v53  ;;  %v1592_v6 = vperm.slane %v8641_v52, %v8382_v33  ;;  %v1602_v52 = vperm.slane %v8713_v49, %v8386_v53 }
 0x7f2   : > { %v1536_v7 = vpop.xlane.xlu1 %1535  ;;  %v1596_v21 = vperm.slane %v8649_v38, %v8386_v53 }
 0x7f3   : > { %v1625_v9 = vperm.slane %v1536_v7, %v8382_v33  ;;  %v11634_v7 = vld [vmem:[#allocation129_spill] sm:$0xff]  ;;  %v1594_v46 = vsel %vm992_vm0, %v1593_v2, %v1592_v6  ;;  %v2602_v6 = vsel %vm463_vm1, %v8523_v0, 0.0  ;;  %v2074_v0 = vsel %vm463_vm1, %v8545_v31, 0.0  ;;  %v11640_v31 = vld [vmem:[#allocation143_spill] sm:$0xff] }
 0x7f5   : > { %v1627_v37 = vsel %vm992_vm0, %v1626_v62, %v1625_v9  ;;  %v2035_v62 = vsel %vm463_vm1, %v11634_v7, 0.0  ;;  %v1585_v9 = vsel %vm992_vm0, %v1584_v55, %v1583_v40 }
 0x7f6   : > { %v1641_v1 = vsel %vm11405_vm8, %v1627_v37, %v1640_v24  ;;  %v1582_v37 = vsel %vm992_vm0, %v1581_v13, %v1580_v11  ;;  %v8829_v24 = vpop.xlane.xlu0 %1997  ;;  %v2050_v11 = vsel %vm463_vm1, %v8482_v14, 0.0  ;;  %v2599_v14 = vsel %vm463_vm1, %v8511_v29, 0.0 }
 0x7f7   : > { %2060 = vadd.xlane.f32.xlu1 %v2059_v45  ;;  %2018 = vadd.xlane.f32.xlu2 %v2017_v58  ;;  %v1673_v63 = vadd.f32 %v1672_v32, %v1641_v1  ;;  %v1628_v18 = vsel %vm1039_vm2, %v1585_v9, %v1582_v37  ;;  %v1591_v32 = vsel %vm992_vm0, %v1590_v51, %v1589_v27 }
 0x7f8   : > { %v1588_v45 = vsel %vm992_vm0, %v1587_v42, %v1586_v4  ;;  %v1595_v58 = vperm.slane %v8573_v54, %v8382_v33  ;;  %v1599_v1 = vperm.slane %v8577_v19, %v8386_v53  ;;  %v2056_v4 = vsel %vm463_vm1, %v8497_v50, 0.0 }
 0x7f9   : > { %v8783_v23 = vmul.f32 0.35355338, %v1673_v63  ;;  %v1629_v3 = vsel %vm1041_vm3, %v1588_v45, %v1628_v18  ;;  %v2071_v45 = vsel %vm463_vm1, %v8535_v44, 0.0  ;;  %v2617_v44 = vsel %vm463_vm1, %v8555_v34, 0.0  ;;  %v11641_v34 = vld [vmem:[#allocation144_spill] sm:$0xff] }
 0x7fa   : > { %v8785_v26 = vpop.xlane.xlu1 %1994  ;;  %v1630_v63 = vsel %vm1043_vm4, %v1591_v32, %v1629_v3  ;;  %v1600_v49 = vsel %vm992_vm0, %v1599_v1, %v1598_v15  ;;  %v1597_v19 = vsel %vm992_vm0, %v1596_v21, %v1595_v58  ;;  %v11639_v21 = vld [vmem:[#allocation115_spill] sm:$0xff] }
 0x7fb   : > { %v1680_v39 = vsel %vm11404_vm9, %v8783_v23, -inf  ;;  %v1631_v54 = vsel %vm1045_vm5, %v1594_v46, %v1630_v63  ;;  %v11638_v63 = vld [vmem:[#allocation114_spill] sm:$0xff] }
 0x7fc   : > { %1681 = vmax.xlane.f32.xlu0 %v1680_v39  ;;  %v11635_v39 = vld [vmem:[#allocation131_spill] sm:$0xff]  ;;  %v1632_v17 = vsel %vm1047_vm6, %v1597_v19, %v1631_v54  ;;  %v2629_v19 = vsel %vm463_vm1, %v11641_v34, 0.0 }
 0x7fd   : > { %v1633_v16 = vsel %vm1049_vm7, %v1600_v49, %v1632_v17 }
 0x7ff   : > { %2063 = vadd.xlane.f32.xlu1 %v2062_v48  ;;  %2021 = vadd.xlane.f32.xlu2 %v2020_v20  ;;  %v2578_v48 = vsel %vm463_vm1, %v11635_v39, 0.0  ;;  %v2080_v20 = vsel %vm463_vm1, %v8527_v47, 0.0  ;;  %v2623_v47 = vsel %vm463_vm1, %v8537_v59, 0.0 }
 0x802   : > { %v8793_v43 = vpop.xlane.xlu1 %2003 }
 0x807   : > { %2606 = vadd.xlane.f32.xlu1 %v2605_v12  ;;  %2564 = vadd.xlane.f32.xlu2 %v2563_v25  ;;  %v1603_v12 = vsel %vm992_vm0, %v1602_v52, %v1601_v28  ;;  %v8864_v25 = vpop.xlane.xlu0 %2006  ;;  %v2620_v28 = vsel %vm463_vm1, %v11640_v31, 0.0 }
 0x80a   : > { %v8799_v8 = vpop.xlane.xlu1 %2540 }
 0x80f   : > { %2609 = vadd.xlane.f32.xlu1 %v2608_v22  ;;  %2567 = vadd.xlane.f32.xlu2 %v2566_v36  ;;  %v1634_v22 = vsel %vm11405_vm8, %v1603_v12, %v1633_v16  ;;  %v2041_v36 = vsel %vm463_vm1, %v11636_v60, 0.0  ;;  %v8879_v7 = vpop.xlane.xlu0 %2543 }
 0x810   : > { %v1670_v40 = vadd.f32 %v8751_v30, %v1634_v22  ;;  %v11637_v30 = vld [vmem:[#allocation141_spill] sm:$0xff] }
 0x811   : > { %v2587_v27 = vsel %vm463_vm1, %v11637_v30, 0.0 }
 0x812   : > { %v8807_v5 = vpop.xlane.xlu1 %2009  ;;  %v8877_v13 = vmul.f32 0.35355338, %v1670_v40 }
 0x817   : > { %2078 = vadd.xlane.f32.xlu1 %v2077_v61  ;;  %2036 = vadd.xlane.f32.xlu2 %v2035_v62  ;;  %v1677_v62 = vsel %vm11404_vm9, %v8877_v13, -inf  ;;  %v8887_v9 = vpop.xlane.xlu0 %2012 }
 0x81a   : > { %v8837_v56 = vpop.xlane.xlu1 %2552 }
 0x81b   : > { %v2679_v30 = vperm.slane %v8837_v56, %v8386_v53 }
 0x81f   : > { %2081 = vadd.xlane.f32.xlu1 %v2080_v20  ;;  %2579 = vadd.xlane.f32.xlu2 %v2578_v48  ;;  %v8895_v2 = vpop.xlane.xlu0 %2015 }
 0x822   : > { %v8866_v38 = vpop.xlane.xlu1 %2555 }
 0x827   : > { %2624 = vadd.xlane.f32.xlu1 %v2623_v47  ;;  %2042 = vadd.xlane.f32.xlu2 %v2041_v36  ;;  %v8901_v51 = vpop.xlane.xlu0 %2558 }
 0x82a   : > { %v8875_v55 = vpop.xlane.xlu1 %2024 }
 0x82f   : > { %1678 = vmax.xlane.f32.xlu1 %v1677_v62  ;;  %2051 = vadd.xlane.f32.xlu2 %v2050_v11  ;;  %v2562_v32 = vpop.xlane.xlu0 %2561  ;;  %v2675_v62 = vperm.slane %v8879_v7, %v8382_v33  ;;  %v2673_v11 = vperm.slane %v8799_v8, %v8386_v53  ;;  %v2681_v8 = vperm.slane %v8866_v38, %v8382_v33 }
 0x832   : > { %v8885_v59 = vpop.xlane.xlu1 %2027 }
 0x837   : > { %2588 = vadd.xlane.f32.xlu2 %v2587_v27  ;;  %v8915_v3 = vpop.xlane.xlu0 %2030  ;;  %v2672_v27 = vperm.slane %v8715_v35, %v8382_v33 }
 0x839   : > { %v2674_v7 = vsel %vm992_vm0, %v2673_v11, %v2672_v27 }
 0x83a   : > { %v8891_v61 = vpop.xlane.xlu1 %2570 }
 0x83f   : > { %2057 = vadd.xlane.f32.xlu2 %v2056_v4  ;;  %v8925_v39 = vpop.xlane.xlu0 %2033 }
 0x842   : > { %v8897_v37 = vpop.xlane.xlu1 %2573 }
 0x847   : > { %2600 = vadd.xlane.f32.xlu2 %v2599_v14  ;;  %v2577_v54 = vpop.xlane.xlu0 %2576 }
 0x84a   : > { %v8903_v42 = vpop.xlane.xlu1 %2582 }
 0x84f   : > { %2603 = vadd.xlane.f32.xlu2 %v2602_v6  ;;  %v8943_v16 = vpop.xlane.xlu0 %2039 }
 0x852   : > { %v8907_v18 = vpop.xlane.xlu1 %2045  ;;  %v1116_v50 = vpop.xlane.xlu2 %1115 }
 0x853   : > { %6465 = vrcp.f32 %v1116_v50 }
 0x857   : > { %2072 = vadd.xlane.f32.xlu2 %v2071_v45  ;;  %v8947_v60 = vpop.xlane.xlu0 %2048 }
 0x859   : > { %v6466_v46 = vpop.eup %6465 }
 0x85a   : > { %v8911_v29 = vpop.xlane.xlu1 %2054  ;;  %v2547_v15 = vpop.xlane.xlu2 %2546  ;;  %v1120_v58 = vmul.f32 %v6466_v46, %v8726_v10  ;;  %v2684_v46 = vperm.slane %v2562_v32, %v8382_v33  ;;  %v2690_v32 = vperm.slane %v8897_v37, %v8382_v33 }
 0x85b   : > { %v2676_v36 = vperm.slane %v2547_v15, %v8386_v53  ;;  %v2682_v15 = vperm.slane %v8901_v51, %v8386_v53 }
 0x85c   : > { %6103 = vmatmul.msk.f32.gmra.mxu0 %vm11404_vm9, %v1120_v58  ;;  %v2688_v58 = vperm.slane %v8891_v61, %v8386_v53  ;;  %v2691_v61 = vperm.slane %v2577_v54, %v8386_v53 }
 0x85d   : > { %v2677_v4 = vsel %vm992_vm0, %v2676_v36, %v2675_v62  ;;  %v2683_v38 = vsel %vm992_vm0, %v2682_v15, %v2681_v8 }
 0x85e   : > { %v2720_v35 = vsel %vm1039_vm2, %v2677_v4, %v2674_v7 }
 0x85f   : > { %2075 = vadd.xlane.f32.xlu2 %v2074_v0 }
 0x862   : > { %v8919_v52 = vpop.xlane.xlu1 %2591  ;;  %v2550_v1 = vpop.xlane.xlu2 %2549 }
 0x863   : > { %v2678_v40 = vperm.slane %v2550_v1, %v8382_v33 }
 0x864   : > { %6112 = vmatmul.msk.f32.vlgmr.msrb.gmra.mxu0 %vm1062_vm15, %v11638_v63  ;;  %v8978_v63 = vpop.xlane.xlu0 %2585 }
 0x865   : > { %v2680_v6 = vsel %vm992_vm0, %v2679_v30, %v2678_v40  ;;  %v2761_v40 = vpop.f32.mrf.mxu1 }
 0x866   : > { %v2721_v0 = vsel %vm1041_vm3, %v2680_v6, %v2720_v35 }
 0x867   : > { %2618 = vadd.xlane.f32.xlu2 %v2617_v44 }
 0x86a   : > { %v8927_v10 = vpop.xlane.xlu1 %2060  ;;  %v8929_v48 = vpop.xlane.xlu2 %2018 }
 0x86c   : > { %6113 = vmatmul.msk.f32.gmra.mxu0 %vm1062_vm15, %v11639_v21  ;;  %v2722_v21 = vsel %vm1043_vm4, %v2683_v38, %v2721_v0  ;;  %v8997_v30 = vpop.xlane.xlu0 %2594 }
 0x86f   : > { %2621 = vadd.xlane.f32.xlu2 %v2620_v28 }
 0x872   : > { %v8935_v20 = vpop.xlane.xlu1 %2063  ;;  %v8937_v49 = vpop.xlane.xlu2 %2021 }
 0x874   : > { %v9010_v8 = vpop.xlane.xlu0 %2597 }
 0x877   : > { %2630 = vadd.xlane.f32.xlu2 %v2629_v19  ;;  %v2694_v19 = vperm.slane %v8903_v42, %v8386_v53 }
 0x87a   : > { %v8941_v12 = vpop.xlane.xlu1 %2606  ;;  %v2565_v17 = vpop.xlane.xlu2 %2564 }
 0x87b   : > { %v2685_v50 = vperm.slane %v2565_v17, %v8386_v53 }
 0x87c   : > { %v9016_v15 = vpop.xlane.xlu0 %2066 }
 0x87d   : > { %v2686_v1 = vsel %vm992_vm0, %v2685_v50, %v2684_v46 }
 0x87e   : > { %v2723_v51 = vsel %vm1045_vm5, %v2686_v1, %v2722_v21 }
 0x882   : > { %v8945_v22 = vpop.xlane.xlu1 %2609  ;;  %v2568_v47 = vpop.xlane.xlu2 %2567 }
 0x883   : > { %v2687_v56 = vperm.slane %v2568_v47, %v8382_v33  ;;  %v2692_v47 = vsel %vm992_vm0, %v2691_v61, %v2690_v32  ;;  %v2127_v61 = vperm.slane %v8785_v26, %v8386_v53  ;;  %v2133_v26 = vperm.slane %v8864_v25, %v8386_v53 }
 0x884   : > { %v9020_v1 = vpop.xlane.xlu0 %2069  ;;  %v2141_v25 = vperm.slane %v8937_v49, %v8382_v33 }
 0x885   : > { %v2689_v44 = vsel %vm992_vm0, %v2688_v58, %v2687_v56 }
 0x886   : > { %v2724_v28 = vsel %vm1047_vm6, %v2689_v44, %v2723_v51  ;;  %v2129_v51 = vperm.slane %v8829_v24, %v8382_v33  ;;  %v2135_v24 = vperm.slane %v8807_v5, %v8382_v33  ;;  %v2147_v5 = vperm.slane %v8925_v39, %v8382_v33 }
 0x887   : > { %v2725_v36 = vsel %vm1049_vm7, %v2692_v47, %v2724_v28  ;;  %v9036_v28 = vpop.f32.mrf.mxu0  ;;  %v2132_v47 = vperm.slane %v8793_v43, %v8382_v33  ;;  %v2138_v43 = vperm.slane %v8895_v2, %v8382_v33  ;;  %v2142_v39 = vperm.slane %v8875_v55, %v8386_v53 }
 0x889   : > { %v2134_v2 = vsel %vm992_vm0, %v2133_v26, %v2132_v47  ;;  %v2143_v55 = vsel %vm992_vm0, %v2142_v39, %v2141_v25 }
 0x88a   : > { %v8960_v14 = vpop.xlane.xlu1 %2078  ;;  %v8964_v45 = vpop.xlane.xlu2 %2036 }
 0x88c   : > { %v9024_v38 = vpop.xlane.xlu0 %2612 }
 0x892   : > { %v8986_v31 = vpop.xlane.xlu1 %2081  ;;  %v2580_v34 = vpop.xlane.xlu2 %2579 }
 0x893   : > { %v2693_v17 = vperm.slane %v2580_v34, %v8382_v33  ;;  %v2130_v34 = vperm.slane %v8709_v41, %v8386_v53 }
 0x894   : > { %v9030_v21 = vpop.xlane.xlu0 %2615 }
 0x895   : > { %v2695_v37 = vsel %vm992_vm0, %v2694_v19, %v2693_v17  ;;  %v2126_v17 = vperm.slane %v8703_v57, %v8382_v33  ;;  %v2139_v57 = vperm.slane %v8929_v48, %v8386_v53  ;;  %v2696_v48 = vperm.slane %v8978_v63, %v8382_v33 }
 0x896   : > { %v2726_v62 = vsel %vm11405_vm8, %v2695_v37, %v2725_v36  ;;  %v2131_v37 = vsel %vm992_vm0, %v2130_v34, %v2129_v51  ;;  %v2136_v36 = vperm.slane %v8887_v9, %v8386_v53  ;;  %v2150_v9 = vperm.slane %v8943_v16, %v8382_v33 }
 0x897   : > { %v2762_v11 = vadd.f32 %v2761_v40, %v2726_v62  ;;  %v2128_v41 = vsel %vm992_vm0, %v2127_v61, %v2126_v17  ;;  %v2145_v62 = vperm.slane %v8915_v3, %v8386_v53  ;;  %v2144_v16 = vperm.slane %v8885_v59, %v8382_v33 }
 0x898   : > { %v2137_v3 = vsel %vm992_vm0, %v2136_v36, %v2135_v24  ;;  %v2140_v63 = vsel %vm992_vm0, %v2139_v57, %v2138_v43  ;;  %v2702_v51 = vperm.slane %v9010_v8, %v8382_v33  ;;  %v2157_v61 = vperm.slane %v8911_v29, %v8386_v53 }
 0x899   : > { %v9001_v27 = vmul.f32 0.35355338, %v2762_v11  ;;  %v2154_v11 = vperm.slane %v8947_v60, %v8386_v53  ;;  %v2153_v60 = vperm.slane %v8907_v18, %v8382_v33  ;;  %v2700_v18 = vperm.slane %v8997_v30, %v8386_v53 }
 0x89a   : > { %v8999_v54 = vpop.xlane.xlu1 %2624  ;;  %v9003_v4 = vpop.xlane.xlu2 %2042  ;;  %v2163_v34 = vperm.slane %v9016_v15, %v8386_v53  ;;  %v2146_v8 = vsel %vm992_vm0, %v2145_v62, %v2144_v16  ;;  %v2699_v29 = vperm.slane %v8919_v52, %v8382_v33  ;;  %v2162_v36 = vperm.slane %v8935_v20, %v8382_v33 }
 0x89b   : > { %v2769_v42 = vsel %vm11404_vm9, %v9001_v27, -inf  ;;  %v2151_v49 = vperm.slane %v9003_v4, %v8386_v53  ;;  %v2148_v4 = vperm.slane %v8964_v45, %v8386_v53  ;;  %v2160_v45 = vperm.slane %v8927_v10, %v8386_v53 }
 0x89c   : > { %2770 = vmax.xlane.f32.xlu1 %v2769_v42  ;;  %v9054_v40 = vpop.xlane.xlu0 %2084  ;;  %v2174_v42 = vsel %vm1039_vm2, %v2131_v37, %v2128_v41  ;;  %v2155_v30 = vsel %vm992_vm0, %v2154_v11, %v2153_v60  ;;  %v2165_v52 = vperm.slane %v9020_v1, %v8382_v33  ;;  %v2169_v20 = vperm.slane %v8960_v14, %v8386_v53 }
 0x89d   : > { %v2149_v24 = vsel %vm992_vm0, %v2148_v4, %v2147_v5  ;;  %v2172_v1 = vperm.slane %v9054_v40, %v8386_v53  ;;  %v2701_v11 = vsel %vm992_vm0, %v2700_v18, %v2699_v29  ;;  %v2706_v14 = vperm.slane %v8941_v12, %v8386_v53 }
 0x8a2   : > { %v1679_v6 = vpop.xlane.xlu1 %1678  ;;  %v9008_v7 = vpop.xlane.xlu2 %2051 }
 0x8a3   : > { %v1683_v50 = vsub.f32 %v8877_v13, %v1679_v6  ;;  %v2156_v6 = vperm.slane %v9008_v7, %v8382_v33 }
 0x8a4   : > { %v2628_v26 = vpop.xlane.xlu0 %2627 }
 0x8a5   : > { %v1685_v56 = vmul.f32 1.442695, %v1683_v50  ;;  %v2158_v47 = vsel %vm992_vm0, %v2157_v61, %v2156_v6 }
 0x8a7   : > { %6467 = vpow2.f32 %v1685_v56  ;;  %v2175_v56 = vsel %vm1041_vm3, %v2134_v2, %v2174_v42 }
 0x8a8   : > { %v2176_v7 = vsel %vm1043_vm4, %v2137_v3, %v2175_v56  ;;  %v2164_v3 = vsel %vm992_vm0, %v2163_v34, %v2162_v36 }
 0x8a9   : > { %v2177_v17 = vsel %vm1045_vm5, %v2140_v63, %v2176_v7  ;;  %v2708_v63 = vperm.slane %v8945_v22, %v8382_v33 }
 0x8aa   : > { %v9012_v46 = vpop.xlane.xlu2 %2588  ;;  %v2178_v37 = vsel %vm1047_vm6, %v2143_v55, %v2177_v17 }
 0x8ab   : > { %v2697_v57 = vperm.slane %v9012_v46, %v8386_v53  ;;  %v2179_v5 = vsel %vm1049_vm7, %v2146_v8, %v2178_v37  ;;  %v2717_v8 = vperm.slane %v2628_v26, %v8382_v33 }
 0x8ac   : > { %v1682_v18 = vpop.xlane.xlu0 %1681 }
 0x8ad   : > { %v9014_v35 = vpop.eup %6467  ;;  %v2698_v39 = vsel %vm992_vm0, %v2697_v57, %v2696_v48 }
 0x8ae   : > { %v1689_v58 = vsel %vm11404_vm9, %v9014_v35, 0.0  ;;  %v2727_v48 = vsel %vm1039_vm2, %v2701_v11, %v2698_v39 }
 0x8af   : > { %1690 = vadd.xlane.f32.xlu1 %v1689_v58 }
 0x8b2   : > { %v2058_v0 = vpop.xlane.xlu2 %2057 }
 0x8b3   : > { %v2159_v58 = vperm.slane %v2058_v0, %v8382_v33  ;;  %v2152_v0 = vsel %vm992_vm0, %v2151_v49, %v2150_v9  ;;  %v2171_v49 = vperm.slane %v8986_v31, %v8382_v33 }
 0x8b4   : > { %v2181_v41 = vsel %vm1039_vm2, %v2155_v30, %v2152_v0 }
 0x8b5   : > { %v2161_v15 = vsel %vm992_vm0, %v2160_v45, %v2159_v58  ;;  %v2182_v62 = vsel %vm1041_vm3, %v2158_v47, %v2181_v41  ;;  %v2711_v58 = vperm.slane %v9030_v21, %v8382_v33  ;;  %v2173_v61 = vsel %vm992_vm0, %v2172_v1, %v2171_v49 }
 0x8b6   : > { %v2183_v25 = vsel %vm1043_vm4, %v2161_v15, %v2182_v62  ;;  %v1684_v21 = vsub.f32 %v8783_v23, %v1682_v18  ;;  %v2764_v23 = vpop.f32.mrf.mxu1 }
 0x8b7   : > { %v2184_v60 = vsel %vm1045_vm5, %v2164_v3, %v2183_v25 }
 0x8b8   : > { %v1687_v36 = vmul.f32 1.442695, %v1684_v21 }
 0x8ba   : > { %v9022_v13 = vpop.xlane.xlu2 %2600  ;;  %6469 = vpow2.f32 %v1687_v36 }
 0x8c0   : > { %v6470_v62 = vpop.eup %6469 }
 0x8c2   : > { %v9026_v44 = vpop.xlane.xlu2 %2603 }
 0x8c3   : > { %v2705_v46 = vperm.slane %v9026_v44, %v8382_v33 }
 0x8c5   : > { %v2707_v6 = vsel %vm992_vm0, %v2706_v14, %v2705_v46 }
 0x8ca   : > { %v9028_v32 = vpop.xlane.xlu2 %2072 }
 0x8cb   : > { %v2166_v10 = vperm.slane %v9028_v32, %v8386_v53  ;;  %v2703_v32 = vperm.slane %v9022_v13, %v8386_v53 }
 0x8cd   : > { %v2167_v13 = vsel %vm992_vm0, %v2166_v10, %v2165_v52  ;;  %v2704_v40 = vsel %vm992_vm0, %v2703_v32, %v2702_v51  ;;  %v2715_v51 = vperm.slane %v8999_v54, %v8386_v53  ;;  %v1692_v32 = vsel %vm11404_vm9, %v6470_v62, 0.0 }
 0x8ce   : > { %v2185_v12 = vsel %vm1047_vm6, %v2167_v13, %v2184_v60  ;;  %v2728_v22 = vsel %vm1041_vm3, %v2704_v40, %v2727_v48 }
 0x8cf   : > { %v2729_v7 = vsel %vm1043_vm4, %v2707_v6, %v2728_v22 }
 0x8d2   : > { %v9040_v19 = vpop.xlane.xlu2 %2075 }
 0x8d3   : > { %v2168_v43 = vperm.slane %v9040_v19, %v8382_v33  ;;  %v2180_v19 = vsel %vm11405_vm8, %v2149_v24, %v2179_v5  ;;  %v11642_v5 = vld [vmem:[#allocation113_spill] sm:$0xff] }
 0x8d5   : > { %v2170_v44 = vsel %vm992_vm0, %v2169_v20, %v2168_v43 }
 0x8d6   : > { %v2186_v4 = vsel %vm1049_vm7, %v2170_v44, %v2185_v12 }
 0x8d7   : > { %v2187_v45 = vsel %vm11405_vm8, %v2173_v61, %v2186_v4 }
 0x8d9   : > { %v9086_v50 = vpop.f32.mrf.mxu0 }
 0x8da   : > { %v2619_v59 = vpop.xlane.xlu2 %2618 }
 0x8db   : > { %v2712_v56 = vperm.slane %v2619_v59, %v8386_v53  ;;  %v2709_v59 = vperm.slane %v9024_v38, %v8386_v53 }
 0x8dd   : > { %v2713_v34 = vsel %vm992_vm0, %v2712_v56, %v2711_v58  ;;  %v2710_v17 = vsel %vm992_vm0, %v2709_v59, %v2708_v63 }
 0x8de   : > { %v2730_v54 = vsel %vm1045_vm5, %v2710_v17, %v2729_v7 }
 0x8df   : > { %v2731_v29 = vsel %vm1047_vm6, %v2713_v34, %v2730_v54 }
 0x8e1   : > { %v2215_v9 = vpop.f32.mrf.mxu0 }
 0x8e2   : > { %v2216_v2 = vadd.f32 %v2215_v9, %v2180_v19  ;;  %v2622_v42 = vpop.xlane.xlu2 %2621 }
 0x8e3   : > { %v2714_v55 = vperm.slane %v2622_v42, %v8382_v33 }
 0x8e4   : > { %v2221_v16 = vmul.f32 0.35355338, %v2216_v2 }
 0x8e5   : > { %v2716_v30 = vsel %vm992_vm0, %v2715_v51, %v2714_v55 }
 0x8e6   : > { %v2223_v31 = vsel %vm11404_vm9, %v2221_v16, -inf  ;;  %v2732_v24 = vsel %vm1049_vm7, %v2716_v30, %v2731_v29 }
 0x8e7   : > { %2224 = vmax.xlane.f32.xlu2 %v2223_v31 }
 0x8e9   : > { %v2218_v0 = vpop.f32.mrf.mxu0 }
 0x8ea   : > { %v2219_v47 = vadd.f32 %v2218_v0, %v2187_v45  ;;  %v2631_v38 = vpop.xlane.xlu2 %2630 }
 0x8eb   : > { %v2718_v37 = vperm.slane %v2631_v38, %v8386_v53 }
 0x8ec   : > { %v2222_v15 = vmul.f32 0.35355338, %v2219_v47 }
 0x8ed   : > { %v2719_v10 = vsel %vm992_vm0, %v2718_v37, %v2717_v8 }
 0x8ee   : > { %v2226_v41 = vsel %vm11404_vm9, %v2222_v15, -inf  ;;  %v2733_v57 = vsel %vm11405_vm8, %v2719_v10, %v2732_v24 }
 0x8ef   : > { %2227 = vmax.xlane.f32.xlu0 %v2226_v41  ;;  %v2765_v43 = vadd.f32 %v2764_v23, %v2733_v57  ;;  %v2860_v41 = vld [vmem:[%s11270_s8 + $0x18] sm:$0xff]  ;;  %v2859_v57 = vld [vmem:[%s11270_s8 + $0x10] sm:$0xff] }
 0x8f0   : > { %2879 = vmatpush.msra.mxu0 %v2860_v41 }
 0x8f1   : > { %v2768_v26 = vmul.f32 0.35355338, %v2765_v43  ;;  %v2858_v43 = vld [vmem:[%s11270_s8 + $0x8] sm:$0xff] }
 0x8f2   : > { %2880 = vmatpush.msra.mxu0 %v2859_v57 }
 0x8f3   : > { %v2772_v52 = vsel %vm11404_vm9, %v2768_v26, -inf }
 0x8f4   : > { %2773 = vmax.xlane.f32.xlu2 %v2772_v52  ;;  %2881 = vmatpush.msra.mxu0 %v2858_v43  ;;  %v2857_v52 = vld [vmem:[%s11270_s8] sm:$0xff] }
 0x8f6   : > { %2882 = vmatpush.msra.mxu0 %v2857_v52 }
 0x8fc   : > { %1693 = vadd.xlane.f32.xlu2 %v1692_v32 }
 0x903   : > { %6344 = vrot.lane.b32.xlu0 %v11642_v5, %s11390_s14  ;;  %s11650_s14 = smov 72  }
 0x90f   : > { %v2771_v20 = vpop.xlane.xlu1 %2770 }
 0x910   : > { %v2775_v25 = vsub.f32 %v9001_v27, %v2771_v20 }
 0x912   : > { %v2777_v46 = vmul.f32 1.442695, %v2775_v25 }
 0x914   : > { %6471 = vpow2.f32 %v2777_v46 }
 0x91a   : > { %v6472_v19 = vpop.eup %6471 }
 0x91b   : > { %v2781_v9 = vsel %vm11404_vm9, %v6472_v19, 0.0 }
 0x91c   : > { %2782 = vadd.xlane.f32.xlu2 %v2781_v9 }
 0x922   : > { %v1691_v49 = vpop.xlane.xlu1 %1690 }
 0x934   : > { %6354 = vrot.lane.b32.xlu2 %v11642_v5, %s11386_s22  ;;  %s11651_s22 = smov 80  }
 0x95a   : > { %v2225_v1 = vpop.xlane.xlu2 %2224 }
 0x95b   : > { %v2229_v11 = vsub.f32 %v2221_v16, %v2225_v1 }
 0x95d   : > { %v2231_v13 = vmul.f32 1.442695, %v2229_v11 }
 0x95f   : > { %6473 = vpow2.f32 %v2231_v13 }
 0x962   : > { %v2228_v2 = vpop.xlane.xlu0 %2227 }
 0x963   : > { %v2230_v42 = vsub.f32 %v2222_v15, %v2228_v2 }
 0x965   : > { %v6474_v3 = vpop.eup %6473  ;;  %v2233_v14 = vmul.f32 1.442695, %v2230_v42 }
 0x966   : > { %v2235_v27 = vsel %vm11404_vm9, %v6474_v3, 0.0 }
 0x967   : > { %6475 = vpow2.f32 %v2233_v14  ;;  %2236 = vadd.xlane.f32.xlu1 %v2235_v27  ;;  %v2774_v39 = vpop.xlane.xlu2 %2773 }
 0x968   : > { %6477 = vrcp.f32 %v1691_v49  ;;  %v2776_v18 = vsub.f32 %v2768_v26, %v2774_v39 }
 0x96a   : > { %v2779_v51 = vmul.f32 1.442695, %v2776_v18 }
 0x96d   : > { %v6476_v44 = vpop.eup %6475 }
 0x96e   : > { %v2238_v40 = vsel %vm11404_vm9, %v6476_v44, 0.0  ;;  %v6478_v16 = vpop.eup %6477 }
 0x96f   : > { %2239 = vadd.xlane.f32.xlu0 %v2238_v40  ;;  %v1694_v60 = vpop.xlane.xlu2 %1693  ;;  %v1697_v12 = vmul.f32 %v6478_v16, %v9014_v35  ;;  %v11645_v16 = vld [vmem:[#allocation22_spill] sm:$0xff] }
 0x970   : > { %6479 = vrcp.f32 %v1694_v60 }
 0x975   : > { %v6345_v63 = vpop.permute.xlu0 %6344 }
 0x976   : > { %v6346_v6 = vunpack.i.l.bf16 %v6345_v63  ;;  %v6347_v56 = vunpack.i.h.bf16 %v6345_v63  ;;  %v6480_v48 = vpop.eup %6479 }
 0x977   : > { %v1698_v55 = vmul.f32 %v6480_v48, %v6470_v62 }
 0x978   : > { %1725 = vmatpush.msrb.mxu3 %v6346_v6 }
 0x97a   : > { %1726 = vmatpush.msrb.mxu3 %v6347_v56 }
 0x97b   : > { %6108 = vmatmul.msk.f32.vlgmr.msrb.gmra.mxu3 %vm11404_vm9, %v1697_v12 }
 0x980   : > { %6349 = vrot.lane.b32.xlu1 %v11642_v5, %s11387_s13  ;;  %s11654_s13 = smov 104  }
 0x983   : > { %6109 = vmatmul.msk.f32.gmra.mxu3 %vm11404_vm9, %v1698_v55 }
 0x98f   : > { %v2783_v31 = vpop.xlane.xlu2 %2782 }
 0x990   : > { %6481 = vrcp.f32 %v2783_v31 }
 0x991   : > { %6483 = vpow2.f32 %v2779_v51  ;;  %v2948_v51 = vld [vmem:[#allocation5] sm:$0xff] }
 0x996   : > { %v6482_v58 = vpop.eup %6481 }
 0x997   : > { %v6355_v4 = vpop.permute.xlu2 %6354  ;;  %v2789_v35 = vmul.f32 %v6482_v58, %v6472_v19  ;;  %v6484_v7 = vpop.eup %6483 }
 0x998   : > { %v6356_v22 = vunpack.i.l.bf16 %v6355_v4  ;;  %v6357_v59 = vunpack.i.h.bf16 %v6355_v4  ;;  %v2784_v61 = vsel %vm11404_vm9, %v6484_v7, 0.0 }
 0x99a   : > { %2817 = vmatpush.msra.mxu3 %v6356_v22  ;;  %v2951_v22 = vld [vmem:[#allocation5 + $0x18] sm:$0xff] }
 0x99c   : > { %2818 = vmatpush.msra.mxu3 %v6357_v59  ;;  %v2950_v59 = vld [vmem:[#allocation5 + $0x10] sm:$0xff] }
 0x99d   : > { %6120 = vmatmul.msk.f32.vlgmr.msra.gmra.mxu3 %vm11404_vm9, %v2789_v35  ;;  %v2949_v35 = vld [vmem:[#allocation5 + $0x8] sm:$0xff] }
 0x9aa   : > { %2785 = vadd.xlane.f32.xlu1 %v2784_v61 }
 0x9da   : > { %v2237_v34 = vpop.xlane.xlu1 %2236 }
 0x9db   : > { %6485 = vrcp.f32 %v2237_v34 }
 0x9e1   : > { %v6486_v21 = vpop.eup %6485 }
 0x9e2   : > { %v2240_v45 = vpop.xlane.xlu0 %2239  ;;  %v2243_v47 = vmul.f32 %v6486_v21, %v6474_v3  ;;  %v11643_v3 = vld [vmem:[#allocation62_spill] sm:$0xff] }
 0x9e3   : > { %6487 = vrcp.f32 %v2240_v45 }
 0x9e9   : > { %v6488_v38 = vpop.eup %6487 }
 0x9ea   : > { %v2244_v54 = vmul.f32 %v6488_v38, %v6476_v44  ;;  %v11644_v44 = vld [vmem:[#allocation64_spill] sm:$0xff]  ;;  %v6389_v38 = vld [vmem:[%s11266_s4 + $0xa] ss:$0 sm:$0xff] }
 0x9f2   : > { %v6350_v0 = vpop.permute.xlu1 %6349 }
 0x9f3   : > { %v6351_v17 = vunpack.i.l.bf16 %v6350_v0  ;;  %v6352_v30 = vunpack.i.h.bf16 %v6350_v0 }
 0x9f5   : > { %2271 = vmatpush.msra.mxu2 %v6351_v17 }
 0x9f7   : > { %2272 = vmatpush.msra.mxu2 %v6352_v30 }
 0x9f8   : > { %6114 = vmatmul.msk.f32.vlgmr.msra.gmra.mxu2 %vm11404_vm9, %v2243_v47 }
 0x9f9   : > { %2972 = vmatpush.msrb.mxu2 %v2951_v22  ;;  %v6396_v22 = vld [vmem:[%s11266_s4 + $0x1d] ss:$0 sm:$0xff] }
 0x9fb   : > { %2973 = vmatpush.msrb.mxu2 %v2950_v59  ;;  %v6397_v59 = vld [vmem:[%s11266_s4 + $0x1e] ss:$0 sm:$0xff] }
 0x9fd   : > { %2974 = vmatpush.msrb.mxu2 %v2949_v35 }
 0x9fe   : > { %v1728_v8 = vpop.f32.mrf.mxu3 }
 0x9ff   : > { %2828 = vrot.lane.b32.xlu2 %v1728_v8, %s11388_s25  ;;  %2975 = vmatpush.msrb.mxu2 %v2948_v51  ;;  %v6392_v51 = vld [vmem:[%s11266_s4 + $0x19] ss:$0 sm:$0xff] }
 0xa00   : > { %6115 = vmatmul.msk.f32.gmra.mxu2 %vm11404_vm9, %v2244_v54 }
 0xa06   : > { %v1731_v37 = vpop.f32.mrf.mxu3 }
 0xa07   : > { %2830 = vrot.lane.b32.xlu2 %v1731_v37, %s11388_s25  ;;  %v6390_v37 = vld [vmem:[%s11266_s4 + $0xb] ss:$0 sm:$0xff]  ;;  %s11861_s25 = smov 8  }
 0xa1d   : > { %v2786_v29 = vpop.xlane.xlu1 %2785 }
 0xa1e   : > { %6489 = vrcp.f32 %v2786_v29 }
 0xa20   : > { %v2820_v15 = vpop.f32.mrf.mxu3 }
 0xa21   : > { %2844 = vrot.lane.b32.xlu0 %v2820_v15, %s11399_s16 }
 0xa24   : > { %v6490_v10 = vpop.eup %6489 }
 0xa25   : > { %v2790_v24 = vmul.f32 %v6490_v10, %v6484_v7 }
 0xa27   : > { %6121 = vmatmul.msk.f32.gmra.mxu3 %vm11404_vm9, %v2790_v24 }
 0xa59   : > { %v2829_v62 = vpop.permute.xlu2 %2828 }
 0xa5a   : > { %v2850_v5 = vsel %vm1062_vm15, %v9036_v28, %v2829_v62  ;;  %v6388_v28 = vld [vmem:[%s11266_s4 + $0x7] ss:$0 sm:$0xff] }
 0xa61   : > { %v2831_v32 = vpop.permute.xlu2 %2830 }
 0xa62   : > { %v2851_v1 = vsel %vm1062_vm15, %v9086_v50, %v2831_v32 }
 0xa7b   : > { %v2274_v23 = vpop.f32.mrf.mxu2 }
 0xa7c   : > { %2836 = vrot.lane.b32.xlu2 %v2274_v23, %s11397_s24 }
 0xa83   : > { %v2277_v36 = vpop.f32.mrf.mxu2 }
 0xa84   : > { %2838 = vrot.lane.b32.xlu2 %v2277_v36, %s11397_s24  ;;  %s11862_s24 = smov 16  }
 0xa93   : > { %v2845_v25 = vpop.permute.xlu0 %2844 }
 0xaaa   : > { %v2823_v26 = vpop.f32.mrf.mxu3 }
 0xaab   : > { %2846 = vrot.lane.b32.xlu2 %v2823_v26, %s11399_s16 }
 0xad6   : > { %v2837_v20 = vpop.permute.xlu2 %2836 }
 0xad7   : > { %v2852_v46 = vsel %vm11404_vm9, %v2850_v5, %v2837_v20 }
 0xad8   : > { %v2855_v19 = vsel %vm11403_vm10, %v2852_v46, %v2845_v25  ;;  %v6391_v25 = vld [vmem:[%s11266_s4 + $0xc] ss:$0 sm:$0xff] }
 0xad9   : > { %6122 = vmatmul.msk.f32.vlgmr.msra.gmra.mxu0 %vm463_vm1, %v2855_v19 }
 0xade   : > { %v2839_v9 = vpop.permute.xlu2 %2838 }
 0xadf   : > { %v2853_v11 = vsel %vm11404_vm9, %v2851_v1, %v2839_v9 }
 0xb05   : > { %v2847_v13 = vpop.permute.xlu2 %2846 }
 0xb06   : > { %v2856_v2 = vsel %vm11403_vm10, %v2853_v11, %v2847_v13  ;;  %vm11409_vm10 = vcmask 1043456  }
 0xb07   : > { %6123 = vmatmul.msk.f32.gmra.mxu0 %vm463_vm1, %v2856_v2 }
 0xb56   : > { %v2884_v42 = vpop.f32.mrf.mxu0 }
 0xb57   : > { %v2890_v14 = vadd.f32 %v2884_v42, %v11643_v3 }
 0xb59   : > { %v9231_v27 = vadd.f32 %v6388_v28, %v2890_v14 }
 0xb5b   : > { %v2898_v39 = vsel %vm463_vm1, %v9231_v27, 0.0 }
 0xb5c   : > { %2899 = vadd.xlane.f32.xlu0 %v2898_v39 }
 0xb84   : > { %v2887_v50 = vpop.f32.mrf.mxu0 }
 0xb85   : > { %v2891_v49 = vadd.f32 %v2887_v50, %v11644_v44 }
 0xb87   : > { %v9236_v40 = vadd.f32 %v6388_v28, %v2891_v49 }
 0xb89   : > { %v2901_v60 = vsel %vm463_vm1, %v9236_v40, 0.0 }
 0xb8a   : > { %2902 = vadd.xlane.f32.xlu1 %v2901_v60  ;;  %v6129_v60 = vld [vmem:[%s11270_s8 + $0x38] sm:$0xff] }
 0xb8b   : > { %3195 = vmatpush.msra.mxu1 %v6129_v60 }
 0xbcf   : > { %v2900_v63 = vpop.xlane.xlu0 %2899 }
 0xbd0   : > { %v2904_v6 = vmul.f32 %v2900_v63, %v11645_v16  ;;  %v6128_v63 = vld [vmem:[%s11270_s8 + $0x30] sm:$0xff] }
 0xbd1   : > { %3196 = vmatpush.msra.mxu1 %v6128_v63 }
 0xbd2   : > { %v2906_v56 = vsub.f32 %v9231_v27, %v2904_v6 }
 0xbd4   : > { %v2908_v12 = vmul.f32 %v2906_v56, %v2906_v56 }
 0xbd6   : > { %v2910_v48 = vsel %vm463_vm1, %v2908_v12, 0.0  ;;  %v6126_v12 = vld [vmem:[%s11270_s8 + $0x20] sm:$0xff] }
 0xbd7   : > { %2911 = vadd.xlane.f32.xlu2 %v2910_v48 }
 0xbfd   : > { %v2903_v55 = vpop.xlane.xlu1 %2902 }
 0xbfe   : > { %v2905_v31 = vmul.f32 %v2903_v55, %v11645_v16  ;;  %v3135_v55 = vld [vmem:[%s11266_s4 + $0x11] sm:$0x1] }
 0xc00   : > { %v2907_v4 = vsub.f32 %v9236_v40, %v2905_v31  ;;  %v9276_v31 = vadd.f32 1e-05, %v3135_v55 }
 0xc02   : > { %v2909_v58 = vmul.f32 %v2907_v4, %v2907_v4  ;;  %vm3143_vm9 = vweird.f32 %v9276_v31 }
 0xc04   : > { %v2913_v18 = vsel %vm463_vm1, %v2909_v58, 0.0  ;;  %v6394_v58 = vld [vmem:[%s11266_s4 + $0x1b] ss:$0 sm:$0xff] }
 0xc05   : > { %2914 = vadd.xlane.f32.xlu1 %v2913_v18  ;;  %v6395_v18 = vld [vmem:[%s11266_s4 + $0x1c] ss:$0 sm:$0xff] }
 0xc4a   : > { %v2912_v7 = vpop.xlane.xlu2 %2911 }
 0xc4b   : > { %v2916_v61 = vmul.f32 %v2912_v7, %v11645_v16  ;;  %v6398_v7 = vld [vmem:[%s11266_s4 + $0x1f] ss:$0 sm:$0xff] }
 0xc4d   : > { %v2918_v34 = vadd.f32 1e-05, %v2916_v61 }
 0xc4f   : > { %6491 = vrsqrt.f32 %v2918_v34  ;;  %vm2926_vm12 = vweird.f32 %v2918_v34 }
 0xc55   : > { %v6492_v45 = vpop.eup %6491 }
 0xc56   : > { %v2921_v0 = vmul.f32 %v6492_v45, %v2918_v34  ;;  %vm2927_vm11 = vweird.f32 %v6492_v45 }
 0xc57   : > { %vm2928_vm13 = vmor %vm2926_vm12, %vm2927_vm11 }
 0xc58   : > { %v2922_v21 = vmul.f32 %v6492_v45, %v2921_v0 }
 0xc5a   : > { %v2923_v17 = vmul.f32 0.5, %v2922_v21 }
 0xc5c   : > { %v2924_v30 = vsub.f32 1.5, %v2923_v17 }
 0xc5e   : > { %v2925_v47 = vmul.f32 %v6492_v45, %v2924_v30 }
 0xc60   : > { %v2929_v8 = vsel %vm2928_vm13, %v6492_v45, %v2925_v47  ;;  %vm3005_vm13 = vcmask 1042432  }
 0xc61   : > { %v2940_v54 = vmul.f32 %v2929_v8, %v2906_v56  ;;  %v6127_v56 = vld [vmem:[%s11270_s8 + $0x28] sm:$0xff] }
 0xc62   : > { %3197 = vmatpush.msra.mxu1 %v6127_v56 }
 0xc63   : > { %v2943_v29 = vmul.f32 %v6389_v38, %v2940_v54 }
 0xc64   : > { %3198 = vmatpush.msra.mxu1 %v6126_v12 }
 0xc65   : > { %v2946_v15 = vadd.f32 %v6390_v37, %v2943_v29 }
 0xc67   : > { %6124 = vmatmul.msk.f32.vlgmr.msrb.gmra.mxu2 %vm463_vm1, %v2946_v15 }
 0xc78   : > { %v2915_v10 = vpop.xlane.xlu1 %2914 }
 0xc79   : > { %v2917_v24 = vmul.f32 %v2915_v10, %v11645_v16 }
 0xc7b   : > { %v2919_v23 = vadd.f32 1e-05, %v2917_v24 }
 0xc7d   : > { %6493 = vrsqrt.f32 %v2919_v23  ;;  %vm2936_vm11 = vweird.f32 %v2919_v23 }
 0xc83   : > { %v6494_v36 = vpop.eup %6493 }
 0xc84   : > { %v2931_v41 = vmul.f32 %v6494_v36, %v2919_v23  ;;  %vm2937_vm14 = vweird.f32 %v6494_v36 }
 0xc85   : > { %vm2938_vm12 = vmor %vm2936_vm11, %vm2937_vm14  ;;  %vm11410_vm14 = vcmask 1046528   ;;  %vm11406_vm11 = vcmask 1045504  }
 0xc86   : > { %v2932_v57 = vmul.f32 %v6494_v36, %v2931_v41 }
 0xc88   : > { %v2933_v43 = vmul.f32 0.5, %v2932_v57 }
 0xc8a   : > { %v2934_v26 = vsub.f32 1.5, %v2933_v43 }
 0xc8c   : > { %v2935_v52 = vmul.f32 %v6494_v36, %v2934_v26 }
 0xc8e   : > { %v2939_v62 = vsel %vm2938_vm12, %v6494_v36, %v2935_v52  ;;  %vm11407_vm12 = vcmask 1044480  }
 0xc8f   : > { %v2941_v32 = vmul.f32 %v2939_v62, %v2907_v4  ;;  %v6393_v4 = vld [vmem:[%s11266_s4 + $0x1a] ss:$0 sm:$0xff] }
 0xc91   : > { %v2944_v5 = vmul.f32 %v6389_v38, %v2941_v32 }
 0xc93   : > { %v2947_v20 = vadd.f32 %v6390_v37, %v2944_v5 }
 0xc95   : > { %6125 = vmatmul.msk.f32.gmra.mxu2 %vm463_vm1, %v2947_v20 }
 0xcea   : > { %v2977_v46 = vpop.f32.mrf.mxu2 }
 0xceb   : > { %v2978_v19 = vadd.f32 %v6391_v25, %v2977_v46 }
 0xced   : > { %v2983_v9 = vsub.f32 0.0, %v2978_v19 }
 0xcef   : > { %v2985_v1 = vmul.f32 1.442695, %v2983_v9 }
 0xcf1   : > { %6495 = vpow2.f32 %v2985_v1 }
 0xcf7   : > { %v6496_v11 = vpop.eup %6495 }
 0xcf8   : > { %v2989_v13 = vadd.f32 1.0, %v6496_v11 }
 0xcfa   : > { %6497 = vrcp.f32 %v2989_v13 }
 0xd00   : > { %v6498_v2 = vpop.eup %6497 }
 0xd01   : > { %2995 = vrot.lane.b32.xlu1 %v6498_v2, %s11401_s26 }
 0xd18   : > { %v2980_v28 = vpop.f32.mrf.mxu2 }
 0xd19   : > { %v2981_v42 = vadd.f32 %v6391_v25, %v2980_v28 }
 0xd1b   : > { %v2984_v3 = vsub.f32 0.0, %v2981_v42 }
 0xd1d   : > { %v2987_v14 = vmul.f32 1.442695, %v2984_v3 }
 0xd1f   : > { %6499 = vpow2.f32 %v2987_v14 }
 0xd25   : > { %v6500_v39 = vpop.eup %6499 }
 0xd26   : > { %v2990_v50 = vadd.f32 1.0, %v6500_v39 }
 0xd28   : > { %6501 = vrcp.f32 %v2990_v50 }
 0xd29   : > { %6503 = vrsqrt.f32 %v9276_v31 }
 0xd2e   : > { %v6502_v44 = vpop.eup %6501 }
 0xd2f   : > { %2997 = vrot.lane.b32.xlu1 %v6502_v44, %s11401_s26  ;;  %v9303_v47 = vpop.eup %6503  ;;  %s11652_s26 = smov 112  }
 0xd30   : > { %v3138_v26 = vmul.f32 %v9303_v47, %v9276_v31  ;;  %vm3144_vm8 = vweird.f32 %v9303_v47 }
 0xd73   : > { %v2996_v49 = vpop.permute.xlu1 %2995 }
 0xd74   : > { %v3001_v6 = vmul.f32 %v2996_v49, %v2978_v19 }
 0xd76   : > { %v3006_v48 = vrot.slane %v3001_v6, 5 }
 0xd78   : > { %v3012_v35 = vsel %vm3005_vm13, 0.0, %v3006_v48 }
 0xd79   : > { %v3022_v61 = vmul.f32 %v6393_v4, %v3012_v35  ;;  %v3040_v34 = vmul.f32 %v6394_v58, %v3012_v35  ;;  %v3058_v45 = vmul.f32 %v6395_v18, %v3012_v35  ;;  %v3076_v21 = vmul.f32 %v6396_v22, %v3012_v35 }
 0xd7a   : > { %v9301_v17 = vmul.f32 %v6397_v59, %v3012_v35  ;;  %v3016_v38 = vmul.f32 %v6392_v51, %v3012_v35  ;;  %v9305_v15 = vmul.f32 %v6398_v7, %v3012_v35 }
 0xd7b   : > { %v3029_v54 = vrot.slane %v3022_v61, 1  ;;  %v3047_v37 = vrot.slane %v3040_v34, 2  ;;  %v3065_v29 = vrot.slane %v3058_v45, 3  ;;  %v3083_v10 = vrot.slane %v3076_v21, 4 }
 0xd7c   : > { %v3100_v24 = vrot.slane %v9301_v17, 5 }
 0xda1   : > { %v2998_v0 = vpop.permute.xlu1 %2997 }
 0xda2   : > { %v3002_v30 = vmul.f32 %v2998_v0, %v2981_v42  ;;  %v3139_v42 = vmul.f32 %v9303_v47, %v3138_v26 }
 0xda4   : > { %v3007_v8 = vrot.slane %v3002_v30, 5 }
 0xda6   : > { %v3008_v23 = vsel %vm3005_vm13, %v3006_v48, %v3007_v8  ;;  %v3013_v36 = vsel %vm3005_vm13, %v3007_v8, 0.0 }
 0xda7   : > { %v3023_v41 = vmul.f32 %v6393_v4, %v3008_v23  ;;  %v3024_v57 = vmul.f32 %v6393_v4, %v3013_v36  ;;  %v3041_v43 = vmul.f32 %v6394_v58, %v3008_v23  ;;  %v3042_v52 = vmul.f32 %v6394_v58, %v3013_v36 }
 0xda8   : > { %v3059_v62 = vmul.f32 %v6395_v18, %v3008_v23  ;;  %v3060_v32 = vmul.f32 %v6395_v18, %v3013_v36  ;;  %v3077_v5 = vmul.f32 %v6396_v22, %v3008_v23  ;;  %v3078_v19 = vmul.f32 %v6396_v22, %v3013_v36 }
 0xda9   : > { %v3030_v20 = vrot.slane %v3023_v41, 1  ;;  %v3032_v25 = vrot.slane %v3024_v57, 1  ;;  %v3048_v46 = vrot.slane %v3041_v43, 2  ;;  %v3017_v9 = vmul.f32 %v6392_v51, %v3008_v23 }
 0xdaa   : > { %v3050_v1 = vrot.slane %v3042_v52, 2  ;;  %v3066_v11 = vrot.slane %v3059_v62, 3  ;;  %v3068_v28 = vrot.slane %v3060_v32, 3  ;;  %v3084_v50 = vrot.slane %v3077_v5, 4  ;;  %v6401_v52 = vld [vmem:[%s11266_s4 + $0xe] ss:$0 sm:$0xff] }
 0xdab   : > { %v3031_v13 = vsel %vm11410_vm14, %v3029_v54, %v3030_v20  ;;  %v3033_v2 = vsel %vm11410_vm14, %v3030_v20, %v3032_v25  ;;  %v3049_v39 = vsel %vm11406_vm11, %v3047_v37, %v3048_v46  ;;  %v3086_v60 = vrot.slane %v3078_v19, 4  ;;  %v6399_v37 = vld [vmem:[%s11266_s4 + $0xd] ss:$0 sm:$0xff] }
 0xdac   : > { %v3036_v3 = vadd.f32 %v3031_v13, %v3016_v38  ;;  %v3037_v14 = vadd.f32 %v3033_v2, %v3017_v9  ;;  %v3051_v44 = vsel %vm11406_vm11, %v3048_v46, %v3050_v1  ;;  %v3067_v49 = vsel %vm11407_vm12, %v3065_v29, %v3066_v11 }
 0xdad   : > { %v3095_v63 = vmul.f32 %v6397_v59, %v3008_v23  ;;  %v3096_v12 = vmul.f32 %v6397_v59, %v3013_v36  ;;  %v3112_v48 = vmul.f32 %v6398_v7, %v3008_v23  ;;  %v3069_v55 = vsel %vm11407_vm12, %v3066_v11, %v3068_v28  ;;  %vm3145_vm12 = vmor %vm3143_vm9, %vm3144_vm8 }
 0xdae   : > { %v3054_v6 = vadd.f32 %v3049_v39, %v3036_v3  ;;  %v3055_v56 = vadd.f32 %v3051_v44, %v3037_v14  ;;  %v3113_v58 = vmul.f32 %v6398_v7, %v3013_v36  ;;  %v3140_v18 = vmul.f32 0.5, %v3139_v42 }
 0xdaf   : > { %v3101_v4 = vrot.slane %v3095_v63, 5  ;;  %v3085_v51 = vsel %vm11409_vm10, %v3083_v10, %v3084_v50  ;;  %v3103_v61 = vrot.slane %v3096_v12, 5  ;;  %v3087_v34 = vsel %vm11409_vm10, %v3084_v50, %v3086_v60 }
 0xdb0   : > { %v3072_v22 = vadd.f32 %v3067_v49, %v3054_v6  ;;  %v3073_v35 = vadd.f32 %v3069_v55, %v3055_v56  ;;  %v3119_v45 = vrot.slane %v3112_v48, 6  ;;  %v3121_v0 = vrot.slane %v3113_v58, 6  ;;  %v6403_v49 = vld [vmem:[%s11266_s4 + $0x12] ss:$0 sm:$0xff] }
 0xdb1   : > { %v3141_v21 = vsub.f32 1.5, %v3140_v18  ;;  %vm11408_vm11 = vcmask 1041408   ;;  %v3118_v59 = vrot.slane %v9305_v15, 6  ;;  %v3102_v7 = vsel %vm3005_vm13, %v3100_v24, %v3101_v4  ;;  %v6400_v15 = vld [vmem:[%s11266_s4 + $0x10] ss:$0 sm:$0xff] }
 0xdb2   : > { %v3090_v17 = vadd.f32 %v3085_v51, %v3072_v22  ;;  %v3091_v30 = vadd.f32 %v3087_v34, %v3073_v35  ;;  %v3104_v38 = vsel %vm3005_vm13, %v3101_v4, %v3103_v61  ;;  %v3122_v31 = vsel %vm11408_vm11, %v3119_v45, %v3121_v0  ;;  %v6135_v0 = vld [vmem:[%s11271_s9 + $0x38] sm:$0xff] }
 0xdb3   : > { %v3142_v8 = vmul.f32 %v9303_v47, %v3141_v21  ;;  %v3120_v10 = vsel %vm11408_vm11, %v3118_v59, %v3119_v45  ;;  %v6134_v21 = vld [vmem:[%s11271_s9 + $0x30] sm:$0xff]  ;;  %3285 = vmatpush.msrb.mxu3 %v6135_v0  ;;  %v6132_v59 = vld [vmem:[%s11271_s9 + $0x20] sm:$0xff] }
 0xdb4   : > { %v3107_v54 = vadd.f32 %v3102_v7, %v3090_v17  ;;  %v3108_v29 = vadd.f32 %v3104_v38, %v3091_v30  ;;  %v6133_v17 = vld [vmem:[%s11271_s9 + $0x28] sm:$0xff] }
 0xdb5   : > { %v3146_v23 = vsel %vm3145_vm12, %v9303_v47, %v3142_v8  ;;  %v6402_v47 = vld [vmem:[%s11266_s4 + $0xf] ss:$0 sm:$0xff]  ;;  %3286 = vmatpush.msrb.mxu3 %v6134_v21  ;;  %v6153_v8 = vld [vmem:[%s11272_s10 + $0xf8] sm:$0xff] }
 0xdb6   : > { %v3125_v36 = vadd.f32 %v3120_v10, %v3107_v54  ;;  %v3126_v24 = vadd.f32 %v3122_v31, %v3108_v29  ;;  %v3147_v57 = vperm.slane %v3146_v23, 0  ;;  %v6152_v54 = vld [vmem:[%s11272_s10 + $0xf0] sm:$0xff]  ;;  %3327 = vmatpush.msrb.mxu0 %v6153_v8 }
 0xdb7   : > { %3287 = vmatpush.msrb.mxu3 %v6133_v17 }
 0xdb8   : > { %v3129_v41 = vadd.f32 %v6399_v37, %v3125_v36  ;;  %v3130_v43 = vadd.f32 %v6399_v37, %v3126_v24  ;;  %v6151_v37 = vld [vmem:[%s11272_s10 + $0xe8] sm:$0xff]  ;;  %3328 = vmatpush.msrb.mxu0 %v6152_v54 }
 0xdb9   : > { %3288 = vmatpush.msrb.mxu3 %v6132_v59 }
 0xdba   : > { %v3133_v26 = vsub.f32 %v3129_v41, %v6400_v15  ;;  %v3134_v62 = vsub.f32 %v3130_v43, %v6400_v15  ;;  %3329 = vmatpush.msrb.mxu0 %v6151_v37 }
 0xdbc   : > { %v3148_v32 = vmul.f32 %v3147_v57, %v3133_v26  ;;  %v3149_v5 = vmul.f32 %v3147_v57, %v3134_v62 }
 0xdbe   : > { %v3152_v20 = vmul.f32 %v6401_v52, %v3148_v32  ;;  %v3153_v25 = vmul.f32 %v6401_v52, %v3149_v5  ;;  %v6404_v52 = vld [vmem:[%s11266_s4 + $0x13] ss:$0 sm:$0xff]  ;;  %v6405_v5 = vld [vmem:[%s11266_s4 + $0x14] ss:$0 sm:$0xff] }
 0xdc0   : > { %v3156_v46 = vadd.f32 %v6402_v47, %v3152_v20  ;;  %v3157_v19 = vadd.f32 %v6402_v47, %v3153_v25 }
 0xdc2   : > { %v3158_v9 = vsub.f32 0.0, %v3156_v46  ;;  %v3159_v1 = vsub.f32 0.0, %v3157_v19 }
 0xdc4   : > { %v3160_v11 = vmul.f32 1.442695, %v3158_v9  ;;  %v3162_v13 = vmul.f32 1.442695, %v3159_v1 }
 0xdc6   : > { %6505 = vpow2.f32 %v3160_v11 }
 0xdc7   : > { %6507 = vpow2.f32 %v3162_v13 }
 0xdcc   : > { %v6506_v2 = vpop.eup %6505 }
 0xdcd   : > { %v3164_v28 = vadd.f32 1.0, %v6506_v2  ;;  %v6508_v42 = vpop.eup %6507 }
 0xdce   : > { %v3165_v3 = vadd.f32 1.0, %v6508_v42  ;;  %v6149_v42 = vld [vmem:[%s11272_s10 + $0xd8] sm:$0xff] }
 0xdcf   : > { %6509 = vrcp.f32 %v3164_v28  ;;  %v6150_v28 = vld [vmem:[%s11272_s10 + $0xe0] sm:$0xff] }
 0xdd0   : > { %6511 = vrcp.f32 %v3165_v3  ;;  %3330 = vmatpush.msrb.mxu0 %v6150_v28  ;;  %v6148_v3 = vld [vmem:[%s11272_s10 + $0xd0] sm:$0xff] }
 0xdd2   : > { %3331 = vmatpush.msrb.mxu0 %v6149_v42 }
 0xdd4   : > { %3332 = vmatpush.msrb.mxu0 %v6148_v3 }
 0xdd5   : > { %v6510_v14 = vpop.eup %6509 }
 0xdd6   : > { %v3168_v39 = vmul.f32 %v6510_v14, %v3156_v46  ;;  %v6512_v50 = vpop.eup %6511  ;;  %v6147_v14 = vld [vmem:[%s11272_s10 + $0xc8] sm:$0xff] }
 0xdd7   : > { %v3169_v44 = vmul.f32 %v6512_v50, %v3157_v19  ;;  %v6146_v50 = vld [vmem:[%s11272_s10 + $0xc0] sm:$0xff]  ;;  %3333 = vmatpush.msrb.mxu0 %v6147_v14 }
 0xdd8   : > { %6130 = vmatmul.msk.f32.vlgmr.msra.gmra.mxu1 %vm463_vm1, %v3168_v39  ;;  %v6406_v39 = vld [vmem:[%s11266_s4 + $0x15] ss:$0 sm:$0xff] }
 0xdd9   : > { %3334 = vmatpush.msrb.mxu0 %v6146_v50 }
 0xde0   : > { %6131 = vmatmul.msk.f32.gmra.mxu1 %vm463_vm1, %v3169_v44  ;;  %v6145_v44 = vld [vmem:[%s11272_s10 + $0xb8] sm:$0xff] }
 0xde1   : > { %3335 = vmatpush.msrb.mxu0 %v6145_v44 }
 0xe55   : > { %v3200_v60 = vpop.f32.mrf.mxu1 }
 0xe56   : > { %v3201_v63 = vadd.f32 %v6403_v49, %v3200_v60 }
 0xe58   : > { %v9352_v6 = vadd.f32 %v3201_v63, %v9231_v27  ;;  %v6144_v63 = vld [vmem:[%s11272_s10 + $0xb0] sm:$0xff] }
 0xe59   : > { %3336 = vmatpush.msrb.mxu0 %v6144_v63 }
 0xe5a   : > { %v3210_v56 = vsel %vm463_vm1, %v9352_v6, 0.0 }
 0xe5b   : > { %3211 = vadd.xlane.f32.xlu0 %v3210_v56 }
 0xe5d   : > { %v3203_v12 = vpop.f32.mrf.mxu1 }
 0xe5e   : > { %v3204_v48 = vadd.f32 %v6403_v49, %v3203_v12  ;;  %v6143_v12 = vld [vmem:[%s11272_s10 + $0xa8] sm:$0xff] }
 0xe5f   : > { %3337 = vmatpush.msrb.mxu0 %v6143_v12 }
 0xe60   : > { %v9357_v55 = vadd.f32 %v3204_v48, %v9236_v40 }
 0xe62   : > { %v3213_v4 = vsel %vm463_vm1, %v9357_v55, 0.0 }
 0xe63   : > { %3214 = vadd.xlane.f32.xlu2 %v3213_v4  ;;  %v6142_v4 = vld [vmem:[%s11272_s10 + $0xa0] sm:$0xff] }
 0xe64   : > { %3338 = vmatpush.msrb.mxu0 %v6142_v4 }
 0xece   : > { %v3212_v58 = vpop.xlane.xlu0 %3211 }
 0xecf   : > { %v3216_v18 = vmul.f32 %v3212_v58, %v11645_v16  ;;  %v6141_v58 = vld [vmem:[%s11272_s10 + $0x98] sm:$0xff] }
 0xed0   : > { %3339 = vmatpush.msrb.mxu0 %v6141_v58 }
 0xed1   : > { %v3218_v22 = vsub.f32 %v9352_v6, %v3216_v18 }
 0xed3   : > { %v3220_v27 = vmul.f32 %v3218_v22, %v3218_v22 }
 0xed5   : > { %v3222_v35 = vsel %vm463_vm1, %v3220_v27, 0.0  ;;  %v6140_v27 = vld [vmem:[%s11272_s10 + $0x90] sm:$0xff] }
 0xed6   : > { %3223 = vadd.xlane.f32.xlu1 %v3222_v35  ;;  %v3215_v51 = vpop.xlane.xlu2 %3214  ;;  %3340 = vmatpush.msrb.mxu0 %v6140_v27 }
 0xed7   : > { %v3217_v61 = vmul.f32 %v3215_v51, %v11645_v16  ;;  %v6139_v51 = vld [vmem:[%s11272_s10 + $0x88] sm:$0xff] }
 0xed8   : > { %3341 = vmatpush.msrb.mxu0 %v6139_v51 }
 0xed9   : > { %v3219_v34 = vsub.f32 %v9357_v55, %v3217_v61 }
 0xedb   : > { %v3221_v40 = vmul.f32 %v3219_v34, %v3219_v34 }
 0xedd   : > { %v3225_v45 = vsel %vm463_vm1, %v3221_v40, 0.0  ;;  %v6138_v40 = vld [vmem:[%s11272_s10 + $0x80] sm:$0xff] }
 0xede   : > { %3226 = vadd.xlane.f32.xlu0 %v3225_v45  ;;  %3342 = vmatpush.msrb.mxu0 %v6138_v40 }
 0xf49   : > { %v3224_v30 = vpop.xlane.xlu1 %3223 }
 0xf4a   : > { %v3228_v7 = vmul.f32 %v3224_v30, %v11645_v16 }
 0xf4c   : > { %v3230_v38 = vadd.f32 1e-05, %v3228_v7 }
 0xf4e   : > { %6513 = vrsqrt.f32 %v3230_v38  ;;  %vm3238_vm9 = vweird.f32 %v3230_v38 }
 0xf51   : > { %v3227_v29 = vpop.xlane.xlu0 %3226 }
 0xf52   : > { %v3229_v10 = vmul.f32 %v3227_v29, %v11645_v16 }
 0xf54   : > { %v6514_v23 = vpop.eup %6513  ;;  %v3231_v31 = vadd.f32 1e-05, %v3229_v10 }
 0xf55   : > { %v3233_v36 = vmul.f32 %v6514_v23, %v3230_v38  ;;  %vm3239_vm8 = vweird.f32 %v6514_v23  ;;  %v6407_v38 = vld [vmem:[%s11266_s4 + $0x16] ss:$0 sm:$0xff] }
 0xf56   : > { %6515 = vrsqrt.f32 %v3231_v31  ;;  %vm3240_vm12 = vmor %vm3238_vm9, %vm3239_vm8  ;;  %vm3248_vm10 = vweird.f32 %v3231_v31 }
 0xf57   : > { %v3234_v15 = vmul.f32 %v6514_v23, %v3233_v36 }
 0xf59   : > { %v3235_v24 = vmul.f32 0.5, %v3234_v15 }
 0xf5b   : > { %v3236_v41 = vsub.f32 1.5, %v3235_v24 }
 0xf5c   : > { %v6516_v57 = vpop.eup %6515 }
 0xf5d   : > { %v3237_v43 = vmul.f32 %v6514_v23, %v3236_v41  ;;  %v3243_v26 = vmul.f32 %v6516_v57, %v3231_v31  ;;  %vm3249_vm11 = vweird.f32 %v6516_v57 }
 0xf5e   : > { %vm3250_vm14 = vmor %vm3248_vm10, %vm3249_vm11 }
 0xf5f   : > { %v3241_v62 = vsel %vm3240_vm12, %v6514_v23, %v3237_v43  ;;  %v3244_v32 = vmul.f32 %v6516_v57, %v3243_v26 }
 0xf60   : > { %v3252_v47 = vmul.f32 %v3241_v62, %v3218_v22 }
 0xf61   : > { %v3245_v20 = vmul.f32 0.5, %v3244_v32 }
 0xf62   : > { %v3255_v25 = vmul.f32 %v6404_v52, %v3252_v47 }
 0xf63   : > { %v3246_v46 = vsub.f32 1.5, %v3245_v20 }
 0xf64   : > { %v3258_v19 = vadd.f32 %v6405_v5, %v3255_v25 }
 0xf65   : > { %v3247_v9 = vmul.f32 %v6516_v57, %v3246_v46 }
 0xf66   : > { %6136 = vmatmul.msk.f32.vlgmr.msrb.gmra.mxu3 %vm463_vm1, %v3258_v19 }
 0xf67   : > { %v3251_v1 = vsel %vm3250_vm14, %v6516_v57, %v3247_v9 }
 0xf68   : > { %v3253_v11 = vmul.f32 %v3251_v1, %v3219_v34 }
 0xf6a   : > { %v3256_v13 = vmul.f32 %v6404_v52, %v3253_v11 }
 0xf6c   : > { %v3259_v2 = vadd.f32 %v6405_v5, %v3256_v13 }
 0xf6e   : > { %6137 = vmatmul.msk.f32.gmra.mxu3 %vm463_vm1, %v3259_v2 }
 0xfe9   : > { %v3290_v49 = vpop.f32.mrf.mxu3 }
 0xfea   : > { %v3291_v60 = vadd.f32 %v6406_v39, %v3290_v49 }
 0xfec   : > { %v3296_v56 = vsub.f32 0.0, %v3291_v60 }
 0xfee   : > { %v3298_v48 = vmul.f32 1.442695, %v3296_v56 }
 0xff0   : > { %6517 = vpow2.f32 %v3298_v48 }
 0xff1   : > { %v3293_v18 = vpop.f32.mrf.mxu3 }
 0xff2   : > { %v3294_v22 = vadd.f32 %v6406_v39, %v3293_v18  ;;  %v6408_v39 = vld [vmem:[%s11266_s4 + $0x17] ss:$0 sm:$0xff] }
 0xff4   : > { %v3297_v35 = vsub.f32 0.0, %v3294_v22 }
 0xff6   : > { %v6518_v61 = vpop.eup %6517  ;;  %v3300_v34 = vmul.f32 1.442695, %v3297_v35 }
 0xff7   : > { %v3302_v45 = vadd.f32 1.0, %v6518_v61 }
 0xff8   : > { %6519 = vpow2.f32 %v3300_v34 }
 0xff9   : > { %6521 = vrcp.f32 %v3302_v45 }
 0xffe   : > { %v6520_v0 = vpop.eup %6519 }
 0xfff   : > { %v6522_v21 = vpop.eup %6521  ;;  %v3303_v17 = vadd.f32 1.0, %v6520_v0 }
0x1000   : > { %v3306_v30 = vmul.f32 %v6522_v21, %v3291_v60  ;;  %v6409_v60 = vld [vmem:[%s11266_s4 + $0x18] ss:$0 sm:$0xff] }
0x1001   : > { %6523 = vrcp.f32 %v3303_v17 }
0x1002   : > { %3343 = vmatmul.f32.vlgmr.msrb.gmra.mxu0 %v3306_v30 }
0x1007   : > { %v6524_v59 = vpop.eup %6523 }
0x1008   : > { %v3307_v7 = vmul.f32 %v6524_v59, %v3294_v22 }
0x100a   : > { %3346 = vmatmul.f32.gmra.mxu0 %v3307_v7 }
0x107f   : > { %v3344_v8 = vpop.f32.mrf.mxu0 }
0x1080   : > { %v3345_v54 = vadd.f32 %v6407_v38, %v3344_v8  ;;  %v6156_v8 = vld [vmem:[%s11271_s9 + $0x50] sm:$0xff] }
0x1082   : > { %v3350_v37 = vmul.f32 0.5, %v3345_v54  ;;  %v6155_v54 = vld [vmem:[%s11271_s9 + $0x48] sm:$0xff] }
0x1084   : > { %v3352_v29 = vadd.f32 %v3350_v37, %v9352_v6 }
0x1086   : > { %v3356_v10 = vsel %vm463_vm1, %v3352_v29, 0.0 }
0x1087   : > { %3357 = vadd.xlane.f32.xlu2 %v3356_v10  ;;  %v3347_v23 = vpop.f32.mrf.mxu0 }
0x1088   : > { %v3348_v31 = vadd.f32 %v6407_v38, %v3347_v23  ;;  %v6157_v38 = vld [vmem:[%s11271_s9 + $0x58] sm:$0xff] }
0x1089   : > { %3483 = vmatpush.msra.mxu2 %v6157_v38 }
0x108a   : > { %v3351_v36 = vmul.f32 0.5, %v3348_v31  ;;  %v6175_v31 = vld [vmem:[%s11272_s10 + $0x178] sm:$0xff] }
0x108b   : > { %3484 = vmatpush.msra.mxu2 %v6156_v8  ;;  %3525 = vmatpush.msrb.mxu1 %v6175_v31 }
0x108c   : > { %v3353_v15 = vadd.f32 %v3351_v36, %v9357_v55  ;;  %v6174_v36 = vld [vmem:[%s11272_s10 + $0x170] sm:$0xff] }
0x108d   : > { %3485 = vmatpush.msra.mxu2 %v6155_v54  ;;  %3526 = vmatpush.msrb.mxu1 %v6174_v36 }
0x108e   : > { %v3359_v24 = vsel %vm463_vm1, %v3353_v15, 0.0 }
0x108f   : > { %3360 = vadd.xlane.f32.xlu0 %v3359_v24 }
0x10fa   : > { %v3358_v41 = vpop.xlane.xlu2 %3357 }
0x10fb   : > { %v3362_v57 = vmul.f32 %v3358_v41, %v11645_v16 }
0x10fd   : > { %v3364_v43 = vsub.f32 %v3352_v29, %v3362_v57  ;;  %v6154_v29 = vld [vmem:[%s11271_s9 + $0x40] sm:$0xff] }
0x10fe   : > { %3486 = vmatpush.msra.mxu2 %v6154_v29 }
0x10ff   : > { %v3366_v26 = vmul.f32 %v3364_v43, %v3364_v43 }
0x1101   : > { %v3368_v52 = vsel %vm463_vm1, %v3366_v26, 0.0 }
0x1102   : > { %v3361_v62 = vpop.xlane.xlu0 %3360  ;;  %3369 = vadd.xlane.f32.xlu2 %v3368_v52 }
0x1103   : > { %v3363_v6 = vmul.f32 %v3361_v62, %v11645_v16 }
0x1105   : > { %v3365_v32 = vsub.f32 %v3353_v15, %v3363_v6  ;;  %v6173_v15 = vld [vmem:[%s11272_s10 + $0x168] sm:$0xff] }
0x1106   : > { %3527 = vmatpush.msrb.mxu1 %v6173_v15 }
0x1107   : > { %v3367_v47 = vmul.f32 %v3365_v32, %v3365_v32 }
0x1109   : > { %v3371_v5 = vsel %vm463_vm1, %v3367_v47, 0.0 }
0x110a   : > { %3372 = vadd.xlane.f32.xlu0 %v3371_v5 }
0x1175   : > { %v3370_v55 = vpop.xlane.xlu2 %3369 }
0x1176   : > { %v3374_v20 = vmul.f32 %v3370_v55, %v11645_v16  ;;  %v6410_v55 = vld [vmem:[%s11266_s4 + $0x20] ss:$0 sm:$0xff] }
0x1178   : > { %v3376_v25 = vadd.f32 1e-05, %v3374_v20 }
0x117a   : > { %6525 = vrsqrt.f32 %v3376_v25  ;;  %vm3384_vm14 = vweird.f32 %v3376_v25 }
0x117d   : > { %v3373_v46 = vpop.xlane.xlu0 %3372 }
0x117e   : > { %v3375_v19 = vmul.f32 %v3373_v46, %v11645_v16 }
0x1180   : > { %v6526_v9 = vpop.eup %6525  ;;  %v3377_v1 = vadd.f32 1e-05, %v3375_v19  ;;  %v6411_v19 = vld [vmem:[%s11266_s4 + $0x21] ss:$0 sm:$0xff] }
0x1181   : > { %v3379_v11 = vmul.f32 %v6526_v9, %v3376_v25  ;;  %vm3385_vm10 = vweird.f32 %v6526_v9 }
0x1182   : > { %6527 = vrsqrt.f32 %v3377_v1  ;;  %vm3386_vm11 = vmor %vm3384_vm14, %vm3385_vm10  ;;  %vm3394_vm9 = vweird.f32 %v3377_v1 }
0x1183   : > { %v3380_v13 = vmul.f32 %v6526_v9, %v3379_v11 }
0x1185   : > { %v3381_v2 = vmul.f32 0.5, %v3380_v13 }
0x1187   : > { %v3382_v28 = vsub.f32 1.5, %v3381_v2 }
0x1188   : > { %v6528_v42 = vpop.eup %6527 }
0x1189   : > { %v3383_v3 = vmul.f32 %v6526_v9, %v3382_v28  ;;  %v3389_v14 = vmul.f32 %v6528_v42, %v3377_v1  ;;  %vm3395_vm8 = vweird.f32 %v6528_v42 }
0x118a   : > { %vm3396_vm12 = vmor %vm3394_vm9, %vm3395_vm8 }
0x118b   : > { %v3387_v50 = vsel %vm3386_vm11, %v6526_v9, %v3383_v3  ;;  %v3390_v44 = vmul.f32 %v6528_v42, %v3389_v14 }
0x118c   : > { %v3398_v49 = vmul.f32 %v3387_v50, %v3364_v43  ;;  %v6171_v50 = vld [vmem:[%s11272_s10 + $0x158] sm:$0xff] }
0x118d   : > { %v3391_v63 = vmul.f32 0.5, %v3390_v44  ;;  %v6170_v44 = vld [vmem:[%s11272_s10 + $0x150] sm:$0xff] }
0x118e   : > { %v3401_v56 = vmul.f32 %v6408_v39, %v3398_v49  ;;  %v6169_v49 = vld [vmem:[%s11272_s10 + $0x148] sm:$0xff] }
0x118f   : > { %v3392_v12 = vsub.f32 1.5, %v3391_v63  ;;  %v6168_v63 = vld [vmem:[%s11272_s10 + $0x140] sm:$0xff] }
0x1190   : > { %v9459_v48 = vadd.f32 %v6409_v60, %v3401_v56  ;;  %v6167_v56 = vld [vmem:[%s11272_s10 + $0x138] sm:$0xff] }
0x1191   : > { %v3393_v4 = vmul.f32 %v6528_v42, %v3392_v12 }
0x1192   : > { %v3408_v58 = vsel %vm463_vm1, %v9459_v48, 0.0 }
0x1193   : > { %v3397_v18 = vsel %vm3396_vm12, %v6528_v42, %v3393_v4  ;;  %3409 = vadd.xlane.f32.xlu2 %v3408_v58  ;;  %v6166_v58 = vld [vmem:[%s11272_s10 + $0x130] sm:$0xff] }
0x1194   : > { %v3399_v22 = vmul.f32 %v3397_v18, %v3365_v32 }
0x1196   : > { %v3402_v27 = vmul.f32 %v6408_v39, %v3399_v22  ;;  %v6172_v39 = vld [vmem:[%s11272_s10 + $0x160] sm:$0xff]  ;;  %v6165_v22 = vld [vmem:[%s11272_s10 + $0x128] sm:$0xff] }
0x1197   : > { %3528 = vmatpush.msrb.mxu1 %v6172_v39 }
0x1198   : > { %v9463_v35 = vadd.f32 %v6409_v60, %v3402_v27  ;;  %v6412_v60 = vld [vmem:[%s11266_s4 + $0x22] ss:$0 sm:$0xff] }
0x1199   : > { %3529 = vmatpush.msrb.mxu1 %v6171_v50 }
0x119a   : > { %v3411_v51 = vsel %vm463_vm1, %v9463_v35, 0.0 }
0x119b   : > { %3412 = vadd.xlane.f32.xlu0 %v3411_v51  ;;  %3530 = vmatpush.msrb.mxu1 %v6170_v44  ;;  %v6164_v51 = vld [vmem:[%s11272_s10 + $0x120] sm:$0xff] }
0x119d   : > { %3531 = vmatpush.msrb.mxu1 %v6169_v49 }
0x119f   : > { %3532 = vmatpush.msrb.mxu1 %v6168_v63 }
0x11a1   : > { %3533 = vmatpush.msrb.mxu1 %v6167_v56 }
0x11a3   : > { %3534 = vmatpush.msrb.mxu1 %v6166_v58 }
0x11a5   : > { %3535 = vmatpush.msrb.mxu1 %v6165_v22  ;;  %v6414_v22 = vld [vmem:[%s11266_s4 + $0x24] ss:$0 sm:$0xff] }
0x11a7   : > { %3536 = vmatpush.msrb.mxu1 %v6164_v51 }
0x1206   : > { %v3410_v61 = vpop.xlane.xlu2 %3409 }
0x1207   : > { %v3414_v34 = vmul.f32 %v3410_v61, %v11645_v16  ;;  %v6163_v61 = vld [vmem:[%s11272_s10 + $0x118] sm:$0xff] }
0x1208   : > { %3537 = vmatpush.msrb.mxu1 %v6163_v61 }
0x1209   : > { %v3416_v40 = vsub.f32 %v9459_v48, %v3414_v34 }
0x120b   : > { %v3418_v45 = vmul.f32 %v3416_v40, %v3416_v40 }
0x120d   : > { %v3420_v0 = vsel %vm463_vm1, %v3418_v45, 0.0  ;;  %v6162_v45 = vld [vmem:[%s11272_s10 + $0x110] sm:$0xff] }
0x120e   : > { %v3413_v21 = vpop.xlane.xlu0 %3412  ;;  %3421 = vadd.xlane.f32.xlu2 %v3420_v0  ;;  %3538 = vmatpush.msrb.mxu1 %v6162_v45 }
0x120f   : > { %v3415_v17 = vmul.f32 %v3413_v21, %v11645_v16  ;;  %v6161_v21 = vld [vmem:[%s11272_s10 + $0x108] sm:$0xff] }
0x1210   : > { %3539 = vmatpush.msrb.mxu1 %v6161_v21 }
0x1211   : > { %v3417_v30 = vsub.f32 %v9463_v35, %v3415_v17 }
0x1213   : > { %v3419_v59 = vmul.f32 %v3417_v30, %v3417_v30 }
0x1215   : > { %v3423_v7 = vsel %vm463_vm1, %v3419_v59, 0.0  ;;  %v6160_v59 = vld [vmem:[%s11272_s10 + $0x100] sm:$0xff] }
0x1216   : > { %3424 = vadd.xlane.f32.xlu0 %v3423_v7  ;;  %3540 = vmatpush.msrb.mxu1 %v6160_v59 }
0x1281   : > { %v3422_v37 = vpop.xlane.xlu2 %3421 }
0x1282   : > { %v3426_v10 = vmul.f32 %v3422_v37, %v11645_v16 }
0x1284   : > { %v3428_v23 = vadd.f32 1e-05, %v3426_v10 }
0x1286   : > { %6529 = vrsqrt.f32 %v3428_v23  ;;  %vm3436_vm14 = vweird.f32 %v3428_v23 }
0x1289   : > { %v3425_v24 = vpop.xlane.xlu0 %3424 }
0x128a   : > { %v3427_v41 = vmul.f32 %v3425_v24, %v11645_v16 }
0x128c   : > { %v6530_v57 = vpop.eup %6529  ;;  %v3429_v43 = vadd.f32 1e-05, %v3427_v41 }
0x128d   : > { %v3431_v26 = vmul.f32 %v6530_v57, %v3428_v23  ;;  %vm3437_vm10 = vweird.f32 %v6530_v57  ;;  %v6413_v23 = vld [vmem:[%s11266_s4 + $0x23] ss:$0 sm:$0xff] }
0x128e   : > { %6531 = vrsqrt.f32 %v3429_v43  ;;  %vm3438_vm11 = vmor %vm3436_vm14, %vm3437_vm10  ;;  %vm3446_vm9 = vweird.f32 %v3429_v43 }
0x128f   : > { %v3432_v52 = vmul.f32 %v6530_v57, %v3431_v26 }
0x1291   : > { %v3433_v62 = vmul.f32 0.5, %v3432_v52 }
0x1293   : > { %v3434_v6 = vsub.f32 1.5, %v3433_v62 }
0x1294   : > { %v6532_v32 = vpop.eup %6531 }
0x1295   : > { %v3435_v47 = vmul.f32 %v6530_v57, %v3434_v6  ;;  %v3441_v5 = vmul.f32 %v6532_v32, %v3429_v43  ;;  %vm3447_vm8 = vweird.f32 %v6532_v32 }
0x1296   : > { %vm3448_vm12 = vmor %vm3446_vm9, %vm3447_vm8 }
0x1297   : > { %v3439_v20 = vsel %vm3438_vm11, %v6530_v57, %v3435_v47  ;;  %v3442_v25 = vmul.f32 %v6532_v32, %v3441_v5 }
0x1298   : > { %v3450_v46 = vmul.f32 %v3439_v20, %v3416_v40 }
0x1299   : > { %v3443_v9 = vmul.f32 0.5, %v3442_v25 }
0x129a   : > { %v3453_v1 = vmul.f32 %v6410_v55, %v3450_v46 }
0x129b   : > { %v3444_v11 = vsub.f32 1.5, %v3443_v9  ;;  %v6178_v9 = vld [vmem:[%s11267_s5 + $0x30] sm:$0xff] }
0x129c   : > { %v3456_v13 = vadd.f32 %v6411_v19, %v3453_v1  ;;  %v6177_v1 = vld [vmem:[%s11267_s5 + $0x28] sm:$0xff] }
0x129d   : > { %v3445_v2 = vmul.f32 %v6532_v32, %v3444_v11 }
0x129e   : > { %6158 = vmatmul.msk.f32.vlgmr.msra.gmra.mxu2 %vm463_vm1, %v3456_v13  ;;  %v6176_v13 = vld [vmem:[%s11267_s5 + $0x20] sm:$0xff] }
0x129f   : > { %v3449_v28 = vsel %vm3448_vm12, %v6532_v32, %v3445_v2 }
0x12a0   : > { %v3451_v42 = vmul.f32 %v3449_v28, %v3417_v30 }
0x12a2   : > { %v3454_v3 = vmul.f32 %v6410_v55, %v3451_v42  ;;  %v6185_v42 = vld [vmem:[%s11268_s6 + $0x38] sm:$0xff] }
0x12a3   : > { %3671 = vmatpush.msrb.mxu2 %v6185_v42 }
0x12a4   : > { %v3457_v14 = vadd.f32 %v6411_v19, %v3454_v3  ;;  %v6179_v19 = vld [vmem:[%s11267_s5 + $0x38] sm:$0xff]  ;;  %v6184_v3 = vld [vmem:[%s11268_s6 + $0x30] sm:$0xff] }
0x12a5   : > { %3629 = vmatpush.msra.mxu3 %v6179_v19  ;;  %3672 = vmatpush.msrb.mxu2 %v6184_v3 }
0x12a6   : > { %6159 = vmatmul.msk.f32.gmra.mxu2 %vm463_vm1, %v3457_v14  ;;  %v6183_v14 = vld [vmem:[%s11268_s6 + $0x28] sm:$0xff] }
0x12a7   : > { %3630 = vmatpush.msra.mxu3 %v6178_v9  ;;  %3673 = vmatpush.msrb.mxu2 %v6183_v14  ;;  %v11659_v14 = vld [vmem:[#allocation29_spill] sm:$0xff] }
0x12a9   : > { %3631 = vmatpush.msra.mxu3 %v6177_v1 }
0x12ab   : > { %3632 = vmatpush.msra.mxu3 %v6176_v13 }
0x1321   : > { %v3488_v12 = vpop.f32.mrf.mxu2 }
0x1322   : > { %v3489_v4 = vadd.f32 %v6412_v60, %v3488_v12 }
0x1324   : > { %v3494_v18 = vsub.f32 0.0, %v3489_v4 }
0x1326   : > { %v3496_v27 = vmul.f32 1.442695, %v3494_v18 }
0x1328   : > { %6533 = vpow2.f32 %v3496_v27 }
0x1329   : > { %v3491_v34 = vpop.f32.mrf.mxu2 }
0x132a   : > { %v3492_v40 = vadd.f32 %v6412_v60, %v3491_v34  ;;  %v6415_v34 = vld [vmem:[%s11266_s4 + $0x25] ss:$0 sm:$0xff] }
0x132c   : > { %v3495_v0 = vsub.f32 0.0, %v3492_v40 }
0x132e   : > { %v6534_v17 = vpop.eup %6533  ;;  %v3498_v30 = vmul.f32 1.442695, %v3495_v0 }
0x132f   : > { %v3500_v7 = vadd.f32 1.0, %v6534_v17 }
0x1330   : > { %6535 = vpow2.f32 %v3498_v30 }
0x1331   : > { %6537 = vrcp.f32 %v3500_v7 }
0x1336   : > { %v6536_v38 = vpop.eup %6535 }
0x1337   : > { %v6538_v8 = vpop.eup %6537  ;;  %v3501_v54 = vadd.f32 1.0, %v6536_v38 }
0x1338   : > { %v3504_v37 = vmul.f32 %v6538_v8, %v3489_v4  ;;  %v6182_v8 = vld [vmem:[%s11268_s6 + $0x20] sm:$0xff] }
0x1339   : > { %6539 = vrcp.f32 %v3501_v54  ;;  %3674 = vmatpush.msrb.mxu2 %v6182_v8  ;;  %v6416_v54 = vld [vmem:[%s11266_s4 + $0x26] ss:$0 sm:$0xff] }
0x133a   : > { %3541 = vmatmul.f32.vlgmr.msrb.gmra.mxu1 %v3504_v37  ;;  %v6417_v37 = vld [vmem:[%s11266_s4 + $0x29] ss:$0 sm:$0xff] }
0x133f   : > { %v6540_v29 = vpop.eup %6539 }
0x1340   : > { %v3505_v10 = vmul.f32 %v6540_v29, %v3492_v40  ;;  %v6418_v29 = vld [vmem:[%s11266_s4 + $0x28] ss:$0 sm:$0xff] }
0x1342   : > { %3544 = vmatmul.f32.gmra.mxu1 %v3505_v10 }
0x13b7   : > { %v3542_v31 = vpop.f32.mrf.mxu1 }
0x13b8   : > { %v3543_v36 = vadd.f32 %v6413_v23, %v3542_v31 }
0x13ba   : > { %v3548_v15 = vmul.f32 0.5, %v3543_v36 }
0x13bc   : > { %v9550_v24 = vadd.f32 %v3548_v15, %v9459_v48 }
0x13be   : > { %11646 = vst [vmem:[#allocation136_spill] sm:$0xff] %v9550_v24  ;;  %v3554_v41 = vsel %vm463_vm1, %v9550_v24, 0.0 }
0x13bf   : > { %v3545_v57 = vpop.f32.mrf.mxu1  ;;  %3555 = vadd.xlane.f32.xlu2 %v3554_v41 }
0x13c0   : > { %v3546_v43 = vadd.f32 %v6413_v23, %v3545_v57 }
0x13c2   : > { %v3549_v26 = vmul.f32 0.5, %v3546_v43 }
0x13c4   : > { %v9555_v52 = vadd.f32 %v3549_v26, %v9463_v35 }
0x13c6   : > { %11647 = vst [vmem:[#allocation137_spill] sm:$0xff] %v9555_v52  ;;  %v3557_v62 = vsel %vm463_vm1, %v9555_v52, 0.0 }
0x13c7   : > { %3558 = vadd.xlane.f32.xlu0 %v3557_v62 }
0x1432   : > { %v3556_v6 = vpop.xlane.xlu2 %3555 }
0x1433   : > { %v3560_v32 = vmul.f32 %v3556_v6, %v11645_v16 }
0x1435   : > { %v3562_v48 = vsub.f32 %v9550_v24, %v3560_v32 }
0x1437   : > { %v3564_v47 = vmul.f32 %v3562_v48, %v3562_v48 }
0x1439   : > { %v3566_v5 = vsel %vm463_vm1, %v3564_v47, 0.0 }
0x143a   : > { %v3559_v55 = vpop.xlane.xlu0 %3558  ;;  %3567 = vadd.xlane.f32.xlu1 %v3566_v5 }
0x143b   : > { %v3561_v20 = vmul.f32 %v3559_v55, %v11645_v16 }
0x143d   : > { %v3563_v25 = vsub.f32 %v9555_v52, %v3561_v20  ;;  %v11727_v52 = vld [vmem:[#allocation97_spill] sm:$0xff] }
0x143f   : > { %v3565_v35 = vmul.f32 %v3563_v25, %v3563_v25 }
0x1441   : > { %v3569_v46 = vsel %vm463_vm1, %v3565_v35, 0.0 }
0x1442   : > { %3570 = vadd.xlane.f32.xlu2 %v3569_v46  ;;  %v11655_v46 = vld [vmem:[#allocation27_spill] sm:$0xff] }
0x14ad   : > { %v3568_v11 = vpop.xlane.xlu1 %3567 }
0x14ae   : > { %v3572_v2 = vmul.f32 %v3568_v11, %v11645_v16  ;;  %v11656_v11 = vld [vmem:[#allocation14_spill] sm:$0xff] }
0x14b0   : > { %v3574_v28 = vadd.f32 1e-05, %v3572_v2  ;;  %v11657_v2 = vld [vmem:[#allocation35_spill] sm:$0xff] }
0x14b2   : > { %6541 = vrsqrt.f32 %v3574_v28  ;;  %vm3582_vm14 = vweird.f32 %v3574_v28 }
0x14b5   : > { %v3571_v39 = vpop.xlane.xlu2 %3570 }
0x14b6   : > { %v3573_v50 = vmul.f32 %v3571_v39, %v11645_v16  ;;  %v11724_v16 = vld [vmem:[#allocation24_spill] sm:$0xff] }
0x14b8   : > { %v6542_v44 = vpop.eup %6541  ;;  %v3575_v49 = vadd.f32 1e-05, %v3573_v50  ;;  %v11660_v50 = vld [vmem:[#allocation48_spill] sm:$0xff] }
0x14b9   : > { %v3577_v60 = vmul.f32 %v6542_v44, %v3574_v28  ;;  %vm3583_vm10 = vweird.f32 %v6542_v44 }
0x14ba   : > { %6543 = vrsqrt.f32 %v3575_v49  ;;  %vm3584_vm11 = vmor %vm3582_vm14, %vm3583_vm10  ;;  %vm3592_vm9 = vweird.f32 %v3575_v49  ;;  %vm11792_vm10 = vcmask 1047559  }
0x14bb   : > { %v3578_v63 = vmul.f32 %v6542_v44, %v3577_v60  ;;  %vm11809_vm14 = vmmov %vm11792_vm10 }
0x14bd   : > { %v3579_v56 = vmul.f32 0.5, %v3578_v63 }
0x14bf   : > { %v3580_v12 = vsub.f32 1.5, %v3579_v56  ;;  %v11661_v56 = vld [vmem:[#allocation12_spill] sm:$0xff] }
0x14c0   : > { %v6544_v4 = vpop.eup %6543 }
0x14c1   : > { %v3581_v58 = vmul.f32 %v6542_v44, %v3580_v12  ;;  %v3587_v18 = vmul.f32 %v6544_v4, %v3575_v49  ;;  %vm3593_vm8 = vweird.f32 %v6544_v4 }
0x14c2   : > { %vm3594_vm12 = vmor %vm3592_vm9, %vm3593_vm8  ;;  %vm11830_vm9 = vcmask 130048  }
0x14c3   : > { %v3585_v27 = vsel %vm3584_vm11, %v6542_v44, %v3581_v58  ;;  %v3588_v51 = vmul.f32 %v6544_v4, %v3587_v18  ;;  %vm11828_vm11 = vmmov %vm11792_vm10 }
0x14c4   : > { %v3596_v61 = vmul.f32 %v3585_v27, %v3562_v48  ;;  %vm11829_vm8 = vmmov %vm11792_vm10 }
0x14c5   : > { %v3589_v40 = vmul.f32 0.5, %v3588_v51  ;;  %v11663_v51 = vld [vmem:[#allocation13_spill] sm:$0xff] }
0x14c6   : > { %v3599_v45 = vmul.f32 %v6414_v22, %v3596_v61 }
0x14c7   : > { %v3590_v0 = vsub.f32 1.5, %v3589_v40 }
0x14c8   : > { %v3602_v21 = vadd.f32 %v6415_v34, %v3599_v45 }
0x14c9   : > { %v3591_v17 = vmul.f32 %v6544_v4, %v3590_v0  ;;  %v11664_v0 = vld [vmem:[#allocation15_spill] sm:$0xff] }
0x14ca   : > { %6180 = vmatmul.msk.f32.vlgmr.msra.gmra.mxu3 %vm463_vm1, %v3602_v21 }
0x14cb   : > { %v3595_v30 = vsel %vm3594_vm12, %v6544_v4, %v3591_v17  ;;  %v11662_v4 = vld [vmem:[#allocation50_spill] sm:$0xff]  ;;  %vm11831_vm12 = vmmov %vm11830_vm9 }
0x14cc   : > { %v3597_v59 = vmul.f32 %v3595_v30, %v3563_v25 }
0x14ce   : > { %v3600_v7 = vmul.f32 %v6414_v22, %v3597_v59  ;;  %v11665_v59 = vld [vmem:[#allocation17_spill] sm:$0xff] }
0x14d0   : > { %v3603_v38 = vadd.f32 %v6415_v34, %v3600_v7 }
0x14d2   : > { %6181 = vmatmul.msk.f32.gmra.mxu3 %vm463_vm1, %v3603_v38  ;;  %v6645_v38 = vld [vmem:[%s11265_s3 + $0x8] sm:$0xff] }
0x154d   : > { %v3634_v10 = vpop.f32.mrf.mxu3 }
0x154e   : > { %v3635_v23 = vadd.f32 %v6416_v54, %v3634_v10 }
0x1550   : > { %4312 = vrot.lane.b32.xlu0 %v3635_v23, %s6817_s2  ;;  %3860 = vrot.lane.b32.xlu2 %v3635_v23, %s11648_s29  ;;  %v3646_v31 = vadd.f32 %v6417_v37, %v3635_v23  ;;  %v3642_v36 = vadd.f32 %v6418_v29, %v3635_v23 }
0x1552   : > { %6186 = vmatmul.msk.f32.vlgmr.msrb.gmra.mxu2 %vm463_vm1, %v3646_v31  ;;  %4308 = vrot.lane.b32.xlu1 %v3642_v36, %s11649_s15 }
0x1555   : > { %v3637_v15 = vpop.f32.mrf.mxu3 }
0x1556   : > { %v3638_v41 = vadd.f32 %v6416_v54, %v3637_v15 }
0x1558   : > { %5212 = vrot.lane.b32.xlu0 %v3635_v23, %s11650_s14  ;;  %4762 = vrot.lane.b32.xlu2 %v3635_v23, %s11651_s22  ;;  %v3647_v57 = vadd.f32 %v6417_v37, %v3638_v41  ;;  %v9616_v43 = vpack.i.bf16 %v3635_v23, %v3638_v41  ;;  %v3643_v26 = vadd.f32 %v6418_v29, %v3638_v41  ;;  %v11666_v29 = vld [vmem:[#allocation19_spill] sm:$0xff] }
0x1559   : > { %v6646_v23 = vld [vmem:[%s11265_s3] sm:$0xff] }
0x155a   : > { %4758 = vrot.lane.b32.xlu1 %v3642_v36, %s11652_s26  ;;  %6187 = vmatmul.msk.f32.gmra.mxu2 %vm463_vm1, %v3647_v57  ;;  %11653 = vst [vmem:[#allocation126_spill] sm:$0xff] %v9616_v43 }
0x1560   : > { %5208 = vrot.lane.b32.xlu2 %v3642_v36, %s11654_s13  ;;  %3862 = vrot.lane.b32.xlu0 %v3638_v41, %s11648_s29 }
0x1562   : > { %4314 = vrot.lane.b32.xlu1 %v3638_v41, %s6817_s2  ;;  %s11658_s2 = smov 64  }
0x1568   : > { %4764 = vrot.lane.b32.xlu0 %v3638_v41, %s11651_s22  ;;  %4310 = vrot.lane.b32.xlu2 %v3643_v26, %s11649_s15 }
0x156a   : > { %5214 = vrot.lane.b32.xlu1 %v3638_v41, %s11650_s14 }
0x1570   : > { %4760 = vrot.lane.b32.xlu0 %v3643_v26, %s11652_s26  ;;  %s11847_s26 = smov 56  }
0x1572   : > { %5210 = vrot.lane.b32.xlu1 %v3643_v26, %s11654_s13  ;;  %s11848_s13 = smov 48  }
0x15aa   : > { %v3861_v32 = vpop.permute.xlu2 %3860 }
0x15b2   : > { %v4763_v5 = vpop.permute.xlu2 %4762 }
0x15ba   : > { %v5209_v9 = vpop.permute.xlu2 %5208 }
0x15c2   : > { %v4313_v62 = vpop.permute.xlu0 %4312  ;;  %v4311_v49 = vpop.permute.xlu2 %4310 }
0x15c4   : > { %v4309_v6 = vpop.permute.xlu1 %4308 }
0x15ca   : > { %v5213_v48 = vpop.permute.xlu0 %5212 }
0x15cc   : > { %v4759_v47 = vpop.permute.xlu1 %4758 }
0x15d2   : > { %v3863_v55 = vpop.permute.xlu0 %3862 }
0x15d3   : > { %6188 = vmatpush.xpose.msk.msrb.mxu3 %vm1062_vm15, %v3863_v55  ;;  %v11671_v55 = vld [vmem:[#allocation31_spill] sm:$0xff] }
0x15d4   : > { %v4315_v20 = vpop.permute.xlu1 %4314 }
0x15d5   : > { %v9627_v25 = vpop.f32.mrf.mxu2  ;;  %6194 = vmatpush.xpose.msk.msra.mxu2 %vm1062_vm15, %v4315_v20 }
0x15d6   : > { %v3698_v35 = vperm.slane %v9627_v25, 0  ;;  %v3684_v3 = vrot.slane %v9627_v25, 1  ;;  %v3685_v63 = vrot.slane %v9627_v25, 2  ;;  %v3687_v22 = vrot.slane %v9627_v25, 4 }
0x15d7   : > { %6189 = vmatpush.xpose.msk.msrb.mxu3 %vm1062_vm15, %v3861_v32  ;;  %v3688_v45 = vrot.slane %v9627_v25, 5  ;;  %v3690_v30 = vrot.slane %v9627_v25, 7  ;;  %v3686_v57 = vrot.slane %v9627_v25, 3 }
0x15d8   : > { %v4502_v19 = vmul.f32 %v3698_v35, %v11655_v46  ;;  %v4053_v13 = vmul.f32 %v3698_v35, %v11656_v11  ;;  %v4052_v28 = vmul.f32 %v3698_v35, %v11657_v2  ;;  %v4952_v39 = vmul.f32 %v3698_v35, %v11659_v14  ;;  %v11672_v46 = vld [vmem:[#allocation20_spill] sm:$0xff]  ;;  %v11677_v14 = vld [vmem:[#allocation37_spill] sm:$0xff] }
0x15d9   : > { %6195 = vmatpush.xpose.msk.msra.mxu2 %vm1062_vm15, %v4313_v62  ;;  %v4503_v44 = vmul.f32 %v3698_v35, %v11660_v50  ;;  %v9651_v60 = vperm.slane %v3684_v3, 0  ;;  %v4953_v58 = vmul.f32 %v3698_v35, %v11662_v4  ;;  %v9661_v18 = vperm.slane %v3685_v63, 0  ;;  %v11674_v11 = vld [vmem:[#allocation36_spill] sm:$0xff]  ;;  %v11678_v50 = vld [vmem:[#allocation70_spill] sm:$0xff] }
0x15da   : > { %v4765_v1 = vpop.permute.xlu0 %4764  ;;  %6190 = vmatmul.msk.f32.vlgmr.msrb.gmra.mxu3 %vm1062_vm15, %v3642_v36  ;;  %4566 = vrot.lane.b32.xlu1 %v4502_v19, %s11658_s2  ;;  %v9669_v40 = vperm.slane %v3687_v22, 0  ;;  %v9676_v17 = vperm.slane %v3688_v45, 0  ;;  %v3731_v8 = vmul.f32 %v6645_v38, %v3698_v35  ;;  %v9685_v54 = vperm.slane %v3690_v30, 0  ;;  %v11667_v36 = vld [vmem:[#allocation28_spill] sm:$0xff]  ;;  %v11682_v22 = vld [vmem:[#allocation85_spill] sm:$0xff]  ;;  %v11686_v30 = vld [vmem:[#allocation42_spill] sm:$0xff] }
0x15db   : > { %6200 = vmatpush.xpose.msk.msra.mxu3 %vm1062_vm15, %v4765_v1  ;;  %4118 = vrot.lane.b32.xlu0 %v4053_v13, %s11648_s29  ;;  %v4054_v12 = vmul.f32 %v9651_v60, %v11661_v56  ;;  %v4057_v61 = vmul.f32 %v9661_v18, %v11663_v51  ;;  %v3730_v31 = vmul.f32 %v6646_v23, %v3698_v35  ;;  %v3689_v35 = vrot.slane %v9627_v25, 6  ;;  %v11680_v56 = vld [vmem:[#allocation38_spill] sm:$0xff]  ;;  %v11681_v4 = vld [vmem:[#allocation72_spill] sm:$0xff] }
0x15dc   : > { %4116 = vrot.lane.b32.xlu2 %v4052_v28, %s11648_s29  ;;  %v5215_v42 = vpop.permute.xlu1 %5214  ;;  %6196 = vmatmul.msk.f32.vlgmr.msra.gmra.mxu2 %vm1062_vm15, %v4309_v6  ;;  %v4060_v21 = vmul.f32 %v9669_v40, %v11664_v0  ;;  %v4063_v7 = vmul.f32 %v9676_v17, %v11665_v59  ;;  %v3765_v37 = vsel %vm463_vm1, %v3731_v8, 0.0  ;;  %v4066_v10 = vmul.f32 %v9685_v54, %v11666_v29  ;;  %v11669_v6 = vld [vmem:[#allocation30_spill] sm:$0xff]  ;;  %v11683_v51 = vld [vmem:[#allocation40_spill] sm:$0xff]  ;;  %v11689_v29 = vld [vmem:[#allocation49_spill] sm:$0xff] }
0x15dd   : > { %6206 = vmatpush.xpose.msk.msrb.mxu2 %vm1062_vm15, %v5215_v42  ;;  %v4505_v15 = vmul.f32 %v9651_v60, %v11667_v36  ;;  %v3762_v41 = vsel %vm463_vm1, %v3730_v31, 0.0  ;;  %v4955_v32 = vmul.f32 %v9651_v60, %v11669_v6  ;;  %v4956_v20 = vmul.f32 %v9661_v18, %v11671_v55  ;;  %v11675_v28 = vld [vmem:[#allocation54_spill] sm:$0xff]  ;;  %v11676_v42 = vld [vmem:[#allocation33_spill] sm:$0xff]  ;;  %v11685_v0 = vld [vmem:[#allocation88_spill] sm:$0xff] }
0x15de   : > { %v4062_v19 = vmul.f32 %v9676_v17, %v11672_v46  ;;  %v4055_v13 = vmul.f32 %v9651_v60, %v11674_v11  ;;  %v9722_v2 = vperm.slane %v3689_v35, 0  ;;  %v4512_v3 = vmul.f32 %v9676_v17, %v11676_v42  ;;  %v11688_v8 = vld [vmem:[#allocation90_spill] sm:$0xff]  ;;  %v11691_v36 = vld [vmem:[#allocation51_spill] sm:$0xff]  ;;  %v11696_v55 = vld [vmem:[#allocation84_spill] sm:$0xff] }
0x15df   : > { %6201 = vmatpush.xpose.msk.msra.mxu3 %vm1062_vm15, %v4763_v5  ;;  %v4067_v59 = vmul.f32 %v9685_v54, %v11686_v30  ;;  %v11690_v23 = vld [vmem:[#allocation78_spill] sm:$0xff]  ;;  %v11697_v35 = vld [vmem:[#allocation55_spill] sm:$0xff]  ;;  %v11700_v42 = vld [vmem:[#allocation89_spill] sm:$0xff] }
0x15e0   : > { %v4065_v25 = vmul.f32 %v9722_v2, %v11675_v28  ;;  %v4510_v31 = vmul.f32 %v9669_v40, %v11690_v23  ;;  %v11694_v6 = vld [vmem:[#allocation82_spill] sm:$0xff]  ;;  %v4513_v46 = vmul.f32 %v9676_v17, %v11697_v35 }
0x15e1   : > { %6207 = vmatpush.xpose.msk.msrb.mxu2 %vm1062_vm15, %v5213_v48  ;;  %v9705_v48 = vperm.slane %v3686_v57, 0  ;;  %v6652_v23 = vld [vmem:[%s11265_s3 + $0x70] sm:$0xff] }
0x15e2   : > { %6191 = vmatmul.msk.f32.gmra.mxu3 %vm1062_vm15, %v3643_v26  ;;  %5016 = vrot.lane.b32.xlu1 %v4952_v39, %s11421_s30  ;;  %v4761_v27 = vpop.permute.xlu0 %4760  ;;  %v11668_v26 = vld [vmem:[#allocation16_spill] sm:$0xff] }
0x15e3   : > { %v4056_v62 = vmul.f32 %v9661_v18, %v11668_v26  ;;  %v4058_v39 = vmul.f32 %v9705_v48, %v11677_v14  ;;  %v11693_v26 = vld [vmem:[#allocation52_spill] sm:$0xff] }
0x15e4   : > { %4568 = vrot.lane.b32.xlu2 %v4503_v44, %s11658_s2  ;;  %6197 = vmatmul.msk.f32.gmra.mxu2 %vm1062_vm15, %v4311_v49  ;;  %v5211_v34 = vpop.permute.xlu1 %5210  ;;  %v4504_v44 = vmul.f32 %v9651_v60, %v11678_v50  ;;  %v11679_v49 = vld [vmem:[#allocation34_spill] sm:$0xff]  ;;  %v6648_v14 = vld [vmem:[%s11265_s3 + $0x28] sm:$0xff]  ;;  %v11701_v50 = vld [vmem:[#allocation59_spill] sm:$0xff] }
0x15e5   : > { %v4961_v63 = vmul.f32 %v9669_v40, %v11679_v49 }
0x15ea   : > { %6202 = vmatmul.msk.f32.vlgmr.msra.gmra.mxu3 %vm1062_vm15, %v4759_v47  ;;  %4120 = vrot.lane.b32.xlu1 %v4054_v12, %s11648_s29  ;;  %v11670_v47 = vld [vmem:[#allocation18_spill] sm:$0xff]  ;;  %v4061_v12 = vmul.f32 %v9669_v40, %v11680_v56 }
0x15eb   : > { %v4059_v5 = vmul.f32 %v9705_v48, %v11670_v47  ;;  %v11695_v47 = vld [vmem:[#allocation53_spill] sm:$0xff] }
0x15ec   : > { %5018 = vrot.lane.b32.xlu2 %v4953_v58, %s11421_s30  ;;  %6208 = vmatmul.msk.f32.vlgmr.msrb.gmra.mxu2 %vm1062_vm15, %v5209_v9  ;;  %v11673_v9 = vld [vmem:[#allocation32_spill] sm:$0xff]  ;;  %v4507_v58 = vmul.f32 %v9661_v18, %v11681_v4 }
0x15ed   : > { %v4511_v1 = vmul.f32 %v9669_v40, %v11673_v9 }
0x15f2   : > { %6203 = vmatmul.msk.f32.gmra.mxu3 %vm1062_vm15, %v4761_v27  ;;  %4126 = vrot.lane.b32.xlu1 %v4057_v61, %s11648_s29  ;;  %v4962_v27 = vmul.f32 %v9676_v17, %v11682_v22  ;;  %v4064_v61 = vmul.f32 %v9722_v2, %v11683_v51  ;;  %v6650_v51 = vld [vmem:[%s11265_s3 + $0x40] sm:$0xff] }
0x15f4   : > { %6209 = vmatmul.msk.f32.gmra.mxu2 %vm1062_vm15, %v5211_v34  ;;  %v11684_v34 = vld [vmem:[#allocation74_spill] sm:$0xff] }
0x15f5   : > { %v4954_v45 = vmul.f32 %v9651_v60, %v11684_v34 }
0x15fa   : > { %4132 = vrot.lane.b32.xlu1 %v4060_v21, %s11648_s29  ;;  %v4517_v21 = vmul.f32 %v9685_v54, %v11685_v0 }
0x1602   : > { %4138 = vrot.lane.b32.xlu1 %v4063_v7, %s11648_s29  ;;  %v11687_v7 = vld [vmem:[#allocation76_spill] sm:$0xff] }
0x1603   : > { %v4509_v38 = vmul.f32 %v9705_v48, %v11687_v7  ;;  %v6651_v7 = vld [vmem:[%s11265_s3 + $0x68] sm:$0xff] }
0x1605   : > { %3766 = vadd.xlane.f32.xlu0 %v3765_v37  ;;  %v4966_v37 = vmul.f32 %v9685_v54, %v11688_v8 }
0x160a   : > { %4144 = vrot.lane.b32.xlu1 %v4066_v10, %s11648_s29  ;;  %v4506_v10 = vmul.f32 %v9661_v18, %v11689_v29 }
0x1612   : > { %4572 = vrot.lane.b32.xlu1 %v4505_v15, %s11658_s2  ;;  %v4508_v15 = vmul.f32 %v9705_v48, %v11691_v36 }
0x1615   : > { %3763 = vadd.xlane.f32.xlu2 %v3762_v41  ;;  %v11692_v41 = vld [vmem:[#allocation80_spill] sm:$0xff] }
0x1616   : > { %v4959_v57 = vmul.f32 %v9705_v48, %v11692_v41 }
0x1619   : > { %4124 = vrot.lane.b32.xlu0 %v4056_v62, %s11648_s29  ;;  %v4957_v62 = vmul.f32 %v9661_v18, %v11693_v26 }
0x161a   : > { %5022 = vrot.lane.b32.xlu1 %v4955_v32, %s11421_s30  ;;  %v4960_v32 = vmul.f32 %v9669_v40, %v11694_v6 }
0x1621   : > { %4130 = vrot.lane.b32.xlu0 %v4059_v5, %s11648_s29  ;;  %v4958_v5 = vmul.f32 %v9705_v48, %v11695_v47 }
0x1622   : > { %5024 = vrot.lane.b32.xlu1 %v4956_v20, %s11421_s30  ;;  %v4515_v20 = vmul.f32 %v9722_v2, %v11696_v55 }
0x1629   : > { %4136 = vrot.lane.b32.xlu0 %v4062_v19, %s11648_s29  ;;  %v11698_v19 = vld [vmem:[#allocation87_spill] sm:$0xff] }
0x162a   : > { %4584 = vrot.lane.b32.xlu1 %v4511_v1, %s11658_s2  ;;  %v4516_v9 = vmul.f32 %v9685_v54, %v11698_v19  ;;  %v6647_v1 = vld [vmem:[%s11265_s3 + $0x10] sm:$0xff] }
0x162b   : > { %v3732_v11 = vmul.f32 %v6647_v1, %v9651_v60 }
0x162d   : > { %4122 = vrot.lane.b32.xlu2 %v4055_v13, %s11648_s29  ;;  %v11699_v13 = vld [vmem:[#allocation57_spill] sm:$0xff] }
0x162e   : > { %v4514_v28 = vmul.f32 %v9722_v2, %v11699_v13 }
0x1631   : > { %4142 = vrot.lane.b32.xlu0 %v4065_v25, %s11648_s29  ;;  %v3768_v25 = vsel %vm463_vm1, %v3732_v11, 0.0 }
0x1632   : > { %4586 = vrot.lane.b32.xlu1 %v4512_v3, %s11658_s2  ;;  %v4965_v3 = vmul.f32 %v9722_v2, %v11700_v42  ;;  %v11706_v42 = vld [vmem:[#allocation21_spill] sm:$0xff] }
0x1635   : > { %4128 = vrot.lane.b32.xlu2 %v4058_v39, %s11648_s29  ;;  %v3735_v39 = vmul.f32 %v6648_v14, %v9661_v18 }
0x1637   : > { %v3777_v49 = vsel %vm463_vm1, %v3735_v39, 0.0 }
0x1639   : > { %4570 = vrot.lane.b32.xlu0 %v4504_v44, %s11658_s2  ;;  %v4963_v44 = vmul.f32 %v9676_v17, %v11701_v50  ;;  %v6658_v50 = vld [vmem:[%s11265_s3 + $0x48] sm:$0xff] }
0x163a   : > { %5034 = vrot.lane.b32.xlu1 %v4961_v63, %s11421_s30  ;;  %v6649_v63 = vld [vmem:[%s11265_s3 + $0x38] sm:$0xff] }
0x163b   : > { %v3737_v56 = vmul.f32 %v6649_v63, %v9705_v48 }
0x163d   : > { %4134 = vrot.lane.b32.xlu2 %v4061_v12, %s11648_s29  ;;  %v11702_v12 = vld [vmem:[#allocation61_spill] sm:$0xff]  ;;  %v3783_v22 = vsel %vm463_vm1, %v3737_v56, 0.0  ;;  %v11707_v56 = vld [vmem:[#allocation92_spill] sm:$0xff] }
0x163e   : > { %v4964_v4 = vmul.f32 %v9722_v2, %v11702_v12 }
0x1641   : > { %4576 = vrot.lane.b32.xlu0 %v4507_v58, %s11658_s2  ;;  %v9822_v58 = vpop.permute.xlu2 %4116 }
0x1642   : > { %5036 = vrot.lane.b32.xlu1 %v4962_v27, %s11421_s30 }
0x1645   : > { %4140 = vrot.lane.b32.xlu2 %v4064_v61, %s11648_s29  ;;  %v3738_v61 = vmul.f32 %v6650_v51, %v9669_v40 }
0x1649   : > { %5020 = vrot.lane.b32.xlu0 %v4954_v45, %s11421_s30  ;;  %v11703_v45 = vld [vmem:[#allocation65_spill] sm:$0xff] }
0x164a   : > { %4596 = vrot.lane.b32.xlu1 %v4517_v21, %s11658_s2  ;;  %v4967_v0 = vmul.f32 %v9685_v54, %v11703_v45  ;;  %v3786_v21 = vsel %vm463_vm1, %v3738_v61, 0.0  ;;  %v11708_v61 = vld [vmem:[#allocation96_spill] sm:$0xff] }
0x164c   : > { %v9832_v34 = vpop.permute.xlu1 %4566 }
0x164d   : > { %4146 = vrot.lane.b32.xlu2 %v4067_v59, %s11648_s29  ;;  %v9825_v27 = vpop.permute.xlu0 %4118  ;;  %v9840_v59 = vpop.permute.xlu2 %4568 }
0x1651   : > { %4580 = vrot.lane.b32.xlu0 %v4509_v38, %s11658_s2  ;;  %v3743_v38 = vmul.f32 %v6651_v7, %v9722_v2 }
0x1652   : > { %5044 = vrot.lane.b32.xlu1 %v4966_v37, %s11421_s30 }
0x1653   : > { %v3801_v37 = vsel %vm463_vm1, %v3743_v38, 0.0 }
0x1654   : > { %v9846_v8 = vpop.permute.xlu1 %5016 }
0x1655   : > { %4574 = vrot.lane.b32.xlu2 %v4506_v10, %s11658_s2  ;;  %v9851_v10 = vpop.permute.xlu2 %5018 }
0x1659   : > { %4582 = vrot.lane.b32.xlu0 %v4510_v31, %s11658_s2  ;;  %v3744_v31 = vmul.f32 %v6652_v23, %v9685_v54 }
0x165b   : > { %v3804_v36 = vsel %vm463_vm1, %v3744_v31, 0.0  ;;  %v11709_v31 = vld [vmem:[#allocation56_spill] sm:$0xff] }
0x165d   : > { %4578 = vrot.lane.b32.xlu2 %v4508_v15, %s11658_s2  ;;  %v9858_v15 = vpop.permute.xlu1 %4120 }
0x1661   : > { %5030 = vrot.lane.b32.xlu0 %v4959_v57, %s11421_s30  ;;  %v6653_v57 = vld [vmem:[%s11265_s3 + $0x20] sm:$0xff] }
0x1662   : > { %v3734_v26 = vmul.f32 %v6653_v57, %v9661_v18  ;;  %v9880_v18 = vpop.f32.mrf.mxu2 }
0x1664   : > { %v3774_v6 = vsel %vm463_vm1, %v3734_v26, 0.0 }
0x1665   : > { %5026 = vrot.lane.b32.xlu2 %v4957_v62, %s11421_s30 }
0x1669   : > { %5032 = vrot.lane.b32.xlu0 %v4960_v32, %s11421_s30  ;;  %v6654_v32 = vld [vmem:[%s11265_s3 + $0x30] sm:$0xff] }
0x166a   : > { %v3736_v47 = vmul.f32 %v6654_v32, %v9705_v48  ;;  %v6656_v48 = vld [vmem:[%s11265_s3 + $0x18] sm:$0xff] }
0x166b   : > { %v3733_v1 = vmul.f32 %v6656_v48, %v9651_v60  ;;  %v6657_v60 = vld [vmem:[%s11265_s3 + $0x60] sm:$0xff] }
0x166c   : > { %v3780_v35 = vsel %vm463_vm1, %v3736_v47, 0.0  ;;  %v3742_v39 = vmul.f32 %v6657_v60, %v9722_v2 }
0x166d   : > { %5028 = vrot.lane.b32.xlu2 %v4958_v5, %s11421_s30  ;;  %v9873_v5 = vpop.permute.xlu1 %4126  ;;  %v3771_v14 = vsel %vm463_vm1, %v3733_v1, 0.0 }
0x1671   : > { %4592 = vrot.lane.b32.xlu0 %v4515_v20, %s11658_s2 }
0x1675   : > { %4588 = vrot.lane.b32.xlu2 %v4513_v46, %s11658_s2  ;;  %v6655_v46 = vld [vmem:[%s11265_s3 + $0x58] sm:$0xff]  ;;  %v9893_v11 = vpop.permute.xlu1 %4132 }
0x1676   : > { %v3741_v19 = vmul.f32 %v6655_v46, %v9676_v17 }
0x1678   : > { %v9837_v30 = vpop.xlane.xlu0 %3766 }
0x1679   : > { %4594 = vrot.lane.b32.xlu0 %v4516_v9, %s11658_s2  ;;  %11704 = vst [vmem:[#allocation134_spill] sm:$0xff] %v9837_v30  ;;  %v9887_v9 = vperm.slane %v9880_v18, 0  ;;  %v11733_v30 = vld [vmem:[#allocation26_spill] sm:$0xff] }
0x167b   : > { %v4519_v12 = vmul.f32 %v9887_v9, %v11707_v56  ;;  %v4969_v45 = vmul.f32 %v9887_v9, %v11708_v61  ;;  %v11713_v61 = vld [vmem:[#allocation43_spill] sm:$0xff] }
0x167c   : > { %3769 = vadd.xlane.f32.xlu1 %v3768_v25 }
0x167d   : > { %4590 = vrot.lane.b32.xlu2 %v4514_v28, %s11658_s2  ;;  %v3795_v28 = vsel %vm463_vm1, %v3741_v19, 0.0  ;;  %v9913_v63 = vpop.permute.xlu1 %4138 }
0x1681   : > { %5042 = vrot.lane.b32.xlu0 %v4965_v3, %s11421_s30  ;;  %v4069_v3 = vmul.f32 %v9887_v9, %v11706_v42  ;;  %v11711_v42 = vld [vmem:[#allocation95_spill] sm:$0xff] }
0x1684   : > { %3778 = vadd.xlane.f32.xlu1 %v3777_v49  ;;  %v3798_v49 = vsel %vm463_vm1, %v3742_v39, 0.0 }
0x1685   : > { %5038 = vrot.lane.b32.xlu2 %v4963_v44, %s11421_s30  ;;  %v3739_v44 = vmul.f32 %v6658_v50, %v9669_v40  ;;  %v6659_v40 = vld [vmem:[%s11265_s3 + $0x50] sm:$0xff]  ;;  %v3693_v50 = vrot.slane %v9880_v18, 3 }
0x1686   : > { %v3740_v2 = vmul.f32 %v6659_v40, %v9676_v17 }
0x1688   : > { %v9866_v62 = vpop.xlane.xlu2 %3763 }
0x1689   : > { %11705 = vst [vmem:[#allocation138_spill] sm:$0xff] %v9866_v62 }
0x168b   : > { %v9849_v29 = vpop.permute.xlu0 %4124 }
0x168c   : > { %3784 = vadd.xlane.f32.xlu1 %v3783_v22  ;;  %v3789_v22 = vsel %vm463_vm1, %v3739_v44, 0.0 }
0x168d   : > { %5040 = vrot.lane.b32.xlu2 %v4964_v4, %s11421_s30 }
0x1690   : > { %v9877_v20 = vpop.permute.xlu2 %4122 }
0x1693   : > { %v9860_v41 = vpop.permute.xlu0 %4130 }
0x1694   : > { %3787 = vadd.xlane.f32.xlu1 %v3786_v21  ;;  %v9930_v21 = vpop.permute.xlu1 %4144 }
0x1695   : > { %5046 = vrot.lane.b32.xlu2 %v4967_v0, %s11421_s30  ;;  %v3792_v0 = vsel %vm463_vm1, %v3740_v2, 0.0  ;;  %v3692_v2 = vrot.slane %v9880_v18, 2 }
0x1698   : > { %v9898_v25 = vpop.permute.xlu2 %4128 }
0x169b   : > { %v9875_v55 = vpop.permute.xlu0 %4136 }
0x169c   : > { %3802 = vadd.xlane.f32.xlu1 %v3801_v37  ;;  %v6660_v37 = vld [vmem:[%s11265_s3 + $0x78] sm:$0xff]  ;;  %v9944_v57 = vpop.permute.xlu1 %4572 }
0x169d   : > { %v3745_v17 = vmul.f32 %v6660_v37, %v9685_v54 }
0x169f   : > { %v3807_v23 = vsel %vm463_vm1, %v3745_v17, 0.0  ;;  %v11714_v17 = vld [vmem:[#allocation60_spill] sm:$0xff] }
0x16a0   : > { %v9920_v51 = vpop.permute.xlu2 %4134 }
0x16a3   : > { %v9895_v13 = vpop.permute.xlu0 %4142 }
0x16a4   : > { %3805 = vadd.xlane.f32.xlu1 %v3804_v36  ;;  %v4068_v36 = vmul.f32 %v9887_v9, %v11709_v31  ;;  %v9959_v19 = vpop.permute.xlu1 %5022 }
0x16a8   : > { %v9935_v38 = vpop.permute.xlu2 %4140 }
0x16ab   : > { %3775 = vadd.xlane.f32.xlu0 %v3774_v6  ;;  %v9917_v4 = vpop.permute.xlu0 %4570  ;;  %v6661_v6 = vld [vmem:[%s11265_s3 + $0x88] sm:$0xff] }
0x16ac   : > { %v3747_v32 = vmul.f32 %v6661_v6, %v9887_v9  ;;  %v9971_v60 = vpop.permute.xlu1 %5024  ;;  %v9999_v6 = vperm.slane %v3692_v2, 0 }
0x16ae   : > { %v3813_v54 = vsel %vm463_vm1, %v3747_v32, 0.0 }
0x16b0   : > { %v9953_v47 = vpop.permute.xlu2 %4146 }
0x16b3   : > { %3781 = vadd.xlane.f32.xlu0 %v3780_v35  ;;  %v9933_v7 = vpop.permute.xlu0 %4576  ;;  %v11710_v35 = vld [vmem:[#allocation91_spill] sm:$0xff] }
0x16b4   : > { %v4518_v46 = vmul.f32 %v9887_v9, %v11710_v35  ;;  %v9991_v37 = vpop.permute.xlu1 %4584 }
0x16b8   : > { %v9963_v1 = vpop.permute.xlu2 %4574 }
0x16bb   : > { %3796 = vadd.xlane.f32.xlu0 %v3795_v28  ;;  %v9947_v26 = vpop.permute.xlu0 %5020  ;;  %v3691_v28 = vrot.slane %v9880_v18, 1 }
0x16bd   : > { %4150 = vrot.lane.b32.xlu1 %v4069_v3, %s11648_s29  ;;  %v4968_v3 = vmul.f32 %v9887_v9, %v11711_v42 }
0x16be   : > { %3772 = vadd.xlane.f32.xlu2 %v3771_v14  ;;  %v9969_v14 = vperm.slane %v3691_v28, 0  ;;  %v11716_v28 = vld [vmem:[#allocation63_spill] sm:$0xff] }
0x16c0   : > { %v9976_v44 = vpop.permute.xlu2 %4578 }
0x16c3   : > { %3799 = vadd.xlane.f32.xlu0 %v3798_v49  ;;  %v9961_v48 = vpop.permute.xlu0 %4580  ;;  %v11712_v49 = vld [vmem:[#allocation58_spill] sm:$0xff] }
0x16c4   : > { %v4071_v56 = vmul.f32 %v9969_v14, %v11712_v49 }
0x16c5   : > { %4600 = vrot.lane.b32.xlu1 %v4519_v12, %s11658_s2  ;;  %v9981_v12 = vperm.slane %v3693_v50, 0 }
0x16c6   : > { %3790 = vadd.xlane.f32.xlu2 %v3789_v22  ;;  %v6662_v22 = vld [vmem:[%s11265_s3 + $0x80] sm:$0xff] }
0x16c7   : > { %v3746_v40 = vmul.f32 %v6662_v22, %v9887_v9  ;;  %v3695_v22 = vrot.slane %v9880_v18, 5 }
0x16c8   : > { %v10001_v9 = vpop.permute.xlu2 %5026 }
0x16cb   : > { %v9973_v39 = vpop.permute.xlu0 %4582 }
0x16cd   : > { %5050 = vrot.lane.b32.xlu1 %v4969_v45, %s11421_s30  ;;  %v4070_v45 = vmul.f32 %v9969_v14, %v11713_v61  ;;  %v3697_v61 = vrot.slane %v9880_v18, 7 }
0x16ce   : > { %3793 = vadd.xlane.f32.xlu2 %v3792_v0  ;;  %v3694_v0 = vrot.slane %v9880_v18, 4 }
0x16d0   : > { %v10004_v32 = vperm.slane %v3694_v0, 0 }
0x16d2   : > { %v4077_v42 = vmul.f32 %v10004_v32, %v11716_v28  ;;  %v11720_v28 = vld [vmem:[#allocation68_spill] sm:$0xff] }
0x16d3   : > { %v9996_v31 = vpop.permute.xlu0 %5030 }
0x16d6   : > { %3808 = vadd.xlane.f32.xlu2 %v3807_v23  ;;  %v4074_v23 = vmul.f32 %v9981_v12, %v11714_v17  ;;  %v10028_v17 = vperm.slane %v3695_v22, 0  ;;  %v11721_v22 = vld [vmem:[#allocation23_spill] sm:$0xff] }
0x16d7   : > { %4148 = vrot.lane.b32.xlu0 %v4068_v36, %s11648_s29  ;;  %v3810_v36 = vsel %vm463_vm1, %v3746_v40, 0.0  ;;  %v11717_v40 = vld [vmem:[#allocation45_spill] sm:$0xff] }
0x16d8   : > { %v4076_v2 = vmul.f32 %v10004_v32, %v11717_v40  ;;  %v4072_v40 = vmul.f32 %v9999_v6, %v11721_v22  ;;  %v4075_v22 = vmul.f32 %v9981_v12, %v11724_v16 }
0x16db   : > { %v10015_v50 = vpop.permute.xlu0 %5032 }
0x16de   : > { %3814 = vadd.xlane.f32.xlu2 %v3813_v54  ;;  %v11715_v54 = vld [vmem:[#allocation44_spill] sm:$0xff] }
0x16df   : > { %4598 = vrot.lane.b32.xlu0 %v4518_v46, %s11658_s2  ;;  %v4073_v35 = vmul.f32 %v9999_v6, %v11715_v54  ;;  %v3696_v46 = vrot.slane %v9880_v18, 6 }
0x16e1   : > { %v10017_v49 = vperm.slane %v3696_v46, 0  ;;  %v11719_v46 = vld [vmem:[#allocation46_spill] sm:$0xff] }
0x16e2   : > { %v4079_v18 = vmul.f32 %v10028_v17, %v11719_v46 }
0x16e3   : > { %v10035_v54 = vpop.permute.xlu0 %4592  ;;  %v4081_v62 = vmul.f32 %v10017_v49, %v11733_v30 }
0x16e7   : > { %5048 = vrot.lane.b32.xlu0 %v4968_v3, %s11421_s30  ;;  %v10012_v3 = vpop.permute.xlu1 %4586 }
0x16ef   : > { %4154 = vrot.lane.b32.xlu0 %v4071_v56, %s11648_s29  ;;  %v10019_v56 = vpop.permute.xlu2 %5028 }
0x16f6   : > { %4152 = vrot.lane.b32.xlu2 %v4070_v45, %s11648_s29  ;;  %v11718_v45 = vld [vmem:[#allocation66_spill] sm:$0xff] }
0x16f7   : > { %4160 = vrot.lane.b32.xlu0 %v4074_v23, %s11648_s29  ;;  %3811 = vadd.xlane.f32.xlu1 %v3810_v36  ;;  %v4080_v0 = vmul.f32 %v10017_v49, %v11718_v45  ;;  %v10031_v23 = vperm.slane %v3697_v61, 0  ;;  %v10033_v36 = vpop.permute.xlu1 %5034  ;;  %v11722_v61 = vld [vmem:[#allocation47_spill] sm:$0xff] }
0x16f9   : > { %v4082_v45 = vmul.f32 %v10031_v23, %v11722_v61 }
0x16fe   : > { %4158 = vrot.lane.b32.xlu2 %v4073_v35, %s11648_s29  ;;  %v10037_v35 = vpop.permute.xlu2 %4588 }
0x16ff   : > { %4166 = vrot.lane.b32.xlu0 %v4077_v42, %s11648_s29  ;;  %v4083_v42 = vmul.f32 %v10031_v23, %v11720_v28 }
0x1706   : > { %4164 = vrot.lane.b32.xlu2 %v4076_v2, %s11648_s29  ;;  %v10048_v2 = vpop.permute.xlu1 %5036  ;;  %v10054_v46 = vpop.permute.xlu2 %4590 }
0x1707   : > { %4172 = vrot.lane.b32.xlu0 %v4080_v0, %s11648_s29  ;;  %v10052_v0 = vpop.permute.xlu0 %4594 }
0x170e   : > { %4170 = vrot.lane.b32.xlu2 %v4079_v18, %s11648_s29  ;;  %v11723_v18 = vld [vmem:[#allocation93_spill] sm:$0xff]  ;;  %v10065_v61 = vpop.permute.xlu1 %4596  ;;  %v10074_v16 = vpop.permute.xlu2 %5038 }
0x170f   : > { %4178 = vrot.lane.b32.xlu0 %v4083_v42, %s11648_s29  ;;  %v4521_v28 = vmul.f32 %v9969_v14, %v11723_v18  ;;  %v11725_v42 = vld [vmem:[#allocation67_spill] sm:$0xff]  ;;  %11726 = vst [vmem:[#allocation135_spill] sm:$0xff] %v10065_v61  ;;  %v10070_v24 = vpop.permute.xlu0 %5042  ;;  %v11729_v18 = vld [vmem:[#allocation25_spill] sm:$0xff] }
0x1710   : > { %4156 = vrot.lane.b32.xlu1 %v4072_v40, %s11648_s29  ;;  %v4520_v40 = vmul.f32 %v9969_v14, %v11725_v42  ;;  %11728 = vst [vmem:[#allocation139_spill] sm:$0xff] %v10070_v24  ;;  %v4078_v43 = vmul.f32 %v10028_v17, %v11729_v18  ;;  %v11731_v42 = vld [vmem:[#allocation99_spill] sm:$0xff]  ;;  %v11743_v24 = vld [vmem:[#allocation98_spill] sm:$0xff] }
0x1716   : > { %4176 = vrot.lane.b32.xlu2 %v4082_v45, %s11648_s29  ;;  %v4971_v45 = vmul.f32 %v9969_v14, %v11727_v52  ;;  %v10087_v18 = vpop.permute.xlu1 %5044 }
0x1717   : > { %4604 = vrot.lane.b32.xlu0 %v4521_v28, %s11658_s2  ;;  %v11730_v28 = vld [vmem:[#allocation69_spill] sm:$0xff]  ;;  %11734 = vst [vmem:[#allocation117_spill] sm:$0xff] %v10087_v18 }
0x1718   : > { %4162 = vrot.lane.b32.xlu1 %v4075_v22, %s11648_s29  ;;  %v4523_v22 = vmul.f32 %v9999_v6, %v11730_v28  ;;  %v11741_v18 = vld [vmem:[#allocation73_spill] sm:$0xff] }
0x171e   : > { %4602 = vrot.lane.b32.xlu2 %v4520_v40, %s11658_s2  ;;  %v4972_v40 = vmul.f32 %v9999_v6, %v11731_v42  ;;  %v10083_v52 = vpop.xlane.xlu0 %3775  ;;  %v10100_v30 = vpop.xlane.xlu1 %3769 }
0x171f   : > { %5054 = vrot.lane.b32.xlu0 %v4971_v45, %s11421_s30  ;;  %11732 = vst [vmem:[#allocation39_spill] sm:$0xff] %v10083_v52  ;;  %v11735_v45 = vld [vmem:[#allocation71_spill] sm:$0xff]  ;;  %v11737_v52 = vld [vmem:[#allocation94_spill] sm:$0xff] }
0x1720   : > { %4168 = vrot.lane.b32.xlu1 %v4078_v43, %s11648_s29  ;;  %v10091_v43 = vpop.permute.xlu2 %5040  ;;  %v4970_v28 = vmul.f32 %v9969_v14, %v11735_v45  ;;  %v4522_v61 = vmul.f32 %v9999_v6, %v11737_v52  ;;  %11738 = vst [vmem:[#allocation41_spill] sm:$0xff] %v10100_v30  ;;  %v4525_v45 = vmul.f32 %v9981_v12, %v11741_v18  ;;  %v11747_v30 = vld [vmem:[#allocation75_spill] sm:$0xff] }
0x1721   : > { %v4524_v52 = vmul.f32 %v9981_v12, %v11743_v24  ;;  %v4526_v18 = vmul.f32 %v10004_v32, %v11747_v30 }
0x1726   : > { %4608 = vrot.lane.b32.xlu2 %v4523_v22, %s11658_s2  ;;  %v11736_v22 = vld [vmem:[#allocation101_spill] sm:$0xff] }
0x1727   : > { %5056 = vrot.lane.b32.xlu0 %v4972_v40, %s11421_s30  ;;  %v4527_v42 = vmul.f32 %v10004_v32, %v11736_v22  ;;  %v10103_v40 = vpop.xlane.xlu0 %3781 }
0x1728   : > { %4174 = vrot.lane.b32.xlu1 %v4081_v62, %s11648_s29  ;;  %11739 = vst [vmem:[#allocation119_spill] sm:$0xff] %v10103_v40  ;;  %v10106_v62 = vpop.permute.xlu2 %5046 }
0x1729   : > { %11740 = vst [vmem:[#allocation121_spill] sm:$0xff] %v10106_v62  ;;  %v11749_v62 = vld [vmem:[#allocation100_spill] sm:$0xff] }
0x172a   : > { %v4973_v24 = vmul.f32 %v9999_v6, %v11749_v62 }
0x172e   : > { %5052 = vrot.lane.b32.xlu2 %v4970_v28, %s11421_s30  ;;  %v11742_v28 = vld [vmem:[#allocation103_spill] sm:$0xff] }
0x172f   : > { %4616 = vrot.lane.b32.xlu0 %v4527_v42, %s11658_s2  ;;  %v4528_v22 = vmul.f32 %v10028_v17, %v11742_v28  ;;  %v10117_v42 = vpop.xlane.xlu1 %3778 }
0x1730   : > { %4606 = vrot.lane.b32.xlu1 %v4522_v61, %s11658_s2  ;;  %11744 = vst [vmem:[#allocation123_spill] sm:$0xff] %v10117_v42  ;;  %v10119_v61 = vpop.xlane.xlu0 %3796 }
0x1731   : > { %11745 = vst [vmem:[#allocation125_spill] sm:$0xff] %v10119_v61  ;;  %v10121_v40 = vpop.xlane.xlu2 %3772 }
0x1732   : > { %11746 = vst [vmem:[#allocation128_spill] sm:$0xff] %v10121_v40  ;;  %v11755_v40 = vld [vmem:[#allocation102_spill] sm:$0xff] }
0x1733   : > { %v4974_v62 = vmul.f32 %v9981_v12, %v11755_v40 }
0x1736   : > { %4612 = vrot.lane.b32.xlu2 %v4525_v45, %s11658_s2  ;;  %v11748_v45 = vld [vmem:[#allocation105_spill] sm:$0xff] }
0x1737   : > { %4618 = vrot.lane.b32.xlu0 %v4528_v22, %s11658_s2  ;;  %v4977_v28 = vmul.f32 %v10004_v32, %v11748_v45  ;;  %v10132_v22 = vpop.xlane.xlu1 %3784 }
0x1738   : > { %4610 = vrot.lane.b32.xlu1 %v4524_v52, %s11658_s2  ;;  %11750 = vst [vmem:[#allocation130_spill] sm:$0xff] %v10132_v22  ;;  %v11751_v52 = vld [vmem:[#allocation77_spill] sm:$0xff]  ;;  %v10136_v42 = vpop.xlane.xlu0 %3799 }
0x1739   : > { %v4975_v61 = vmul.f32 %v9981_v12, %v11751_v52  ;;  %11752 = vst [vmem:[#allocation132_spill] sm:$0xff] %v10136_v42  ;;  %v10138_v30 = vpop.xlane.xlu2 %3790 }
0x173a   : > { %11753 = vst [vmem:[#allocation133_spill] sm:$0xff] %v10138_v30 }
0x173e   : > { %4614 = vrot.lane.b32.xlu2 %v4526_v18, %s11658_s2  ;;  %v11754_v18 = vld [vmem:[#allocation107_spill] sm:$0xff] }
0x173f   : > { %5066 = vrot.lane.b32.xlu0 %v4977_v28, %s11421_s30  ;;  %v4978_v45 = vmul.f32 %v10028_v17, %v11754_v18  ;;  %v11756_v28 = vld [vmem:[#allocation79_spill] sm:$0xff]  ;;  %v10151_v42 = vpop.xlane.xlu1 %3787  ;;  %v11760_v18 = vld [vmem:[#allocation104_spill] sm:$0xff] }
0x1740   : > { %5058 = vrot.lane.b32.xlu1 %v4973_v24, %s11421_s30  ;;  %v4976_v24 = vmul.f32 %v10004_v32, %v11756_v28  ;;  %11758 = vst [vmem:[#allocation116_spill] sm:$0xff] %v10151_v42  ;;  %v4529_v30 = vmul.f32 %v10028_v17, %v11760_v18  ;;  %v11763_v28 = vld [vmem:[#allocation111_spill] sm:$0xff] }
0x1741   : > { %v10158_v40 = vpop.xlane.xlu2 %3793 }
0x1742   : > { %11761 = vst [vmem:[#allocation118_spill] sm:$0xff] %v10158_v40 }
0x1746   : > { %5062 = vrot.lane.b32.xlu2 %v4975_v61, %s11421_s30  ;;  %v11759_v61 = vld [vmem:[#allocation109_spill] sm:$0xff] }
0x1747   : > { %5068 = vrot.lane.b32.xlu0 %v4978_v45, %s11421_s30  ;;  %v4533_v22 = vmul.f32 %v10031_v23, %v11759_v61  ;;  %v11762_v45 = vld [vmem:[#allocation81_spill] sm:$0xff]  ;;  %v11765_v61 = vld [vmem:[#allocation106_spill] sm:$0xff]  ;;  %v10171_v18 = vpop.xlane.xlu1 %3802 }
0x1748   : > { %5060 = vrot.lane.b32.xlu1 %v4974_v62, %s11421_s30  ;;  %v4531_v62 = vmul.f32 %v10017_v49, %v11762_v45  ;;  %11766 = vst [vmem:[#allocation122_spill] sm:$0xff] %v10171_v18 }
0x1749   : > { %v10149_v52 = vpop.permute.xlu0 %4148 }
0x174a   : > { %11757 = vst [vmem:[#allocation142_spill] sm:$0xff] %v10149_v52  ;;  %v4530_v52 = vmul.f32 %v10017_v49, %v11765_v61 }
0x174e   : > { %5064 = vrot.lane.b32.xlu2 %v4976_v24, %s11421_s30  ;;  %v4982_v24 = vmul.f32 %v10031_v23, %v11763_v28 }
0x174f   : > { %4628 = vrot.lane.b32.xlu0 %v4533_v22, %s11658_s2  ;;  %v10175_v22 = vpop.xlane.xlu2 %3808  ;;  %v10185_v61 = vpop.xlane.xlu1 %3805 }
0x1750   : > { %4620 = vrot.lane.b32.xlu1 %v4529_v30, %s11658_s2  ;;  %11767 = vst [vmem:[#allocation124_spill] sm:$0xff] %v10175_v22  ;;  %v11768_v30 = vld [vmem:[#allocation83_spill] sm:$0xff]  ;;  %v11773_v22 = vld [vmem:[#allocation110_spill] sm:$0xff] }
0x1751   : > { %v10167_v42 = vpop.permute.xlu0 %4598  ;;  %v4532_v45 = vmul.f32 %v10031_v23, %v11768_v30  ;;  %11771 = vst [vmem:[#allocation129_spill] sm:$0xff] %v10185_v61  ;;  %v4980_v30 = vmul.f32 %v10017_v49, %v11773_v22  ;;  %v6663_v22 = vld [vmem:[%s11265_s3 + $0x90] sm:$0xff] }
0x1752   : > { %11764 = vst [vmem:[#allocation120_spill] sm:$0xff] %v10167_v42 }
0x1756   : > { %4624 = vrot.lane.b32.xlu2 %v4531_v62, %s11658_s2  ;;  %v11769_v62 = vld [vmem:[#allocation108_spill] sm:$0xff] }
0x1757   : > { %5076 = vrot.lane.b32.xlu0 %v4982_v24, %s11421_s30  ;;  %v4979_v28 = vmul.f32 %v10028_v17, %v11769_v62  ;;  %v10187_v18 = vpop.xlane.xlu2 %3814  ;;  %v11772_v24 = vld [vmem:[#allocation86_spill] sm:$0xff] }
0x1758   : > { %4622 = vrot.lane.b32.xlu1 %v4530_v52, %s11658_s2  ;;  %v4981_v52 = vmul.f32 %v10017_v49, %v11772_v24 }
0x1759   : > { %v10182_v40 = vpop.permute.xlu0 %5048 }
0x175a   : > { %11770 = vst [vmem:[#allocation127_spill] sm:$0xff] %v10182_v40 }
0x175e   : > { %4626 = vrot.lane.b32.xlu2 %v4532_v45, %s11658_s2  ;;  %v10195_v45 = vpop.permute.xlu1 %4150 }
0x175f   : > { %11774 = vst [vmem:[#allocation131_spill] sm:$0xff] %v10195_v45  ;;  %v10199_v40 = vpop.permute.xlu2 %4152 }
0x1760   : > { %5070 = vrot.lane.b32.xlu1 %v4979_v28, %s11421_s30  ;;  %11776 = vst [vmem:[#allocation141_spill] sm:$0xff] %v10199_v40  ;;  %v11777_v28 = vld [vmem:[#allocation112_spill] sm:$0xff] }
0x1761   : > { %v10197_v62 = vpop.permute.xlu0 %4154  ;;  %v4983_v61 = vmul.f32 %v10031_v23, %v11777_v28 }
0x1762   : > { %11775 = vst [vmem:[#allocation140_spill] sm:$0xff] %v10197_v62 }
0x1766   : > { %5074 = vrot.lane.b32.xlu2 %v4981_v52, %s11421_s30  ;;  %v10204_v42 = vpop.permute.xlu1 %4600 }
0x1767   : > { %11778 = vst [vmem:[#allocation114_spill] sm:$0xff] %v10204_v42  ;;  %v10208_v52 = vpop.permute.xlu2 %4158 }
0x1768   : > { %5072 = vrot.lane.b32.xlu1 %v4980_v30, %s11421_s30  ;;  %11780 = vst [vmem:[#allocation143_spill] sm:$0xff] %v10208_v52  ;;  %v3748_v30 = vmul.f32 %v6663_v22, %v9969_v14 }
0x1769   : > { %v10206_v24 = vpop.permute.xlu0 %4160 }
0x176a   : > { %11779 = vst [vmem:[#allocation115_spill] sm:$0xff] %v10206_v24  ;;  %v3816_v28 = vsel %vm463_vm1, %v3748_v30, 0.0  ;;  %v6665_v30 = vld [vmem:[%s11265_s3 + $0xa0] sm:$0xff] }
0x176e   : > { %v10214_v62 = vpop.permute.xlu1 %5050 }
0x176f   : > { %11781 = vst [vmem:[#allocation144_spill] sm:$0xff] %v10214_v62  ;;  %v10219_v45 = vpop.permute.xlu2 %4164 }
0x1770   : > { %5078 = vrot.lane.b32.xlu1 %v4983_v61, %s11421_s30  ;;  %11783 = vst [vmem:[#allocation62_spill] sm:$0xff] %v10219_v45  ;;  %v6664_v61 = vld [vmem:[%s11265_s3 + $0xa8] sm:$0xff]  ;;  %v3750_v45 = vmul.f32 %v6665_v30, %v9999_v6  ;;  %s11863_s30 = smov 24  }
0x1771   : > { %v10216_v40 = vpop.permute.xlu0 %4166  ;;  %v3751_v24 = vmul.f32 %v6664_v61, %v9999_v6  ;;  %v6667_v6 = vld [vmem:[%s11265_s3 + $0xb0] sm:$0xff] }
0x1772   : > { %11782 = vst [vmem:[#allocation113_spill] sm:$0xff] %v10216_v40  ;;  %v6666_v40 = vld [vmem:[%s11265_s3 + $0xb8] sm:$0xff] }
0x1773   : > { %v3825_v22 = vsel %vm463_vm1, %v3751_v24, 0.0  ;;  %v3753_v61 = vmul.f32 %v6666_v40, %v9981_v12  ;;  %v6668_v40 = vld [vmem:[%s11265_s3 + $0xc0] sm:$0xff] }
0x1775   : > { %v3831_v24 = vsel %vm463_vm1, %v3753_v61, 0.0 }
0x1776   : > { %v10225_v52 = vpop.xlane.xlu1 %3811 }
0x1779   : > { %v10227_v42 = vpop.permute.xlu0 %4172 }
0x177a   : > { %11784 = vst [vmem:[#allocation64_spill] sm:$0xff] %v10227_v42  ;;  %v3822_v42 = vsel %vm463_vm1, %v3750_v45, 0.0  ;;  %v6669_v45 = vld [vmem:[%s11265_s3 + $0x98] sm:$0xff] }
0x177b   : > { %v3749_v61 = vmul.f32 %v6669_v45, %v9969_v14  ;;  %v6671_v14 = vld [vmem:[%s11265_s3 + $0xe8] sm:$0xff] }
0x177c   : > { %v6672_v45 = vld [vmem:[%s11265_s3 + $0xc8] sm:$0xff] }
0x1781   : > { %3817 = vadd.xlane.f32.xlu0 %v3816_v28  ;;  %v10234_v28 = vpop.permute.xlu2 %4170  ;;  %v10248_v30 = vpop.permute.xlu0 %4178 }
0x1782   : > { %11785 = vst [vmem:[#allocation27_spill] sm:$0xff] %v10234_v28  ;;  %v10240_v62 = vpop.permute.xlu1 %4156  ;;  %v3754_v28 = vmul.f32 %v6668_v40, %v10004_v32  ;;  %v6670_v40 = vld [vmem:[%s11265_s3 + $0xd8] sm:$0xff] }
0x1783   : > { %11786 = vst [vmem:[#allocation14_spill] sm:$0xff] %v10240_v62 }
0x1784   : > { %11787 = vst [vmem:[#allocation35_spill] sm:$0xff] %v10248_v30 }
0x1789   : > { %3826 = vadd.xlane.f32.xlu0 %v3825_v22  ;;  %v3752_v22 = vmul.f32 %v6667_v6, %v9981_v12  ;;  %v10254_v62 = vpop.permute.xlu2 %4176  ;;  %v3819_v6 = vsel %vm463_vm1, %v3749_v61, 0.0  ;;  %v10269_v30 = vpop.permute.xlu0 %4604  ;;  %v3755_v61 = vmul.f32 %v6672_v45, %v10004_v32  ;;  %v6674_v32 = vld [vmem:[%s11265_s3 + $0xf0] sm:$0xff] }
0x178a   : > { %v10261_v12 = vpop.permute.xlu1 %4162  ;;  %11788 = vst [vmem:[#allocation29_spill] sm:$0xff] %v10269_v30  ;;  %v6675_v45 = vld [vmem:[%s11265_s3 + $0xd0] sm:$0xff] }
0x178b   : > { %v3837_v30 = vsel %vm463_vm1, %v3755_v61, 0.0  ;;  %v3756_v61 = vmul.f32 %v6675_v45, %v10028_v17 }
0x178f   : > { %3823 = vadd.xlane.f32.xlu2 %v3822_v42  ;;  %v3828_v42 = vsel %vm463_vm1, %v3752_v22, 0.0  ;;  %v3757_v22 = vmul.f32 %v6670_v40, %v10028_v17  ;;  %v6676_v17 = vld [vmem:[%s11265_s3 + $0xf8] sm:$0xff] }
0x1790   : > { %v3761_v45 = vmul.f32 %v6676_v17, %v10031_v23 }
0x1791   : > { %3832 = vadd.xlane.f32.xlu0 %v3831_v24  ;;  %v3834_v24 = vsel %vm463_vm1, %v3754_v28, 0.0  ;;  %v3843_v28 = vsel %vm463_vm1, %v3757_v22, 0.0  ;;  %v6673_v22 = vld [vmem:[%s11265_s3 + $0xe0] sm:$0xff] }
0x1792   : > { %v10283_v40 = vpop.permute.xlu1 %4168 }
0x1797   : > { %3829 = vadd.xlane.f32.xlu2 %v3828_v42  ;;  %v3759_v42 = vmul.f32 %v6671_v14, %v10017_v49  ;;  %v3758_v14 = vmul.f32 %v6673_v22, %v10017_v49  ;;  %v3840_v22 = vsel %vm463_vm1, %v3756_v61, 0.0  ;;  %v3855_v61 = vsel %vm463_vm1, %v3761_v45, 0.0 }
0x1798   : > { %v4224_v45 = vsel %vm463_vm1, %v9849_v29, 0.0  ;;  %v4227_v29 = vsel %vm463_vm1, %v9873_v5, 0.0  ;;  %v4233_v5 = vsel %vm463_vm1, %v9860_v41, 0.0 }
0x1799   : > { %3835 = vadd.xlane.f32.xlu0 %v3834_v24  ;;  %v10280_v24 = vpop.permute.xlu2 %4602 }
0x179a   : > { %3820 = vadd.xlane.f32.xlu1 %v3819_v6  ;;  %v3849_v6 = vsel %vm463_vm1, %v3759_v42, 0.0  ;;  %v3846_v42 = vsel %vm463_vm1, %v3758_v14, 0.0  ;;  %v4212_v14 = vsel %vm463_vm1, %v9822_v58, 0.0  ;;  %v4221_v58 = vsel %vm463_vm1, %v9877_v20, 0.0 }
0x179b   : > { %v5112_v20 = vsel %vm463_vm1, %v9846_v8, 0.0  ;;  %v4218_v8 = vsel %vm463_vm1, %v9858_v15, 0.0  ;;  %v4254_v15 = vsel %vm463_vm1, %v9930_v21, 0.0  ;;  %v4248_v21 = vsel %vm463_vm1, %v9935_v38, 0.0 }
0x179c   : > { %v4674_v38 = vsel %vm463_vm1, %v9963_v1, 0.0 }
0x179f   : > { %3844 = vadd.xlane.f32.xlu2 %v3843_v28  ;;  %v3760_v28 = vmul.f32 %v6674_v32, %v10031_v23  ;;  %v10305_v32 = vpop.permute.xlu1 %4174  ;;  %v4662_v23 = vsel %vm463_vm1, %v9832_v34, 0.0  ;;  %v5115_v34 = vsel %vm463_vm1, %v9851_v10, 0.0  ;;  %v4242_v10 = vsel %vm463_vm1, %v9875_v55, 0.0 }
0x17a1   : > { %3850 = vadd.xlane.f32.xlu0 %v3849_v6  ;;  %v10299_v6 = vpop.permute.xlu0 %5054  ;;  %v3852_v49 = vsel %vm463_vm1, %v3760_v28, 0.0  ;;  %v4215_v28 = vsel %vm463_vm1, %v9825_v27, 0.0 }
0x17a2   : > { %3838 = vadd.xlane.f32.xlu1 %v3837_v30  ;;  %v10302_v30 = vpop.permute.xlu2 %4608 }
0x17a7   : > { %3847 = vadd.xlane.f32.xlu2 %v3846_v42 }
0x17a9   : > { %3853 = vadd.xlane.f32.xlu0 %v3852_v49  ;;  %v10313_v42 = vpop.permute.xlu0 %5056 }
0x17aa   : > { %3841 = vadd.xlane.f32.xlu1 %v3840_v22  ;;  %v10318_v49 = vpop.permute.xlu2 %5052  ;;  %v10320_v22 = vpop.permute.xlu1 %4606 }
0x17af   : > { %4213 = vadd.xlane.f32.xlu2 %v4212_v14  ;;  %v4665_v14 = vsel %vm463_vm1, %v9840_v59, 0.0 }
0x17b1   : > { %4216 = vadd.xlane.f32.xlu0 %v4215_v28  ;;  %v10328_v27 = vpop.permute.xlu0 %4616 }
0x17b2   : > { %3856 = vadd.xlane.f32.xlu1 %v3855_v61  ;;  %v10330_v17 = vpop.permute.xlu2 %4612  ;;  %v10334_v28 = vpop.permute.xlu1 %4610  ;;  %v4239_v61 = vsel %vm463_vm1, %v9920_v51, 0.0  ;;  %v4230_v51 = vsel %vm463_vm1, %v9898_v25, 0.0  ;;  %v4236_v25 = vsel %vm463_vm1, %v9893_v11, 0.0 }
0x17b7   : > { %4222 = vadd.xlane.f32.xlu2 %v4221_v58 }
0x17b9   : > { %4663 = vadd.xlane.f32.xlu0 %v4662_v23  ;;  %v10340_v59 = vpop.permute.xlu0 %4618 }
0x17ba   : > { %4666 = vadd.xlane.f32.xlu1 %v4665_v14  ;;  %v10344_v58 = vpop.permute.xlu2 %4614  ;;  %v10348_v23 = vpop.permute.xlu1 %5058 }
0x17bf   : > { %4225 = vadd.xlane.f32.xlu2 %v4224_v45 }
0x17c1   : > { %5113 = vadd.xlane.f32.xlu0 %v5112_v20  ;;  %v10354_v14 = vpop.permute.xlu0 %5066 }
0x17c2   : > { %5116 = vadd.xlane.f32.xlu1 %v5115_v34  ;;  %v10358_v45 = vpop.permute.xlu2 %5062  ;;  %v10362_v20 = vpop.permute.xlu1 %5060  ;;  %v4245_v34 = vsel %vm463_vm1, %v9913_v63, 0.0  ;;  %v4251_v63 = vsel %vm463_vm1, %v9895_v13, 0.0 }
0x17c7   : > { %4240 = vadd.xlane.f32.xlu2 %v4239_v61 }
0x17c9   : > { %4228 = vadd.xlane.f32.xlu0 %v4227_v29  ;;  %v10366_v55 = vpop.permute.xlu0 %5068  ;;  %v4668_v29 = vsel %vm463_vm1, %v9917_v4, 0.0  ;;  %v4257_v4 = vsel %vm463_vm1, %v9953_v47, 0.0  ;;  %v4680_v47 = vsel %vm463_vm1, %v9976_v44, 0.0  ;;  %v4686_v44 = vsel %vm463_vm1, %v9973_v39, 0.0 }
0x17ca   : > { %4219 = vadd.xlane.f32.xlu1 %v4218_v8  ;;  %v10372_v61 = vpop.permute.xlu2 %5064  ;;  %v10374_v41 = vpop.permute.xlu1 %4620  ;;  %v4689_v39 = vsel %vm463_vm1, %v9991_v37, 0.0 }
0x17cf   : > { %4243 = vadd.xlane.f32.xlu2 %v4242_v10  ;;  %v4677_v10 = vsel %vm463_vm1, %v9933_v7, 0.0  ;;  %v4671_v7 = vsel %vm463_vm1, %v9944_v57, 0.0  ;;  %v5127_v57 = vsel %vm463_vm1, %v10001_v9, 0.0  ;;  %v5133_v9 = vsel %vm463_vm1, %v9996_v31, 0.0 }
0x17d0   : > { %v5136_v31 = vsel %vm463_vm1, %v10015_v50, 0.0  ;;  %v4692_v50 = vsel %vm463_vm1, %v10012_v3, 0.0  ;;  %v4701_v3 = vsel %vm463_vm1, %v10035_v54, 0.0 }
0x17d1   : > { %4231 = vadd.xlane.f32.xlu0 %v4230_v51  ;;  %v10382_v8 = vpop.permute.xlu0 %4628 }
0x17d2   : > { %4234 = vadd.xlane.f32.xlu1 %v4233_v5  ;;  %v10384_v11 = vpop.permute.xlu2 %4624  ;;  %v10388_v51 = vpop.permute.xlu1 %4622  ;;  %v5118_v5 = vsel %vm463_vm1, %v9947_v26, 0.0  ;;  %v5121_v26 = vsel %vm463_vm1, %v9959_v19, 0.0  ;;  %v5130_v19 = vsel %vm463_vm1, %v10019_v56, 0.0  ;;  %v3920_v56 = vperm.slane %v10225_v52, %v8382_v33 }
0x17d7   : > { %4255 = vadd.xlane.f32.xlu2 %v4254_v15 }
0x17d9   : > { %4246 = vadd.xlane.f32.xlu0 %v4245_v34  ;;  %v10394_v13 = vpop.permute.xlu0 %5076 }
0x17da   : > { %4237 = vadd.xlane.f32.xlu1 %v4236_v25  ;;  %v10398_v15 = vpop.permute.xlu2 %4626  ;;  %v10402_v34 = vpop.permute.xlu1 %5070  ;;  %v4683_v25 = vsel %vm463_vm1, %v9961_v48, 0.0  ;;  %v5124_v48 = vsel %vm463_vm1, %v9971_v60, 0.0  ;;  %v4695_v60 = vsel %vm463_vm1, %v10037_v35, 0.0 }
0x17df   : > { %4669 = vadd.xlane.f32.xlu2 %v4668_v29 }
0x17e1   : > { %4249 = vadd.xlane.f32.xlu0 %v4248_v21 }
0x17e2   : > { %4252 = vadd.xlane.f32.xlu1 %v4251_v63  ;;  %v10410_v29 = vpop.permute.xlu2 %5074  ;;  %v10414_v21 = vpop.permute.xlu1 %5072 }
0x17e7   : > { %4678 = vadd.xlane.f32.xlu2 %v4677_v10 }
0x17e9   : > { %4258 = vadd.xlane.f32.xlu0 %v4257_v4 }
0x17ea   : > { %4675 = vadd.xlane.f32.xlu1 %v4674_v38  ;;  %v10422_v38 = vpop.permute.xlu1 %5078 }
0x17ef   : > { %5119 = vadd.xlane.f32.xlu2 %v5118_v5 }
0x17f1   : > { %4672 = vadd.xlane.f32.xlu0 %v4671_v7 }
0x17f2   : > { %4681 = vadd.xlane.f32.xlu1 %v4680_v47 }
0x17f4   : > { %v3818_v1 = vpop.xlane.xlu0 %3817 }
0x17f5   : > { %v3923_v37 = vperm.slane %v3818_v1, %v8382_v33 }
0x17f7   : > { %4684 = vadd.xlane.f32.xlu2 %v4683_v25 }
0x17f9   : > { %5122 = vadd.xlane.f32.xlu0 %v5121_v26  ;;  %v3921_v26 = vperm.slane %v10187_v18, %v8386_v53 }
0x17fa   : > { %5128 = vadd.xlane.f32.xlu1 %v5127_v57 }
0x17fb   : > { %v3922_v52 = vsel %vm992_vm0, %v3921_v26, %v3920_v56 }
0x17fc   : > { %v3827_v63 = vpop.xlane.xlu0 %3826 }
0x17ff   : > { %4687 = vadd.xlane.f32.xlu2 %v4686_v44  ;;  %v3927_v44 = vperm.slane %v3827_v63, %v8386_v53 }
0x1801   : > { %5125 = vadd.xlane.f32.xlu0 %v5124_v48 }
0x1802   : > { %v3824_v10 = vpop.xlane.xlu2 %3823  ;;  %5131 = vadd.xlane.f32.xlu1 %v5130_v19 }
0x1803   : > { %v3926_v47 = vperm.slane %v3824_v10, %v8382_v33 }
0x1804   : > { %v3833_v4 = vpop.xlane.xlu0 %3832 }
0x1805   : > { %v3930_v48 = vperm.slane %v3833_v4, %v8386_v53  ;;  %v3928_v18 = vsel %vm992_vm0, %v3927_v44, %v3926_v47 }
0x1807   : > { %5134 = vadd.xlane.f32.xlu2 %v5133_v9  ;;  %v4698_v9 = vsel %vm463_vm1, %v10054_v46, 0.0  ;;  %v5139_v46 = vsel %vm463_vm1, %v10033_v36, 0.0 }
0x1809   : > { %4690 = vadd.xlane.f32.xlu0 %v4689_v39 }
0x180a   : > { %v3830_v5 = vpop.xlane.xlu2 %3829  ;;  %4696 = vadd.xlane.f32.xlu1 %v4695_v60 }
0x180b   : > { %v3929_v57 = vperm.slane %v3830_v5, %v8382_v33 }
0x180c   : > { %v3836_v7 = vpop.xlane.xlu0 %3835 }
0x180d   : > { %v3821_v25 = vpop.xlane.xlu1 %3820  ;;  %v3931_v63 = vsel %vm992_vm0, %v3930_v48, %v3929_v57  ;;  %v3932_v56 = vperm.slane %v3836_v7, %v8382_v33  ;;  %v4704_v7 = vsel %vm463_vm1, %v10052_v0, 0.0  ;;  %v5148_v0 = vsel %vm463_vm1, %v10091_v43, 0.0 }
0x180e   : > { %v3924_v35 = vperm.slane %v3821_v25, %v8386_v53 }
0x180f   : > { %5137 = vadd.xlane.f32.xlu2 %v5136_v31 }
0x1810   : > { %v3925_v10 = vsel %vm992_vm0, %v3924_v35, %v3923_v37  ;;  %v5145_v37 = vsel %vm463_vm1, %v10074_v16, 0.0  ;;  %v5142_v16 = vsel %vm463_vm1, %v10048_v2, 0.0 }
0x1811   : > { %v3951_v1 = vsel %vm1039_vm2, %v3925_v10, %v3922_v52  ;;  %4693 = vadd.xlane.f32.xlu0 %v4692_v50 }
0x1812   : > { %v3845_v19 = vpop.xlane.xlu2 %3844  ;;  %v3952_v39 = vsel %vm1041_vm3, %v3928_v18, %v3951_v1  ;;  %4699 = vadd.xlane.f32.xlu1 %v4698_v9 }
0x1813   : > { %v3953_v4 = vsel %vm1043_vm4, %v3931_v63, %v3952_v39  ;;  %v3936_v35 = vperm.slane %v3845_v19, %v8386_v53 }
0x1814   : > { %v3851_v5 = vpop.xlane.xlu0 %3850 }
0x1815   : > { %v3839_v60 = vpop.xlane.xlu1 %3838  ;;  %v3939_v36 = vperm.slane %v3851_v5, %v8386_v53 }
0x1816   : > { %v3933_v47 = vperm.slane %v3839_v60, %v8386_v53 }
0x1817   : > { %4702 = vadd.xlane.f32.xlu2 %v4701_v3 }
0x1818   : > { %v3934_v25 = vsel %vm992_vm0, %v3933_v47, %v3932_v56  ;;  %v11790_v56 = vld [vmem:[#allocation135_spill] sm:$0xff] }
0x1819   : > { %v3954_v31 = vsel %vm1045_vm5, %v3934_v25, %v3953_v4  ;;  %5140 = vadd.xlane.f32.xlu0 %v5139_v46  ;;  %v11789_v4 = vld [vmem:[#allocation139_spill] sm:$0xff]  ;;  %v4707_v47 = vsel %vm463_vm1, %v11790_v56, 0.0  ;;  %v11791_v46 = vld [vmem:[#allocation121_spill] sm:$0xff] }
0x181a   : > { %v3848_v26 = vpop.xlane.xlu2 %3847  ;;  %5146 = vadd.xlane.f32.xlu1 %v5145_v37  ;;  %v5151_v2 = vsel %vm463_vm1, %v11789_v4, 0.0  ;;  %v11797_v4 = vld [vmem:[#allocation114_spill] sm:$0xff] }
0x181b   : > { %v3938_v44 = vperm.slane %v3848_v26, %v8382_v33 }
0x181c   : > { %v3854_v57 = vpop.xlane.xlu0 %3853 }
0x181d   : > { %v3842_v54 = vpop.xlane.xlu1 %3841  ;;  %v3940_v18 = vsel %vm992_vm0, %v3939_v36, %v3938_v44  ;;  %v3941_v5 = vperm.slane %v3854_v57, %v8382_v33  ;;  %v11794_v36 = vld [vmem:[#allocation117_spill] sm:$0xff] }
0x181e   : > { %v3935_v52 = vperm.slane %v3842_v54, %v8382_v33  ;;  %v11793_v54 = vld [vmem:[#allocation131_spill] sm:$0xff] }
0x181f   : > { %4705 = vadd.xlane.f32.xlu2 %v4704_v7  ;;  %v4263_v7 = vsel %vm463_vm1, %v11793_v54, 0.0 }
0x1820   : > { %v3937_v48 = vsel %vm992_vm0, %v3936_v35, %v3935_v52 }
0x1821   : > { %v3955_v10 = vsel %vm1047_vm6, %v3937_v48, %v3954_v31  ;;  %5143 = vadd.xlane.f32.xlu0 %v5142_v16  ;;  %v5157_v31 = vsel %vm463_vm1, %v11791_v46, 0.0  ;;  %v5154_v48 = vsel %vm463_vm1, %v11794_v36, 0.0  ;;  %v11800_v36 = vld [vmem:[#allocation144_spill] sm:$0xff] }
0x1822   : > { %v4214_v50 = vpop.xlane.xlu2 %4213  ;;  %5149 = vadd.xlane.f32.xlu1 %v5148_v0  ;;  %v3956_v1 = vsel %vm1049_vm7, %v3940_v18, %v3955_v10  ;;  %v11795_v10 = vld [vmem:[#allocation142_spill] sm:$0xff] }
0x1823   : > { %v4348_v9 = vperm.slane %v4214_v50, %v8382_v33  ;;  %v4260_v50 = vsel %vm463_vm1, %v11795_v10, 0.0 }
0x1824   : > { %v4217_v19 = vpop.xlane.xlu0 %4216 }
0x1825   : > { %v4349_v63 = vperm.slane %v4217_v19, %v8386_v53  ;;  %v3857_v39 = vpop.xlane.xlu1 %3856 }
0x1826   : > { %v3942_v60 = vperm.slane %v3857_v39, %v8386_v53 }
0x1827   : > { %5152 = vadd.xlane.f32.xlu2 %v5151_v2  ;;  %v4350_v43 = vsel %vm992_vm0, %v4349_v63, %v4348_v9  ;;  %v4713_v2 = vsel %vm463_vm1, %v11797_v4, 0.0 }
0x1828   : > { %v3943_v3 = vsel %vm992_vm0, %v3942_v60, %v3941_v5  ;;  %v11798_v60 = vld [vmem:[#allocation140_spill] sm:$0xff] }
0x1829   : > { %4708 = vadd.xlane.f32.xlu0 %v4707_v47  ;;  %v10490_v26 = vsel %vm11792_vm10, %v3943_v3, %v3956_v1  ;;  %v11796_v1 = vld [vmem:[#allocation120_spill] sm:$0xff]  ;;  %v4269_v3 = vsel %vm463_vm1, %v11798_v60, 0.0  ;;  %vm11832_vm10 = vmmov %vm11829_vm8 }
0x182a   : > { %v4223_v25 = vpop.xlane.xlu2 %4222  ;;  %5158 = vadd.xlane.f32.xlu1 %v5157_v31  ;;  %v4710_v19 = vsel %vm463_vm1, %v11796_v1, 0.0 }
0x182b   : > { %v4352_v54 = vperm.slane %v4223_v25, %v8386_v53 }
0x182c   : > { %v4664_v37 = vpop.xlane.xlu0 %4663 }
0x182d   : > { %v4667_v57 = vpop.xlane.xlu1 %4666  ;;  %v4798_v35 = vperm.slane %v4664_v37, %v8382_v33  ;;  %v11799_v37 = vld [vmem:[#allocation127_spill] sm:$0xff] }
0x182e   : > { %v4799_v44 = vperm.slane %v4667_v57, %v8386_v53  ;;  %v5160_v57 = vsel %vm463_vm1, %v11799_v37, 0.0 }
0x182f   : > { %4264 = vadd.xlane.f32.xlu2 %v4263_v7 }
0x1830   : > { %v10497_v52 = vsel %vm992_vm0, %v4799_v44, %v4798_v35 }
0x1831   : > { %5155 = vadd.xlane.f32.xlu0 %v5154_v48  ;;  %v5163_v48 = vsel %vm463_vm1, %v11800_v36, 0.0 }
0x1832   : > { %v4226_v16 = vpop.xlane.xlu2 %4225  ;;  %4261 = vadd.xlane.f32.xlu1 %v4260_v50  ;;  %v11801_v50 = vld [vmem:[#allocation14_spill] sm:$0xff] }
0x1833   : > { %v4354_v47 = vperm.slane %v4226_v16, %v8382_v33 }
0x1834   : > { %v5114_v0 = vpop.xlane.xlu0 %5113 }
0x1835   : > { %v5117_v18 = vpop.xlane.xlu1 %5116  ;;  %v5248_v9 = vperm.slane %v5114_v0, %v8382_v33  ;;  %v4272_v0 = vsel %vm463_vm1, %v11801_v50, 0.0  ;;  %v4281_v50 = vsel %vm463_vm1, %v10261_v12, 0.0 }
0x1836   : > { %v5249_v63 = vperm.slane %v5117_v18, %v8386_v53 }
0x1837   : > { %4711 = vadd.xlane.f32.xlu2 %v4710_v19  ;;  %v11802_v19 = vld [vmem:[#allocation143_spill] sm:$0xff] }
0x1838   : > { %v10508_v39 = vsel %vm992_vm0, %v5249_v63, %v5248_v9  ;;  %v4275_v9 = vsel %vm463_vm1, %v11802_v19, 0.0  ;;  %v11806_v19 = vld [vmem:[#allocation27_spill] sm:$0xff] }
0x1839   : > { %4714 = vadd.xlane.f32.xlu0 %v4713_v2  ;;  %v11803_v2 = vld [vmem:[#allocation141_spill] sm:$0xff] }
0x183a   : > { %v4241_v5 = vpop.xlane.xlu2 %4240  ;;  %4270 = vadd.xlane.f32.xlu1 %v4269_v3  ;;  %v4266_v60 = vsel %vm463_vm1, %v11803_v2, 0.0 }
0x183c   : > { %v4229_v56 = vpop.xlane.xlu0 %4228 }
0x183d   : > { %v4355_v46 = vperm.slane %v4229_v56, %v8386_v53  ;;  %v4220_v31 = vpop.xlane.xlu1 %4219 }
0x183e   : > { %v4351_v7 = vperm.slane %v4220_v31, %v8382_v33 }
0x183f   : > { %5161 = vadd.xlane.f32.xlu2 %v5160_v57  ;;  %v4356_v35 = vsel %vm992_vm0, %v4355_v46, %v4354_v47  ;;  %v11804_v47 = vld [vmem:[#allocation113_spill] sm:$0xff] }
0x1840   : > { %v4353_v44 = vsel %vm992_vm0, %v4352_v54, %v4351_v7  ;;  %v4287_v46 = vsel %vm463_vm1, %v11804_v47, 0.0  ;;  %v11805_v7 = vld [vmem:[#allocation115_spill] sm:$0xff] }
0x1841   : > { %v4396_v16 = vsel %vm1039_vm2, %v4353_v44, %v4350_v43  ;;  %5164 = vadd.xlane.f32.xlu0 %v5163_v48  ;;  %v4361_v44 = vperm.slane %v4241_v5, %v8386_v53 }
0x1842   : > { %v4244_v10 = vpop.xlane.xlu2 %4243  ;;  %4273 = vadd.xlane.f32.xlu1 %v4272_v0  ;;  %v4397_v25 = vsel %vm1041_vm3, %v4356_v35, %v4396_v16  ;;  %v4278_v35 = vsel %vm463_vm1, %v11805_v7, 0.0 }
0x1843   : > { %v4363_v37 = vperm.slane %v4244_v10, %v8382_v33 }
0x1844   : > { %v4232_v18 = vpop.xlane.xlu0 %4231 }
0x1845   : > { %v4235_v1 = vpop.xlane.xlu1 %4234  ;;  %v4357_v63 = vperm.slane %v4232_v18, %v8382_v33 }
0x1846   : > { %v4358_v4 = vperm.slane %v4235_v1, %v8386_v53 }
0x1847   : > { %4276 = vadd.xlane.f32.xlu2 %v4275_v9  ;;  %v4293_v9 = vsel %vm463_vm1, %v11806_v19, 0.0 }
0x1848   : > { %v4359_v43 = vsel %vm992_vm0, %v4358_v4, %v4357_v63 }
0x1849   : > { %v4398_v3 = vsel %vm1043_vm4, %v4359_v43, %v4397_v25  ;;  %4267 = vadd.xlane.f32.xlu0 %v4266_v60  ;;  %v4290_v25 = vsel %vm463_vm1, %v10283_v40, 0.0  ;;  %v11807_v43 = vld [vmem:[#allocation62_spill] sm:$0xff] }
0x184a   : > { %v4256_v56 = vpop.xlane.xlu2 %4255  ;;  %4288 = vadd.xlane.f32.xlu1 %v4287_v46  ;;  %v4284_v2 = vsel %vm463_vm1, %v11807_v43, 0.0 }
0x184b   : > { %v4369_v46 = vperm.slane %v4256_v56, %v8382_v33 }
0x184c   : > { %v4247_v31 = vpop.xlane.xlu0 %4246 }
0x184d   : > { %v4364_v57 = vperm.slane %v4247_v31, %v8386_v53  ;;  %v4238_v54 = vpop.xlane.xlu1 %4237 }
0x184e   : > { %v4360_v36 = vperm.slane %v4238_v54, %v8382_v33 }
0x184f   : > { %4279 = vadd.xlane.f32.xlu2 %v4278_v35  ;;  %v4365_v48 = vsel %vm992_vm0, %v4364_v57, %v4363_v37  ;;  %v11808_v57 = vld [vmem:[#allocation64_spill] sm:$0xff] }
0x1850   : > { %v4362_v16 = vsel %vm992_vm0, %v4361_v44, %v4360_v36  ;;  %v4296_v54 = vsel %vm463_vm1, %v11808_v57, 0.0  ;;  %v5166_v57 = vsel %vm463_vm1, %v10318_v49, 0.0 }
0x1851   : > { %v4399_v10 = vsel %vm1045_vm5, %v4362_v16, %v4398_v3  ;;  %4282 = vadd.xlane.f32.xlu0 %v4281_v50  ;;  %v4302_v3 = vsel %vm463_vm1, %v10254_v62, 0.0  ;;  %v4299_v62 = vsel %vm463_vm1, %v10305_v32, 0.0  ;;  %v4716_v16 = vsel %vm463_vm1, %v10280_v24, 0.0 }
0x1852   : > { %v4670_v0 = vpop.xlane.xlu2 %4669  ;;  %4291 = vadd.xlane.f32.xlu1 %v4290_v25  ;;  %v4400_v5 = vsel %vm1047_vm6, %v4365_v48, %v4399_v10 }
0x1853   : > { %v4801_v10 = vperm.slane %v4670_v0, %v8382_v33  ;;  %v4725_v0 = vsel %vm463_vm1, %v10302_v30, 0.0 }
0x1854   : > { %v4250_v18 = vpop.xlane.xlu0 %4249 }
0x1855   : > { %v4253_v1 = vpop.xlane.xlu1 %4252  ;;  %v4366_v63 = vperm.slane %v4250_v18, %v8382_v33  ;;  %v11810_v18 = vld [vmem:[#allocation35_spill] sm:$0xff] }
0x1856   : > { %v4367_v4 = vperm.slane %v4253_v1, %v8386_v53  ;;  %v4305_v1 = vsel %vm463_vm1, %v11810_v18, 0.0  ;;  %v4743_v18 = vsel %vm463_vm1, %v10374_v41, 0.0  ;;  %v11813_v41 = vld [vmem:[#allocation138_spill] sm:$0xff] }
0x1857   : > { %4294 = vadd.xlane.f32.xlu2 %v4293_v9  ;;  %v4722_v9 = vsel %vm463_vm1, %v10320_v22, 0.0 }
0x1858   : > { %v4368_v12 = vsel %vm992_vm0, %v4367_v4, %v4366_v63 }
0x1859   : > { %v4401_v40 = vsel %vm1049_vm7, %v4368_v12, %v4400_v5  ;;  %4285 = vadd.xlane.f32.xlu0 %v4284_v2 }
0x185a   : > { %v4679_v60 = vpop.xlane.xlu2 %4678  ;;  %4303 = vadd.xlane.f32.xlu1 %v4302_v3  ;;  %v11811_v3 = vld [vmem:[#allocation29_spill] sm:$0xff] }
0x185b   : > { %v4805_v7 = vperm.slane %v4679_v60, %v8386_v53 }
0x185c   : > { %v4259_v47 = vpop.xlane.xlu0 %4258 }
0x185d   : > { %v4370_v31 = vperm.slane %v4259_v47, %v8386_v53  ;;  %v4676_v37 = vpop.xlane.xlu1 %4675  ;;  %v4719_v47 = vsel %vm463_vm1, %v11811_v3, 0.0 }
0x185e   : > { %v4804_v35 = vperm.slane %v4676_v37, %v8382_v33 }
0x185f   : > { %4297 = vadd.xlane.f32.xlu2 %v4296_v54  ;;  %v4371_v44 = vsel %vm992_vm0, %v4370_v31, %v4369_v46  ;;  %v4728_v31 = vsel %vm463_vm1, %v10334_v28, 0.0  ;;  %v4731_v28 = vsel %vm463_vm1, %v10330_v17, 0.0  ;;  %v5178_v17 = vsel %vm463_vm1, %v10362_v20, 0.0 }
0x1860   : > { %v4806_v36 = vsel %vm992_vm0, %v4805_v7, %v4804_v35  ;;  %v10573_v56 = vsel %vm11809_vm14, %v4371_v44, %v4401_v40  ;;  %v5169_v35 = vsel %vm463_vm1, %v10299_v6, 0.0  ;;  %v5172_v6 = vsel %vm463_vm1, %v10313_v42, 0.0  ;;  %vm11833_vm14 = vmmov %vm11830_vm9 }
0x1861   : > { %4300 = vadd.xlane.f32.xlu0 %v4299_v62  ;;  %v4737_v42 = vsel %vm463_vm1, %v10328_v27, 0.0  ;;  %v11812_v27 = vld [vmem:[#allocation128_spill] sm:$0xff] }
0x1862   : > { %v5120_v48 = vpop.xlane.xlu2 %5119  ;;  %4717 = vadd.xlane.f32.xlu1 %v4716_v16 }
0x1864   : > { %v4673_v50 = vpop.xlane.xlu0 %4672 }
0x1865   : > { %v4802_v25 = vperm.slane %v4673_v50, %v8386_v53  ;;  %v4682_v5 = vpop.xlane.xlu1 %4681 }
0x1866   : > { %v4807_v4 = vperm.slane %v4682_v5, %v8382_v33 }
0x1867   : > { %4306 = vadd.xlane.f32.xlu2 %v4305_v1  ;;  %v4803_v32 = vsel %vm992_vm0, %v4802_v25, %v4801_v10  ;;  %v4734_v10 = vsel %vm463_vm1, %v10344_v58, 0.0  ;;  %v5181_v1 = vsel %vm463_vm1, %v10358_v45, 0.0  ;;  %v4746_v45 = vsel %vm463_vm1, %v10388_v51, 0.0  ;;  %v11817_v51 = vld [vmem:[#allocation123_spill] sm:$0xff] }
0x1868   : > { %v4846_v19 = vsel %vm1039_vm2, %v4803_v32, %v10497_v52  ;;  %v5251_v52 = vperm.slane %v5120_v48, %v8382_v33 }
0x1869   : > { %4723 = vadd.xlane.f32.xlu0 %v4722_v9  ;;  %v4847_v24 = vsel %vm1041_vm3, %v4806_v36, %v4846_v19  ;;  %v4740_v19 = vsel %vm463_vm1, %v10340_v59, 0.0  ;;  %v3900_v9 = vperm.slane %v11812_v27, %v8386_v53  ;;  %v11815_v59 = vld [vmem:[#allocation134_spill] sm:$0xff]  ;;  %v4749_v27 = vsel %vm463_vm1, %v10384_v11, 0.0 }
0x186a   : > { %v4685_v63 = vpop.xlane.xlu2 %4684  ;;  %4726 = vadd.xlane.f32.xlu1 %v4725_v0 }
0x186b   : > { %v4808_v12 = vperm.slane %v4685_v63, %v8386_v53  ;;  %v11814_v63 = vld [vmem:[#allocation41_spill] sm:$0xff] }
0x186c   : > { %v5123_v2 = vpop.xlane.xlu0 %5122  ;;  %v3899_v0 = vperm.slane %v11814_v63, %v8382_v33 }
0x186d   : > { %v4809_v43 = vsel %vm992_vm0, %v4808_v12, %v4807_v4  ;;  %v5252_v22 = vperm.slane %v5123_v2, %v8386_v53  ;;  %v10595_v60 = vpop.xlane.xlu1 %5128  ;;  %v5184_v12 = vsel %vm463_vm1, %v10372_v61, 0.0  ;;  %v11818_v61 = vld [vmem:[#allocation133_spill] sm:$0xff] }
0x186e   : > { %v4848_v40 = vsel %vm1043_vm4, %v4809_v43, %v4847_v24  ;;  %v3896_v24 = vperm.slane %v11813_v41, %v8382_v33  ;;  %v3897_v43 = vperm.slane %v11815_v59, %v8386_v53  ;;  %v3901_v2 = vsel %vm992_vm0, %v3900_v9, %v3899_v0  ;;  %v10704_v0 = vpop.f32.mrf.mxu2  ;;  %v3987_v59 = vpop.f32.mrf.mxu3 }
0x186f   : > { %4720 = vadd.xlane.f32.xlu2 %v4719_v47  ;;  %v5253_v30 = vsel %vm992_vm0, %v5252_v22, %v5251_v52  ;;  %v11816_v52 = vld [vmem:[#allocation39_spill] sm:$0xff]  ;;  %v3903_v47 = vperm.slane %v11817_v51, %v8386_v53 }
0x1870   : > { %v10602_v46 = vsel %vm1039_vm2, %v5253_v30, %v10508_v39  ;;  %v5175_v39 = vsel %vm463_vm1, %v10348_v23, 0.0  ;;  %v3898_v22 = vsel %vm992_vm0, %v3897_v43, %v3896_v24  ;;  %v11824_v24 = vld [vmem:[#allocation124_spill] sm:$0xff]  ;;  %v11826_v43 = vld [vmem:[#allocation129_spill] sm:$0xff] }
0x1871   : > { %4729 = vadd.xlane.f32.xlu0 %v4728_v31  ;;  %v3944_v30 = vsel %vm1039_vm2, %v3901_v2, %v3898_v22  ;;  %v3909_v31 = vperm.slane %v11818_v61, %v8386_v53  ;;  %v3918_v63 = vperm.slane %v11824_v24, %v8386_v53  ;;  %v3917_v2 = vperm.slane %v11826_v43, %v8382_v33 }
0x1872   : > { %v4688_v37 = vpop.xlane.xlu2 %4687  ;;  %5167 = vadd.xlane.f32.xlu1 %v5166_v57  ;;  %v5187_v57 = vsel %vm463_vm1, %v10354_v14, 0.0 }
0x1873   : > { %v4810_v36 = vperm.slane %v4688_v37, %v8382_v33  ;;  %v3919_v61 = vsel %vm992_vm0, %v3918_v63, %v3917_v2 }
0x1874   : > { %v10608_v54 = vpop.xlane.xlu0 %5125 }
0x1875   : > { %v10610_v7 = vpop.xlane.xlu1 %5131 }
0x1877   : > { %5170 = vadd.xlane.f32.xlu2 %v5169_v35  ;;  %v11819_v35 = vld [vmem:[#allocation119_spill] sm:$0xff] }
0x1879   : > { %5176 = vadd.xlane.f32.xlu0 %v5175_v39  ;;  %v3905_v39 = vperm.slane %v11819_v35, %v8382_v33 }
0x187a   : > { %v10616_v44 = vpop.xlane.xlu2 %5134  ;;  %4732 = vadd.xlane.f32.xlu1 %v4731_v28  ;;  %v11820_v28 = vld [vmem:[#allocation118_spill] sm:$0xff] }
0x187c   : > { %v4691_v49 = vpop.xlane.xlu0 %4690 }
0x187d   : > { %v4811_v62 = vperm.slane %v4691_v49, %v8386_v53  ;;  %v10622_v48 = vpop.xlane.xlu1 %4696  ;;  %v3911_v49 = vperm.slane %v11820_v28, %v8382_v33 }
0x187f   : > { %5173 = vadd.xlane.f32.xlu2 %v5172_v6  ;;  %v4812_v23 = vsel %vm992_vm0, %v4811_v62, %v4810_v36  ;;  %v11821_v36 = vld [vmem:[#allocation116_spill] sm:$0xff] }
0x1880   : > { %v10628_v16 = vsel %vm1045_vm5, %v4812_v23, %v4848_v40  ;;  %v3902_v40 = vperm.slane %v11816_v52, %v8382_v33  ;;  %v3908_v62 = vperm.slane %v11821_v36, %v8382_v33  ;;  %v11822_v23 = vld [vmem:[#allocation130_spill] sm:$0xff]  ;;  %v5258_v36 = vperm.slane %v10616_v44, %v8386_v53 }
0x1881   : > { %5179 = vadd.xlane.f32.xlu0 %v5178_v17  ;;  %v3906_v17 = vperm.slane %v11822_v23, %v8386_v53 }
0x1882   : > { %v10632_v50 = vpop.xlane.xlu2 %5137  ;;  %4735 = vadd.xlane.f32.xlu1 %v4734_v10  ;;  %v3904_v6 = vsel %vm992_vm0, %v3903_v47, %v3902_v40  ;;  %v11823_v10 = vld [vmem:[#allocation125_spill] sm:$0xff]  ;;  %v11827_v40 = vld [vmem:[#allocation122_spill] sm:$0xff] }
0x1883   : > { %v3945_v14 = vsel %vm1041_vm3, %v3904_v6, %v3944_v30  ;;  %v3907_v9 = vsel %vm992_vm0, %v3906_v17, %v3905_v39  ;;  %v3915_v22 = vperm.slane %v11827_v40, %v8386_v53  ;;  %v5190_v30 = vsel %vm463_vm1, %v10366_v55, 0.0  ;;  %v10741_v17 = vpop.f32.mrf.mxu2 }
0x1884   : > { %v10636_v25 = vpop.xlane.xlu0 %4693  ;;  %v5254_v39 = vperm.slane %v10608_v54, %v8382_v33  ;;  %v5257_v54 = vperm.slane %v10610_v7, %v8382_v33  ;;  %v5260_v44 = vperm.slane %v10632_v50, %v8382_v33  ;;  %v3990_v7 = vpop.f32.mrf.mxu3  ;;  %v4438_v40 = vadd.f32 %v10704_v0, %v10573_v56 }
0x1885   : > { %v10638_v5 = vpop.xlane.xlu1 %4699 }
0x1887   : > { %4738 = vadd.xlane.f32.xlu2 %v4737_v42  ;;  %v3912_v42 = vperm.slane %v11823_v10, %v8386_v53 }
0x1889   : > { %4744 = vadd.xlane.f32.xlu0 %v4743_v18  ;;  %v5193_v18 = vsel %vm463_vm1, %v10402_v34, 0.0  ;;  %v3913_v41 = vsel %vm992_vm0, %v3912_v42, %v3911_v49  ;;  %v4752_v49 = vsel %vm463_vm1, %v10398_v15, 0.0 }
0x188a   : > { %v10644_v20 = vpop.xlane.xlu2 %4702  ;;  %5182 = vadd.xlane.f32.xlu1 %v5181_v1  ;;  %v3910_v1 = vsel %vm992_vm0, %v3909_v31, %v3908_v62 }
0x188c   : > { %v10648_v58 = vpop.xlane.xlu0 %5140 }
0x188d   : > { %v10650_v32 = vpop.xlane.xlu1 %5146  ;;  %v5261_v62 = vperm.slane %v10648_v58, %v8386_v53  ;;  %v4755_v58 = vsel %vm463_vm1, %v10382_v8, 0.0 }
0x188f   : > { %4741 = vadd.xlane.f32.xlu2 %v4740_v19  ;;  %v5262_v50 = vsel %vm992_vm0, %v5261_v62, %v5260_v44 }
0x1891   : > { %4747 = vadd.xlane.f32.xlu0 %v4746_v45  ;;  %v11825_v45 = vld [vmem:[#allocation132_spill] sm:$0xff] }
0x1892   : > { %v10662_v4 = vpop.xlane.xlu2 %4705  ;;  %5185 = vadd.xlane.f32.xlu1 %v5184_v12  ;;  %v3914_v34 = vperm.slane %v11825_v45, %v8382_v33  ;;  %v3946_v12 = vsel %vm1043_vm4, %v3907_v9, %v3945_v14  ;;  %v5259_v14 = vsel %vm992_vm0, %v5258_v36, %v5257_v54  ;;  %v4813_v9 = vperm.slane %v10636_v25, %v8382_v33  ;;  %v4887_v36 = vpop.f32.mrf.mxu3 }
0x1893   : > { %v3947_v11 = vsel %vm1045_vm5, %v3910_v1, %v3946_v12  ;;  %v5205_v1 = vsel %vm463_vm1, %v10422_v38, 0.0  ;;  %v4817_v25 = vperm.slane %v10644_v20, %v8386_v53  ;;  %v4816_v20 = vperm.slane %v10638_v5, %v8382_v33  ;;  %v5337_v5 = vpop.f32.mrf.mxu2 }
0x1894   : > { %v10672_v3 = vpop.xlane.xlu0 %5143  ;;  %v3948_v51 = vsel %vm1047_vm6, %v3913_v41, %v3947_v11  ;;  %v3916_v31 = vsel %vm992_vm0, %v3915_v22, %v3914_v34  ;;  %v4819_v22 = vperm.slane %v10662_v4, %v8382_v33 }
0x1895   : > { %v10679_v37 = vpop.xlane.xlu1 %5149  ;;  %v3949_v35 = vsel %vm1049_vm7, %v3916_v31, %v3948_v51  ;;  %v5263_v6 = vperm.slane %v10672_v3, %v8382_v33  ;;  %v5264_v3 = vperm.slane %v10650_v32, %v8386_v53 }
0x1896   : > { %v3950_v55 = vsel %vm11828_vm11, %v3919_v61, %v3949_v35  ;;  %vm11834_vm11 = vmmov %vm11830_vm9 }
0x1897   : > { %5188 = vadd.xlane.f32.xlu2 %v5187_v57  ;;  %v5196_v57 = vsel %vm463_vm1, %v10414_v21, 0.0  ;;  %v5255_v21 = vperm.slane %v10595_v60, %v8386_v53  ;;  %v3988_v15 = vadd.f32 %v3987_v59, %v3950_v55  ;;  %v5265_v32 = vsel %vm992_vm0, %v5264_v3, %v5263_v6 }
0x1899   : > { %5194 = vadd.xlane.f32.xlu0 %v5193_v18  ;;  %v5256_v10 = vsel %vm992_vm0, %v5255_v21, %v5254_v39 }
0x189a   : > { %v5153_v19 = vpop.xlane.xlu2 %5152  ;;  %4750 = vadd.xlane.f32.xlu1 %v4749_v27  ;;  %v3991_v27 = vadd.f32 %v3990_v7, %v10490_v26  ;;  %v5297_v8 = vsel %vm1041_vm3, %v5256_v10, %v10602_v46  ;;  %v10771_v26 = vmul.f32 0.35355338, %v3988_v15  ;;  %v4814_v46 = vperm.slane %v10622_v48, %v8386_v53 }
0x189b   : > { %v5267_v60 = vperm.slane %v5153_v19, %v8386_v53  ;;  %v5266_v19 = vperm.slane %v10679_v37, %v8382_v33  ;;  %v5298_v24 = vsel %vm1043_vm4, %v5259_v14, %v5297_v8  ;;  %v5199_v37 = vsel %vm463_vm1, %v10410_v29, 0.0 }
0x189c   : > { %v10712_v52 = vpop.xlane.xlu0 %4708  ;;  %v5299_v45 = vsel %vm1045_vm5, %v5262_v50, %v5298_v24  ;;  %v5202_v29 = vsel %vm463_vm1, %v10394_v13, 0.0  ;;  %v10784_v43 = vmul.f32 0.35355338, %v3991_v27  ;;  %v4815_v48 = vsel %vm992_vm0, %v4814_v46, %v4813_v9 }
0x189d   : > { %v5159_v47 = vpop.xlane.xlu1 %5158  ;;  %v5268_v38 = vsel %vm992_vm0, %v5267_v60, %v5266_v19  ;;  %v5300_v12 = vsel %vm1047_vm6, %v5265_v32, %v5299_v45  ;;  %v4820_v59 = vperm.slane %v10712_v52, %v8386_v53  ;;  %v4850_v56 = vsel %vm1047_vm6, %v4815_v48, %v10628_v16 }
0x189e   : > { %v5270_v41 = vperm.slane %v5159_v47, %v8386_v53  ;;  %v5301_v2 = vsel %vm1049_vm7, %v5268_v38, %v5300_v12  ;;  %v3998_v4 = vsel %vm11830_vm9, %v10784_v43, -inf  ;;  %v3995_v39 = vsel %vm11831_vm12, %v10771_v26, -inf }
0x189f   : > { %5191 = vadd.xlane.f32.xlu2 %v5190_v30  ;;  %v4818_v30 = vsel %vm992_vm0, %v4817_v25, %v4816_v20  ;;  %v4821_v61 = vsel %vm992_vm0, %v4820_v59, %v4819_v22 }
0x18a1   : > { %5197 = vadd.xlane.f32.xlu0 %v5196_v57  ;;  %v4851_v57 = vsel %vm1049_vm7, %v4818_v30, %v4850_v56 }
0x18a2   : > { %v10726_v28 = vpop.xlane.xlu2 %4264  ;;  %4753 = vadd.xlane.f32.xlu1 %v4752_v49  ;;  %v10809_v49 = vmul.f32 0.35355338, %v4438_v40  ;;  %v4852_v55 = vsel %vm11832_vm10, %v4821_v61, %v4851_v57 }
0x18a3   : > { %v4888_v15 = vadd.f32 %v4887_v36, %v4852_v55  ;;  %v4373_v24 = vperm.slane %v10726_v28, %v8386_v53 }
0x18a4   : > { %v5156_v23 = vpop.xlane.xlu0 %5155 }
0x18a5   : > { %v10747_v42 = vpop.xlane.xlu1 %4261  ;;  %v5269_v18 = vperm.slane %v5156_v23, %v8382_v33  ;;  %v4445_v23 = vsel %vm11833_vm14, %v10809_v49, -inf }
0x18a6   : > { %v4372_v32 = vperm.slane %v10747_v42, %v8382_v33 }
0x18a7   : > { %4756 = vadd.xlane.f32.xlu2 %v4755_v58  ;;  %v5271_v34 = vsel %vm992_vm0, %v5270_v41, %v5269_v18  ;;  %v10823_v58 = vmul.f32 0.35355338, %v4888_v15 }
0x18a8   : > { %v5302_v47 = vsel %vm11829_vm8, %v5271_v34, %v5301_v2  ;;  %vm11835_vm8 = vmmov %vm11830_vm9  ;;  %v4374_v45 = vsel %vm992_vm0, %v4373_v24, %v4372_v32 }
0x18a9   : > { %5206 = vadd.xlane.f32.xlu0 %v5205_v1  ;;  %v5338_v0 = vadd.f32 %v5337_v5, %v5302_v47  ;;  %v4895_v3 = vsel %vm11835_vm8, %v10823_v58, -inf  ;;  %vm11836_vm9 = vmmov %vm11832_vm10 }
0x18aa   : > { %v4712_v63 = vpop.xlane.xlu2 %4711  ;;  %5200 = vadd.xlane.f32.xlu1 %v5199_v37  ;;  %vm11837_vm12 = vmmov %vm11835_vm8 }
0x18ab   : > { %v4822_v52 = vperm.slane %v4712_v63, %v8382_v33  ;;  %v10812_v62 = vmul.f32 0.35355338, %v5338_v0  ;;  %vm11838_vm10 = vmmov %vm11836_vm9 }
0x18ac   : > { %v4715_v11 = vpop.xlane.xlu0 %4714 }
0x18ad   : > { %v4823_v13 = vperm.slane %v4715_v11, %v8386_v53  ;;  %v4271_v51 = vpop.xlane.xlu1 %4270  ;;  %v5345_v44 = vsel %vm11834_vm11, %v10812_v62, -inf }
0x18ae   : > { %v4376_v41 = vperm.slane %v4271_v51, %v8386_v53 }
0x18af   : > { %5203 = vadd.xlane.f32.xlu2 %v5202_v29  ;;  %v10800_v31 = vsel %vm992_vm0, %v4823_v13, %v4822_v52 }
0x18b1   : > { %3999 = vmax.xlane.f32.xlu0 %v3998_v4 }
0x18b2   : > { %v5162_v35 = vpop.xlane.xlu2 %5161  ;;  %3996 = vmax.xlane.f32.xlu1 %v3995_v39 }
0x18b3   : > { %v5272_v16 = vperm.slane %v5162_v35, %v8382_v33 }
0x18b4   : > { %v5165_v21 = vpop.xlane.xlu0 %5164 }
0x18b5   : > { %v5273_v54 = vperm.slane %v5165_v21, %v8386_v53  ;;  %v4274_v6 = vpop.xlane.xlu1 %4273 }
0x18b6   : > { %v4378_v42 = vperm.slane %v4274_v6, %v8382_v33 }
0x18b7   : > { %4446 = vmax.xlane.f32.xlu2 %v4445_v23  ;;  %v10819_v10 = vsel %vm992_vm0, %v5273_v54, %v5272_v16 }
0x18b9   : > { %5346 = vmax.xlane.f32.xlu0 %v5345_v44 }
0x18ba   : > { %v4277_v60 = vpop.xlane.xlu2 %4276 }
0x18bb   : > { %v4379_v37 = vperm.slane %v4277_v60, %v8386_v53 }
0x18bc   : > { %v4268_v7 = vpop.xlane.xlu0 %4267 }
0x18bd   : > { %v4289_v14 = vpop.xlane.xlu1 %4288  ;;  %v4375_v27 = vperm.slane %v4268_v7, %v8382_v33  ;;  %v4380_v48 = vsel %vm992_vm0, %v4379_v37, %v4378_v42 }
0x18be   : > { %v4385_v59 = vperm.slane %v4289_v14, %v8386_v53 }
0x18bf   : > { %4896 = vmax.xlane.f32.xlu2 %v4895_v3  ;;  %v4377_v38 = vsel %vm992_vm0, %v4376_v41, %v4375_v27 }
0x18c0   : > { %v4403_v12 = vsel %vm1039_vm2, %v4377_v38, %v4374_v45 }
0x18c1   : > { %v4404_v40 = vsel %vm1041_vm3, %v4380_v48, %v4403_v12 }
0x18c2   : > { %v4280_v18 = vpop.xlane.xlu2 %4279 }
0x18c3   : > { %v4381_v34 = vperm.slane %v4280_v18, %v8382_v33 }
0x18c4   : > { %v4283_v1 = vpop.xlane.xlu0 %4282 }
0x18c5   : > { %v4292_v50 = vpop.xlane.xlu1 %4291  ;;  %v4382_v63 = vperm.slane %v4283_v1, %v8386_v53 }
0x18c6   : > { %v4387_v51 = vperm.slane %v4292_v50, %v8382_v33 }
0x18c7   : > { %v4383_v28 = vsel %vm992_vm0, %v4382_v63, %v4381_v34 }
0x18c8   : > { %v4405_v52 = vsel %vm1043_vm4, %v4383_v28, %v4404_v40 }
0x18ca   : > { %v4295_v19 = vpop.xlane.xlu2 %4294 }
0x18cb   : > { %v4388_v22 = vperm.slane %v4295_v19, %v8386_v53 }
0x18cc   : > { %v4286_v8 = vpop.xlane.xlu0 %4285 }
0x18cd   : > { %v4304_v9 = vpop.xlane.xlu1 %4303  ;;  %v4384_v46 = vperm.slane %v4286_v8, %v8382_v33  ;;  %v4389_v61 = vsel %vm992_vm0, %v4388_v22, %v4387_v51 }
0x18ce   : > { %v4393_v56 = vperm.slane %v4304_v9, %v8382_v33 }
0x18cf   : > { %v4386_v20 = vsel %vm992_vm0, %v4385_v59, %v4384_v46 }
0x18d0   : > { %v4406_v47 = vsel %vm1045_vm5, %v4386_v20, %v4405_v52 }
0x18d1   : > { %v4407_v0 = vsel %vm1047_vm6, %v4389_v61, %v4406_v47 }
0x18d2   : > { %v4298_v25 = vpop.xlane.xlu2 %4297 }
0x18d3   : > { %v4390_v13 = vperm.slane %v4298_v25, %v8382_v33 }
0x18d4   : > { %v4301_v29 = vpop.xlane.xlu0 %4300 }
0x18d5   : > { %v4391_v2 = vperm.slane %v4301_v29, %v8386_v53  ;;  %v4718_v11 = vpop.xlane.xlu1 %4717 }
0x18d6   : > { %v4825_v38 = vperm.slane %v4718_v11, %v8382_v33 }
0x18d7   : > { %v4392_v30 = vsel %vm992_vm0, %v4391_v2, %v4390_v13 }
0x18d8   : > { %v4408_v57 = vsel %vm1049_vm7, %v4392_v30, %v4407_v0 }
0x18da   : > { %v4307_v5 = vpop.xlane.xlu2 %4306 }
0x18db   : > { %v4394_v4 = vperm.slane %v4307_v5, %v8386_v53 }
0x18dc   : > { %v4724_v39 = vpop.xlane.xlu0 %4723 }
0x18dd   : > { %v4395_v35 = vsel %vm992_vm0, %v4394_v4, %v4393_v56  ;;  %v4727_v55 = vpop.xlane.xlu1 %4726  ;;  %v4828_v59 = vperm.slane %v4724_v39, %v8382_v33 }
0x18de   : > { %v4409_v36 = vsel %vm11836_vm9, %v4395_v35, %v4408_v57  ;;  %v4829_v25 = vperm.slane %v4727_v55, %v8386_v53 }
0x18df   : > { %v4441_v21 = vadd.f32 %v10741_v17, %v4409_v36 }
0x18e0   : > { %v4830_v40 = vsel %vm992_vm0, %v4829_v25, %v4828_v59 }
0x18e1   : > { %v10861_v16 = vmul.f32 0.35355338, %v4441_v21 }
0x18e2   : > { %v4721_v54 = vpop.xlane.xlu2 %4720 }
0x18e3   : > { %v4448_v6 = vsel %vm11837_vm12, %v10861_v16, -inf  ;;  %v4826_v24 = vperm.slane %v4721_v54, %v8386_v53 }
0x18e4   : > { %4449 = vmax.xlane.f32.xlu1 %v4448_v6  ;;  %v4730_v23 = vpop.xlane.xlu0 %4729 }
0x18e5   : > { %v5168_v15 = vpop.xlane.xlu1 %5167  ;;  %v4827_v37 = vsel %vm992_vm0, %v4826_v24, %v4825_v38  ;;  %v4831_v34 = vperm.slane %v4730_v23, %v8382_v33 }
0x18e6   : > { %v4853_v28 = vsel %vm1039_vm2, %v4827_v37, %v10800_v31  ;;  %v5275_v47 = vperm.slane %v5168_v15, %v8382_v33 }
0x18e7   : > { %v4854_v51 = vsel %vm1041_vm3, %v4830_v40, %v4853_v28 }
0x18ea   : > { %v5171_v44 = vpop.xlane.xlu2 %5170 }
0x18eb   : > { %v5276_v22 = vperm.slane %v5171_v44, %v8386_v53 }
0x18ec   : > { %v5177_v60 = vpop.xlane.xlu0 %5176 }
0x18ed   : > { %v4733_v7 = vpop.xlane.xlu1 %4732  ;;  %v5277_v39 = vsel %vm992_vm0, %v5276_v22, %v5275_v47  ;;  %v5279_v55 = vperm.slane %v5177_v60, %v8386_v53 }
0x18ee   : > { %v4832_v46 = vperm.slane %v4733_v7, %v8386_v53  ;;  %v4890_v7 = vpop.f32.mrf.mxu3 }
0x18f0   : > { %v4833_v2 = vsel %vm992_vm0, %v4832_v46, %v4831_v34 }
0x18f1   : > { %v4855_v30 = vsel %vm1043_vm4, %v4833_v2, %v4854_v51 }
0x18f2   : > { %v5174_v14 = vpop.xlane.xlu2 %5173 }
0x18f3   : > { %v5278_v5 = vperm.slane %v5174_v14, %v8382_v33 }
0x18f4   : > { %v5180_v3 = vpop.xlane.xlu0 %5179 }
0x18f5   : > { %v4736_v18 = vpop.xlane.xlu1 %4735  ;;  %v5281_v54 = vperm.slane %v5180_v3, %v8382_v33  ;;  %v5280_v14 = vsel %vm992_vm0, %v5279_v55, %v5278_v5 }
0x18f6   : > { %v4834_v29 = vperm.slane %v4736_v18, %v8382_v33 }
0x18fa   : > { %v4739_v1 = vpop.xlane.xlu2 %4738 }
0x18fb   : > { %v4835_v45 = vperm.slane %v4739_v1, %v8386_v53 }
0x18fc   : > { %v4745_v50 = vpop.xlane.xlu0 %4744 }
0x18fd   : > { %v5183_v19 = vpop.xlane.xlu1 %5182  ;;  %v4838_v11 = vperm.slane %v4745_v50, %v8386_v53  ;;  %v4836_v52 = vsel %vm992_vm0, %v4835_v45, %v4834_v29 }
0x18fe   : > { %v4856_v4 = vsel %vm1045_vm5, %v4836_v52, %v4855_v30  ;;  %v5282_v0 = vperm.slane %v5183_v19, %v8386_v53 }
0x1900   : > { %v5283_v50 = vsel %vm992_vm0, %v5282_v0, %v5281_v54 }
0x1902   : > { %v4742_v27 = vpop.xlane.xlu2 %4741 }
0x1903   : > { %v4837_v42 = vperm.slane %v4742_v27, %v8382_v33 }
0x1904   : > { %v4748_v17 = vpop.xlane.xlu0 %4747 }
0x1905   : > { %v5186_v8 = vpop.xlane.xlu1 %5185  ;;  %v4840_v13 = vperm.slane %v4748_v17, %v8382_v33  ;;  %v4839_v31 = vsel %vm992_vm0, %v4838_v11, %v4837_v42  ;;  %v5303_v17 = vsel %vm1039_vm2, %v5277_v39, %v10819_v10  ;;  %vm11839_vm2 = vmmov %vm11835_vm8  ;;  %v5340_v42 = vpop.f32.mrf.mxu2 }
0x1906   : > { %v4857_v36 = vsel %vm1047_vm6, %v4839_v31, %v4856_v4  ;;  %v5284_v18 = vperm.slane %v5186_v8, %v8382_v33  ;;  %v5304_v24 = vsel %vm1041_vm3, %v5280_v14, %v5303_v17  ;;  %vm11840_vm3 = vmmov %vm11836_vm9 }
0x190a   : > { %v5189_v9 = vpop.xlane.xlu2 %5188 }
0x190b   : > { %v5285_v21 = vperm.slane %v5189_v9, %v8386_v53 }
0x190c   : > { %v5195_v32 = vpop.xlane.xlu0 %5194 }
0x190d   : > { %v4751_v41 = vpop.xlane.xlu1 %4750  ;;  %v5288_v19 = vperm.slane %v5195_v32, %v8386_v53  ;;  %v5286_v9 = vsel %vm992_vm0, %v5285_v21, %v5284_v18 }
0x190e   : > { %v4841_v48 = vperm.slane %v4751_v41, %v8386_v53 }
0x1910   : > { %v4842_v61 = vsel %vm992_vm0, %v4841_v48, %v4840_v13 }
0x1911   : > { %v4858_v6 = vsel %vm1049_vm7, %v4842_v61, %v4857_v36 }
0x1912   : > { %v5192_v63 = vpop.xlane.xlu2 %5191 }
0x1913   : > { %v5287_v23 = vperm.slane %v5192_v63, %v8382_v33  ;;  %v5305_v63 = vsel %vm1043_vm4, %v5283_v50, %v5304_v24  ;;  %vm11841_vm4 = vmmov %vm11839_vm2 }
0x1914   : > { %v5198_v12 = vpop.xlane.xlu0 %5197  ;;  %v5306_v46 = vsel %vm1045_vm5, %v5286_v9, %v5305_v63 }
0x1915   : > { %v4754_v20 = vpop.xlane.xlu1 %4753  ;;  %v5290_v41 = vperm.slane %v5198_v12, %v8382_v33  ;;  %v5289_v8 = vsel %vm992_vm0, %v5288_v19, %v5287_v23 }
0x1916   : > { %v4843_v57 = vperm.slane %v4754_v20, %v8382_v33  ;;  %v5307_v34 = vsel %vm1047_vm6, %v5289_v8, %v5306_v46 }
0x191a   : > { %v4757_v56 = vpop.xlane.xlu2 %4756 }
0x191b   : > { %v4844_v35 = vperm.slane %v4757_v56, %v8386_v53 }
0x191c   : > { %v5207_v44 = vpop.xlane.xlu0 %5206 }
0x191d   : > { %v4845_v15 = vsel %vm992_vm0, %v4844_v35, %v4843_v57  ;;  %v5201_v1 = vpop.xlane.xlu1 %5200  ;;  %v5294_v25 = vperm.slane %v5207_v44, %v8386_v53 }
0x191e   : > { %v4859_v60 = vsel %vm11838_vm10, %v4845_v15, %v4858_v6  ;;  %v5291_v3 = vperm.slane %v5201_v1, %v8386_v53 }
0x191f   : > { %v4891_v27 = vadd.f32 %v4890_v7, %v4859_v60 }
0x1920   : > { %v5292_v32 = vsel %vm992_vm0, %v5291_v3, %v5290_v41 }
0x1921   : > { %v10914_v38 = vmul.f32 0.35355338, %v4891_v27  ;;  %v5308_v12 = vsel %vm1049_vm7, %v5292_v32, %v5307_v34 }
0x1922   : > { %v5204_v37 = vpop.xlane.xlu2 %5203 }
0x1923   : > { %v5293_v10 = vperm.slane %v5204_v37, %v8382_v33  ;;  %v4898_v45 = vsel %vm11839_vm2, %v10914_v38, -inf }
0x1924   : > { %4899 = vmax.xlane.f32.xlu1 %v4898_v45  ;;  %v4000_v28 = vpop.xlane.xlu0 %3999 }
0x1925   : > { %v5295_v59 = vsel %vm992_vm0, %v5294_v25, %v5293_v10  ;;  %v3997_v29 = vpop.xlane.xlu1 %3996  ;;  %v4002_v33 = vsub.f32 %v10784_v43, %v4000_v28  ;;  %vm11842_vm0 = vmmov %vm11839_vm2 }
0x1926   : > { %v5309_v48 = vsel %vm11840_vm3, %v5295_v59, %v5308_v12  ;;  %v4001_v20 = vsub.f32 %v10771_v26, %v3997_v29  ;;  %vm11843_vm5 = vmmov %vm11842_vm0 }
0x1927   : > { %v5341_v53 = vadd.f32 %v5340_v42, %v5309_v48  ;;  %v4005_v13 = vmul.f32 1.442695, %v4002_v33  ;;  %vm11844_vm6 = vmmov %vm11842_vm0 }
0x1928   : > { %v4003_v2 = vmul.f32 1.442695, %v4001_v20  ;;  %vm11845_vm7 = vmmov %vm11842_vm0 }
0x1929   : > { %v10929_v11 = vmul.f32 0.35355338, %v5341_v53  ;;  %vm11849_vm14 = vmmov %vm11842_vm0 }
0x192a   : > { %v4447_v40 = vpop.xlane.xlu2 %4446  ;;  %6545 = vpow2.f32 %v4003_v2  ;;  %vm11850_vm11 = vmmov %vm11842_vm0 }
0x192b   : > { %v4451_v22 = vsub.f32 %v10809_v49, %v4447_v40  ;;  %v5348_v52 = vsel %vm11841_vm4, %v10929_v11, -inf  ;;  %vm11852_vm8 = vmmov %vm11842_vm0 }
0x192c   : > { %5349 = vmax.xlane.f32.xlu2 %v5348_v52  ;;  %v5347_v57 = vpop.xlane.xlu0 %5346  ;;  %vm11853_vm9 = vmmov %vm11842_vm0 }
0x192d   : > { %v4453_v51 = vmul.f32 1.442695, %v4451_v22  ;;  %v5351_v35 = vsub.f32 %v10812_v62, %v5347_v57  ;;  %vm11854_vm12 = vmmov %vm11842_vm0  ;;  %v6214_v57 = vld [vmem:[%s11270_s8 + $0x50] sm:$0xff] }
0x192e   : > { %vm11855_vm10 = vmmov %vm11842_vm0 }
0x192f   : > { %6547 = vpow2.f32 %v4453_v51  ;;  %v5353_v39 = vmul.f32 1.442695, %v5351_v35  ;;  %vm11856_vm2 = vmmov %vm11842_vm0  ;;  %v6213_v35 = vld [vmem:[%s11270_s8 + $0x48] sm:$0xff] }
0x1930   : > { %v6546_v31 = vpop.eup %6545  ;;  %6549 = vpow2.f32 %v4005_v13  ;;  %vm11857_vm3 = vmmov %vm11842_vm0 }
0x1931   : > { %v4007_v47 = vsel %vm11842_vm0, %v6546_v31, 0.0  ;;  %vm11858_vm4 = vmmov %vm11842_vm0 }
0x1932   : > { %v4897_v26 = vpop.xlane.xlu2 %4896  ;;  %4008 = vadd.xlane.f32.xlu0 %v4007_v47 }
0x1933   : > { %v4901_v43 = vsub.f32 %v10823_v58, %v4897_v26  ;;  %v11846_v58 = vld [vmem:[#allocation126_spill] sm:$0xff] }
0x1935   : > { %v10936_v30 = vpop.eup %6547  ;;  %v4903_v5 = vmul.f32 1.442695, %v4901_v43 }
0x1936   : > { %v4457_v49 = vsel %vm11843_vm5, %v10936_v30, 0.0  ;;  %v6550_v61 = vpop.eup %6549  ;;  %vm11859_vm5 = vmmov %vm11842_vm0 }
0x1937   : > { %4458 = vadd.xlane.f32.xlu1 %v4457_v49  ;;  %6551 = vpow2.f32 %v4903_v5  ;;  %v4010_v56 = vsel %vm11844_vm6, %v6550_v61, 0.0  ;;  %vm11860_vm6 = vmmov %vm11842_vm0 }
0x1938   : > { %6553 = vpow2.f32 %v5353_v39 }
0x193a   : > { %4011 = vadd.xlane.f32.xlu0 %v4010_v56 }
0x193d   : > { %v10941_v4 = vpop.eup %6551 }
0x193e   : > { %v4907_v0 = vsel %vm11845_vm7, %v10941_v4, 0.0  ;;  %v10952_v55 = vpop.eup %6553  ;;  %vm11864_vm7 = vmmov %vm11842_vm0 }
0x193f   : > { %v5357_v21 = vsel %vm11849_vm14, %v10952_v55, 0.0  ;;  %vm11865_vm14 = vcmask 195584  }
0x1942   : > { %4908 = vadd.xlane.f32.xlu0 %v4907_v0 }
0x1944   : > { %6359 = vrot.lane.b32.xlu2 %v11846_v58, %s11658_s2  ;;  %s11851_s2 = smov 40  }
0x1950   : > { %6364 = vrot.lane.b32.xlu1 %v11846_v58, %s11847_s26  ;;  %s6087_s26 = sshll.u32 %s409_s12, 4 }
0x1956   : > { %6369 = vrot.lane.b32.xlu0 %v11846_v58, %s11848_s13  ;;  %s6254_s13 = sshll.u32 %s6911_s21, 4  ;;  %s5980_s21 = scalar_lea.sflag [#allocation4], %s409_s12 }
0x1957   : > { %v4450_v36 = vpop.xlane.xlu1 %4449  ;;  %s5991_s16 = scalar_lea.hbm %s11273_s11, %s6254_s13 }
0x1958   : > { %v4452_v54 = vsub.f32 %v10861_v16, %v4450_v36  ;;  %s5994_s14 = sshll.u32 %s5991_s16, 4  ;;  %s5995_s14 = int_to_ptr.hbm [resolvable:$true] %s5994_s14 }
0x195a   : > { %v4455_v6 = vmul.f32 1.442695, %v4452_v54 }
0x195c   : > { %6555 = vpow2.f32 %v4455_v6 }
0x1962   : > { %v6556_v23 = vpop.eup %6555 }
0x1963   : > { %v4460_v15 = vsel %vm11850_vm11, %v6556_v23, 0.0  ;;  %vm11866_vm11 = vmmov %vm11842_vm0 }
0x196d   : > { %5358 = vadd.xlane.f32.xlu2 %v5357_v21 }
0x1980   : > { %4461 = vadd.xlane.f32.xlu0 %v4460_v15 }
0x1994   : > { %6374 = vrot.lane.b32.xlu0 %v11846_v58, %s11851_s2  ;;  %v6215_v58 = vld [vmem:[%s11270_s8 + $0x58] sm:$0xff]  ;;  %s411_s2 = scalar_lea.vmem [#allocation7], %s6087_s26 }
0x1995   : > { %5455 = vmatpush.msrb.mxu3 %v6215_v58  ;;  %s5992_s15 = sshll.u32 %s411_s2, 4  ;;  %s5993_s15 = int_to_ptr.vmem [resolvable:$true] %s5992_s15 }
0x1997   : > { %v4900_v62 = vpop.xlane.xlu1 %4899  ;;  %5456 = vmatpush.msrb.mxu3 %v6214_v57 }
0x1998   : > { %v4902_v44 = vsub.f32 %v10914_v38, %v4900_v62 }
0x1999   : > { %5457 = vmatpush.msrb.mxu3 %v6213_v35 }
0x199a   : > { %v4905_v7 = vmul.f32 1.442695, %v4902_v44 }
0x199c   : > { %6557 = vpow2.f32 %v4905_v7 }
0x199f   : > { %v5350_v14 = vpop.xlane.xlu2 %5349 }
0x19a0   : > { %v5352_v27 = vsub.f32 %v10929_v11, %v5350_v14 }
0x19a2   : > { %v6558_v18 = vpop.eup %6557  ;;  %v5355_v41 = vmul.f32 1.442695, %v5352_v27 }
0x19a3   : > { %v4910_v1 = vsel %vm11852_vm8, %v6558_v18, 0.0  ;;  %vm11867_vm8 = vmmov %vm11865_vm14 }
0x19a4   : > { %4911 = vadd.xlane.f32.xlu1 %v4910_v1 }
0x19a5   : > { %v4009_v16 = vpop.xlane.xlu0 %4008 }
0x19a6   : > { %6559 = vrcp.f32 %v4009_v16  ;;  %v6419_v16 = vld [vmem:[%s11266_s4 + $0x27] ss:$0 sm:$0xff] }
0x19a7   : > { %v6360_v60 = vpop.permute.xlu2 %6359 }
0x19a8   : > { %v6361_v50 = vunpack.i.l.bf16 %v6360_v60  ;;  %v6362_v19 = vunpack.i.h.bf16 %v6360_v60 }
0x19aa   : > { %4043 = vmatpush.msra.mxu0 %v6361_v50  ;;  %v4459_v38 = vpop.xlane.xlu1 %4458  ;;  %v11868_v50 = vld [vmem:[#allocation136_spill] sm:$0xff] }
0x19ac   : > { %4044 = vmatpush.msra.mxu0 %v6362_v19  ;;  %v6560_v3 = vpop.eup %6559 }
0x19ad   : > { %v4015_v17 = vmul.f32 %v6560_v3, %v6546_v31  ;;  %v4012_v9 = vpop.xlane.xlu0 %4011 }
0x19ae   : > { %6561 = vrcp.f32 %v4012_v9  ;;  %v11869_v9 = vld [vmem:[#allocation137_spill] sm:$0xff] }
0x19af   : > { %6192 = vmatmul.msk.f32.vlgmr.msra.gmra.mxu0 %vm11853_vm9, %v4015_v17  ;;  %6563 = vpow2.f32 %v5355_v41 }
0x19b0   : > { %6565 = vrcp.f32 %v4459_v38 }
0x19b4   : > { %v6562_v24 = vpop.eup %6561 }
0x19b5   : > { %v4016_v8 = vmul.f32 %v6562_v24, %v6550_v61  ;;  %v6564_v63 = vpop.eup %6563  ;;  %v4909_v37 = vpop.xlane.xlu0 %4908 }
0x19b6   : > { %v5360_v32 = vsel %vm11855_vm10, %v6564_v63, 0.0  ;;  %v6566_v25 = vpop.eup %6565  ;;  %6567 = vrcp.f32 %v4909_v37 }
0x19b7   : > { %6193 = vmatmul.msk.f32.gmra.mxu0 %vm11854_vm12, %v4016_v8  ;;  %v4465_v34 = vmul.f32 %v6566_v25, %v10936_v30 }
0x19bc   : > { %v6568_v12 = vpop.eup %6567 }
0x19bd   : > { %v4915_v29 = vmul.f32 %v6568_v12, %v10941_v4 }
0x19be   : > { %5361 = vadd.xlane.f32.xlu0 %v5360_v32 }
0x19c2   : > { %v6365_v46 = vpop.permute.xlu1 %6364 }
0x19c3   : > { %v6366_v10 = vunpack.i.l.bf16 %v6365_v46  ;;  %v6367_v45 = vunpack.i.h.bf16 %v6365_v46 }
0x19c5   : > { %4493 = vmatpush.msra.mxu1 %v6366_v10 }
0x19c7   : > { %4494 = vmatpush.msra.mxu1 %v6367_v45 }
0x19c8   : > { %6198 = vmatmul.msk.f32.vlgmr.msra.gmra.mxu1 %vm11856_vm2, %v4465_v34  ;;  %v6370_v42 = vpop.permute.xlu0 %6369 }
0x19c9   : > { %v6371_v59 = vunpack.i.l.bf16 %v6370_v42  ;;  %v6372_v28 = vunpack.i.h.bf16 %v6370_v42 }
0x19cb   : > { %4943 = vmatpush.msrb.mxu0 %v6371_v59  ;;  %v5528_v59 = vld [vmem:[#allocation5 + $0x38] sm:$0xff] }
0x19cd   : > { %4944 = vmatpush.msrb.mxu0 %v6372_v28  ;;  %v5527_v28 = vld [vmem:[#allocation5 + $0x30] sm:$0xff] }
0x19ce   : > { %6204 = vmatmul.msk.f32.vlgmr.msrb.gmra.mxu0 %vm11857_vm3, %v4915_v29  ;;  %v5526_v29 = vld [vmem:[#allocation5 + $0x28] sm:$0xff] }
0x19cf   : > { %5549 = vmatpush.msra.mxu0 %v5528_v59  ;;  %v6423_v59 = vld [vmem:[%s11266_s4 + $0x39] ss:$0 sm:$0xff] }
0x19d1   : > { %5550 = vmatpush.msra.mxu0 %v5527_v28  ;;  %v6428_v28 = vld [vmem:[%s11266_s4 + $0x3e] ss:$0 sm:$0xff] }
0x19d3   : > { %5551 = vmatpush.msra.mxu0 %v5526_v29  ;;  %v6429_v29 = vld [vmem:[%s11266_s4 + $0x3f] ss:$0 sm:$0xff] }
0x19e0   : > { %v5359_v33 = vpop.xlane.xlu2 %5358 }
0x19f3   : > { %v4462_v48 = vpop.xlane.xlu0 %4461 }
0x19f4   : > { %6569 = vrcp.f32 %v4462_v48  ;;  %v5525_v48 = vld [vmem:[#allocation5 + $0x20] sm:$0xff] }
0x19f5   : > { %6571 = vrcp.f32 %v5359_v33  ;;  %5552 = vmatpush.msra.mxu0 %v5525_v48 }
0x19fa   : > { %v6570_v20 = vpop.eup %6569 }
0x19fb   : > { %v4466_v53 = vmul.f32 %v6570_v20, %v6556_v23  ;;  %v6572_v11 = vpop.eup %6571 }
0x19fc   : > { %v5365_v52 = vmul.f32 %v6572_v11, %v10952_v55  ;;  %v6212_v55 = vld [vmem:[%s11270_s8 + $0x40] sm:$0xff] }
0x19fd   : > { %6199 = vmatmul.msk.f32.gmra.mxu1 %vm11858_vm4, %v4466_v53  ;;  %5458 = vmatpush.msrb.mxu3 %v6212_v55 }
0x1a06   : > { %v6375_v2 = vpop.permute.xlu0 %6374 }
0x1a07   : > { %v6376_v40 = vunpack.i.l.bf16 %v6375_v2  ;;  %v6377_v22 = vunpack.i.h.bf16 %v6375_v2 }
0x1a09   : > { %5393 = vmatpush.msrb.mxu1 %v6376_v40 }
0x1a0b   : > { %5394 = vmatpush.msrb.mxu1 %v6377_v22 }
0x1a0c   : > { %6210 = vmatmul.msk.f32.vlgmr.msrb.gmra.mxu1 %vm11842_vm0, %v5365_v52 }
0x1a17   : > { %v4912_v13 = vpop.xlane.xlu1 %4911 }
0x1a18   : > { %6573 = vrcp.f32 %v4912_v13 }
0x1a1e   : > { %v6574_v51 = vpop.eup %6573 }
0x1a1f   : > { %v4916_v31 = vmul.f32 %v6574_v51, %v6558_v18  ;;  %v6420_v51 = vld [vmem:[%s11266_s4 + $0x2a] ss:$0 sm:$0xff] }
0x1a21   : > { %6205 = vmatmul.msk.f32.gmra.mxu0 %vm11859_vm5, %v4916_v31  ;;  %vm11871_vm5 = vcmask 1046528  }
0x1a2c   : > { %v4046_v43 = vpop.f32.mrf.mxu0 }
0x1a31   : > { %v5362_v26 = vpop.xlane.xlu0 %5361 }
0x1a32   : > { %6575 = vrcp.f32 %v5362_v26 }
0x1a34   : > { %v4049_v5 = vpop.f32.mrf.mxu0 }
0x1a38   : > { %v6576_v47 = vpop.eup %6575 }
0x1a39   : > { %v5366_v30 = vmul.f32 %v6576_v47, %v6564_v63  ;;  %v11870_v63 = vld [vmem:[#allocation22_spill] sm:$0xff]  ;;  %v6421_v47 = vld [vmem:[%s11266_s4 + $0x2b] ss:$0 sm:$0xff] }
0x1a3b   : > { %6211 = vmatmul.msk.f32.gmra.mxu1 %vm11860_vm6, %v5366_v30  ;;  %vm11872_vm6 = vmmov %vm11871_vm5 }
0x1a45   : > { %v4496_v49 = vpop.f32.mrf.mxu1 }
0x1a46   : > { %5404 = vrot.lane.b32.xlu2 %v4496_v49, %s11861_s25 }
0x1a4b   : > { %v4946_v61 = vpop.f32.mrf.mxu0 }
0x1a4c   : > { %5412 = vrot.lane.b32.xlu1 %v4946_v61, %s11862_s24 }
0x1a7a   : > { %v4499_v56 = vpop.f32.mrf.mxu1 }
0x1a7b   : > { %5406 = vrot.lane.b32.xlu0 %v4499_v56, %s11861_s25 }
0x1a89   : > { %v5396_v4 = vpop.f32.mrf.mxu1 }
0x1a8a   : > { %5420 = vrot.lane.b32.xlu2 %v5396_v4, %s11863_s30 }
0x1a9e   : > { %v4949_v0 = vpop.f32.mrf.mxu0 }
0x1a9f   : > { %5414 = vrot.lane.b32.xlu2 %v4949_v0, %s11862_s24  ;;  %s6757_s24 = scalar_lea.hbm %s11273_s11, 32 }
0x1aa0   : > { %v5405_v36 = vpop.permute.xlu2 %5404 }
0x1aa1   : > { %v5426_v54 = vsel %vm1062_vm15, %v4046_v43, %v5405_v36 }
0x1ab8   : > { %v5399_v39 = vpop.f32.mrf.mxu1 }
0x1ab9   : > { %5422 = vrot.lane.b32.xlu1 %v5399_v39, %s11863_s30 }
0x1abe   : > { %v5413_v21 = vpop.permute.xlu1 %5412 }
0x1abf   : > { %v5428_v6 = vsel %vm11864_vm7, %v5426_v54, %v5413_v21  ;;  %v6422_v54 = vld [vmem:[%s11266_s4 + $0x2c] ss:$0 sm:$0xff]  ;;  %vm11873_vm7 = vcmask 1045504  }
0x1ae4   : > { %v5421_v23 = vpop.permute.xlu2 %5420 }
0x1ae5   : > { %v5430_v15 = vsel %vm11865_vm14, %v5428_v6, %v5421_v23  ;;  %vm11874_vm14 = vmmov %vm11873_vm7 }
0x1ae6   : > { %6216 = vmatmul.msk.f32.vlgmr.msrb.gmra.mxu3 %vm463_vm1, %v5430_v15 }
0x1aed   : > { %v5407_v62 = vpop.permute.xlu0 %5406 }
0x1aee   : > { %v5427_v7 = vsel %vm1062_vm15, %v4049_v5, %v5407_v62 }
0x1af9   : > { %v5415_v44 = vpop.permute.xlu2 %5414 }
0x1afa   : > { %v5429_v14 = vsel %vm11866_vm11, %v5427_v7, %v5415_v44  ;;  %vm11875_vm11 = vcmask 1044480  }
0x1b2b   : > { %v5423_v18 = vpop.permute.xlu1 %5422 }
0x1b2c   : > { %v5431_v1 = vsel %vm11867_vm8, %v5429_v14, %v5423_v18  ;;  %vm11876_vm8 = vmmov %vm11875_vm11 }
0x1b2d   : > { %6217 = vmatmul.msk.f32.gmra.mxu3 %vm463_vm1, %v5431_v1 }
0x1b69   : > { %v5460_v60 = vpop.f32.mrf.mxu3 }
0x1b6a   : > { %v5466_v19 = vadd.f32 %v5460_v60, %v11868_v50 }
0x1b6c   : > { %v11005_v3 = vadd.f32 %v6419_v16, %v5466_v19 }
0x1b6e   : > { %v5474_v27 = vsel %vm463_vm1, %v11005_v3, 0.0 }
0x1b6f   : > { %5475 = vadd.xlane.f32.xlu2 %v5474_v27 }
0x1bb0   : > { %v5463_v17 = vpop.f32.mrf.mxu3 }
0x1bb1   : > { %v5467_v41 = vadd.f32 %v5463_v17, %v11869_v9 }
0x1bb3   : > { %v11010_v24 = vadd.f32 %v6419_v16, %v5467_v41  ;;  %v6223_v41 = vld [vmem:[%s11270_s8 + $0x78] sm:$0xff] }
0x1bb4   : > { %5766 = vmatpush.msra.mxu2 %v6223_v41 }
0x1bb5   : > { %v5477_v8 = vsel %vm463_vm1, %v11010_v24, 0.0 }
0x1bb6   : > { %5478 = vadd.xlane.f32.xlu1 %v5477_v8  ;;  %v6222_v8 = vld [vmem:[%s11270_s8 + $0x70] sm:$0xff] }
0x1bb7   : > { %5767 = vmatpush.msra.mxu2 %v6222_v8 }
0x1be2   : > { %v5476_v38 = vpop.xlane.xlu2 %5475 }
0x1be3   : > { %v5480_v32 = vmul.f32 %v5476_v38, %v11870_v63  ;;  %v6221_v38 = vld [vmem:[%s11270_s8 + $0x68] sm:$0xff] }
0x1be4   : > { %5768 = vmatpush.msra.mxu2 %v6221_v38 }
0x1be5   : > { %v5482_v37 = vsub.f32 %v11005_v3, %v5480_v32 }
0x1be7   : > { %v5484_v46 = vmul.f32 %v5482_v37, %v5482_v37 }
0x1be9   : > { %v5486_v25 = vsel %vm463_vm1, %v5484_v46, 0.0  ;;  %v5706_v46 = vld [vmem:[%s11266_s4 + $0x31] sm:$0x1] }
0x1bea   : > { %5487 = vadd.xlane.f32.xlu0 %v5486_v25  ;;  %v11050_v25 = vadd.f32 1e-05, %v5706_v46 }
0x1bec   : > { %vm5714_vm4 = vweird.f32 %v11050_v25 }
0x1c29   : > { %v5479_v10 = vpop.xlane.xlu1 %5478 }
0x1c2a   : > { %v5481_v45 = vmul.f32 %v5479_v10, %v11870_v63  ;;  %v6424_v10 = vld [vmem:[%s11266_s4 + $0x3a] ss:$0 sm:$0xff] }
0x1c2c   : > { %v5483_v34 = vsub.f32 %v11010_v24, %v5481_v45  ;;  %v6425_v45 = vld [vmem:[%s11266_s4 + $0x3b] ss:$0 sm:$0xff] }
0x1c2e   : > { %v5485_v42 = vmul.f32 %v5483_v34, %v5483_v34 }
0x1c30   : > { %v5489_v12 = vsel %vm463_vm1, %v5485_v42, 0.0  ;;  %v6427_v42 = vld [vmem:[%s11266_s4 + $0x3d] ss:$0 sm:$0xff] }
0x1c31   : > { %5490 = vadd.xlane.f32.xlu2 %v5489_v12 }
0x1c5d   : > { %v5488_v20 = vpop.xlane.xlu0 %5487 }
0x1c5e   : > { %v5492_v53 = vmul.f32 %v5488_v20, %v11870_v63 }
0x1c60   : > { %v5494_v33 = vadd.f32 1e-05, %v5492_v53 }
0x1c62   : > { %6577 = vrsqrt.f32 %v5494_v33  ;;  %vm5502_vm9 = vweird.f32 %v5494_v33 }
0x1c68   : > { %v6578_v2 = vpop.eup %6577 }
0x1c69   : > { %v5497_v11 = vmul.f32 %v6578_v2, %v5494_v33  ;;  %vm5503_vm15 = vweird.f32 %v6578_v2 }
0x1c6a   : > { %vm5504_vm12 = vmor %vm5502_vm9, %vm5503_vm15  ;;  %vm11877_vm15 = vcmask 1043456  }
0x1c6b   : > { %v5498_v40 = vmul.f32 %v6578_v2, %v5497_v11  ;;  %vm11878_vm9 = vmmov %vm11877_vm15 }
0x1c6d   : > { %v5499_v22 = vmul.f32 0.5, %v5498_v40 }
0x1c6f   : > { %v5500_v52 = vsub.f32 1.5, %v5499_v22 }
0x1c71   : > { %v5501_v13 = vmul.f32 %v6578_v2, %v5500_v52 }
0x1c73   : > { %v5505_v31 = vsel %vm5504_vm12, %v6578_v2, %v5501_v13 }
0x1c74   : > { %v5516_v26 = vmul.f32 %v5505_v31, %v5482_v37  ;;  %v6220_v37 = vld [vmem:[%s11270_s8 + $0x60] sm:$0xff] }
0x1c75   : > { %5769 = vmatpush.msra.mxu2 %v6220_v37 }
0x1c76   : > { %v5519_v43 = vmul.f32 %v6420_v51, %v5516_v26 }
0x1c78   : > { %v5522_v30 = vadd.f32 %v6421_v47, %v5519_v43 }
0x1c7a   : > { %6218 = vmatmul.msk.f32.vlgmr.msra.gmra.mxu0 %vm463_vm1, %v5522_v30 }
0x1ca4   : > { %v5491_v5 = vpop.xlane.xlu2 %5490 }
0x1ca5   : > { %v5493_v49 = vmul.f32 %v5491_v5, %v11870_v63 }
0x1ca7   : > { %v5495_v61 = vadd.f32 1e-05, %v5493_v49 }
0x1ca9   : > { %6579 = vrsqrt.f32 %v5495_v61  ;;  %vm5512_vm2 = vweird.f32 %v5495_v61 }
0x1caf   : > { %v6580_v56 = vpop.eup %6579 }
0x1cb0   : > { %v5507_v4 = vmul.f32 %v6580_v56, %v5495_v61  ;;  %vm5513_vm10 = vweird.f32 %v6580_v56 }
0x1cb1   : > { %vm5514_vm3 = vmor %vm5512_vm2, %vm5513_vm10  ;;  %vm11879_vm10 = vcmask 1041408  }
0x1cb2   : > { %v5508_v0 = vmul.f32 %v6580_v56, %v5507_v4  ;;  %vm11880_vm2 = vmmov %vm11879_vm10 }
0x1cb4   : > { %v5509_v58 = vmul.f32 0.5, %v5508_v0 }
0x1cb6   : > { %v5510_v57 = vsub.f32 1.5, %v5509_v58 }
0x1cb8   : > { %v5511_v35 = vmul.f32 %v6580_v56, %v5510_v57 }
0x1cba   : > { %v5515_v39 = vsel %vm5514_vm3, %v6580_v56, %v5511_v35 }
0x1cbb   : > { %v5517_v55 = vmul.f32 %v5515_v39, %v5483_v34  ;;  %v6426_v34 = vld [vmem:[%s11266_s4 + $0x3c] ss:$0 sm:$0xff] }
0x1cbd   : > { %v5520_v36 = vmul.f32 %v6420_v51, %v5517_v55 }
0x1cbf   : > { %v5523_v21 = vadd.f32 %v6421_v47, %v5520_v36 }
0x1cc1   : > { %6219 = vmatmul.msk.f32.gmra.mxu0 %vm463_vm1, %v5523_v21 }
0x1cf7   : > { %v5554_v6 = vpop.f32.mrf.mxu0 }
0x1cf8   : > { %v5555_v23 = vadd.f32 %v6422_v54, %v5554_v6 }
0x1cfa   : > { %v5560_v15 = vsub.f32 0.0, %v5555_v23 }
0x1cfc   : > { %v5562_v62 = vmul.f32 1.442695, %v5560_v15 }
0x1cfe   : > { %6581 = vpow2.f32 %v5562_v62 }
0x1d04   : > { %v6582_v44 = vpop.eup %6581 }
0x1d05   : > { %v5566_v7 = vadd.f32 1.0, %v6582_v44 }
0x1d07   : > { %6583 = vrcp.f32 %v5566_v7 }
0x1d0d   : > { %v6584_v14 = vpop.eup %6583 }
0x1d0e   : > { %5572 = vrot.lane.b32.xlu1 %v6584_v14, %s11648_s29 }
0x1d3e   : > { %v5557_v18 = vpop.f32.mrf.mxu0 }
0x1d3f   : > { %v5558_v1 = vadd.f32 %v6422_v54, %v5557_v18 }
0x1d41   : > { %v5561_v16 = vsub.f32 0.0, %v5558_v1 }
0x1d43   : > { %v5564_v60 = vmul.f32 1.442695, %v5561_v16 }
0x1d45   : > { %6585 = vpow2.f32 %v5564_v60 }
0x1d4b   : > { %v6586_v50 = vpop.eup %6585 }
0x1d4c   : > { %v5567_v19 = vadd.f32 1.0, %v6586_v50 }
0x1d4e   : > { %6587 = vrcp.f32 %v5567_v19 }
0x1d4f   : > { %6589 = vrsqrt.f32 %v11050_v25 }
0x1d54   : > { %v6588_v27 = vpop.eup %6587 }
0x1d55   : > { %5574 = vrot.lane.b32.xlu2 %v6588_v27, %s11648_s29  ;;  %v11075_v40 = vpop.eup %6589  ;;  %s6751_s29 = sshra.s32 %s5995_s14, 4  ;;  %s6752_s29 = int_to_ptr.hbm [resolvable:$true] %s6751_s29 }
0x1d56   : > { %v5709_v4 = vmul.f32 %v11075_v40, %v11050_v25  ;;  %vm5715_vm0 = vweird.f32 %v11075_v40  ;;  %v6431_v25 = vld [vmem:[%s11266_s4 + $0x30] ss:$0 sm:$0xff]  ;;  %s6753_s22 = scalar_lea.hbm %s6752_s29, 16  ;;  %p6758_p3 = scmp.lt.s32.totalorder %s6752_s29, %s11273_s11 }
0x1d57   : > { %vm5716_vm12 = vmor %vm5714_vm4, %vm5715_vm0  ;;  %p6754_p0 = scmp.ne.s32.totalorder %s6752_s29, %s6753_s22  ;;  %p6759_p4 = scmp.lt.s32.totalorder %s6757_s24, %s6753_s22 }
0x1d58   : > { %v5710_v7 = vmul.f32 %v11075_v40, %v5709_v4  ;;  %v6432_v4 = vld [vmem:[%s11266_s4 + $0x2e] ss:$0 sm:$0xff] }
0x1d59   : > { %p6755_p1 = pnand %p6754_p0, %p6928_p5  ;;  %p6760_p7 = por %p6759_p4, %p6758_p3 }
0x1d5a   : > { %v5711_v46 = vmul.f32 0.5, %v5710_v7 }
0x1d5b   : > { %p6756_p2 = pneg %p6755_p1 }
0x1d5d   : > { %p6761_p8 = pnand %p6760_p7, %p6756_p2 }
0x1d80   : > { %v5573_v17 = vpop.permute.xlu1 %5572 }
0x1d81   : > { %v5578_v9 = vmul.f32 %v5573_v17, %v5555_v23 }
0x1d83   : > { %v5582_v32 = vrot.slane %v5578_v9, 5 }
0x1d85   : > { %v5588_v12 = vsel %vm3005_vm13, 0.0, %v5582_v32 }
0x1d86   : > { %v5598_v48 = vmul.f32 %v6424_v10, %v5588_v12  ;;  %v5615_v20 = vmul.f32 %v6425_v45, %v5588_v12  ;;  %v5632_v33 = vmul.f32 %v6426_v34, %v5588_v12  ;;  %v5649_v2 = vmul.f32 %v6427_v42, %v5588_v12 }
0x1d87   : > { %v5592_v22 = vmul.f32 %v6423_v59, %v5588_v12  ;;  %v5666_v31 = vmul.f32 %v6428_v28, %v5588_v12  ;;  %v5683_v26 = vmul.f32 %v6429_v29, %v5588_v12 }
0x1d88   : > { %v5604_v13 = vrot.slane %v5598_v48, 1  ;;  %v5621_v51 = vrot.slane %v5615_v20, 2  ;;  %v5638_v47 = vrot.slane %v5632_v33, 3  ;;  %v5655_v43 = vrot.slane %v5649_v2, 4 }
0x1d89   : > { %v5712_v20 = vsub.f32 1.5, %v5711_v46 }
0x1daf   : > { %v5575_v53 = vpop.permute.xlu2 %5574 }
0x1db0   : > { %v5579_v11 = vmul.f32 %v5575_v53, %v5558_v1 }
0x1db2   : > { %v5583_v52 = vrot.slane %v5579_v11, 5  ;;  %v5713_v11 = vmul.f32 %v11075_v40, %v5712_v20 }
0x1db4   : > { %v5584_v30 = vsel %vm3005_vm13, %v5582_v32, %v5583_v52  ;;  %v5589_v5 = vsel %vm3005_vm13, %v5583_v52, 0.0 }
0x1db5   : > { %v5599_v49 = vmul.f32 %v6424_v10, %v5584_v30  ;;  %v5600_v61 = vmul.f32 %v6424_v10, %v5589_v5  ;;  %v5616_v56 = vmul.f32 %v6425_v45, %v5584_v30  ;;  %v5617_v0 = vmul.f32 %v6425_v45, %v5589_v5 }
0x1db6   : > { %v5633_v58 = vmul.f32 %v6426_v34, %v5584_v30  ;;  %v5634_v57 = vmul.f32 %v6426_v34, %v5589_v5  ;;  %v5650_v35 = vmul.f32 %v6427_v42, %v5584_v30  ;;  %v5651_v21 = vmul.f32 %v6427_v42, %v5589_v5 }
0x1db7   : > { %v5605_v39 = vrot.slane %v5599_v49, 1  ;;  %v5607_v55 = vrot.slane %v5600_v61, 1  ;;  %v5622_v36 = vrot.slane %v5616_v56, 2  ;;  %v5593_v54 = vmul.f32 %v6423_v59, %v5584_v30 }
0x1db8   : > { %v5624_v6 = vrot.slane %v5617_v0, 2  ;;  %v5639_v23 = vrot.slane %v5633_v58, 3  ;;  %v5641_v44 = vrot.slane %v5634_v57, 3  ;;  %v5656_v16 = vrot.slane %v5650_v35, 4 }
0x1db9   : > { %v5606_v15 = vsel %vm11871_vm5, %v5604_v13, %v5605_v39  ;;  %v5608_v62 = vsel %vm11872_vm6, %v5605_v39, %v5607_v55  ;;  %v5623_v1 = vsel %vm11873_vm7, %v5621_v51, %v5622_v36  ;;  %v5658_v19 = vrot.slane %v5651_v21, 4  ;;  %v6430_v13 = vld [vmem:[%s11266_s4 + $0x2d] ss:$0 sm:$0xff] }
0x1dba   : > { %v5611_v14 = vadd.f32 %v5606_v15, %v5592_v22  ;;  %v5612_v18 = vadd.f32 %v5608_v62, %v5593_v54  ;;  %v5625_v60 = vsel %vm11874_vm14, %v5622_v36, %v5624_v6  ;;  %v5640_v50 = vsel %vm11875_vm11, %v5638_v47, %v5639_v23 }
0x1dbb   : > { %v5667_v27 = vmul.f32 %v6428_v28, %v5584_v30  ;;  %v5668_v41 = vmul.f32 %v6428_v28, %v5589_v5  ;;  %v5684_v8 = vmul.f32 %v6429_v29, %v5584_v30  ;;  %v5642_v38 = vsel %vm11876_vm8, %v5639_v23, %v5641_v44 }
0x1dbc   : > { %v5628_v17 = vadd.f32 %v5623_v1, %v5611_v14  ;;  %v5629_v9 = vadd.f32 %v5625_v60, %v5612_v18  ;;  %v5685_v37 = vmul.f32 %v6429_v29, %v5589_v5  ;;  %v5672_v10 = vrot.slane %v5666_v31, 5  ;;  %v6434_v60 = vld [vmem:[%s11266_s4 + $0x32] ss:$0 sm:$0xff] }
0x1dbd   : > { %v5673_v32 = vrot.slane %v5667_v27, 5  ;;  %v5675_v42 = vrot.slane %v5668_v41, 5  ;;  %v5657_v12 = vsel %vm11877_vm15, %v5655_v43, %v5656_v16  ;;  %v5659_v59 = vsel %vm11878_vm9, %v5656_v16, %v5658_v19 }
0x1dbe   : > { %v5645_v45 = vadd.f32 %v5640_v50, %v5628_v17  ;;  %v5646_v34 = vadd.f32 %v5642_v38, %v5629_v9  ;;  %v5690_v48 = vrot.slane %v5684_v8, 6  ;;  %v5692_v2 = vrot.slane %v5685_v37, 6 }
0x1dbf   : > { %v5689_v28 = vrot.slane %v5683_v26, 6  ;;  %v5674_v29 = vsel %vm3005_vm13, %v5672_v10, %v5673_v32  ;;  %v5676_v22 = vsel %vm3005_vm13, %v5673_v32, %v5675_v42  ;;  %v5717_v31 = vsel %vm5716_vm12, %v11075_v40, %v5713_v11  ;;  %v6433_v40 = vld [vmem:[%s11266_s4 + $0x2f] ss:$0 sm:$0xff]  ;;  %v6246_v11 = vld [vmem:[%s11272_s10 + $0x1f0] sm:$0xff] }
0x1dc0   : > { %v5662_v53 = vadd.f32 %v5657_v12, %v5645_v45  ;;  %v5663_v33 = vadd.f32 %v5659_v59, %v5646_v34  ;;  %v5693_v26 = vsel %vm11880_vm2, %v5690_v48, %v5692_v2  ;;  %v5718_v49 = vperm.slane %v5717_v31, 0  ;;  %v6229_v59 = vld [vmem:[%s11271_s9 + $0x78] sm:$0xff]  ;;  %v6226_v2 = vld [vmem:[%s11271_s9 + $0x60] sm:$0xff] }
0x1dc1   : > { %v5691_v51 = vsel %vm11879_vm10, %v5689_v28, %v5690_v48  ;;  %v6228_v48 = vld [vmem:[%s11271_s9 + $0x70] sm:$0xff]  ;;  %5856 = vmatpush.msra.mxu1 %v6229_v59 }
0x1dc2   : > { %v5679_v52 = vadd.f32 %v5674_v29, %v5662_v53  ;;  %v5680_v47 = vadd.f32 %v5676_v22, %v5663_v33  ;;  %v6227_v53 = vld [vmem:[%s11271_s9 + $0x68] sm:$0xff]  ;;  %v6247_v29 = vld [vmem:[%s11272_s10 + $0x1f8] sm:$0xff] }
0x1dc3   : > { %5857 = vmatpush.msra.mxu1 %v6228_v48  ;;  %5898 = vmatpush.msra.mxu3 %v6247_v29  ;;  %v6245_v22 = vld [vmem:[%s11272_s10 + $0x1e8] sm:$0xff] }
0x1dc4   : > { %v5696_v43 = vadd.f32 %v5691_v51, %v5679_v52  ;;  %v5697_v30 = vadd.f32 %v5693_v26, %v5680_v47 }
0x1dc5   : > { %5858 = vmatpush.msra.mxu1 %v6227_v53  ;;  %5899 = vmatpush.msra.mxu3 %v6246_v11 }
0x1dc6   : > { %v5700_v5 = vadd.f32 %v6430_v13, %v5696_v43  ;;  %v5701_v61 = vadd.f32 %v6430_v13, %v5697_v30 }
0x1dc7   : > { %5859 = vmatpush.msra.mxu1 %v6226_v2  ;;  %5900 = vmatpush.msra.mxu3 %v6245_v22 }
0x1dc8   : > { %v5704_v56 = vsub.f32 %v5700_v5, %v6431_v25  ;;  %v5705_v0 = vsub.f32 %v5701_v61, %v6431_v25  ;;  %v6435_v61 = vld [vmem:[%s11266_s4 + $0x33] ss:$0 sm:$0xff] }
0x1dca   : > { %v5719_v58 = vmul.f32 %v5718_v49, %v5704_v56  ;;  %v5720_v57 = vmul.f32 %v5718_v49, %v5705_v0 }
0x1dcc   : > { %v5723_v35 = vmul.f32 %v6432_v4, %v5719_v58  ;;  %v5724_v39 = vmul.f32 %v6432_v4, %v5720_v57  ;;  %v6436_v58 = vld [vmem:[%s11266_s4 + $0x34] ss:$0 sm:$0xff] }
0x1dce   : > { %v5727_v55 = vadd.f32 %v6433_v40, %v5723_v35  ;;  %v5728_v36 = vadd.f32 %v6433_v40, %v5724_v39 }
0x1dd0   : > { %v5729_v21 = vsub.f32 0.0, %v5727_v55  ;;  %v5730_v54 = vsub.f32 0.0, %v5728_v36 }
0x1dd2   : > { %v5731_v6 = vmul.f32 1.442695, %v5729_v21  ;;  %v5733_v23 = vmul.f32 1.442695, %v5730_v54 }
0x1dd4   : > { %6591 = vpow2.f32 %v5731_v6 }
0x1dd5   : > { %6593 = vpow2.f32 %v5733_v23  ;;  %v6244_v23 = vld [vmem:[%s11272_s10 + $0x1e0] sm:$0xff] }
0x1dd6   : > { %5901 = vmatpush.msra.mxu3 %v6244_v23 }
0x1dda   : > { %v6592_v15 = vpop.eup %6591 }
0x1ddb   : > { %v5735_v62 = vadd.f32 1.0, %v6592_v15  ;;  %v6594_v44 = vpop.eup %6593  ;;  %v6243_v15 = vld [vmem:[%s11272_s10 + $0x1d8] sm:$0xff] }
0x1ddc   : > { %v5736_v7 = vadd.f32 1.0, %v6594_v44  ;;  %5902 = vmatpush.msra.mxu3 %v6243_v15  ;;  %v6241_v44 = vld [vmem:[%s11272_s10 + $0x1c8] sm:$0xff] }
0x1ddd   : > { %6595 = vrcp.f32 %v5735_v62  ;;  %v6242_v62 = vld [vmem:[%s11272_s10 + $0x1d0] sm:$0xff] }
0x1dde   : > { %6597 = vrcp.f32 %v5736_v7  ;;  %5903 = vmatpush.msra.mxu3 %v6242_v62  ;;  %v6437_v7 = vld [vmem:[%s11266_s4 + $0x35] ss:$0 sm:$0xff]  ;;  %v6439_v62 = vld [vmem:[%s11266_s4 + $0x37] ss:$0 sm:$0xff] }
0x1de0   : > { %5904 = vmatpush.msra.mxu3 %v6241_v44 }
0x1de3   : > { %v6596_v14 = vpop.eup %6595 }
0x1de4   : > { %v5739_v18 = vmul.f32 %v6596_v14, %v5727_v55  ;;  %v6598_v1 = vpop.eup %6597  ;;  %v6240_v14 = vld [vmem:[%s11272_s10 + $0x1c0] sm:$0xff] }
0x1de5   : > { %v5740_v16 = vmul.f32 %v6598_v1, %v5728_v36  ;;  %5905 = vmatpush.msra.mxu3 %v6240_v14 }
0x1de6   : > { %6224 = vmatmul.msk.f32.vlgmr.msra.gmra.mxu2 %vm463_vm1, %v5739_v18  ;;  %v6239_v18 = vld [vmem:[%s11272_s10 + $0x1b8] sm:$0xff] }
0x1de7   : > { %5906 = vmatpush.msra.mxu3 %v6239_v18 }
0x1dee   : > { %6225 = vmatmul.msk.f32.gmra.mxu2 %vm463_vm1, %v5740_v16 }
0x1e69   : > { %v5771_v50 = vpop.f32.mrf.mxu2 }
0x1e6a   : > { %v5772_v19 = vadd.f32 %v6434_v60, %v5771_v50 }
0x1e6c   : > { %v11120_v27 = vadd.f32 %v5772_v19, %v11005_v3  ;;  %v6237_v19 = vld [vmem:[%s11272_s10 + $0x1a8] sm:$0xff] }
0x1e6e   : > { %v5781_v17 = vsel %vm463_vm1, %v11120_v27, 0.0 }
0x1e6f   : > { %5782 = vadd.xlane.f32.xlu0 %v5781_v17 }
0x1e71   : > { %v5774_v9 = vpop.f32.mrf.mxu2 }
0x1e72   : > { %v5775_v41 = vadd.f32 %v6434_v60, %v5774_v9  ;;  %v6238_v60 = vld [vmem:[%s11272_s10 + $0x1b0] sm:$0xff]  ;;  %v6236_v9 = vld [vmem:[%s11272_s10 + $0x1a0] sm:$0xff] }
0x1e73   : > { %5907 = vmatpush.msra.mxu3 %v6238_v60 }
0x1e74   : > { %v11125_v8 = vadd.f32 %v5775_v41, %v11010_v24  ;;  %v6235_v41 = vld [vmem:[%s11272_s10 + $0x198] sm:$0xff] }
0x1e75   : > { %5908 = vmatpush.msra.mxu3 %v6237_v19 }
0x1e76   : > { %v5784_v38 = vsel %vm463_vm1, %v11125_v8, 0.0 }
0x1e77   : > { %5785 = vadd.xlane.f32.xlu0 %v5784_v38  ;;  %5909 = vmatpush.msra.mxu3 %v6236_v9 }
0x1e79   : > { %5910 = vmatpush.msra.mxu3 %v6235_v41 }
0x1ee2   : > { %v5783_v32 = vpop.xlane.xlu0 %5782 }
0x1ee3   : > { %v5787_v37 = vmul.f32 %v5783_v32, %v11870_v63 }
0x1ee5   : > { %v5789_v46 = vsub.f32 %v11120_v27, %v5787_v37  ;;  %v6234_v37 = vld [vmem:[%s11272_s10 + $0x190] sm:$0xff] }
0x1ee6   : > { %5911 = vmatpush.msra.mxu3 %v6234_v37 }
0x1ee7   : > { %v5791_v3 = vmul.f32 %v5789_v46, %v5789_v46 }
0x1ee9   : > { %v5793_v10 = vsel %vm463_vm1, %v5791_v3, 0.0  ;;  %v6233_v3 = vld [vmem:[%s11272_s10 + $0x188] sm:$0xff] }
0x1eea   : > { %5794 = vadd.xlane.f32.xlu0 %v5793_v10  ;;  %v5786_v45 = vpop.xlane.xlu0 %5785  ;;  %5912 = vmatpush.msra.mxu3 %v6233_v3 }
0x1eeb   : > { %v5788_v34 = vmul.f32 %v5786_v45, %v11870_v63 }
0x1eed   : > { %v5790_v42 = vsub.f32 %v11125_v8, %v5788_v34  ;;  %v6232_v34 = vld [vmem:[%s11272_s10 + $0x180] sm:$0xff] }
0x1eee   : > { %5913 = vmatpush.msra.mxu3 %v6232_v34 }
0x1eef   : > { %v5792_v24 = vmul.f32 %v5790_v42, %v5790_v42 }
0x1ef1   : > { %v5796_v12 = vsel %vm463_vm1, %v5792_v24, 0.0 }
0x1ef2   : > { %5797 = vadd.xlane.f32.xlu1 %v5796_v12 }
0x1f5d   : > { %v5795_v20 = vpop.xlane.xlu0 %5794 }
0x1f5e   : > { %v5799_v33 = vmul.f32 %v5795_v20, %v11870_v63 }
0x1f60   : > { %v5801_v28 = vadd.f32 1e-05, %v5799_v33  ;;  %v6438_v33 = vld [vmem:[%s11266_s4 + $0x36] ss:$0 sm:$0xff] }
0x1f62   : > { %6599 = vrsqrt.f32 %v5801_v28  ;;  %vm5809_vm3 = vweird.f32 %v5801_v28 }
0x1f65   : > { %v5798_v52 = vpop.xlane.xlu1 %5797 }
0x1f66   : > { %v5800_v13 = vmul.f32 %v5798_v52, %v11870_v63 }
0x1f68   : > { %v6600_v51 = vpop.eup %6599  ;;  %v5802_v31 = vadd.f32 1e-05, %v5800_v13 }
0x1f69   : > { %v5804_v47 = vmul.f32 %v6600_v51, %v5801_v28  ;;  %vm5810_vm13 = vweird.f32 %v6600_v51 }
0x1f6a   : > { %6601 = vrsqrt.f32 %v5802_v31  ;;  %vm5811_vm4 = vmor %vm5809_vm3, %vm5810_vm13  ;;  %vm5819_vm5 = vweird.f32 %v5802_v31 }
0x1f6b   : > { %v5805_v43 = vmul.f32 %v6600_v51, %v5804_v47 }
0x1f6d   : > { %v5806_v25 = vmul.f32 0.5, %v5805_v43 }
0x1f6f   : > { %v5807_v26 = vsub.f32 1.5, %v5806_v25 }
0x1f70   : > { %v6602_v30 = vpop.eup %6601 }
0x1f71   : > { %v5808_v5 = vmul.f32 %v6600_v51, %v5807_v26  ;;  %v5814_v49 = vmul.f32 %v6602_v30, %v5802_v31  ;;  %vm5820_vm0 = vweird.f32 %v6602_v30 }
0x1f72   : > { %vm5821_vm6 = vmor %vm5819_vm5, %vm5820_vm0 }
0x1f73   : > { %v5812_v56 = vsel %vm5811_vm4, %v6600_v51, %v5808_v5  ;;  %v5815_v4 = vmul.f32 %v6602_v30, %v5814_v49 }
0x1f74   : > { %v5823_v0 = vmul.f32 %v5812_v56, %v5789_v46 }
0x1f75   : > { %v5816_v40 = vmul.f32 0.5, %v5815_v4 }
0x1f76   : > { %v5826_v57 = vmul.f32 %v6435_v61, %v5823_v0 }
0x1f77   : > { %v5817_v35 = vsub.f32 1.5, %v5816_v40 }
0x1f78   : > { %v5829_v39 = vadd.f32 %v6436_v58, %v5826_v57 }
0x1f79   : > { %v5818_v55 = vmul.f32 %v6602_v30, %v5817_v35 }
0x1f7a   : > { %6230 = vmatmul.msk.f32.vlgmr.msra.gmra.mxu1 %vm463_vm1, %v5829_v39 }
0x1f7b   : > { %v5822_v36 = vsel %vm5821_vm6, %v6602_v30, %v5818_v55 }
0x1f7c   : > { %v5824_v21 = vmul.f32 %v5822_v36, %v5790_v42 }
0x1f7e   : > { %v5827_v54 = vmul.f32 %v6435_v61, %v5824_v21 }
0x1f80   : > { %v5830_v6 = vadd.f32 %v6436_v58, %v5827_v54 }
0x1f82   : > { %6231 = vmatmul.msk.f32.gmra.mxu1 %vm463_vm1, %v5830_v6 }
0x1ff7   : > { %v5861_v1 = vpop.f32.mrf.mxu1 }
0x1ff8   : > { %v5862_v16 = vadd.f32 %v6437_v7, %v5861_v1 }
0x1ffa   : > { %v5867_v50 = vsub.f32 0.0, %v5862_v16 }
0x1ffc   : > { %v5869_v17 = vmul.f32 1.442695, %v5867_v50 }
0x1ffe   : > { %6603 = vpow2.f32 %v5869_v17 }
0x1fff   : > { %v5864_v38 = vpop.f32.mrf.mxu1 }
0x2000   : > { %v5865_v32 = vadd.f32 %v6437_v7, %v5864_v38  ;;  %v6440_v7 = vld [vmem:[%s11266_s4 + $0x38] ss:$0 sm:$0xff] }
0x2002   : > { %v5868_v46 = vsub.f32 0.0, %v5865_v32 }
0x2004   : > { %v6604_v10 = vpop.eup %6603  ;;  %v5871_v45 = vmul.f32 1.442695, %v5868_v46 }
0x2005   : > { %v5873_v42 = vadd.f32 1.0, %v6604_v10 }
0x2006   : > { %6605 = vpow2.f32 %v5871_v45 }
0x2007   : > { %6607 = vrcp.f32 %v5873_v42 }
0x200c   : > { %v6606_v24 = vpop.eup %6605 }
0x200d   : > { %v6608_v12 = vpop.eup %6607  ;;  %v5874_v59 = vadd.f32 1.0, %v6606_v24 }
0x200e   : > { %v5877_v48 = vmul.f32 %v6608_v12, %v5862_v16 }
0x200f   : > { %6609 = vrcp.f32 %v5874_v59 }
0x2010   : > { %5914 = vmatmul.f32.vlgmr.msra.gmra.mxu3 %v5877_v48 }
0x2015   : > { %v6610_v20 = vpop.eup %6609 }
0x2016   : > { %v5878_v53 = vmul.f32 %v6610_v20, %v5865_v32 }
0x2018   : > { %5917 = vmatmul.f32.gmra.mxu3 %v5878_v53 }
0x2093   : > { %v5915_v2 = vpop.f32.mrf.mxu3 }
0x2094   : > { %v5916_v28 = vadd.f32 %v6438_v33, %v5915_v2 }
0x2096   : > { %v5921_v29 = vmul.f32 0.5, %v5916_v28 }
0x2098   : > { %v5923_v11 = vadd.f32 %v5921_v29, %v11120_v27 }
0x209a   : > { %v5927_v22 = vsel %vm463_vm1, %v5923_v11, 0.0 }
0x209b   : > { %v5918_v52 = vpop.f32.mrf.mxu3  ;;  %5928 = vadd.xlane.f32.xlu2 %v5927_v22 }
0x209c   : > { %v5919_v13 = vadd.f32 %v6438_v33, %v5918_v52 }
0x209e   : > { %v5922_v51 = vmul.f32 0.5, %v5919_v13 }
0x20a0   : > { %v5924_v31 = vadd.f32 %v5922_v51, %v11125_v8 }
0x20a2   : > { %v5930_v47 = vsel %vm463_vm1, %v5924_v31, 0.0 }
0x20a3   : > { %5931 = vadd.xlane.f32.xlu0 %v5930_v47 }
0x210e   : > { %v5929_v43 = vpop.xlane.xlu2 %5928 }
0x210f   : > { %v5933_v25 = vmul.f32 %v5929_v43, %v11870_v63 }
0x2111   : > { %v5935_v26 = vsub.f32 %v5923_v11, %v5933_v25 }
0x2113   : > { %v5937_v30 = vmul.f32 %v5935_v26, %v5935_v26 }
0x2115   : > { %v5939_v5 = vsel %vm463_vm1, %v5937_v30, 0.0 }
0x2116   : > { %v5932_v49 = vpop.xlane.xlu0 %5931  ;;  %5940 = vadd.xlane.f32.xlu0 %v5939_v5 }
0x2117   : > { %v5934_v27 = vmul.f32 %v5932_v49, %v11870_v63 }
0x2119   : > { %v5936_v61 = vsub.f32 %v5924_v31, %v5934_v27 }
0x211b   : > { %v5938_v56 = vmul.f32 %v5936_v61, %v5936_v61 }
0x211d   : > { %v5942_v4 = vsel %vm463_vm1, %v5938_v56, 0.0 }
0x211e   : > { %5943 = vadd.xlane.f32.xlu0 %v5942_v4 }
0x2189   : > { %v5941_v8 = vpop.xlane.xlu0 %5940 }
0x218a   : > { %v5945_v0 = vmul.f32 %v5941_v8, %v11870_v63 }
0x218c   : > { %v5947_v58 = vadd.f32 1e-05, %v5945_v0 }
0x218e   : > { %6611 = vrsqrt.f32 %v5947_v58  ;;  %vm5955_vm14 = vweird.f32 %v5947_v58 }
0x2191   : > { %v5944_v40 = vpop.xlane.xlu0 %5943 }
0x2192   : > { %v5946_v57 = vmul.f32 %v5944_v40, %v11870_v63 }
0x2194   : > { %v6612_v35 = vpop.eup %6611  ;;  %v5948_v39 = vadd.f32 1e-05, %v5946_v57 }
0x2195   : > { %v5950_v55 = vmul.f32 %v6612_v35, %v5947_v58  ;;  %vm5956_vm7 = vweird.f32 %v6612_v35 }
0x2196   : > { %6613 = vrsqrt.f32 %v5948_v39  ;;  %vm5957_vm11 = vmor %vm5955_vm14, %vm5956_vm7  ;;  %vm5965_vm15 = vweird.f32 %v5948_v39 }
0x2197   : > { %v5951_v36 = vmul.f32 %v6612_v35, %v5950_v55 }
0x2199   : > { %v5952_v21 = vmul.f32 0.5, %v5951_v36 }
0x219b   : > { %v5953_v54 = vsub.f32 1.5, %v5952_v21 }
0x219c   : > { %v6614_v6 = vpop.eup %6613 }
0x219d   : > { %v5954_v23 = vmul.f32 %v6612_v35, %v5953_v54  ;;  %v5960_v15 = vmul.f32 %v6614_v6, %v5948_v39  ;;  %vm5966_vm8 = vweird.f32 %v6614_v6 }
0x219e   : > { %vm5967_vm9 = vmor %vm5965_vm15, %vm5966_vm8 }
0x219f   : > { %v5958_v63 = vsel %vm5957_vm11, %v6612_v35, %v5954_v23  ;;  %v5961_v44 = vmul.f32 %v6614_v6, %v5960_v15 }
0x21a0   : > { %v5969_v14 = vmul.f32 %v5958_v63, %v5935_v26 }
0x21a1   : > { %v5962_v18 = vmul.f32 0.5, %v5961_v44 }
0x21a2   : > { %v5972_v1 = vmul.f32 %v6439_v62, %v5969_v14 }
0x21a3   : > { %v5963_v16 = vsub.f32 1.5, %v5962_v18 }
0x21a4   : > { %v5975_v60 = vadd.f32 %v6440_v7, %v5972_v1 }
0x21a5   : > { %v5964_v50 = vmul.f32 %v6614_v6, %v5963_v16 }
0x21a6   : > { %5977 = vst.msk [vmem:[%s411_s2] sm:$0xff] %vm463_vm1, %v5975_v60 }
0x21a7   : > { %v5968_v19 = vsel %vm5967_vm9, %v6614_v6, %v5964_v50 }
0x21a8   : > { %v5970_v17 = vmul.f32 %v5968_v19, %v5936_v61 }
0x21aa   : > { %v5973_v9 = vmul.f32 %v6439_v62, %v5970_v17 }
0x21ac   : > { %v5976_v41 = vadd.f32 %v6440_v7, %v5973_v9 }
0x21ae   : > { %5978 = vst.msk [vmem:[%s411_s2 + $0x8] sm:$0xff] %vm463_vm1, %v5976_v41 }
0x21af   : > { %6764 = shalt.err (!%p6761_p8)
}
0x21b0   : > { %s6829_s12 = smov 128  }
0x21b1   : > { %6267 = dma.vmem_to_hbm [thread:$0]  (%p6928_p5), %s5993_s15, 256, %s5995_s14, %s5980_s21, %s6829_s12, %s6829_s12, %s11861_s25  }
0x21b2 PF: > { %p6284_p9 = scmp.ge.s32.totalorder %s6807_s20, 2  ;;  %s6009_s2 = sand.u32 1, %s6795_s17  }
0x21b3   : > { %s6010_s26 = scalar_lea.sflag [#allocation4], %s6009_s2 }
0x21b4   : > { %p6277_p10 = pnand %p6284_p9, %p6932_p6 }
0x21b6   : > { %p6278_p11 = pneg %p6277_p10 }
0x21b8   : > { %6790 = dma.done.wait (%p6278_p11), %s6010_s26, 256  }
0x21b9   : > { %6792 = vsyncadd (%p6278_p11), %s6010_s26, 4294967040  ;;  %s11881_s29 = sld [smem:[#allocation11_spill]]  ;;  %p23_p12 = scmp.ge.s32.totalorder %s6915_s23, 4  }
0x21ba   : > { %s11882_s17 = smov %s6799_s18  ;;  %s11883_s18 = smov %s6803_s19 }
0x21bb   : > { %s11885_s20 = smov %s6915_s23  ;;  %25 = sbr.rel (!%p23_p12) target bundleno = 7 (0x7), region = 120 }
0x21bf   : > { %s11884_s19 = smov %s11881_s29 }
0x21c0   :  { %6016 = vsyncpa [#allocation3], 1 }
0x21c1   :  { %6018 = vsyncpa [#allocation3 + $0x1], 1 }
0x21c2   :  { %6019 = vsyncpa [#allocation6], 1 }
0x21c3   :  { %6020 = vsyncpa [#allocation4], 1 }
0x21c4   :  { %6022 = vsyncpa [#allocation4 + $0x1], 1 }

</bundles_post_ra>
